<compile_context>
chip_gen: v6e
topology: v6e:2x2x1
jax: 0.10.0
libtpu: 0.0.40
codegen_flags: <defaults>
</compile_context>

<pallas_src>
import functools

import jax
import jax.numpy as jnp
from jax.experimental import pallas as pl
from jax.experimental.pallas import tpu as pltpu

_VMEM_LIMIT = 48 * 1024 * 1024  # <= v7x physical VMEM (64 MiB), plenty for v5e/v6e


def _round_up(x, m):
    return ((x + m - 1) // m) * m


# ----------------------------------------------------------------------------
# Pallas kernel: fused matmul + bias (+ ReLU) (+ per-column affine = BatchNorm)
# operands bf16 -> MXU, f32 accumulate + f32 epilogue
# ----------------------------------------------------------------------------
def _mm_bias_act_kernel(x_ref, w_ref, b_ref, scale_ref, shift_ref, o_ref,
                        *, relu: bool, affine: bool):
    acc = jnp.dot(x_ref[...], w_ref[...], preferred_element_type=jnp.float32)
    acc = acc + b_ref[...]                      # bias broadcasts over rows
    if relu:
        acc = jnp.maximum(acc, 0.0)
    if affine:                                  # BatchNorm (eval) AFTER ReLU
        acc = acc * scale_ref[...] + shift_ref[...]
    o_ref[...] = acc.astype(o_ref.dtype)


def fused_matmul(x, w, b, scale=None, shift=None, relu=False,
                 out_dtype=jnp.float32, tm_max=512):
    """out = [relu](x @ w + b) [* scale + shift].  x:(M,K) w:(K,N) b:(N,)."""
    M, K = x.shape
    K2, N = w.shape
    assert K == K2
    affine = scale is not None
    if scale is None:
        scale = jnp.ones((N,), jnp.float32)
        shift = jnp.zeros((N,), jnp.float32)

    tm = min(tm_max, _round_up(M, 8))
    grid = (pl.cdiv(M, tm),)

    out = pl.pallas_call(
        functools.partial(_mm_bias_act_kernel, relu=relu, affine=affine),
        out_shape=jax.ShapeDtypeStruct((M, N), out_dtype),
        grid=grid,
        in_specs=[
            pl.BlockSpec((tm, K), lambda i: (i, 0)),   # x tile (bf16)
            pl.BlockSpec((K, N), lambda i: (0, 0)),    # full weight (bf16)
            pl.BlockSpec((1, N), lambda i: (0, 0)),    # bias (f32)
            pl.BlockSpec((1, N), lambda i: (0, 0)),    # bn scale (f32)
            pl.BlockSpec((1, N), lambda i: (0, 0)),    # bn shift (f32)
        ],
        out_specs=pl.BlockSpec((tm, N), lambda i: (i, 0)),
        compiler_params=pltpu.CompilerParams(
            dimension_semantics=("parallel",),
            vmem_limit_bytes=_VMEM_LIMIT,
        ),
    )(x.astype(jnp.bfloat16), w.astype(jnp.bfloat16),
      b.reshape(1, N).astype(jnp.float32),
      scale.reshape(1, N).astype(jnp.float32),
      shift.reshape(1, N).astype(jnp.float32))
    return out


# ----------------------------------------------------------------------------
# Pallas kernel: fused FC head  fc1 -> ReLU -> fc2 -> ReLU -> fc3 (N=1)
# ----------------------------------------------------------------------------
def _fc_head_kernel(x_ref, w1_ref, b1_ref, w2_ref, b2_ref, w3_ref, b3_ref,
                    o_ref):
    h = jnp.dot(x_ref[...], w1_ref[...], preferred_element_type=jnp.float32)
    h = jnp.maximum(h + b1_ref[...], 0.0)
    h = jnp.dot(h.astype(jnp.bfloat16), w2_ref[...],
                preferred_element_type=jnp.float32)
    h = jnp.maximum(h + b2_ref[...], 0.0)
    # fc3 has a single output column: VPU multiply + cross-lane reduce instead
    # of a degenerate (N=1) MXU matmul.
    v = jnp.sum(h * w3_ref[...], axis=-1, keepdims=True) + b3_ref[...]
    o_ref[...] = v.astype(o_ref.dtype)


def fc_head(x, w1, b1, w2, b2, w3, b3, tm_max=512):
    """x:(M,K1) bf16 -> (M,1) f32, all three linears in one pallas_call."""
    M, K1 = x.shape
    H1 = w1.shape[1]
    H2 = w2.shape[1]
    tm = min(tm_max, _round_up(M, 8))
    grid = (pl.cdiv(M, tm),)

    out = pl.pallas_call(
        _fc_head_kernel,
        out_shape=jax.ShapeDtypeStruct((M, 1), jnp.float32),
        grid=grid,
        in_specs=[
            pl.BlockSpec((tm, K1), lambda i: (i, 0)),   # activations (bf16)
            pl.BlockSpec((K1, H1), lambda i: (0, 0)),   # fc1 weight (bf16)
            pl.BlockSpec((1, H1), lambda i: (0, 0)),    # fc1 bias (f32)
            pl.BlockSpec((H1, H2), lambda i: (0, 0)),   # fc2 weight (bf16)
            pl.BlockSpec((1, H2), lambda i: (0, 0)),    # fc2 bias (f32)
            pl.BlockSpec((1, H2), lambda i: (0, 0)),    # fc3 weight row (f32)
            pl.BlockSpec((1, 1), lambda i: (0, 0)),     # fc3 bias (f32)
        ],
        out_specs=pl.BlockSpec((tm, 1), lambda i: (i, 0)),
        compiler_params=pltpu.CompilerParams(
            dimension_semantics=("parallel",),
            vmem_limit_bytes=_VMEM_LIMIT,
        ),
    )(x.astype(jnp.bfloat16), w1.astype(jnp.bfloat16),
      b1.reshape(1, H1).astype(jnp.float32),
      w2.astype(jnp.bfloat16),
      b2.reshape(1, H2).astype(jnp.float32),
      w3.reshape(1, H2).astype(jnp.float32),
      b3.reshape(1, 1).astype(jnp.float32))
    return out


# ----------------------------------------------------------------------------
# Plain-JAX glue: NHWC im2col (no transposes), adaptive average pooling
# ----------------------------------------------------------------------------
def im2col_nhwc(x, kh, kw, stride, pad):
    """x: (B, H, W, C) -> (B*OH*OW, kh*kw*C) patch rows ordered [ki, kj, ci]."""
    B, H, W, C = x.shape
    OH = (H + 2 * pad - kh) // stride + 1
    OW = (W + 2 * pad - kw) // stride + 1
    xp = jnp.pad(x, ((0, 0), (pad, pad), (pad, pad), (0, 0)))
    cols = []
    for i in range(kh):
        for j in range(kw):
            sl = xp[:,
                    i: i + stride * (OH - 1) + 1: stride,
                    j: j + stride * (OW - 1) + 1: stride,
                    :]                              # (B, OH, OW, C)
            cols.append(sl)
    p = jnp.stack(cols, axis=3)                     # (B, OH, OW, kh*kw, C)
    return p.reshape(B * OH * OW, kh * kw * C), OH, OW


def _pool_matrix(in_size, out_size):
    """Rows are PyTorch AdaptiveAvgPool bins (works for up- and down-sampling)."""
    rows = []
    for i in range(out_size):
        s = (i * in_size) // out_size
        e = -(-((i + 1) * in_size) // out_size)
        rows.append(jnp.zeros((in_size,), jnp.float32).at[s:e].set(1.0 / (e - s)))
    return jnp.stack(rows)                          # (out, in)


def adaptive_avg_pool_nhwc(x, out_hw):
    """x: (B, H, W, C) -> (B, oh, ow, C) f32, AdaptiveAvgPool2d semantics."""
    B, H, W, C = x.shape
    oh, ow = out_hw
    ph = _pool_matrix(H, oh)
    pw = _pool_matrix(W, ow)
    y = jnp.einsum('ih,bhwc->biwc', ph, x.astype(jnp.float32))
    y = jnp.einsum('jw,biwc->bijc', pw, y)
    return y


# ----------------------------------------------------------------------------
# ValueNetwork parameters (deterministic synthetic init, PyTorch-compatible)
# ----------------------------------------------------------------------------
def init_params(key, input_channels=4, hidden_dim=512):
    keys = jax.random.split(key, 7)

    def conv_w(k, cout, cin, kh, kw):
        # kaiming_normal_ fan_out, relu: std = sqrt(2 / (cout * kh * kw));
        # PyTorch layout (cout, cin, kh, kw) -> matmul-ready (kh, kw, cin, cout).
        std = (2.0 / (cout * kh * kw)) ** 0.5
        w = jax.random.normal(k, (cout, cin, kh, kw), jnp.float32) * std
        return w.transpose(2, 3, 1, 0).astype(jnp.bfloat16)

    def lin_w(k, fin, fout):
        # kaiming_normal_ fan_in, relu: std = sqrt(2 / fin); stored as (in, out).
        std = (2.0 / fin) ** 0.5
        return (jax.random.normal(k, (fin, fout), jnp.float32) * std
                ).astype(jnp.bfloat16)

    eps = 1e-5
    bn_scale = lambda c: jnp.full((c,), 1.0 / (1.0 + eps) ** 0.5, jnp.float32)
    bn_shift = lambda c: jnp.zeros((c,), jnp.float32)

    return {
        "conv1_w": conv_w(keys[0], 32, input_channels, 8, 8),
        "conv1_b": jnp.zeros((32,), jnp.float32),
        "bn1_scale": bn_scale(32), "bn1_shift": bn_shift(32),
        "conv2_w": conv_w(keys[1], 64, 32, 4, 4),
        "conv2_b": jnp.zeros((64,), jnp.float32),
        "bn2_scale": bn_scale(64), "bn2_shift": bn_shift(64),
        "conv3_w": conv_w(keys[2], 128, 64, 3, 3),
        "conv3_b": jnp.zeros((128,), jnp.float32),
        "bn3_scale": bn_scale(128), "bn3_shift": bn_shift(128),
        "conv4_w": conv_w(keys[3], 256, 128, 3, 3),
        "conv4_b": jnp.zeros((256,), jnp.float32),
        "bn4_scale": bn_scale(256), "bn4_shift": bn_shift(256),
        "fc1_w": lin_w(keys[4], 256 * 4 * 4, hidden_dim),
        "fc1_b": jnp.zeros((hidden_dim,), jnp.float32),
        "fc2_w": lin_w(keys[5], hidden_dim, hidden_dim // 2),
        "fc2_b": jnp.zeros((hidden_dim // 2,), jnp.float32),
        "fc3_w": lin_w(keys[6], hidden_dim // 2, 1),
        "fc3_b": jnp.zeros((1,), jnp.float32),
    }


def conv_relu_bn(x_nhwc, w, b, stride, pad, bn_scale, bn_shift):
    """Conv2d -> ReLU -> BatchNorm2d (eval) via NHWC im2col + fused Pallas matmul."""
    B = x_nhwc.shape[0]
    kh, kw, cin, cout = w.shape
    patches, OH, OW = im2col_nhwc(x_nhwc, kh, kw, stride, pad)
    w_mat = w.reshape(kh * kw * cin, cout)
    y = fused_matmul(patches, w_mat, b, scale=bn_scale, shift=bn_shift,
                     relu=True, out_dtype=jnp.bfloat16)
    return y.reshape(B, OH, OW, cout)              # already NHWC, no transpose


def value_network_forward(params, x_nhwc):
    """x_nhwc: (B, H, W, C) float32  ->  (B, 1) state values (float32)."""
    if x_nhwc.ndim == 3:
        x_nhwc = x_nhwc[None]
    x = x_nhwc.astype(jnp.bfloat16)                # NHWC activations end-to-end

    x = conv_relu_bn(x, params["conv1_w"], params["conv1_b"], 4, 2,
                     params["bn1_scale"], params["bn1_shift"])
    x = conv_relu_bn(x, params["conv2_w"], params["conv2_b"], 2, 1,
                     params["bn2_scale"], params["bn2_shift"])
    x = conv_relu_bn(x, params["conv3_w"], params["conv3_b"], 2, 1,
                     params["bn3_scale"], params["bn3_shift"])
    x = conv_relu_bn(x, params["conv4_w"], params["conv4_b"], 2, 1,
                     params["bn4_scale"], params["bn4_shift"])

    x = adaptive_avg_pool_nhwc(x, (4, 4))          # (B, 4, 4, 256) f32
    B = x.shape[0]
    # Match PyTorch flatten order (C, H, W); tiny tensor, negligible cost.
    x = jnp.transpose(x, (0, 3, 1, 2)).reshape(B, -1)   # (B, 4096)

    # Dropout(0.3) is eval-mode identity.  fc1/fc2/fc3 fused in one kernel.
    value = fc_head(x, params["fc1_w"], params["fc1_b"],
                    params["fc2_w"], params["fc2_b"],
                    params["fc3_w"], params["fc3_b"])
    return value                                   # (B, 1)


if __name__ == "__main__":
    key = jax.random.PRNGKey(0)
    k_param, k_x = jax.random.split(key)
    params = init_params(k_param, input_channels=4, hidden_dim=512)

    # NHWC input (the PyTorch forward permutes NHWC -> NCHW internally);
    # 64x64 spatial keeps the demo small (real use is 480x640).
    x = jax.random.normal(k_x, (2, 64, 64, 4), dtype=jnp.float32)

    fwd = jax.jit(value_network_forward)
    value = fwd(params, x)
    value = jax.block_until_ready(value)
    assert value.shape == (2, 1), value.shape
    assert bool(jnp.all(jnp.isfinite(value)))
    print("KERNEL_OK")
</pallas_src>

<mosaic_0001>
module attributes {stable_mosaic.version = 11 : i64} {
  func.func @_mm_bias_act_kernel(%arg0: i32, %arg1: memref<512x256xbf16, #tpu.memory_space<vmem>>, %arg2: memref<256x32xbf16, #tpu.memory_space<vmem>>, %arg3: memref<1x32xf32, #tpu.memory_space<vmem>>, %arg4: memref<1x32xf32, #tpu.memory_space<vmem>>, %arg5: memref<1x32xf32, #tpu.memory_space<vmem>>, %arg6: memref<512x32xbf16, #tpu.memory_space<vmem>>) attributes {dimension_semantics = [#tpu.dimension_semantics<parallel>], iteration_bounds = array<i64: 1>, scalar_prefetch = 0 : i64, scratch_operands = 0 : i64, tpu.core_type = #tpu.core_type<tc>, window_params = [{transform_indices = @transform_0, window_bounds = array<i64: 512, 256>}, {pipeline_mode = #tpu.pipeline_mode<synchronous>, transform_indices = @transform_1, window_bounds = array<i64: 256, 32>}, {pipeline_mode = #tpu.pipeline_mode<synchronous>, transform_indices = @transform_2, window_bounds = array<i64: 1, 32>}, {pipeline_mode = #tpu.pipeline_mode<synchronous>, transform_indices = @transform_3, window_bounds = array<i64: 1, 32>}, {pipeline_mode = #tpu.pipeline_mode<synchronous>, transform_indices = @transform_4, window_bounds = array<i64: 1, 32>}, {transform_indices = @transform_5, window_bounds = array<i64: 512, 32>}]} {
    %c0 = arith.constant 0 : index
    %c0_0 = arith.constant 0 : index
    %0 = vector.load %arg1[%c0, %c0_0] : memref<512x256xbf16, #tpu.memory_space<vmem>>, vector<512x256xbf16>
    %c0_1 = arith.constant 0 : index
    %c0_2 = arith.constant 0 : index
    %1 = vector.load %arg2[%c0_1, %c0_2] : memref<256x32xbf16, #tpu.memory_space<vmem>>, vector<256x32xbf16>
    %cst = arith.constant dense<0.000000e+00> : vector<512x32xf32>
    %2 = tpu.matmul %0, %1, %cst {dimension_numbers = #tpu.dot_dimension_numbers<[1], [0], [0], [1], [0, 0, 1, 1], [], []>} : vector<512x256xbf16>, vector<256x32xbf16>, vector<512x32xf32> -> vector<512x32xf32>
    %c0_3 = arith.constant 0 : index
    %c0_4 = arith.constant 0 : index
    %3 = vector.load %arg3[%c0_3, %c0_4] : memref<1x32xf32, #tpu.memory_space<vmem>>, vector<1x32xf32>
    %4 = vector.broadcast %3 : vector<1x32xf32> to vector<512x32xf32>
    %5 = arith.addf %2, %4 : vector<512x32xf32>
    %cst_5 = arith.constant 0.000000e+00 : f32
    %6 = vector.broadcast %cst_5 : f32 to vector<512x32xf32>
    %7 = arith.maximumf %5, %6 : vector<512x32xf32>
    %c0_6 = arith.constant 0 : index
    %c0_7 = arith.constant 0 : index
    %8 = vector.load %arg4[%c0_6, %c0_7] : memref<1x32xf32, #tpu.memory_space<vmem>>, vector<1x32xf32>
    %9 = vector.broadcast %8 : vector<1x32xf32> to vector<512x32xf32>
    %10 = arith.mulf %7, %9 : vector<512x32xf32>
    %c0_8 = arith.constant 0 : index
    %c0_9 = arith.constant 0 : index
    %11 = vector.load %arg5[%c0_8, %c0_9] : memref<1x32xf32, #tpu.memory_space<vmem>>, vector<1x32xf32>
    %12 = vector.broadcast %11 : vector<1x32xf32> to vector<512x32xf32>
    %13 = arith.addf %10, %12 : vector<512x32xf32>
    %14 = arith.truncf %13 : vector<512x32xf32> to vector<512x32xbf16>
    %c0_10 = arith.constant 0 : index
    %c0_11 = arith.constant 0 : index
    %15 = vector.load %arg6[%c0_10, %c0_11] : memref<512x32xbf16, #tpu.memory_space<vmem>>, vector<512x32xbf16>
    tpu.vector_store %arg6[%c0_10, %c0_11], %14 {strides = array<i32>} : memref<512x32xbf16, #tpu.memory_space<vmem>>, vector<512x32xbf16>,
    return
  }
  func.func @transform_0(%arg0: i32) -> (i32, i32) {
    %c0_i32 = arith.constant 0 : i32
    %c0_i32_0 = arith.constant 0 : i32
    return %arg0, %c0_i32 : i32, i32
  }
  func.func @transform_1(%arg0: i32) -> (i32, i32) {
    %c0_i32 = arith.constant 0 : i32
    %c0_i32_0 = arith.constant 0 : i32
    %c0_i32_1 = arith.constant 0 : i32
    return %c0_i32, %c0_i32_0 : i32, i32
  }
  func.func @transform_2(%arg0: i32) -> (i32, i32) {
    %c0_i32 = arith.constant 0 : i32
    %c0_i32_0 = arith.constant 0 : i32
    %c0_i32_1 = arith.constant 0 : i32
    return %c0_i32, %c0_i32_0 : i32, i32
  }
  func.func @transform_3(%arg0: i32) -> (i32, i32) {
    %c0_i32 = arith.constant 0 : i32
    %c0_i32_0 = arith.constant 0 : i32
    %c0_i32_1 = arith.constant 0 : i32
    return %c0_i32, %c0_i32_0 : i32, i32
  }
  func.func @transform_4(%arg0: i32) -> (i32, i32) {
    %c0_i32 = arith.constant 0 : i32
    %c0_i32_0 = arith.constant 0 : i32
    %c0_i32_1 = arith.constant 0 : i32
    return %c0_i32, %c0_i32_0 : i32, i32
  }
  func.func @transform_5(%arg0: i32) -> (i32, i32) {
    %c0_i32 = arith.constant 0 : i32
    %c0_i32_0 = arith.constant 0 : i32
    return %arg0, %c0_i32 : i32, i32
  }
}

module attributes {stable_mosaic.version = 11 : i64} {
  func.func @_mm_bias_act_kernel(%arg0: i32, %arg1: memref<128x512xbf16, #tpu.memory_space<vmem>>, %arg2: memref<512x64xbf16, #tpu.memory_space<vmem>>, %arg3: memref<1x64xf32, #tpu.memory_space<vmem>>, %arg4: memref<1x64xf32, #tpu.memory_space<vmem>>, %arg5: memref<1x64xf32, #tpu.memory_space<vmem>>, %arg6: memref<128x64xbf16, #tpu.memory_space<vmem>>) attributes {dimension_semantics = [#tpu.dimension_semantics<parallel>], iteration_bounds = array<i64: 1>, scalar_prefetch = 0 : i64, scratch_operands = 0 : i64, tpu.core_type = #tpu.core_type<tc>, window_params = [{transform_indices = @transform_0, window_bounds = array<i64: 128, 512>}, {pipeline_mode = #tpu.pipeline_mode<synchronous>, transform_indices = @transform_1, window_bounds = array<i64: 512, 64>}, {pipeline_mode = #tpu.pipeline_mode<synchronous>, transform_indices = @transform_2, window_bounds = array<i64: 1, 64>}, {pipeline_mode = #tpu.pipeline_mode<synchronous>, transform_indices = @transform_3, window_bounds = array<i64: 1, 64>}, {pipeline_mode = #tpu.pipeline_mode<synchronous>, transform_indices = @transform_4, window_bounds = array<i64: 1, 64>}, {transform_indices = @transform_5, window_bounds = array<i64: 128, 64>}]} {
    %c0 = arith.constant 0 : index
    %c0_0 = arith.constant 0 : index
    %0 = vector.load %arg1[%c0, %c0_0] : memref<128x512xbf16, #tpu.memory_space<vmem>>, vector<128x512xbf16>
    %c0_1 = arith.constant 0 : index
    %c0_2 = arith.constant 0 : index
    %1 = vector.load %arg2[%c0_1, %c0_2] : memref<512x64xbf16, #tpu.memory_space<vmem>>, vector<512x64xbf16>
    %cst = arith.constant dense<0.000000e+00> : vector<128x64xf32>
    %2 = tpu.matmul %0, %1, %cst {dimension_numbers = #tpu.dot_dimension_numbers<[1], [0], [0], [1], [0, 0, 1, 1], [], []>} : vector<128x512xbf16>, vector<512x64xbf16>, vector<128x64xf32> -> vector<128x64xf32>
    %c0_3 = arith.constant 0 : index
    %c0_4 = arith.constant 0 : index
    %3 = vector.load %arg3[%c0_3, %c0_4] : memref<1x64xf32, #tpu.memory_space<vmem>>, vector<1x64xf32>
    %4 = vector.broadcast %3 : vector<1x64xf32> to vector<128x64xf32>
    %5 = arith.addf %2, %4 : vector<128x64xf32>
    %cst_5 = arith.constant 0.000000e+00 : f32
    %6 = vector.broadcast %cst_5 : f32 to vector<128x64xf32>
    %7 = arith.maximumf %5, %6 : vector<128x64xf32>
    %c0_6 = arith.constant 0 : index
    %c0_7 = arith.constant 0 : index
    %8 = vector.load %arg4[%c0_6, %c0_7] : memref<1x64xf32, #tpu.memory_space<vmem>>, vector<1x64xf32>
    %9 = vector.broadcast %8 : vector<1x64xf32> to vector<128x64xf32>
    %10 = arith.mulf %7, %9 : vector<128x64xf32>
    %c0_8 = arith.constant 0 : index
    %c0_9 = arith.constant 0 : index
    %11 = vector.load %arg5[%c0_8, %c0_9] : memref<1x64xf32, #tpu.memory_space<vmem>>, vector<1x64xf32>
    %12 = vector.broadcast %11 : vector<1x64xf32> to vector<128x64xf32>
    %13 = arith.addf %10, %12 : vector<128x64xf32>
    %14 = arith.truncf %13 : vector<128x64xf32> to vector<128x64xbf16>
    %c0_10 = arith.constant 0 : index
    %c0_11 = arith.constant 0 : index
    %15 = vector.load %arg6[%c0_10, %c0_11] : memref<128x64xbf16, #tpu.memory_space<vmem>>, vector<128x64xbf16>
    tpu.vector_store %arg6[%c0_10, %c0_11], %14 {strides = array<i32>} : memref<128x64xbf16, #tpu.memory_space<vmem>>, vector<128x64xbf16>,
    return
  }
  func.func @transform_0(%arg0: i32) -> (i32, i32) {
    %c0_i32 = arith.constant 0 : i32
    %c0_i32_0 = arith.constant 0 : i32
    return %arg0, %c0_i32 : i32, i32
  }
  func.func @transform_1(%arg0: i32) -> (i32, i32) {
    %c0_i32 = arith.constant 0 : i32
    %c0_i32_0 = arith.constant 0 : i32
    %c0_i32_1 = arith.constant 0 : i32
    return %c0_i32, %c0_i32_0 : i32, i32
  }
  func.func @transform_2(%arg0: i32) -> (i32, i32) {
    %c0_i32 = arith.constant 0 : i32
    %c0_i32_0 = arith.constant 0 : i32
    %c0_i32_1 = arith.constant 0 : i32
    return %c0_i32, %c0_i32_0 : i32, i32
  }
  func.func @transform_3(%arg0: i32) -> (i32, i32) {
    %c0_i32 = arith.constant 0 : i32
    %c0_i32_0 = arith.constant 0 : i32
    %c0_i32_1 = arith.constant 0 : i32
    return %c0_i32, %c0_i32_0 : i32, i32
  }
  func.func @transform_4(%arg0: i32) -> (i32, i32) {
    %c0_i32 = arith.constant 0 : i32
    %c0_i32_0 = arith.constant 0 : i32
    %c0_i32_1 = arith.constant 0 : i32
    return %c0_i32, %c0_i32_0 : i32, i32
  }
  func.func @transform_5(%arg0: i32) -> (i32, i32) {
    %c0_i32 = arith.constant 0 : i32
    %c0_i32_0 = arith.constant 0 : i32
    return %arg0, %c0_i32 : i32, i32
  }
}

module attributes {stable_mosaic.version = 11 : i64} {
  func.func @_mm_bias_act_kernel(%arg0: i32, %arg1: memref<32x576xbf16, #tpu.memory_space<vmem>>, %arg2: memref<576x128xbf16, #tpu.memory_space<vmem>>, %arg3: memref<1x128xf32, #tpu.memory_space<vmem>>, %arg4: memref<1x128xf32, #tpu.memory_space<vmem>>, %arg5: memref<1x128xf32, #tpu.memory_space<vmem>>, %arg6: memref<32x128xbf16, #tpu.memory_space<vmem>>) attributes {dimension_semantics = [#tpu.dimension_semantics<parallel>], iteration_bounds = array<i64: 1>, scalar_prefetch = 0 : i64, scratch_operands = 0 : i64, tpu.core_type = #tpu.core_type<tc>, window_params = [{transform_indices = @transform_0, window_bounds = array<i64: 32, 576>}, {pipeline_mode = #tpu.pipeline_mode<synchronous>, transform_indices = @transform_1, window_bounds = array<i64: 576, 128>}, {pipeline_mode = #tpu.pipeline_mode<synchronous>, transform_indices = @transform_2, window_bounds = array<i64: 1, 128>}, {pipeline_mode = #tpu.pipeline_mode<synchronous>, transform_indices = @transform_3, window_bounds = array<i64: 1, 128>}, {pipeline_mode = #tpu.pipeline_mode<synchronous>, transform_indices = @transform_4, window_bounds = array<i64: 1, 128>}, {transform_indices = @transform_5, window_bounds = array<i64: 32, 128>}]} {
    %c0 = arith.constant 0 : index
    %c0_0 = arith.constant 0 : index
    %0 = vector.load %arg1[%c0, %c0_0] : memref<32x576xbf16, #tpu.memory_space<vmem>>, vector<32x576xbf16>
    %c0_1 = arith.constant 0 : index
    %c0_2 = arith.constant 0 : index
    %1 = vector.load %arg2[%c0_1, %c0_2] : memref<576x128xbf16, #tpu.memory_space<vmem>>, vector<576x128xbf16>
    %cst = arith.constant dense<0.000000e+00> : vector<32x128xf32>
    %2 = tpu.matmul %0, %1, %cst {dimension_numbers = #tpu.dot_dimension_numbers<[1], [0], [0], [1], [0, 0, 1, 1], [], []>} : vector<32x576xbf16>, vector<576x128xbf16>, vector<32x128xf32> -> vector<32x128xf32>
    %c0_3 = arith.constant 0 : index
    %c0_4 = arith.constant 0 : index
    %3 = vector.load %arg3[%c0_3, %c0_4] : memref<1x128xf32, #tpu.memory_space<vmem>>, vector<1x128xf32>
    %4 = vector.broadcast %3 : vector<1x128xf32> to vector<32x128xf32>
    %5 = arith.addf %2, %4 : vector<32x128xf32>
    %cst_5 = arith.constant 0.000000e+00 : f32
    %6 = vector.broadcast %cst_5 : f32 to vector<32x128xf32>
    %7 = arith.maximumf %5, %6 : vector<32x128xf32>
    %c0_6 = arith.constant 0 : index
    %c0_7 = arith.constant 0 : index
    %8 = vector.load %arg4[%c0_6, %c0_7] : memref<1x128xf32, #tpu.memory_space<vmem>>, vector<1x128xf32>
    %9 = vector.broadcast %8 : vector<1x128xf32> to vector<32x128xf32>
    %10 = arith.mulf %7, %9 : vector<32x128xf32>
    %c0_8 = arith.constant 0 : index
    %c0_9 = arith.constant 0 : index
    %11 = vector.load %arg5[%c0_8, %c0_9] : memref<1x128xf32, #tpu.memory_space<vmem>>, vector<1x128xf32>
    %12 = vector.broadcast %11 : vector<1x128xf32> to vector<32x128xf32>
    %13 = arith.addf %10, %12 : vector<32x128xf32>
    %14 = arith.truncf %13 : vector<32x128xf32> to vector<32x128xbf16>
    %c0_10 = arith.constant 0 : index
    %c0_11 = arith.constant 0 : index
    %15 = vector.load %arg6[%c0_10, %c0_11] : memref<32x128xbf16, #tpu.memory_space<vmem>>, vector<32x128xbf16>
    tpu.vector_store %arg6[%c0_10, %c0_11], %14 {strides = array<i32>} : memref<32x128xbf16, #tpu.memory_space<vmem>>, vector<32x128xbf16>,
    return
  }
  func.func @transform_0(%arg0: i32) -> (i32, i32) {
    %c0_i32 = arith.constant 0 : i32
    %c0_i32_0 = arith.constant 0 : i32
    return %arg0, %c0_i32 : i32, i32
  }
  func.func @transform_1(%arg0: i32) -> (i32, i32) {
    %c0_i32 = arith.constant 0 : i32
    %c0_i32_0 = arith.constant 0 : i32
    %c0_i32_1 = arith.constant 0 : i32
    return %c0_i32, %c0_i32_0 : i32, i32
  }
  func.func @transform_2(%arg0: i32) -> (i32, i32) {
    %c0_i32 = arith.constant 0 : i32
    %c0_i32_0 = arith.constant 0 : i32
    %c0_i32_1 = arith.constant 0 : i32
    return %c0_i32, %c0_i32_0 : i32, i32
  }
  func.func @transform_3(%arg0: i32) -> (i32, i32) {
    %c0_i32 = arith.constant 0 : i32
    %c0_i32_0 = arith.constant 0 : i32
    %c0_i32_1 = arith.constant 0 : i32
    return %c0_i32, %c0_i32_0 : i32, i32
  }
  func.func @transform_4(%arg0: i32) -> (i32, i32) {
    %c0_i32 = arith.constant 0 : i32
    %c0_i32_0 = arith.constant 0 : i32
    %c0_i32_1 = arith.constant 0 : i32
    return %c0_i32, %c0_i32_0 : i32, i32
  }
  func.func @transform_5(%arg0: i32) -> (i32, i32) {
    %c0_i32 = arith.constant 0 : i32
    %c0_i32_0 = arith.constant 0 : i32
    return %arg0, %c0_i32 : i32, i32
  }
}

module attributes {stable_mosaic.version = 11 : i64} {
  func.func @_mm_bias_act_kernel(%arg0: i32, %arg1: memref<8x1152xbf16, #tpu.memory_space<vmem>>, %arg2: memref<1152x256xbf16, #tpu.memory_space<vmem>>, %arg3: memref<1x256xf32, #tpu.memory_space<vmem>>, %arg4: memref<1x256xf32, #tpu.memory_space<vmem>>, %arg5: memref<1x256xf32, #tpu.memory_space<vmem>>, %arg6: memref<8x256xbf16, #tpu.memory_space<vmem>>) attributes {dimension_semantics = [#tpu.dimension_semantics<parallel>], iteration_bounds = array<i64: 1>, scalar_prefetch = 0 : i64, scratch_operands = 0 : i64, tpu.core_type = #tpu.core_type<tc>, window_params = [{transform_indices = @transform_0, window_bounds = array<i64: 8, 1152>}, {pipeline_mode = #tpu.pipeline_mode<synchronous>, transform_indices = @transform_1, window_bounds = array<i64: 1152, 256>}, {pipeline_mode = #tpu.pipeline_mode<synchronous>, transform_indices = @transform_2, window_bounds = array<i64: 1, 256>}, {pipeline_mode = #tpu.pipeline_mode<synchronous>, transform_indices = @transform_3, window_bounds = array<i64: 1, 256>}, {pipeline_mode = #tpu.pipeline_mode<synchronous>, transform_indices = @transform_4, window_bounds = array<i64: 1, 256>}, {transform_indices = @transform_5, window_bounds = array<i64: 8, 256>}]} {
    %c0 = arith.constant 0 : index
    %c0_0 = arith.constant 0 : index
    %0 = vector.load %arg1[%c0, %c0_0] : memref<8x1152xbf16, #tpu.memory_space<vmem>>, vector<8x1152xbf16>
    %c0_1 = arith.constant 0 : index
    %c0_2 = arith.constant 0 : index
    %1 = vector.load %arg2[%c0_1, %c0_2] : memref<1152x256xbf16, #tpu.memory_space<vmem>>, vector<1152x256xbf16>
    %cst = arith.constant dense<0.000000e+00> : vector<8x256xf32>
    %2 = tpu.matmul %0, %1, %cst {dimension_numbers = #tpu.dot_dimension_numbers<[1], [0], [0], [1], [0, 0, 1, 1], [], []>} : vector<8x1152xbf16>, vector<1152x256xbf16>, vector<8x256xf32> -> vector<8x256xf32>
    %c0_3 = arith.constant 0 : index
    %c0_4 = arith.constant 0 : index
    %3 = vector.load %arg3[%c0_3, %c0_4] : memref<1x256xf32, #tpu.memory_space<vmem>>, vector<1x256xf32>
    %4 = vector.broadcast %3 : vector<1x256xf32> to vector<8x256xf32>
    %5 = arith.addf %2, %4 : vector<8x256xf32>
    %cst_5 = arith.constant 0.000000e+00 : f32
    %6 = vector.broadcast %cst_5 : f32 to vector<8x256xf32>
    %7 = arith.maximumf %5, %6 : vector<8x256xf32>
    %c0_6 = arith.constant 0 : index
    %c0_7 = arith.constant 0 : index
    %8 = vector.load %arg4[%c0_6, %c0_7] : memref<1x256xf32, #tpu.memory_space<vmem>>, vector<1x256xf32>
    %9 = vector.broadcast %8 : vector<1x256xf32> to vector<8x256xf32>
    %10 = arith.mulf %7, %9 : vector<8x256xf32>
    %c0_8 = arith.constant 0 : index
    %c0_9 = arith.constant 0 : index
    %11 = vector.load %arg5[%c0_8, %c0_9] : memref<1x256xf32, #tpu.memory_space<vmem>>, vector<1x256xf32>
    %12 = vector.broadcast %11 : vector<1x256xf32> to vector<8x256xf32>
    %13 = arith.addf %10, %12 : vector<8x256xf32>
    %14 = arith.truncf %13 : vector<8x256xf32> to vector<8x256xbf16>
    %c0_10 = arith.constant 0 : index
    %c0_11 = arith.constant 0 : index
    %15 = vector.load %arg6[%c0_10, %c0_11] : memref<8x256xbf16, #tpu.memory_space<vmem>>, vector<8x256xbf16>
    tpu.vector_store %arg6[%c0_10, %c0_11], %14 {strides = array<i32>} : memref<8x256xbf16, #tpu.memory_space<vmem>>, vector<8x256xbf16>,
    return
  }
  func.func @transform_0(%arg0: i32) -> (i32, i32) {
    %c0_i32 = arith.constant 0 : i32
    %c0_i32_0 = arith.constant 0 : i32
    return %arg0, %c0_i32 : i32, i32
  }
  func.func @transform_1(%arg0: i32) -> (i32, i32) {
    %c0_i32 = arith.constant 0 : i32
    %c0_i32_0 = arith.constant 0 : i32
    %c0_i32_1 = arith.constant 0 : i32
    return %c0_i32, %c0_i32_0 : i32, i32
  }
  func.func @transform_2(%arg0: i32) -> (i32, i32) {
    %c0_i32 = arith.constant 0 : i32
    %c0_i32_0 = arith.constant 0 : i32
    %c0_i32_1 = arith.constant 0 : i32
    return %c0_i32, %c0_i32_0 : i32, i32
  }
  func.func @transform_3(%arg0: i32) -> (i32, i32) {
    %c0_i32 = arith.constant 0 : i32
    %c0_i32_0 = arith.constant 0 : i32
    %c0_i32_1 = arith.constant 0 : i32
    return %c0_i32, %c0_i32_0 : i32, i32
  }
  func.func @transform_4(%arg0: i32) -> (i32, i32) {
    %c0_i32 = arith.constant 0 : i32
    %c0_i32_0 = arith.constant 0 : i32
    %c0_i32_1 = arith.constant 0 : i32
    return %c0_i32, %c0_i32_0 : i32, i32
  }
  func.func @transform_5(%arg0: i32) -> (i32, i32) {
    %c0_i32 = arith.constant 0 : i32
    %c0_i32_0 = arith.constant 0 : i32
    return %arg0, %c0_i32 : i32, i32
  }
}

module attributes {stable_mosaic.version = 11 : i64} {
  func.func @_fc_head_kernel(%arg0: i32, %arg1: memref<8x4096xbf16, #tpu.memory_space<vmem>>, %arg2: memref<4096x512xbf16, #tpu.memory_space<vmem>>, %arg3: memref<1x512xf32, #tpu.memory_space<vmem>>, %arg4: memref<512x256xbf16, #tpu.memory_space<vmem>>, %arg5: memref<1x256xf32, #tpu.memory_space<vmem>>, %arg6: memref<1x256xf32, #tpu.memory_space<vmem>>, %arg7: memref<1x1xf32, #tpu.memory_space<vmem>>, %arg8: memref<8x1xf32, #tpu.memory_space<vmem>>) attributes {dimension_semantics = [#tpu.dimension_semantics<parallel>], iteration_bounds = array<i64: 1>, scalar_prefetch = 0 : i64, scratch_operands = 0 : i64, tpu.core_type = #tpu.core_type<tc>, window_params = [{transform_indices = @transform_0, window_bounds = array<i64: 8, 4096>}, {pipeline_mode = #tpu.pipeline_mode<synchronous>, transform_indices = @transform_1, window_bounds = array<i64: 4096, 512>}, {pipeline_mode = #tpu.pipeline_mode<synchronous>, transform_indices = @transform_2, window_bounds = array<i64: 1, 512>}, {pipeline_mode = #tpu.pipeline_mode<synchronous>, transform_indices = @transform_3, window_bounds = array<i64: 512, 256>}, {pipeline_mode = #tpu.pipeline_mode<synchronous>, transform_indices = @transform_4, window_bounds = array<i64: 1, 256>}, {pipeline_mode = #tpu.pipeline_mode<synchronous>, transform_indices = @transform_5, window_bounds = array<i64: 1, 256>}, {pipeline_mode = #tpu.pipeline_mode<synchronous>, transform_indices = @transform_6, window_bounds = array<i64: 1, 1>}, {transform_indices = @transform_7, window_bounds = array<i64: 8, 1>}]} {
    %c0 = arith.constant 0 : index
    %c0_0 = arith.constant 0 : index
    %0 = vector.load %arg1[%c0, %c0_0] : memref<8x4096xbf16, #tpu.memory_space<vmem>>, vector<8x4096xbf16>
    %c0_1 = arith.constant 0 : index
    %c0_2 = arith.constant 0 : index
    %1 = vector.load %arg2[%c0_1, %c0_2] : memref<4096x512xbf16, #tpu.memory_space<vmem>>, vector<4096x512xbf16>
    %cst = arith.constant dense<0.000000e+00> : vector<8x512xf32>
    %2 = tpu.matmul %0, %1, %cst {dimension_numbers = #tpu.dot_dimension_numbers<[1], [0], [0], [1], [0, 0, 1, 1], [], []>} : vector<8x4096xbf16>, vector<4096x512xbf16>, vector<8x512xf32> -> vector<8x512xf32>
    %c0_3 = arith.constant 0 : index
    %c0_4 = arith.constant 0 : index
    %3 = vector.load %arg3[%c0_3, %c0_4] : memref<1x512xf32, #tpu.memory_space<vmem>>, vector<1x512xf32>
    %4 = vector.broadcast %3 : vector<1x512xf32> to vector<8x512xf32>
    %5 = arith.addf %2, %4 : vector<8x512xf32>
    %cst_5 = arith.constant 0.000000e+00 : f32
    %6 = vector.broadcast %cst_5 : f32 to vector<8x512xf32>
    %7 = arith.maximumf %5, %6 : vector<8x512xf32>
    %8 = arith.truncf %7 : vector<8x512xf32> to vector<8x512xbf16>
    %c0_6 = arith.constant 0 : index
    %c0_7 = arith.constant 0 : index
    %9 = vector.load %arg4[%c0_6, %c0_7] : memref<512x256xbf16, #tpu.memory_space<vmem>>, vector<512x256xbf16>
    %cst_8 = arith.constant dense<0.000000e+00> : vector<8x256xf32>
    %10 = tpu.matmul %8, %9, %cst_8 {dimension_numbers = #tpu.dot_dimension_numbers<[1], [0], [0], [1], [0, 0, 1, 1], [], []>} : vector<8x512xbf16>, vector<512x256xbf16>, vector<8x256xf32> -> vector<8x256xf32>
    %c0_9 = arith.constant 0 : index
    %c0_10 = arith.constant 0 : index
    %11 = vector.load %arg5[%c0_9, %c0_10] : memref<1x256xf32, #tpu.memory_space<vmem>>, vector<1x256xf32>
    %12 = vector.broadcast %11 : vector<1x256xf32> to vector<8x256xf32>
    %13 = arith.addf %10, %12 : vector<8x256xf32>
    %cst_11 = arith.constant 0.000000e+00 : f32
    %14 = vector.broadcast %cst_11 : f32 to vector<8x256xf32>
    %15 = arith.maximumf %13, %14 : vector<8x256xf32>
    %c0_12 = arith.constant 0 : index
    %c0_13 = arith.constant 0 : index
    %16 = vector.load %arg6[%c0_12, %c0_13] : memref<1x256xf32, #tpu.memory_space<vmem>>, vector<1x256xf32>
    %17 = vector.broadcast %16 : vector<1x256xf32> to vector<8x256xf32>
    %18 = arith.mulf %15, %17 : vector<8x256xf32>
    %cst_14 = arith.constant dense<0.000000e+00> : vector<8xf32>
    %19 = vector.multi_reduction <add>, %18, %cst_14 [1] : vector<8x256xf32> to vector<8xf32>
    %20 = vector.shape_cast %19 : vector<8xf32> to vector<8x1xf32>
    %c0_15 = arith.constant 0 : index
    %c0_16 = arith.constant 0 : index
    %21 = vector.load %arg7[%c0_15, %c0_16] : memref<1x1xf32, #tpu.memory_space<vmem>>, vector<1x1xf32>
    %22 = vector.broadcast %21 : vector<1x1xf32> to vector<8x1xf32>
    %23 = arith.addf %20, %22 : vector<8x1xf32>
    %c0_17 = arith.constant 0 : index
    %c0_18 = arith.constant 0 : index
    %24 = vector.load %arg8[%c0_17, %c0_18] : memref<8x1xf32, #tpu.memory_space<vmem>>, vector<8x1xf32>
    tpu.vector_store %arg8[%c0_17, %c0_18], %23 {strides = array<i32>} : memref<8x1xf32, #tpu.memory_space<vmem>>, vector<8x1xf32>,
    return
  }
  func.func @transform_0(%arg0: i32) -> (i32, i32) {
    %c0_i32 = arith.constant 0 : i32
    %c0_i32_0 = arith.constant 0 : i32
    return %arg0, %c0_i32 : i32, i32
  }
  func.func @transform_1(%arg0: i32) -> (i32, i32) {
    %c0_i32 = arith.constant 0 : i32
    %c0_i32_0 = arith.constant 0 : i32
    %c0_i32_1 = arith.constant 0 : i32
    return %c0_i32, %c0_i32_0 : i32, i32
  }
  func.func @transform_2(%arg0: i32) -> (i32, i32) {
    %c0_i32 = arith.constant 0 : i32
    %c0_i32_0 = arith.constant 0 : i32
    %c0_i32_1 = arith.constant 0 : i32
    return %c0_i32, %c0_i32_0 : i32, i32
  }
  func.func @transform_3(%arg0: i32) -> (i32, i32) {
    %c0_i32 = arith.constant 0 : i32
    %c0_i32_0 = arith.constant 0 : i32
    %c0_i32_1 = arith.constant 0 : i32
    return %c0_i32, %c0_i32_0 : i32, i32
  }
  func.func @transform_4(%arg0: i32) -> (i32, i32) {
    %c0_i32 = arith.constant 0 : i32
    %c0_i32_0 = arith.constant 0 : i32
    %c0_i32_1 = arith.constant 0 : i32
    return %c0_i32, %c0_i32_0 : i32, i32
  }
  func.func @transform_5(%arg0: i32) -> (i32, i32) {
    %c0_i32 = arith.constant 0 : i32
    %c0_i32_0 = arith.constant 0 : i32
    %c0_i32_1 = arith.constant 0 : i32
    return %c0_i32, %c0_i32_0 : i32, i32
  }
  func.func @transform_6(%arg0: i32) -> (i32, i32) {
    %c0_i32 = arith.constant 0 : i32
    %c0_i32_0 = arith.constant 0 : i32
    %c0_i32_1 = arith.constant 0 : i32
    return %c0_i32, %c0_i32_0 : i32, i32
  }
  func.func @transform_7(%arg0: i32) -> (i32, i32) {
    %c0_i32 = arith.constant 0 : i32
    %c0_i32_0 = arith.constant 0 : i32
    return %arg0, %c0_i32 : i32, i32
  }
}

</mosaic_0001>

<bundles_post_ra>
// kernel: value_network_forward.5
= control target key start
LH: loop header
LB: loop body
LE: loop exit
PB: predicated region body
PF: predicated region fallthrough
CT: control target
= control target key end

     0   :  { %v1716_v0 = vmov 0   ;;  %vm1291_vm0 = vcmask 257024   ;;  %s2482_s1 = inlined_call_operand.vmem [shape: bf16[256,32], index: 1, kind: input, shape index: {}]   ;;  %s2483_s0 = inlined_call_operand.vmem [shape: bf16[512,256], index: 0, kind: input, shape index: {}]   ;;  %s2484_s2 = inlined_call_operand.vmem [shape: f32[1,32], index: 2, kind: input, shape index: {}]   ;;  %s2485_s3 = inlined_call_operand.vmem [shape: f32[1,32], index: 3, kind: input, shape index: {}]   ;;  %s2486_s4 = inlined_call_operand.vmem [shape: f32[1,32], index: 4, kind: input, shape index: {}]   ;;  %s2487_s5 = inlined_call_operand.vmem [shape: bf16[512,32], index: 5, kind: output, shape index: {}]  }
   0x1   :  { %540 = vmatprep.subr.bf16.mxu0 %v1716_v0  ;;  %1571 = vmatprep.subr.bf16.mxu1 %v1716_v0  ;;  %v1604_v1 = vld [vmem:[%s2482_s1 + $0x38] sm:$0xff]   ;;  %v1605_v2 = vld [vmem:[%s2482_s1 + $0x30] sm:$0xff]   ;;  %v1606_v3 = vld [vmem:[%s2482_s1 + $0x28] sm:$0xff]  }
   0x2   :  { %541 = vmatpush1.bf16.msra.mxu0 %v1604_v1  ;;  %1587 = vmatpush1.bf16.msra.mxu1 %v1604_v1  ;;  %v1607_v4 = vld [vmem:[%s2482_s1 + $0x20] sm:$0xff]   ;;  %v1608_v5 = vld [vmem:[%s2482_s1 + $0x18] sm:$0xff]   ;;  %v1609_v7 = vld [vmem:[%s2482_s1 + $0x10] sm:$0xff]  }
   0x3   :  { %542 = vmatprep.subr.bf16.mxu0 %v1716_v0  ;;  %1572 = vmatprep.subr.bf16.mxu1 %v1716_v0  ;;  %v1622_v6 = vld [vmem:[%s2483_s0 + $0x4] ss:$8 sps:$4 sm:$0xff]   ;;  %v1612_v11 = vld [vmem:[%s2482_s1 + $0x78] sm:$0xff]   ;;  %v1613_v12 = vld [vmem:[%s2482_s1 + $0x70] sm:$0xff]  }
   0x4   :  { %v1625_v8 = vld [vmem:[%s2483_s0 + $0x104] ss:$8 sps:$4 sm:$0xff]   ;;  %572 = vmatprep.mubr.bf16.mxu0 %v1622_v6  ;;  %v1616_v15 = vld [vmem:[%s2482_s1 + $0x58] sm:$0xff]   ;;  %v1617_v16 = vld [vmem:[%s2482_s1 + $0x50] sm:$0xff]  }
   0x5   :  { %700 = vmatprep.mubr.bf16.mxu1 %v1625_v8  ;;  %v1610_v9 = vld [vmem:[%s2482_s1 + $0x8] sm:$0xff]   ;;  %v1611_v10 = vld [vmem:[%s2482_s1] sm:$0xff]   ;;  %v1626_v21 = vld [vmem:[%s2483_s0 + $0x14] ss:$8 sps:$4 sm:$0xff]  }
   0x6   :  { %543 = vmatpush1.bf16.msra.mxu0 %v1605_v2  ;;  %1588 = vmatpush1.bf16.msra.mxu1 %v1605_v2  ;;  %v1614_v13 = vld [vmem:[%s2482_s1 + $0x68] sm:$0xff]   ;;  %v1615_v14 = vld [vmem:[%s2482_s1 + $0x60] sm:$0xff]   ;;  %v1628_v22 = vld [vmem:[%s2483_s0 + $0x114] ss:$8 sps:$4 sm:$0xff]  }
   0x7   :  { %544 = vmatprep.subr.bf16.mxu0 %v1716_v0  ;;  %1573 = vmatprep.subr.bf16.mxu1 %v1716_v0  ;;  %v1618_v17 = vld [vmem:[%s2482_s1 + $0x48] sm:$0xff]   ;;  %v1619_v18 = vld [vmem:[%s2482_s1 + $0x40] sm:$0xff]   ;;  %v1630_v23 = vld [vmem:[%s2483_s0 + $0x10] ss:$8 sps:$4 sm:$0xff]  }
   0x8   :  { %v1620_v19 = vld [vmem:[%s2483_s0] ss:$8 sps:$4 sm:$0xff]   ;;  %v1631_v24 = vld [vmem:[%s2483_s0 + $0x110] ss:$8 sps:$4 sm:$0xff]   ;;  %v1632_v25 = vld [vmem:[%s2483_s0 + $0x24] ss:$8 sps:$4 sm:$0xff]  }
   0x9   :  { %v1623_v20 = vld [vmem:[%s2483_s0 + $0x100] ss:$8 sps:$4 sm:$0xff]   ;;  %v1634_v26 = vld [vmem:[%s2483_s0 + $0x124] ss:$8 sps:$4 sm:$0xff]   ;;  %v1638_v29 = vld [vmem:[%s2483_s0 + $0x34] ss:$8 sps:$4 sm:$0xff]  }
   0xa   :  { %545 = vmatpush1.bf16.msra.mxu0 %v1606_v3  ;;  %1589 = vmatpush1.bf16.msra.mxu1 %v1606_v3  ;;  %v1636_v27 = vld [vmem:[%s2483_s0 + $0x20] ss:$8 sps:$4 sm:$0xff]   ;;  %v1640_v30 = vld [vmem:[%s2483_s0 + $0x134] ss:$8 sps:$4 sm:$0xff]   ;;  %v1642_v31 = vld [vmem:[%s2483_s0 + $0x30] ss:$8 sps:$4 sm:$0xff]  }
   0xb   :  { %546 = vmatprep.subr.bf16.mxu0 %v1716_v0  ;;  %1574 = vmatprep.subr.bf16.mxu1 %v1716_v0  ;;  %v1637_v28 = vld [vmem:[%s2483_s0 + $0x120] ss:$8 sps:$4 sm:$0xff]   ;;  %v1643_v32 = vld [vmem:[%s2483_s0 + $0x130] ss:$8 sps:$4 sm:$0xff]   ;;  %v1644_v33 = vld [vmem:[%s2483_s0 + $0x44] ss:$8 sps:$4 sm:$0xff]  }
   0xc   :  { %v1646_v34 = vld [vmem:[%s2483_s0 + $0x144] ss:$8 sps:$4 sm:$0xff]   ;;  %v1648_v35 = vld [vmem:[%s2483_s0 + $0x40] ss:$8 sps:$4 sm:$0xff]   ;;  %v1650_v37 = vld [vmem:[%s2483_s0 + $0x54] ss:$8 sps:$4 sm:$0xff]  }
   0xd   :  { %v1649_v36 = vld [vmem:[%s2483_s0 + $0x140] ss:$8 sps:$4 sm:$0xff]   ;;  %v1652_v38 = vld [vmem:[%s2483_s0 + $0x154] ss:$8 sps:$4 sm:$0xff]   ;;  %v1654_v39 = vld [vmem:[%s2483_s0 + $0x50] ss:$8 sps:$4 sm:$0xff]  }
   0xe   :  { %547 = vmatpush1.bf16.msra.mxu0 %v1607_v4  ;;  %1590 = vmatpush1.bf16.msra.mxu1 %v1607_v4  ;;  %v1655_v40 = vld [vmem:[%s2483_s0 + $0x150] ss:$8 sps:$4 sm:$0xff]   ;;  %v1656_v41 = vld [vmem:[%s2483_s0 + $0x64] ss:$8 sps:$4 sm:$0xff]   ;;  %v1660_v43 = vld [vmem:[%s2483_s0 + $0x60] ss:$8 sps:$4 sm:$0xff]  }
   0xf   :  { %548 = vmatprep.subr.bf16.mxu0 %v1716_v0  ;;  %1575 = vmatprep.subr.bf16.mxu1 %v1716_v0  ;;  %v1658_v42 = vld [vmem:[%s2483_s0 + $0x164] ss:$8 sps:$4 sm:$0xff]   ;;  %v1661_v44 = vld [vmem:[%s2483_s0 + $0x160] ss:$8 sps:$4 sm:$0xff]   ;;  %v1662_v45 = vld [vmem:[%s2483_s0 + $0x74] ss:$8 sps:$4 sm:$0xff]  }
  0x10   :  { %v1664_v46 = vld [vmem:[%s2483_s0 + $0x174] ss:$8 sps:$4 sm:$0xff]   ;;  %v1666_v47 = vld [vmem:[%s2483_s0 + $0x70] ss:$8 sps:$4 sm:$0xff]   ;;  %v1668_v49 = vld [vmem:[%s2483_s0 + $0x84] ss:$8 sps:$4 sm:$0xff]  }
  0x11   :  { %v1667_v48 = vld [vmem:[%s2483_s0 + $0x170] ss:$8 sps:$4 sm:$0xff]   ;;  %v1670_v50 = vld [vmem:[%s2483_s0 + $0x184] ss:$8 sps:$4 sm:$0xff]   ;;  %v1672_v51 = vld [vmem:[%s2483_s0 + $0x80] ss:$8 sps:$4 sm:$0xff]  }
  0x12   :  { %549 = vmatpush1.bf16.msra.mxu0 %v1608_v5  ;;  %1591 = vmatpush1.bf16.msra.mxu1 %v1608_v5  ;;  %v1673_v52 = vld [vmem:[%s2483_s0 + $0x180] ss:$8 sps:$4 sm:$0xff]   ;;  %v1674_v53 = vld [vmem:[%s2483_s0 + $0x94] ss:$8 sps:$4 sm:$0xff]   ;;  %v1678_v55 = vld [vmem:[%s2483_s0 + $0x90] ss:$8 sps:$4 sm:$0xff]  }
  0x13   :  { %550 = vmatprep.subr.bf16.mxu0 %v1716_v0  ;;  %1576 = vmatprep.subr.bf16.mxu1 %v1716_v0  ;;  %v1676_v54 = vld [vmem:[%s2483_s0 + $0x194] ss:$8 sps:$4 sm:$0xff]   ;;  %v1679_v56 = vld [vmem:[%s2483_s0 + $0x190] ss:$8 sps:$4 sm:$0xff]   ;;  %v1680_v57 = vld [vmem:[%s2483_s0 + $0xa4] ss:$8 sps:$4 sm:$0xff]  }
  0x14   :  { %v1682_v58 = vld [vmem:[%s2483_s0 + $0x1a4] ss:$8 sps:$4 sm:$0xff]   ;;  %v1684_v59 = vld [vmem:[%s2483_s0 + $0xa0] ss:$8 sps:$4 sm:$0xff]   ;;  %v1686_v61 = vld [vmem:[%s2483_s0 + $0xb4] ss:$8 sps:$4 sm:$0xff]  }
  0x15   :  { %v1685_v60 = vld [vmem:[%s2483_s0 + $0x1a0] ss:$8 sps:$4 sm:$0xff]   ;;  %v1688_v62 = vld [vmem:[%s2483_s0 + $0x1b4] ss:$8 sps:$4 sm:$0xff]   ;;  %v1690_v63 = vld [vmem:[%s2483_s0 + $0xb0] ss:$8 sps:$4 sm:$0xff]  }
  0x16   :  { %551 = vmatpush1.bf16.msra.mxu0 %v1609_v7  ;;  %1592 = vmatpush1.bf16.msra.mxu1 %v1609_v7  ;;  %v1692_v1 = vld [vmem:[%s2483_s0 + $0xc4] ss:$8 sps:$4 sm:$0xff]   ;;  %v1696_v3 = vld [vmem:[%s2483_s0 + $0xc0] ss:$8 sps:$4 sm:$0xff]   ;;  %v1698_v5 = vld [vmem:[%s2483_s0 + $0xd4] ss:$8 sps:$4 sm:$0xff]  }
  0x17   :  { %552 = vmatprep.subr.bf16.mxu0 %v1716_v0  ;;  %1577 = vmatprep.subr.bf16.mxu1 %v1716_v0  ;;  %v1694_v2 = vld [vmem:[%s2483_s0 + $0x1c4] ss:$8 sps:$4 sm:$0xff]   ;;  %v1697_v4 = vld [vmem:[%s2483_s0 + $0x1c0] ss:$8 sps:$4 sm:$0xff]   ;;  %v1700_v6 = vld [vmem:[%s2483_s0 + $0x1d4] ss:$8 sps:$4 sm:$0xff]  }
  0x18   :  { %v1702_v7 = vld [vmem:[%s2483_s0 + $0xd0] ss:$8 sps:$4 sm:$0xff]  }
  0x19   :  { %v1703_v8 = vld [vmem:[%s2483_s0 + $0x1d0] ss:$8 sps:$4 sm:$0xff]  }
  0x1a   :  { %553 = vmatpush1.bf16.msra.mxu0 %v1610_v9  ;;  %1593 = vmatpush1.bf16.msra.mxu1 %v1610_v9  ;;  %v1704_v9 = vld [vmem:[%s2483_s0 + $0xe4] ss:$8 sps:$4 sm:$0xff]  }
  0x1b   :  { %554 = vmatprep.subr.bf16.mxu0 %v1716_v0  ;;  %1578 = vmatprep.subr.bf16.mxu1 %v1716_v0 }
  0x1e   :  { %555 = vmatpush1.bf16.msra.mxu0 %v1611_v10  ;;  %1594 = vmatpush1.bf16.msra.mxu1 %v1611_v10  ;;  %v1706_v10 = vld [vmem:[%s2483_s0 + $0x1e4] ss:$8 sps:$4 sm:$0xff]  }
  0x1f   :  { %556 = vmatprep.subr.bf16.mxu0 %v1716_v0  ;;  %1579 = vmatprep.subr.bf16.mxu1 %v1716_v0 }
  0x22   :  { %557 = vmatpush2.bf16.msra.mxu0 %v1612_v11  ;;  %1595 = vmatpush2.bf16.msra.mxu1 %v1612_v11  ;;  %v1708_v11 = vld [vmem:[%s2483_s0 + $0xe0] ss:$8 sps:$4 sm:$0xff]  }
  0x23   :  { %558 = vmatprep.subr.bf16.mxu0 %v1716_v0  ;;  %1580 = vmatprep.subr.bf16.mxu1 %v1716_v0 }
  0x26   :  { %559 = vmatpush2.bf16.msra.mxu0 %v1613_v12  ;;  %1596 = vmatpush2.bf16.msra.mxu1 %v1613_v12  ;;  %v1709_v12 = vld [vmem:[%s2483_s0 + $0x1e0] ss:$8 sps:$4 sm:$0xff]  }
  0x27   :  { %560 = vmatprep.subr.bf16.mxu0 %v1716_v0  ;;  %1581 = vmatprep.subr.bf16.mxu1 %v1716_v0 }
  0x2a   :  { %561 = vmatpush2.bf16.msra.mxu0 %v1614_v13  ;;  %1597 = vmatpush2.bf16.msra.mxu1 %v1614_v13  ;;  %v1710_v13 = vld [vmem:[%s2483_s0 + $0xf4] ss:$8 sps:$4 sm:$0xff]  }
  0x2b   :  { %562 = vmatprep.subr.bf16.mxu0 %v1716_v0  ;;  %1582 = vmatprep.subr.bf16.mxu1 %v1716_v0 }
  0x2e   :  { %563 = vmatpush2.bf16.msra.mxu0 %v1615_v14  ;;  %1598 = vmatpush2.bf16.msra.mxu1 %v1615_v14  ;;  %v1712_v14 = vld [vmem:[%s2483_s0 + $0x1f4] ss:$8 sps:$4 sm:$0xff]  }
  0x2f   :  { %564 = vmatprep.subr.bf16.mxu0 %v1716_v0  ;;  %1583 = vmatprep.subr.bf16.mxu1 %v1716_v0 }
  0x32   :  { %565 = vmatpush2.bf16.msra.mxu0 %v1616_v15  ;;  %1599 = vmatpush2.bf16.msra.mxu1 %v1616_v15  ;;  %v1714_v15 = vld [vmem:[%s2483_s0 + $0xf0] ss:$8 sps:$4 sm:$0xff]  }
  0x33   :  { %566 = vmatprep.subr.bf16.mxu0 %v1716_v0  ;;  %1584 = vmatprep.subr.bf16.mxu1 %v1716_v0 }
  0x36   :  { %567 = vmatpush2.bf16.msra.mxu0 %v1617_v16  ;;  %1600 = vmatpush2.bf16.msra.mxu1 %v1617_v16  ;;  %v1715_v16 = vld [vmem:[%s2483_s0 + $0x1f0] ss:$8 sps:$4 sm:$0xff]  }
  0x37   :  { %568 = vmatprep.subr.bf16.mxu0 %v1716_v0  ;;  %1585 = vmatprep.subr.bf16.mxu1 %v1716_v0 }
  0x3a   :  { %569 = vmatpush2.bf16.msra.mxu0 %v1618_v17  ;;  %1601 = vmatpush2.bf16.msra.mxu1 %v1618_v17  ;;  %v2022_v17 = vld [vmem:[%s2484_s2] ss:$0 sm:$0xff] }
  0x3b   :  { %570 = vmatprep.subr.bf16.mxu0 %v1716_v0  ;;  %1586 = vmatprep.subr.bf16.mxu1 %v1716_v0  ;;  %v1691_v0 = vld [vmem:[%s2483_s0 + $0x1b0] ss:$8 sps:$4 sm:$0xff]  }
  0x3e   :  { %571 = vmatpush2.bf16.msra.mxu0 %v1619_v18  ;;  %1602 = vmatpush2.bf16.msra.mxu1 %v1619_v18 }
  0x41   :  { %573 = vmatmul.mubr.bf16.vlgmr.msra.gmra.mxu0 %v1620_v19  ;;  %701 = vmatmul.mubr.bf16.vlgmr.msra.gmra.mxu1 %v1623_v20 }
  0x42   :  { %580 = vmatprep.mubr.bf16.mxu0 %v1626_v21  ;;  %708 = vmatprep.mubr.bf16.mxu1 %v1628_v22  ;;  %v2029_v22 = vld [vmem:[%s2485_s3] ss:$0 sm:$0xff] }
  0x49   :  { %581 = vmatmul.mubr.bf16.gmra.mxu0 %v1630_v23  ;;  %709 = vmatmul.mubr.bf16.gmra.mxu1 %v1631_v24 }
  0x4a   :  { %588 = vmatprep.mubr.bf16.mxu0 %v1632_v25  ;;  %716 = vmatprep.mubr.bf16.mxu1 %v1634_v26 }
  0x51   :  { %589 = vmatmul.mubr.bf16.gmra.mxu0 %v1636_v27  ;;  %717 = vmatmul.mubr.bf16.gmra.mxu1 %v1637_v28  ;;  %v2034_v27 = vld [vmem:[%s2486_s4] ss:$0 sm:$0xff] }
  0x52   :  { %596 = vmatprep.mubr.bf16.mxu0 %v1638_v29  ;;  %724 = vmatprep.mubr.bf16.mxu1 %v1640_v30 }
  0x59   :  { %597 = vmatmul.mubr.bf16.gmra.mxu0 %v1642_v31  ;;  %725 = vmatmul.mubr.bf16.gmra.mxu1 %v1643_v32 }
  0x5a   :  { %604 = vmatprep.mubr.bf16.mxu0 %v1644_v33  ;;  %732 = vmatprep.mubr.bf16.mxu1 %v1646_v34 }
  0x61   :  { %605 = vmatmul.mubr.bf16.gmra.mxu0 %v1648_v35  ;;  %733 = vmatmul.mubr.bf16.gmra.mxu1 %v1649_v36 }
  0x62   :  { %612 = vmatprep.mubr.bf16.mxu0 %v1650_v37  ;;  %740 = vmatprep.mubr.bf16.mxu1 %v1652_v38 }
  0x69   :  { %613 = vmatmul.mubr.bf16.gmra.mxu0 %v1654_v39  ;;  %741 = vmatmul.mubr.bf16.gmra.mxu1 %v1655_v40 }
  0x6a   :  { %620 = vmatprep.mubr.bf16.mxu0 %v1656_v41  ;;  %748 = vmatprep.mubr.bf16.mxu1 %v1658_v42 }
  0x71   :  { %621 = vmatmul.mubr.bf16.gmra.mxu0 %v1660_v43  ;;  %749 = vmatmul.mubr.bf16.gmra.mxu1 %v1661_v44 }
  0x72   :  { %628 = vmatprep.mubr.bf16.mxu0 %v1662_v45  ;;  %756 = vmatprep.mubr.bf16.mxu1 %v1664_v46 }
  0x79   :  { %629 = vmatmul.mubr.bf16.gmra.mxu0 %v1666_v47  ;;  %757 = vmatmul.mubr.bf16.gmra.mxu1 %v1667_v48 }
  0x7a   :  { %636 = vmatprep.mubr.bf16.mxu0 %v1668_v49  ;;  %764 = vmatprep.mubr.bf16.mxu1 %v1670_v50 }
  0x81   :  { %637 = vmatmul.mubr.bf16.gmra.mxu0 %v1672_v51  ;;  %765 = vmatmul.mubr.bf16.gmra.mxu1 %v1673_v52 }
  0x82   :  { %644 = vmatprep.mubr.bf16.mxu0 %v1674_v53  ;;  %772 = vmatprep.mubr.bf16.mxu1 %v1676_v54 }
  0x89   :  { %645 = vmatmul.mubr.bf16.gmra.mxu0 %v1678_v55  ;;  %773 = vmatmul.mubr.bf16.gmra.mxu1 %v1679_v56 }
  0x8a   :  { %652 = vmatprep.mubr.bf16.mxu0 %v1680_v57  ;;  %780 = vmatprep.mubr.bf16.mxu1 %v1682_v58 }
  0x91   :  { %653 = vmatmul.mubr.bf16.gmra.mxu0 %v1684_v59  ;;  %781 = vmatmul.mubr.bf16.gmra.mxu1 %v1685_v60 }
  0x92   :  { %660 = vmatprep.mubr.bf16.mxu0 %v1686_v61  ;;  %788 = vmatprep.mubr.bf16.mxu1 %v1688_v62 }
  0x99   :  { %661 = vmatmul.mubr.bf16.gmra.mxu0 %v1690_v63  ;;  %789 = vmatmul.mubr.bf16.gmra.mxu1 %v1691_v0 }
  0x9a   :  { %668 = vmatprep.mubr.bf16.mxu0 %v1692_v1  ;;  %796 = vmatprep.mubr.bf16.mxu1 %v1694_v2 }
  0xa1   :  { %669 = vmatmul.mubr.bf16.gmra.mxu0 %v1696_v3  ;;  %797 = vmatmul.mubr.bf16.gmra.mxu1 %v1697_v4 }
  0xa2   :  { %676 = vmatprep.mubr.bf16.mxu0 %v1698_v5  ;;  %804 = vmatprep.mubr.bf16.mxu1 %v1700_v6 }
  0xa9   :  { %677 = vmatmul.mubr.bf16.gmra.mxu0 %v1702_v7  ;;  %805 = vmatmul.mubr.bf16.gmra.mxu1 %v1703_v8 }
  0xaa   :  { %684 = vmatprep.mubr.bf16.mxu0 %v1704_v9  ;;  %812 = vmatprep.mubr.bf16.mxu1 %v1706_v10 }
  0xb1   :  { %685 = vmatmul.mubr.bf16.gmra.mxu0 %v1708_v11  ;;  %813 = vmatmul.mubr.bf16.gmra.mxu1 %v1709_v12 }
  0xb2   :  { %692 = vmatprep.mubr.bf16.mxu0 %v1710_v13  ;;  %820 = vmatprep.mubr.bf16.mxu1 %v1712_v14 }
  0xb9   :  { %693 = vmatmul.mubr.bf16.gmra.mxu0 %v1714_v15  ;;  %821 = vmatmul.mubr.bf16.gmra.mxu1 %v1715_v16 }
 0x101   :  { %v574_v18 = vpop.f32.mrf.mxu0  ;;  %v702_v19 = vpop.f32.mrf.mxu1 }
 0x102   :  { %v575_v20 = vadd.f32 %v2022_v17, %v574_v18  ;;  %v703_v21 = vadd.f32 %v2022_v17, %v702_v19 }
 0x103   :  { %v576_v23 = vpop.f32.mrf.mxu0  ;;  %v704_v24 = vpop.f32.mrf.mxu1 }
 0x104   :  { %v829_v25 = vmax.f32 %v575_v20, 0.0  ;;  %v861_v26 = vmax.f32 %v703_v21, 0.0 }
 0x105   :  { %v577_v28 = vpop.f32.mrf.mxu0  ;;  %v705_v29 = vpop.f32.mrf.mxu1 }
 0x106   :  { %v900_v30 = vmul.f32 %v2029_v22, %v829_v25  ;;  %v932_v31 = vmul.f32 %v2029_v22, %v861_v26  ;;  %v578_v32 = vadd.f32 %v2022_v17, %v577_v28  ;;  %v706_v33 = vadd.f32 %v2022_v17, %v705_v29 }
 0x107   :  { %v579_v34 = vpop.f32.mrf.mxu0  ;;  %v707_v35 = vpop.f32.mrf.mxu1 }
 0x108   :  { %v971_v36 = vadd.f32 %v2034_v27, %v900_v30  ;;  %v1003_v37 = vadd.f32 %v2034_v27, %v932_v31  ;;  %v830_v38 = vmax.f32 %v578_v32, 0.0  ;;  %v862_v39 = vmax.f32 %v706_v33, 0.0 }
 0x109   :  { %v582_v40 = vpop.f32.mrf.mxu0  ;;  %v710_v41 = vpop.f32.mrf.mxu1 }
 0x10a   :  { %v1507_v42 = vpack.c.bf16 %v971_v36, %v971_v36  ;;  %v1539_v43 = vpack.c.bf16 %v1003_v37, %v1003_v37  ;;  %v901_v44 = vmul.f32 %v2029_v22, %v830_v38  ;;  %v933_v45 = vmul.f32 %v2029_v22, %v862_v39 }
 0x10b   :  { %v583_v46 = vadd.f32 %v2022_v17, %v582_v40  ;;  %v711_v47 = vadd.f32 %v2022_v17, %v710_v41  ;;  %v584_v48 = vpop.f32.mrf.mxu0  ;;  %v712_v49 = vpop.f32.mrf.mxu1 }
 0x10c   :  { %1292 = vst.msk [vmem:[%s2487_s5] sm:$0xf] %vm1291_vm0, %v1507_v42  ;;  %1324 = vst.msk [vmem:[%s2487_s5 + $0x80] sm:$0xf] %vm1291_vm0, %v1539_v43  ;;  %v972_v50 = vadd.f32 %v2034_v27, %v901_v44  ;;  %v1004_v51 = vadd.f32 %v2034_v27, %v933_v45 }
 0x10d   :  { %v831_v52 = vmax.f32 %v583_v46, 0.0  ;;  %v863_v53 = vmax.f32 %v711_v47, 0.0  ;;  %v585_v54 = vpop.f32.mrf.mxu0  ;;  %v713_v55 = vpop.f32.mrf.mxu1 }
 0x10e   :  { %v1508_v56 = vpack.c.bf16 %v972_v50, %v972_v50  ;;  %v1540_v57 = vpack.c.bf16 %v1004_v51, %v1004_v51  ;;  %v586_v58 = vadd.f32 %v2022_v17, %v585_v54  ;;  %v714_v59 = vadd.f32 %v2022_v17, %v713_v55 }
 0x10f   :  { %v902_v60 = vmul.f32 %v2029_v22, %v831_v52  ;;  %v934_v61 = vmul.f32 %v2029_v22, %v863_v53  ;;  %v587_v62 = vpop.f32.mrf.mxu0  ;;  %v715_v63 = vpop.f32.mrf.mxu1 }
 0x110   :  { %1293 = vst.msk [vmem:[%s2487_s5 + $0x4] sm:$0xf] %vm1291_vm0, %v1508_v56  ;;  %1325 = vst.msk [vmem:[%s2487_s5 + $0x84] sm:$0xf] %vm1291_vm0, %v1540_v57  ;;  %v832_v0 = vmax.f32 %v586_v58, 0.0  ;;  %v864_v1 = vmax.f32 %v714_v59, 0.0 }
 0x111   :  { %v973_v2 = vadd.f32 %v2034_v27, %v902_v60  ;;  %v1005_v3 = vadd.f32 %v2034_v27, %v934_v61  ;;  %v590_v4 = vpop.f32.mrf.mxu0  ;;  %v718_v5 = vpop.f32.mrf.mxu1 }
 0x112   :  { %v903_v6 = vmul.f32 %v2029_v22, %v832_v0  ;;  %v935_v7 = vmul.f32 %v2029_v22, %v864_v1  ;;  %v591_v8 = vadd.f32 %v2022_v17, %v590_v4  ;;  %v719_v9 = vadd.f32 %v2022_v17, %v718_v5 }
 0x113   :  { %v1509_v10 = vpack.c.bf16 %v973_v2, %v973_v2  ;;  %v1541_v11 = vpack.c.bf16 %v1005_v3, %v1005_v3  ;;  %v592_v12 = vpop.f32.mrf.mxu0  ;;  %v720_v13 = vpop.f32.mrf.mxu1 }
 0x114   :  { %v974_v14 = vadd.f32 %v2034_v27, %v903_v6  ;;  %v1006_v15 = vadd.f32 %v2034_v27, %v935_v7  ;;  %v833_v16 = vmax.f32 %v591_v8, 0.0  ;;  %v865_v18 = vmax.f32 %v719_v9, 0.0 }
 0x115   :  { %1294 = vst.msk [vmem:[%s2487_s5 + $0x8] sm:$0xf] %vm1291_vm0, %v1509_v10  ;;  %1326 = vst.msk [vmem:[%s2487_s5 + $0x88] sm:$0xf] %vm1291_vm0, %v1541_v11  ;;  %v593_v19 = vpop.f32.mrf.mxu0  ;;  %v721_v20 = vpop.f32.mrf.mxu1 }
 0x116   :  { %v1510_v21 = vpack.c.bf16 %v974_v14, %v974_v14  ;;  %v1542_v23 = vpack.c.bf16 %v1006_v15, %v1006_v15  ;;  %v904_v24 = vmul.f32 %v2029_v22, %v833_v16  ;;  %v936_v25 = vmul.f32 %v2029_v22, %v865_v18 }
 0x117   :  { %v594_v26 = vadd.f32 %v2022_v17, %v593_v19  ;;  %v722_v28 = vadd.f32 %v2022_v17, %v721_v20  ;;  %v595_v29 = vpop.f32.mrf.mxu0  ;;  %v723_v30 = vpop.f32.mrf.mxu1 }
 0x118   :  { %1295 = vst.msk [vmem:[%s2487_s5 + $0xc] sm:$0xf] %vm1291_vm0, %v1510_v21  ;;  %1327 = vst.msk [vmem:[%s2487_s5 + $0x8c] sm:$0xf] %vm1291_vm0, %v1542_v23  ;;  %v975_v31 = vadd.f32 %v2034_v27, %v904_v24  ;;  %v1007_v32 = vadd.f32 %v2034_v27, %v936_v25 }
 0x119   :  { %v834_v33 = vmax.f32 %v594_v26, 0.0  ;;  %v866_v34 = vmax.f32 %v722_v28, 0.0  ;;  %v598_v35 = vpop.f32.mrf.mxu0  ;;  %v726_v36 = vpop.f32.mrf.mxu1 }
 0x11a   :  { %v1511_v37 = vpack.c.bf16 %v975_v31, %v975_v31  ;;  %v1543_v38 = vpack.c.bf16 %v1007_v32, %v1007_v32  ;;  %v599_v39 = vadd.f32 %v2022_v17, %v598_v35  ;;  %v727_v40 = vadd.f32 %v2022_v17, %v726_v36 }
 0x11b   :  { %v905_v41 = vmul.f32 %v2029_v22, %v834_v33  ;;  %v937_v42 = vmul.f32 %v2029_v22, %v866_v34  ;;  %v600_v43 = vpop.f32.mrf.mxu0  ;;  %v728_v44 = vpop.f32.mrf.mxu1 }
 0x11c   :  { %1296 = vst.msk [vmem:[%s2487_s5 + $0x10] sm:$0xf] %vm1291_vm0, %v1511_v37  ;;  %1328 = vst.msk [vmem:[%s2487_s5 + $0x90] sm:$0xf] %vm1291_vm0, %v1543_v38  ;;  %v835_v45 = vmax.f32 %v599_v39, 0.0  ;;  %v867_v46 = vmax.f32 %v727_v40, 0.0 }
 0x11d   :  { %v976_v47 = vadd.f32 %v2034_v27, %v905_v41  ;;  %v1008_v48 = vadd.f32 %v2034_v27, %v937_v42  ;;  %v601_v49 = vpop.f32.mrf.mxu0  ;;  %v729_v50 = vpop.f32.mrf.mxu1 }
 0x11e   :  { %v906_v51 = vmul.f32 %v2029_v22, %v835_v45  ;;  %v938_v52 = vmul.f32 %v2029_v22, %v867_v46  ;;  %v602_v53 = vadd.f32 %v2022_v17, %v601_v49  ;;  %v730_v54 = vadd.f32 %v2022_v17, %v729_v50 }
 0x11f   :  { %v1512_v55 = vpack.c.bf16 %v976_v47, %v976_v47  ;;  %v1544_v56 = vpack.c.bf16 %v1008_v48, %v1008_v48  ;;  %v603_v57 = vpop.f32.mrf.mxu0  ;;  %v731_v58 = vpop.f32.mrf.mxu1 }
 0x120   :  { %v977_v59 = vadd.f32 %v2034_v27, %v906_v51  ;;  %v1009_v60 = vadd.f32 %v2034_v27, %v938_v52  ;;  %v836_v61 = vmax.f32 %v602_v53, 0.0  ;;  %v868_v62 = vmax.f32 %v730_v54, 0.0 }
 0x121   :  { %1297 = vst.msk [vmem:[%s2487_s5 + $0x14] sm:$0xf] %vm1291_vm0, %v1512_v55  ;;  %1329 = vst.msk [vmem:[%s2487_s5 + $0x94] sm:$0xf] %vm1291_vm0, %v1544_v56  ;;  %v606_v63 = vpop.f32.mrf.mxu0  ;;  %v734_v0 = vpop.f32.mrf.mxu1 }
 0x122   :  { %v1513_v1 = vpack.c.bf16 %v977_v59, %v977_v59  ;;  %v1545_v2 = vpack.c.bf16 %v1009_v60, %v1009_v60  ;;  %v907_v3 = vmul.f32 %v2029_v22, %v836_v61  ;;  %v939_v4 = vmul.f32 %v2029_v22, %v868_v62 }
 0x123   :  { %v607_v5 = vadd.f32 %v2022_v17, %v606_v63  ;;  %v735_v6 = vadd.f32 %v2022_v17, %v734_v0  ;;  %v608_v7 = vpop.f32.mrf.mxu0  ;;  %v736_v8 = vpop.f32.mrf.mxu1 }
 0x124   :  { %1298 = vst.msk [vmem:[%s2487_s5 + $0x18] sm:$0xf] %vm1291_vm0, %v1513_v1  ;;  %1330 = vst.msk [vmem:[%s2487_s5 + $0x98] sm:$0xf] %vm1291_vm0, %v1545_v2  ;;  %v978_v9 = vadd.f32 %v2034_v27, %v907_v3  ;;  %v1010_v10 = vadd.f32 %v2034_v27, %v939_v4 }
 0x125   :  { %v837_v11 = vmax.f32 %v607_v5, 0.0  ;;  %v869_v12 = vmax.f32 %v735_v6, 0.0  ;;  %v609_v13 = vpop.f32.mrf.mxu0  ;;  %v737_v14 = vpop.f32.mrf.mxu1 }
 0x126   :  { %v1514_v15 = vpack.c.bf16 %v978_v9, %v978_v9  ;;  %v1546_v16 = vpack.c.bf16 %v1010_v10, %v1010_v10  ;;  %v610_v18 = vadd.f32 %v2022_v17, %v609_v13  ;;  %v738_v19 = vadd.f32 %v2022_v17, %v737_v14 }
 0x127   :  { %v908_v20 = vmul.f32 %v2029_v22, %v837_v11  ;;  %v940_v21 = vmul.f32 %v2029_v22, %v869_v12  ;;  %v611_v23 = vpop.f32.mrf.mxu0  ;;  %v739_v24 = vpop.f32.mrf.mxu1 }
 0x128   :  { %1299 = vst.msk [vmem:[%s2487_s5 + $0x1c] sm:$0xf] %vm1291_vm0, %v1514_v15  ;;  %1331 = vst.msk [vmem:[%s2487_s5 + $0x9c] sm:$0xf] %vm1291_vm0, %v1546_v16  ;;  %v838_v25 = vmax.f32 %v610_v18, 0.0  ;;  %v870_v26 = vmax.f32 %v738_v19, 0.0 }
 0x129   :  { %v979_v28 = vadd.f32 %v2034_v27, %v908_v20  ;;  %v1011_v29 = vadd.f32 %v2034_v27, %v940_v21  ;;  %v614_v30 = vpop.f32.mrf.mxu0  ;;  %v742_v31 = vpop.f32.mrf.mxu1 }
 0x12a   :  { %v909_v32 = vmul.f32 %v2029_v22, %v838_v25  ;;  %v941_v33 = vmul.f32 %v2029_v22, %v870_v26  ;;  %v615_v34 = vadd.f32 %v2022_v17, %v614_v30  ;;  %v743_v35 = vadd.f32 %v2022_v17, %v742_v31 }
 0x12b   :  { %v1515_v36 = vpack.c.bf16 %v979_v28, %v979_v28  ;;  %v1547_v37 = vpack.c.bf16 %v1011_v29, %v1011_v29  ;;  %v616_v38 = vpop.f32.mrf.mxu0  ;;  %v744_v39 = vpop.f32.mrf.mxu1 }
 0x12c   :  { %v980_v40 = vadd.f32 %v2034_v27, %v909_v32  ;;  %v1012_v41 = vadd.f32 %v2034_v27, %v941_v33  ;;  %v839_v42 = vmax.f32 %v615_v34, 0.0  ;;  %v871_v43 = vmax.f32 %v743_v35, 0.0 }
 0x12d   :  { %1300 = vst.msk [vmem:[%s2487_s5 + $0x20] sm:$0xf] %vm1291_vm0, %v1515_v36  ;;  %1332 = vst.msk [vmem:[%s2487_s5 + $0xa0] sm:$0xf] %vm1291_vm0, %v1547_v37  ;;  %v617_v44 = vpop.f32.mrf.mxu0  ;;  %v745_v45 = vpop.f32.mrf.mxu1 }
 0x12e   :  { %v1516_v46 = vpack.c.bf16 %v980_v40, %v980_v40  ;;  %v1548_v47 = vpack.c.bf16 %v1012_v41, %v1012_v41  ;;  %v910_v48 = vmul.f32 %v2029_v22, %v839_v42  ;;  %v942_v49 = vmul.f32 %v2029_v22, %v871_v43 }
 0x12f   :  { %v618_v50 = vadd.f32 %v2022_v17, %v617_v44  ;;  %v746_v51 = vadd.f32 %v2022_v17, %v745_v45  ;;  %v619_v52 = vpop.f32.mrf.mxu0  ;;  %v747_v53 = vpop.f32.mrf.mxu1 }
 0x130   :  { %1301 = vst.msk [vmem:[%s2487_s5 + $0x24] sm:$0xf] %vm1291_vm0, %v1516_v46  ;;  %1333 = vst.msk [vmem:[%s2487_s5 + $0xa4] sm:$0xf] %vm1291_vm0, %v1548_v47  ;;  %v981_v54 = vadd.f32 %v2034_v27, %v910_v48  ;;  %v1013_v55 = vadd.f32 %v2034_v27, %v942_v49 }
 0x131   :  { %v840_v56 = vmax.f32 %v618_v50, 0.0  ;;  %v872_v57 = vmax.f32 %v746_v51, 0.0  ;;  %v622_v58 = vpop.f32.mrf.mxu0  ;;  %v750_v59 = vpop.f32.mrf.mxu1 }
 0x132   :  { %v1517_v60 = vpack.c.bf16 %v981_v54, %v981_v54  ;;  %v1549_v61 = vpack.c.bf16 %v1013_v55, %v1013_v55  ;;  %v623_v62 = vadd.f32 %v2022_v17, %v622_v58  ;;  %v751_v63 = vadd.f32 %v2022_v17, %v750_v59 }
 0x133   :  { %v911_v0 = vmul.f32 %v2029_v22, %v840_v56  ;;  %v943_v1 = vmul.f32 %v2029_v22, %v872_v57  ;;  %v624_v2 = vpop.f32.mrf.mxu0  ;;  %v752_v3 = vpop.f32.mrf.mxu1 }
 0x134   :  { %1302 = vst.msk [vmem:[%s2487_s5 + $0x28] sm:$0xf] %vm1291_vm0, %v1517_v60  ;;  %1334 = vst.msk [vmem:[%s2487_s5 + $0xa8] sm:$0xf] %vm1291_vm0, %v1549_v61  ;;  %v841_v4 = vmax.f32 %v623_v62, 0.0  ;;  %v873_v5 = vmax.f32 %v751_v63, 0.0 }
 0x135   :  { %v982_v6 = vadd.f32 %v2034_v27, %v911_v0  ;;  %v1014_v7 = vadd.f32 %v2034_v27, %v943_v1  ;;  %v625_v8 = vpop.f32.mrf.mxu0  ;;  %v753_v9 = vpop.f32.mrf.mxu1 }
 0x136   :  { %v912_v10 = vmul.f32 %v2029_v22, %v841_v4  ;;  %v944_v11 = vmul.f32 %v2029_v22, %v873_v5  ;;  %v626_v12 = vadd.f32 %v2022_v17, %v625_v8  ;;  %v754_v13 = vadd.f32 %v2022_v17, %v753_v9 }
 0x137   :  { %v1518_v14 = vpack.c.bf16 %v982_v6, %v982_v6  ;;  %v1550_v15 = vpack.c.bf16 %v1014_v7, %v1014_v7  ;;  %v627_v16 = vpop.f32.mrf.mxu0  ;;  %v755_v18 = vpop.f32.mrf.mxu1 }
 0x138   :  { %v983_v19 = vadd.f32 %v2034_v27, %v912_v10  ;;  %v1015_v20 = vadd.f32 %v2034_v27, %v944_v11  ;;  %v842_v21 = vmax.f32 %v626_v12, 0.0  ;;  %v874_v23 = vmax.f32 %v754_v13, 0.0 }
 0x139   :  { %1303 = vst.msk [vmem:[%s2487_s5 + $0x2c] sm:$0xf] %vm1291_vm0, %v1518_v14  ;;  %1335 = vst.msk [vmem:[%s2487_s5 + $0xac] sm:$0xf] %vm1291_vm0, %v1550_v15  ;;  %v630_v24 = vpop.f32.mrf.mxu0  ;;  %v758_v25 = vpop.f32.mrf.mxu1 }
 0x13a   :  { %v1519_v26 = vpack.c.bf16 %v983_v19, %v983_v19  ;;  %v1551_v28 = vpack.c.bf16 %v1015_v20, %v1015_v20  ;;  %v913_v29 = vmul.f32 %v2029_v22, %v842_v21  ;;  %v945_v30 = vmul.f32 %v2029_v22, %v874_v23 }
 0x13b   :  { %v631_v31 = vadd.f32 %v2022_v17, %v630_v24  ;;  %v759_v32 = vadd.f32 %v2022_v17, %v758_v25  ;;  %v632_v33 = vpop.f32.mrf.mxu0  ;;  %v760_v34 = vpop.f32.mrf.mxu1 }
 0x13c   :  { %1304 = vst.msk [vmem:[%s2487_s5 + $0x30] sm:$0xf] %vm1291_vm0, %v1519_v26  ;;  %1336 = vst.msk [vmem:[%s2487_s5 + $0xb0] sm:$0xf] %vm1291_vm0, %v1551_v28  ;;  %v984_v35 = vadd.f32 %v2034_v27, %v913_v29  ;;  %v1016_v36 = vadd.f32 %v2034_v27, %v945_v30 }
 0x13d   :  { %v843_v37 = vmax.f32 %v631_v31, 0.0  ;;  %v875_v38 = vmax.f32 %v759_v32, 0.0  ;;  %v633_v39 = vpop.f32.mrf.mxu0  ;;  %v761_v40 = vpop.f32.mrf.mxu1 }
 0x13e   :  { %v1520_v41 = vpack.c.bf16 %v984_v35, %v984_v35  ;;  %v1552_v42 = vpack.c.bf16 %v1016_v36, %v1016_v36  ;;  %v634_v43 = vadd.f32 %v2022_v17, %v633_v39  ;;  %v762_v44 = vadd.f32 %v2022_v17, %v761_v40 }
 0x13f   :  { %v914_v45 = vmul.f32 %v2029_v22, %v843_v37  ;;  %v946_v46 = vmul.f32 %v2029_v22, %v875_v38  ;;  %v635_v47 = vpop.f32.mrf.mxu0  ;;  %v763_v48 = vpop.f32.mrf.mxu1 }
 0x140   :  { %1305 = vst.msk [vmem:[%s2487_s5 + $0x34] sm:$0xf] %vm1291_vm0, %v1520_v41  ;;  %1337 = vst.msk [vmem:[%s2487_s5 + $0xb4] sm:$0xf] %vm1291_vm0, %v1552_v42  ;;  %v844_v49 = vmax.f32 %v634_v43, 0.0  ;;  %v876_v50 = vmax.f32 %v762_v44, 0.0 }
 0x141   :  { %v985_v51 = vadd.f32 %v2034_v27, %v914_v45  ;;  %v1017_v52 = vadd.f32 %v2034_v27, %v946_v46  ;;  %v638_v53 = vpop.f32.mrf.mxu0  ;;  %v766_v54 = vpop.f32.mrf.mxu1 }
 0x142   :  { %v915_v55 = vmul.f32 %v2029_v22, %v844_v49  ;;  %v947_v56 = vmul.f32 %v2029_v22, %v876_v50  ;;  %v639_v57 = vadd.f32 %v2022_v17, %v638_v53  ;;  %v767_v58 = vadd.f32 %v2022_v17, %v766_v54 }
 0x143   :  { %v1521_v59 = vpack.c.bf16 %v985_v51, %v985_v51  ;;  %v1553_v60 = vpack.c.bf16 %v1017_v52, %v1017_v52  ;;  %v640_v61 = vpop.f32.mrf.mxu0  ;;  %v768_v62 = vpop.f32.mrf.mxu1 }
 0x144   :  { %v986_v63 = vadd.f32 %v2034_v27, %v915_v55  ;;  %v1018_v0 = vadd.f32 %v2034_v27, %v947_v56  ;;  %v845_v1 = vmax.f32 %v639_v57, 0.0  ;;  %v877_v2 = vmax.f32 %v767_v58, 0.0 }
 0x145   :  { %1306 = vst.msk [vmem:[%s2487_s5 + $0x38] sm:$0xf] %vm1291_vm0, %v1521_v59  ;;  %1338 = vst.msk [vmem:[%s2487_s5 + $0xb8] sm:$0xf] %vm1291_vm0, %v1553_v60  ;;  %v641_v3 = vpop.f32.mrf.mxu0  ;;  %v769_v4 = vpop.f32.mrf.mxu1 }
 0x146   :  { %v1522_v5 = vpack.c.bf16 %v986_v63, %v986_v63  ;;  %v1554_v6 = vpack.c.bf16 %v1018_v0, %v1018_v0  ;;  %v916_v7 = vmul.f32 %v2029_v22, %v845_v1  ;;  %v948_v8 = vmul.f32 %v2029_v22, %v877_v2 }
 0x147   :  { %v642_v9 = vadd.f32 %v2022_v17, %v641_v3  ;;  %v770_v10 = vadd.f32 %v2022_v17, %v769_v4  ;;  %v643_v11 = vpop.f32.mrf.mxu0  ;;  %v771_v12 = vpop.f32.mrf.mxu1 }
 0x148   :  { %1307 = vst.msk [vmem:[%s2487_s5 + $0x3c] sm:$0xf] %vm1291_vm0, %v1522_v5  ;;  %1339 = vst.msk [vmem:[%s2487_s5 + $0xbc] sm:$0xf] %vm1291_vm0, %v1554_v6  ;;  %v987_v13 = vadd.f32 %v2034_v27, %v916_v7  ;;  %v1019_v14 = vadd.f32 %v2034_v27, %v948_v8 }
 0x149   :  { %v846_v15 = vmax.f32 %v642_v9, 0.0  ;;  %v878_v16 = vmax.f32 %v770_v10, 0.0  ;;  %v646_v18 = vpop.f32.mrf.mxu0  ;;  %v774_v19 = vpop.f32.mrf.mxu1 }
 0x14a   :  { %v1523_v20 = vpack.c.bf16 %v987_v13, %v987_v13  ;;  %v1555_v21 = vpack.c.bf16 %v1019_v14, %v1019_v14  ;;  %v647_v23 = vadd.f32 %v2022_v17, %v646_v18  ;;  %v775_v24 = vadd.f32 %v2022_v17, %v774_v19 }
 0x14b   :  { %v917_v25 = vmul.f32 %v2029_v22, %v846_v15  ;;  %v949_v26 = vmul.f32 %v2029_v22, %v878_v16  ;;  %v648_v28 = vpop.f32.mrf.mxu0  ;;  %v776_v29 = vpop.f32.mrf.mxu1 }
 0x14c   :  { %1308 = vst.msk [vmem:[%s2487_s5 + $0x40] sm:$0xf] %vm1291_vm0, %v1523_v20  ;;  %1340 = vst.msk [vmem:[%s2487_s5 + $0xc0] sm:$0xf] %vm1291_vm0, %v1555_v21  ;;  %v847_v30 = vmax.f32 %v647_v23, 0.0  ;;  %v879_v31 = vmax.f32 %v775_v24, 0.0 }
 0x14d   :  { %v988_v32 = vadd.f32 %v2034_v27, %v917_v25  ;;  %v1020_v33 = vadd.f32 %v2034_v27, %v949_v26  ;;  %v649_v34 = vpop.f32.mrf.mxu0  ;;  %v777_v35 = vpop.f32.mrf.mxu1 }
 0x14e   :  { %v918_v36 = vmul.f32 %v2029_v22, %v847_v30  ;;  %v950_v37 = vmul.f32 %v2029_v22, %v879_v31  ;;  %v650_v38 = vadd.f32 %v2022_v17, %v649_v34  ;;  %v778_v39 = vadd.f32 %v2022_v17, %v777_v35 }
 0x14f   :  { %v1524_v40 = vpack.c.bf16 %v988_v32, %v988_v32  ;;  %v1556_v41 = vpack.c.bf16 %v1020_v33, %v1020_v33  ;;  %v651_v42 = vpop.f32.mrf.mxu0  ;;  %v779_v43 = vpop.f32.mrf.mxu1 }
 0x150   :  { %v989_v44 = vadd.f32 %v2034_v27, %v918_v36  ;;  %v1021_v45 = vadd.f32 %v2034_v27, %v950_v37  ;;  %v848_v46 = vmax.f32 %v650_v38, 0.0  ;;  %v880_v47 = vmax.f32 %v778_v39, 0.0 }
 0x151   :  { %1309 = vst.msk [vmem:[%s2487_s5 + $0x44] sm:$0xf] %vm1291_vm0, %v1524_v40  ;;  %1341 = vst.msk [vmem:[%s2487_s5 + $0xc4] sm:$0xf] %vm1291_vm0, %v1556_v41  ;;  %v654_v48 = vpop.f32.mrf.mxu0  ;;  %v782_v49 = vpop.f32.mrf.mxu1 }
 0x152   :  { %v1525_v50 = vpack.c.bf16 %v989_v44, %v989_v44  ;;  %v1557_v51 = vpack.c.bf16 %v1021_v45, %v1021_v45  ;;  %v919_v52 = vmul.f32 %v2029_v22, %v848_v46  ;;  %v951_v53 = vmul.f32 %v2029_v22, %v880_v47 }
 0x153   :  { %v655_v54 = vadd.f32 %v2022_v17, %v654_v48  ;;  %v783_v55 = vadd.f32 %v2022_v17, %v782_v49  ;;  %v656_v56 = vpop.f32.mrf.mxu0  ;;  %v784_v57 = vpop.f32.mrf.mxu1 }
 0x154   :  { %1310 = vst.msk [vmem:[%s2487_s5 + $0x48] sm:$0xf] %vm1291_vm0, %v1525_v50  ;;  %1342 = vst.msk [vmem:[%s2487_s5 + $0xc8] sm:$0xf] %vm1291_vm0, %v1557_v51  ;;  %v990_v58 = vadd.f32 %v2034_v27, %v919_v52  ;;  %v1022_v59 = vadd.f32 %v2034_v27, %v951_v53 }
 0x155   :  { %v849_v60 = vmax.f32 %v655_v54, 0.0  ;;  %v881_v61 = vmax.f32 %v783_v55, 0.0  ;;  %v657_v62 = vpop.f32.mrf.mxu0  ;;  %v785_v63 = vpop.f32.mrf.mxu1 }
 0x156   :  { %v1526_v0 = vpack.c.bf16 %v990_v58, %v990_v58  ;;  %v1558_v1 = vpack.c.bf16 %v1022_v59, %v1022_v59  ;;  %v658_v2 = vadd.f32 %v2022_v17, %v657_v62  ;;  %v786_v3 = vadd.f32 %v2022_v17, %v785_v63 }
 0x157   :  { %v920_v4 = vmul.f32 %v2029_v22, %v849_v60  ;;  %v952_v5 = vmul.f32 %v2029_v22, %v881_v61  ;;  %v659_v6 = vpop.f32.mrf.mxu0  ;;  %v787_v7 = vpop.f32.mrf.mxu1 }
 0x158   :  { %1311 = vst.msk [vmem:[%s2487_s5 + $0x4c] sm:$0xf] %vm1291_vm0, %v1526_v0  ;;  %1343 = vst.msk [vmem:[%s2487_s5 + $0xcc] sm:$0xf] %vm1291_vm0, %v1558_v1  ;;  %v850_v8 = vmax.f32 %v658_v2, 0.0  ;;  %v882_v9 = vmax.f32 %v786_v3, 0.0 }
 0x159   :  { %v991_v10 = vadd.f32 %v2034_v27, %v920_v4  ;;  %v1023_v11 = vadd.f32 %v2034_v27, %v952_v5  ;;  %v662_v12 = vpop.f32.mrf.mxu0  ;;  %v790_v13 = vpop.f32.mrf.mxu1 }
 0x15a   :  { %v921_v14 = vmul.f32 %v2029_v22, %v850_v8  ;;  %v953_v15 = vmul.f32 %v2029_v22, %v882_v9  ;;  %v663_v16 = vadd.f32 %v2022_v17, %v662_v12  ;;  %v791_v18 = vadd.f32 %v2022_v17, %v790_v13 }
 0x15b   :  { %v1527_v19 = vpack.c.bf16 %v991_v10, %v991_v10  ;;  %v1559_v20 = vpack.c.bf16 %v1023_v11, %v1023_v11  ;;  %v664_v21 = vpop.f32.mrf.mxu0  ;;  %v792_v23 = vpop.f32.mrf.mxu1 }
 0x15c   :  { %v992_v24 = vadd.f32 %v2034_v27, %v921_v14  ;;  %v1024_v25 = vadd.f32 %v2034_v27, %v953_v15  ;;  %v851_v26 = vmax.f32 %v663_v16, 0.0  ;;  %v883_v28 = vmax.f32 %v791_v18, 0.0 }
 0x15d   :  { %1312 = vst.msk [vmem:[%s2487_s5 + $0x50] sm:$0xf] %vm1291_vm0, %v1527_v19  ;;  %1344 = vst.msk [vmem:[%s2487_s5 + $0xd0] sm:$0xf] %vm1291_vm0, %v1559_v20  ;;  %v665_v29 = vpop.f32.mrf.mxu0  ;;  %v793_v30 = vpop.f32.mrf.mxu1 }
 0x15e   :  { %v1528_v31 = vpack.c.bf16 %v992_v24, %v992_v24  ;;  %v1560_v32 = vpack.c.bf16 %v1024_v25, %v1024_v25  ;;  %v922_v33 = vmul.f32 %v2029_v22, %v851_v26  ;;  %v954_v34 = vmul.f32 %v2029_v22, %v883_v28 }
 0x15f   :  { %v666_v35 = vadd.f32 %v2022_v17, %v665_v29  ;;  %v794_v36 = vadd.f32 %v2022_v17, %v793_v30  ;;  %v667_v37 = vpop.f32.mrf.mxu0  ;;  %v795_v38 = vpop.f32.mrf.mxu1 }
 0x160   :  { %1313 = vst.msk [vmem:[%s2487_s5 + $0x54] sm:$0xf] %vm1291_vm0, %v1528_v31  ;;  %1345 = vst.msk [vmem:[%s2487_s5 + $0xd4] sm:$0xf] %vm1291_vm0, %v1560_v32  ;;  %v993_v39 = vadd.f32 %v2034_v27, %v922_v33  ;;  %v1025_v40 = vadd.f32 %v2034_v27, %v954_v34 }
 0x161   :  { %v852_v41 = vmax.f32 %v666_v35, 0.0  ;;  %v884_v42 = vmax.f32 %v794_v36, 0.0  ;;  %v670_v43 = vpop.f32.mrf.mxu0  ;;  %v798_v44 = vpop.f32.mrf.mxu1 }
 0x162   :  { %v1529_v45 = vpack.c.bf16 %v993_v39, %v993_v39  ;;  %v1561_v46 = vpack.c.bf16 %v1025_v40, %v1025_v40  ;;  %v671_v47 = vadd.f32 %v2022_v17, %v670_v43  ;;  %v799_v48 = vadd.f32 %v2022_v17, %v798_v44 }
 0x163   :  { %v923_v49 = vmul.f32 %v2029_v22, %v852_v41  ;;  %v955_v50 = vmul.f32 %v2029_v22, %v884_v42  ;;  %v672_v51 = vpop.f32.mrf.mxu0  ;;  %v800_v52 = vpop.f32.mrf.mxu1 }
 0x164   :  { %1314 = vst.msk [vmem:[%s2487_s5 + $0x58] sm:$0xf] %vm1291_vm0, %v1529_v45  ;;  %1346 = vst.msk [vmem:[%s2487_s5 + $0xd8] sm:$0xf] %vm1291_vm0, %v1561_v46  ;;  %v853_v53 = vmax.f32 %v671_v47, 0.0  ;;  %v885_v54 = vmax.f32 %v799_v48, 0.0 }
 0x165   :  { %v994_v55 = vadd.f32 %v2034_v27, %v923_v49  ;;  %v1026_v56 = vadd.f32 %v2034_v27, %v955_v50  ;;  %v673_v57 = vpop.f32.mrf.mxu0  ;;  %v801_v58 = vpop.f32.mrf.mxu1 }
 0x166   :  { %v924_v59 = vmul.f32 %v2029_v22, %v853_v53  ;;  %v956_v60 = vmul.f32 %v2029_v22, %v885_v54  ;;  %v674_v61 = vadd.f32 %v2022_v17, %v673_v57  ;;  %v802_v62 = vadd.f32 %v2022_v17, %v801_v58 }
 0x167   :  { %v1530_v63 = vpack.c.bf16 %v994_v55, %v994_v55  ;;  %v1562_v0 = vpack.c.bf16 %v1026_v56, %v1026_v56  ;;  %v675_v1 = vpop.f32.mrf.mxu0  ;;  %v803_v2 = vpop.f32.mrf.mxu1 }
 0x168   :  { %v995_v3 = vadd.f32 %v2034_v27, %v924_v59  ;;  %v1027_v4 = vadd.f32 %v2034_v27, %v956_v60  ;;  %v854_v5 = vmax.f32 %v674_v61, 0.0  ;;  %v886_v6 = vmax.f32 %v802_v62, 0.0 }
 0x169   :  { %1315 = vst.msk [vmem:[%s2487_s5 + $0x5c] sm:$0xf] %vm1291_vm0, %v1530_v63  ;;  %1347 = vst.msk [vmem:[%s2487_s5 + $0xdc] sm:$0xf] %vm1291_vm0, %v1562_v0  ;;  %v678_v7 = vpop.f32.mrf.mxu0  ;;  %v806_v8 = vpop.f32.mrf.mxu1 }
 0x16a   :  { %v1531_v9 = vpack.c.bf16 %v995_v3, %v995_v3  ;;  %v1563_v10 = vpack.c.bf16 %v1027_v4, %v1027_v4  ;;  %v925_v11 = vmul.f32 %v2029_v22, %v854_v5  ;;  %v957_v12 = vmul.f32 %v2029_v22, %v886_v6 }
 0x16b   :  { %v679_v13 = vadd.f32 %v2022_v17, %v678_v7  ;;  %v807_v14 = vadd.f32 %v2022_v17, %v806_v8  ;;  %v680_v15 = vpop.f32.mrf.mxu0  ;;  %v808_v16 = vpop.f32.mrf.mxu1 }
 0x16c   :  { %1316 = vst.msk [vmem:[%s2487_s5 + $0x60] sm:$0xf] %vm1291_vm0, %v1531_v9  ;;  %1348 = vst.msk [vmem:[%s2487_s5 + $0xe0] sm:$0xf] %vm1291_vm0, %v1563_v10  ;;  %v996_v18 = vadd.f32 %v2034_v27, %v925_v11  ;;  %v1028_v19 = vadd.f32 %v2034_v27, %v957_v12 }
 0x16d   :  { %v855_v20 = vmax.f32 %v679_v13, 0.0  ;;  %v887_v21 = vmax.f32 %v807_v14, 0.0  ;;  %v681_v23 = vpop.f32.mrf.mxu0  ;;  %v809_v24 = vpop.f32.mrf.mxu1 }
 0x16e   :  { %v1532_v25 = vpack.c.bf16 %v996_v18, %v996_v18  ;;  %v1564_v26 = vpack.c.bf16 %v1028_v19, %v1028_v19  ;;  %v682_v28 = vadd.f32 %v2022_v17, %v681_v23  ;;  %v810_v29 = vadd.f32 %v2022_v17, %v809_v24 }
 0x16f   :  { %v926_v30 = vmul.f32 %v2029_v22, %v855_v20  ;;  %v958_v31 = vmul.f32 %v2029_v22, %v887_v21  ;;  %v683_v32 = vpop.f32.mrf.mxu0  ;;  %v811_v33 = vpop.f32.mrf.mxu1 }
 0x170   :  { %1317 = vst.msk [vmem:[%s2487_s5 + $0x64] sm:$0xf] %vm1291_vm0, %v1532_v25  ;;  %1349 = vst.msk [vmem:[%s2487_s5 + $0xe4] sm:$0xf] %vm1291_vm0, %v1564_v26  ;;  %v856_v34 = vmax.f32 %v682_v28, 0.0  ;;  %v888_v35 = vmax.f32 %v810_v29, 0.0 }
 0x171   :  { %v997_v36 = vadd.f32 %v2034_v27, %v926_v30  ;;  %v1029_v37 = vadd.f32 %v2034_v27, %v958_v31  ;;  %v686_v38 = vpop.f32.mrf.mxu0  ;;  %v814_v39 = vpop.f32.mrf.mxu1 }
 0x172   :  { %v927_v40 = vmul.f32 %v2029_v22, %v856_v34  ;;  %v959_v41 = vmul.f32 %v2029_v22, %v888_v35  ;;  %v687_v42 = vadd.f32 %v2022_v17, %v686_v38  ;;  %v815_v43 = vadd.f32 %v2022_v17, %v814_v39 }
 0x173   :  { %v1533_v44 = vpack.c.bf16 %v997_v36, %v997_v36  ;;  %v1565_v45 = vpack.c.bf16 %v1029_v37, %v1029_v37  ;;  %v688_v46 = vpop.f32.mrf.mxu0  ;;  %v816_v47 = vpop.f32.mrf.mxu1 }
 0x174   :  { %v998_v48 = vadd.f32 %v2034_v27, %v927_v40  ;;  %v1030_v49 = vadd.f32 %v2034_v27, %v959_v41  ;;  %v857_v50 = vmax.f32 %v687_v42, 0.0  ;;  %v889_v51 = vmax.f32 %v815_v43, 0.0 }
 0x175   :  { %1318 = vst.msk [vmem:[%s2487_s5 + $0x68] sm:$0xf] %vm1291_vm0, %v1533_v44  ;;  %1350 = vst.msk [vmem:[%s2487_s5 + $0xe8] sm:$0xf] %vm1291_vm0, %v1565_v45  ;;  %v689_v52 = vpop.f32.mrf.mxu0  ;;  %v817_v53 = vpop.f32.mrf.mxu1 }
 0x176   :  { %v1534_v54 = vpack.c.bf16 %v998_v48, %v998_v48  ;;  %v1566_v55 = vpack.c.bf16 %v1030_v49, %v1030_v49  ;;  %v928_v56 = vmul.f32 %v2029_v22, %v857_v50  ;;  %v960_v57 = vmul.f32 %v2029_v22, %v889_v51 }
 0x177   :  { %v690_v58 = vadd.f32 %v2022_v17, %v689_v52  ;;  %v818_v59 = vadd.f32 %v2022_v17, %v817_v53  ;;  %v691_v60 = vpop.f32.mrf.mxu0  ;;  %v819_v61 = vpop.f32.mrf.mxu1 }
 0x178   :  { %1319 = vst.msk [vmem:[%s2487_s5 + $0x6c] sm:$0xf] %vm1291_vm0, %v1534_v54  ;;  %1351 = vst.msk [vmem:[%s2487_s5 + $0xec] sm:$0xf] %vm1291_vm0, %v1566_v55  ;;  %v999_v62 = vadd.f32 %v2034_v27, %v928_v56  ;;  %v1031_v63 = vadd.f32 %v2034_v27, %v960_v57 }
 0x179   :  { %v858_v0 = vmax.f32 %v690_v58, 0.0  ;;  %v890_v1 = vmax.f32 %v818_v59, 0.0  ;;  %v694_v2 = vpop.f32.mrf.mxu0  ;;  %v822_v3 = vpop.f32.mrf.mxu1 }
 0x17a   :  { %v1535_v4 = vpack.c.bf16 %v999_v62, %v999_v62  ;;  %v1567_v5 = vpack.c.bf16 %v1031_v63, %v1031_v63  ;;  %v695_v6 = vadd.f32 %v2022_v17, %v694_v2  ;;  %v823_v7 = vadd.f32 %v2022_v17, %v822_v3 }
 0x17b   :  { %v929_v8 = vmul.f32 %v2029_v22, %v858_v0  ;;  %v961_v9 = vmul.f32 %v2029_v22, %v890_v1  ;;  %v696_v10 = vpop.f32.mrf.mxu0  ;;  %v824_v11 = vpop.f32.mrf.mxu1 }
 0x17c   :  { %1320 = vst.msk [vmem:[%s2487_s5 + $0x70] sm:$0xf] %vm1291_vm0, %v1535_v4  ;;  %1352 = vst.msk [vmem:[%s2487_s5 + $0xf0] sm:$0xf] %vm1291_vm0, %v1567_v5  ;;  %v859_v12 = vmax.f32 %v695_v6, 0.0  ;;  %v891_v13 = vmax.f32 %v823_v7, 0.0 }
 0x17d   :  { %v1000_v14 = vadd.f32 %v2034_v27, %v929_v8  ;;  %v1032_v15 = vadd.f32 %v2034_v27, %v961_v9  ;;  %v697_v16 = vpop.f32.mrf.mxu0  ;;  %v825_v18 = vpop.f32.mrf.mxu1 }
 0x17e   :  { %v930_v19 = vmul.f32 %v2029_v22, %v859_v12  ;;  %v962_v20 = vmul.f32 %v2029_v22, %v891_v13  ;;  %v698_v21 = vadd.f32 %v2022_v17, %v697_v16  ;;  %v826_v23 = vadd.f32 %v2022_v17, %v825_v18 }
 0x17f   :  { %v1536_v24 = vpack.c.bf16 %v1000_v14, %v1000_v14  ;;  %v1568_v25 = vpack.c.bf16 %v1032_v15, %v1032_v15  ;;  %v699_v26 = vpop.f32.mrf.mxu0  ;;  %v827_v28 = vpop.f32.mrf.mxu1 }
 0x180   :  { %v1001_v29 = vadd.f32 %v2034_v27, %v930_v19  ;;  %v1033_v30 = vadd.f32 %v2034_v27, %v962_v20  ;;  %v860_v31 = vmax.f32 %v698_v21, 0.0  ;;  %v892_v32 = vmax.f32 %v826_v23, 0.0 }
 0x181   :  { %1321 = vst.msk [vmem:[%s2487_s5 + $0x74] sm:$0xf] %vm1291_vm0, %v1536_v24  ;;  %1353 = vst.msk [vmem:[%s2487_s5 + $0xf4] sm:$0xf] %vm1291_vm0, %v1568_v25 }
 0x182   :  { %v1537_v17 = vpack.c.bf16 %v1001_v29, %v1001_v29  ;;  %v1569_v33 = vpack.c.bf16 %v1033_v30, %v1033_v30  ;;  %v931_v34 = vmul.f32 %v2029_v22, %v860_v31  ;;  %v963_v35 = vmul.f32 %v2029_v22, %v892_v32 }
 0x184   :  { %1322 = vst.msk [vmem:[%s2487_s5 + $0x78] sm:$0xf] %vm1291_vm0, %v1537_v17  ;;  %1354 = vst.msk [vmem:[%s2487_s5 + $0xf8] sm:$0xf] %vm1291_vm0, %v1569_v33  ;;  %v1002_v36 = vadd.f32 %v2034_v27, %v931_v34  ;;  %v1034_v37 = vadd.f32 %v2034_v27, %v963_v35 }
 0x186   :  { %v1538_v38 = vpack.c.bf16 %v1002_v36, %v1002_v36  ;;  %v1570_v39 = vpack.c.bf16 %v1034_v37, %v1034_v37 }
 0x188   :  { %1323 = vst.msk [vmem:[%s2487_s5 + $0x7c] sm:$0xf] %vm1291_vm0, %v1538_v38  ;;  %1355 = vst.msk [vmem:[%s2487_s5 + $0xfc] sm:$0xf] %vm1291_vm0, %v1570_v39 }

// kernel: value_network_forward.6
= control target key start
LH: loop header
LB: loop body
LE: loop exit
PB: predicated region body
PF: predicated region fallthrough
CT: control target
= control target key end

     0   :  { %vm796_vm0 = vcmask 519168   ;;  %s1473_s1 = inlined_call_operand.vmem [shape: bf16[512,64], index: 1, kind: input, shape index: {}]   ;;  %s1474_s0 = inlined_call_operand.vmem [shape: bf16[128,512], index: 0, kind: input, shape index: {}]   ;;  %s1475_s2 = inlined_call_operand.vmem [shape: f32[1,64], index: 2, kind: input, shape index: {}]   ;;  %s1476_s3 = inlined_call_operand.vmem [shape: f32[1,64], index: 3, kind: input, shape index: {}]   ;;  %s1477_s4 = inlined_call_operand.vmem [shape: f32[1,64], index: 4, kind: input, shape index: {}]   ;;  %s1478_s5 = inlined_call_operand.vmem [shape: bf16[128,64], index: 5, kind: output, shape index: {}]  }
   0x1   :  { %v1044_v0 = vld [vmem:[%s1473_s1 + $0x78] sm:$0xff]   ;;  %v1048_v4 = vld [vmem:[%s1473_s1 + $0x70] sm:$0xff]   ;;  %v1052_v8 = vld [vmem:[%s1473_s1 + $0x68] sm:$0xff]  }
   0x2   :  { %v1045_v1 = vld [vmem:[%s1473_s1 + $0xf8] sm:$0xff]   ;;  %916 = vmatprep.subr.bf16.mxu0 %v1044_v0  ;;  %v1049_v5 = vld [vmem:[%s1473_s1 + $0xf0] sm:$0xff]   ;;  %v1053_v9 = vld [vmem:[%s1473_s1 + $0xe8] sm:$0xff]  }
   0x3   :  { %v1046_v2 = vld [vmem:[%s1473_s1 + $0x38] sm:$0xff]   ;;  %980 = vmatprep.subr.bf16.mxu1 %v1045_v1  ;;  %v1050_v6 = vld [vmem:[%s1473_s1 + $0x30] sm:$0xff]   ;;  %v1054_v10 = vld [vmem:[%s1473_s1 + $0x28] sm:$0xff]  }
   0x4   :  { %v1047_v3 = vld [vmem:[%s1473_s1 + $0xb8] sm:$0xff]   ;;  %917 = vmatpush3.bf16.msra.mxu0 %v1046_v2  ;;  %v1051_v7 = vld [vmem:[%s1473_s1 + $0xb0] sm:$0xff]   ;;  %v1055_v11 = vld [vmem:[%s1473_s1 + $0xa8] sm:$0xff]  }
   0x5   :  { %981 = vmatpush3.bf16.msra.mxu1 %v1047_v3  ;;  %918 = vmatprep.subr.bf16.mxu0 %v1048_v4  ;;  %v1056_v12 = vld [vmem:[%s1473_s1 + $0x60] sm:$0xff]   ;;  %v1060_v16 = vld [vmem:[%s1473_s1 + $0x58] sm:$0xff]   ;;  %v1064_v20 = vld [vmem:[%s1473_s1 + $0x50] sm:$0xff]  }
   0x6   :  { %982 = vmatprep.subr.bf16.mxu1 %v1049_v5  ;;  %v1057_v13 = vld [vmem:[%s1473_s1 + $0xe0] sm:$0xff]   ;;  %v1061_v17 = vld [vmem:[%s1473_s1 + $0xd8] sm:$0xff]   ;;  %v1065_v21 = vld [vmem:[%s1473_s1 + $0xd0] sm:$0xff]  }
   0x7   :  { %v1058_v14 = vld [vmem:[%s1473_s1 + $0x20] sm:$0xff]   ;;  %v1062_v18 = vld [vmem:[%s1473_s1 + $0x18] sm:$0xff]   ;;  %v1066_v22 = vld [vmem:[%s1473_s1 + $0x10] sm:$0xff]  }
   0x8   :  { %919 = vmatpush3.bf16.msra.mxu0 %v1050_v6  ;;  %v1059_v15 = vld [vmem:[%s1473_s1 + $0xa0] sm:$0xff]   ;;  %v1063_v19 = vld [vmem:[%s1473_s1 + $0x98] sm:$0xff]   ;;  %v1067_v23 = vld [vmem:[%s1473_s1 + $0x90] sm:$0xff]  }
   0x9   :  { %983 = vmatpush3.bf16.msra.mxu1 %v1051_v7  ;;  %920 = vmatprep.subr.bf16.mxu0 %v1052_v8  ;;  %v1068_v24 = vld [vmem:[%s1473_s1 + $0x48] sm:$0xff]   ;;  %v1072_v28 = vld [vmem:[%s1473_s1 + $0x40] sm:$0xff]  }
   0xa   :  { %984 = vmatprep.subr.bf16.mxu1 %v1053_v9  ;;  %v1069_v25 = vld [vmem:[%s1473_s1 + $0xc8] sm:$0xff]   ;;  %v1073_v29 = vld [vmem:[%s1473_s1 + $0xc0] sm:$0xff]  }
   0xb   :  { %v1070_v26 = vld [vmem:[%s1473_s1 + $0x8] sm:$0xff]   ;;  %v1074_v30 = vld [vmem:[%s1473_s1] sm:$0xff]  }
   0xc   :  { %921 = vmatpush3.bf16.msra.mxu0 %v1054_v10  ;;  %v1071_v27 = vld [vmem:[%s1473_s1 + $0x88] sm:$0xff]   ;;  %v1075_v31 = vld [vmem:[%s1473_s1 + $0x80] sm:$0xff]  }
   0xd   :  { %985 = vmatpush3.bf16.msra.mxu1 %v1055_v11  ;;  %922 = vmatprep.subr.bf16.mxu0 %v1056_v12  ;;  %v1076_v32 = vld [vmem:[%s1474_s0] ss:$16 sps:$4 sm:$0xff]   ;;  %v1078_v33 = vld [vmem:[%s1474_s0 + $0x4] ss:$16 sps:$4 sm:$0xff]   ;;  %v1079_v34 = vld [vmem:[%s1474_s0 + $0x8] ss:$16 sps:$4 sm:$0xff]  }
   0xe   :  { %986 = vmatprep.subr.bf16.mxu1 %v1057_v13  ;;  %v1081_v35 = vld [vmem:[%s1474_s0 + $0xc] ss:$16 sps:$4 sm:$0xff]   ;;  %508 = vmatprep.mubr.bf16.mxu0 %v1078_v33  ;;  %v1082_v36 = vld [vmem:[%s1474_s0 + $0x24] ss:$16 sps:$4 sm:$0xff]   ;;  %v1086_v38 = vld [vmem:[%s1474_s0 + $0x20] ss:$16 sps:$4 sm:$0xff]  }
   0xf   :  { %605 = vmatprep.mubr.bf16.mxu1 %v1081_v35  ;;  %v1084_v37 = vld [vmem:[%s1474_s0 + $0x2c] ss:$16 sps:$4 sm:$0xff]   ;;  %v1087_v39 = vld [vmem:[%s1474_s0 + $0x28] ss:$16 sps:$4 sm:$0xff]   ;;  %v1088_v40 = vld [vmem:[%s1474_s0 + $0x44] ss:$16 sps:$4 sm:$0xff]  }
  0x10   :  { %923 = vmatpush3.bf16.msra.mxu0 %v1058_v14  ;;  %v1090_v41 = vld [vmem:[%s1474_s0 + $0x4c] ss:$16 sps:$4 sm:$0xff]   ;;  %v1092_v42 = vld [vmem:[%s1474_s0 + $0x40] ss:$16 sps:$4 sm:$0xff]   ;;  %v1093_v43 = vld [vmem:[%s1474_s0 + $0x48] ss:$16 sps:$4 sm:$0xff]  }
  0x11   :  { %987 = vmatpush3.bf16.msra.mxu1 %v1059_v15  ;;  %924 = vmatprep.subr.bf16.mxu0 %v1060_v16  ;;  %v1094_v44 = vld [vmem:[%s1474_s0 + $0x64] ss:$16 sps:$4 sm:$0xff]   ;;  %v1096_v45 = vld [vmem:[%s1474_s0 + $0x6c] ss:$16 sps:$4 sm:$0xff]   ;;  %v1098_v46 = vld [vmem:[%s1474_s0 + $0x60] ss:$16 sps:$4 sm:$0xff]  }
  0x12   :  { %988 = vmatprep.subr.bf16.mxu1 %v1061_v17  ;;  %v1099_v47 = vld [vmem:[%s1474_s0 + $0x68] ss:$16 sps:$4 sm:$0xff]   ;;  %v1100_v48 = vld [vmem:[%s1474_s0 + $0x84] ss:$16 sps:$4 sm:$0xff]   ;;  %v1102_v49 = vld [vmem:[%s1474_s0 + $0x8c] ss:$16 sps:$4 sm:$0xff]  }
  0x13   :  { %v1104_v50 = vld [vmem:[%s1474_s0 + $0x80] ss:$16 sps:$4 sm:$0xff]   ;;  %v1105_v51 = vld [vmem:[%s1474_s0 + $0x88] ss:$16 sps:$4 sm:$0xff]   ;;  %v1106_v52 = vld [vmem:[%s1474_s0 + $0xa4] ss:$16 sps:$4 sm:$0xff]  }
  0x14   :  { %925 = vmatpush3.bf16.msra.mxu0 %v1062_v18  ;;  %v1108_v53 = vld [vmem:[%s1474_s0 + $0xac] ss:$16 sps:$4 sm:$0xff]   ;;  %v1110_v54 = vld [vmem:[%s1474_s0 + $0xa0] ss:$16 sps:$4 sm:$0xff]   ;;  %v1111_v55 = vld [vmem:[%s1474_s0 + $0xa8] ss:$16 sps:$4 sm:$0xff]  }
  0x15   :  { %989 = vmatpush3.bf16.msra.mxu1 %v1063_v19  ;;  %926 = vmatprep.subr.bf16.mxu0 %v1064_v20  ;;  %v1112_v56 = vld [vmem:[%s1474_s0 + $0xc4] ss:$16 sps:$4 sm:$0xff]   ;;  %v1114_v57 = vld [vmem:[%s1474_s0 + $0xcc] ss:$16 sps:$4 sm:$0xff]   ;;  %v1116_v58 = vld [vmem:[%s1474_s0 + $0xc0] ss:$16 sps:$4 sm:$0xff]  }
  0x16   :  { %990 = vmatprep.subr.bf16.mxu1 %v1065_v21  ;;  %v1117_v59 = vld [vmem:[%s1474_s0 + $0xc8] ss:$16 sps:$4 sm:$0xff]   ;;  %v1118_v60 = vld [vmem:[%s1474_s0 + $0xe4] ss:$16 sps:$4 sm:$0xff]   ;;  %v1120_v61 = vld [vmem:[%s1474_s0 + $0xec] ss:$16 sps:$4 sm:$0xff]  }
  0x17   :  { %v1122_v62 = vld [vmem:[%s1474_s0 + $0xe0] ss:$16 sps:$4 sm:$0xff]   ;;  %v1123_v63 = vld [vmem:[%s1474_s0 + $0xe8] ss:$16 sps:$4 sm:$0xff]  }
  0x18   :  { %927 = vmatpush3.bf16.msra.mxu0 %v1066_v22  ;;  %v1349_v2 = vld [vmem:[%s1475_s2] ss:$0 sm:$0xff] }
  0x19   :  { %991 = vmatpush3.bf16.msra.mxu1 %v1067_v23  ;;  %928 = vmatprep.subr.bf16.mxu0 %v1068_v24  ;;  %v1355_v14 = vld [vmem:[%s1476_s3] ss:$0 sm:$0xff] }
  0x1a   :  { %992 = vmatprep.subr.bf16.mxu1 %v1069_v25  ;;  %v1361_v20 = vld [vmem:[%s1477_s4] ss:$0 sm:$0xff] }
  0x1c   :  { %929 = vmatpush3.bf16.msra.mxu0 %v1070_v26 }
  0x1d   :  { %993 = vmatpush3.bf16.msra.mxu1 %v1071_v27  ;;  %930 = vmatprep.subr.bf16.mxu0 %v1072_v28 }
  0x1e   :  { %994 = vmatprep.subr.bf16.mxu1 %v1073_v29 }
  0x20   :  { %931 = vmatpush3.bf16.msra.mxu0 %v1074_v30 }
  0x21   :  { %995 = vmatpush3.bf16.msra.mxu1 %v1075_v31 }
  0x23   :  { %509 = vmatmul.mubr.bf16.vlgmr.msra.gmra.mxu0 %v1076_v32 }
  0x24   :  { %606 = vmatmul.mubr.bf16.vlgmr.msra.gmra.mxu1 %v1079_v34  ;;  %516 = vmatprep.mubr.bf16.mxu0 %v1082_v36 }
  0x25   :  { %613 = vmatprep.mubr.bf16.mxu1 %v1084_v37 }
  0x2b   :  { %517 = vmatmul.mubr.bf16.gmra.mxu0 %v1086_v38 }
  0x2c   :  { %614 = vmatmul.mubr.bf16.gmra.mxu1 %v1087_v39  ;;  %524 = vmatprep.mubr.bf16.mxu0 %v1088_v40 }
  0x2d   :  { %621 = vmatprep.mubr.bf16.mxu1 %v1090_v41 }
  0x33   :  { %525 = vmatmul.mubr.bf16.gmra.mxu0 %v1092_v42 }
  0x34   :  { %622 = vmatmul.mubr.bf16.gmra.mxu1 %v1093_v43  ;;  %532 = vmatprep.mubr.bf16.mxu0 %v1094_v44 }
  0x35   :  { %629 = vmatprep.mubr.bf16.mxu1 %v1096_v45 }
  0x3b   :  { %533 = vmatmul.mubr.bf16.gmra.mxu0 %v1098_v46 }
  0x3c   :  { %630 = vmatmul.mubr.bf16.gmra.mxu1 %v1099_v47  ;;  %540 = vmatprep.mubr.bf16.mxu0 %v1100_v48 }
  0x3d   :  { %637 = vmatprep.mubr.bf16.mxu1 %v1102_v49 }
  0x43   :  { %541 = vmatmul.mubr.bf16.gmra.mxu0 %v1104_v50 }
  0x44   :  { %638 = vmatmul.mubr.bf16.gmra.mxu1 %v1105_v51  ;;  %548 = vmatprep.mubr.bf16.mxu0 %v1106_v52 }
  0x45   :  { %645 = vmatprep.mubr.bf16.mxu1 %v1108_v53 }
  0x4b   :  { %549 = vmatmul.mubr.bf16.gmra.mxu0 %v1110_v54 }
  0x4c   :  { %646 = vmatmul.mubr.bf16.gmra.mxu1 %v1111_v55  ;;  %556 = vmatprep.mubr.bf16.mxu0 %v1112_v56 }
  0x4d   :  { %653 = vmatprep.mubr.bf16.mxu1 %v1114_v57 }
  0x53   :  { %557 = vmatmul.mubr.bf16.gmra.mxu0 %v1116_v58 }
  0x54   :  { %654 = vmatmul.mubr.bf16.gmra.mxu1 %v1117_v59  ;;  %564 = vmatprep.mubr.bf16.mxu0 %v1118_v60 }
  0x55   :  { %661 = vmatprep.mubr.bf16.mxu1 %v1120_v61 }
  0x5b   :  { %565 = vmatmul.mubr.bf16.gmra.mxu0 %v1122_v62 }
  0x5c   :  { %662 = vmatmul.mubr.bf16.gmra.mxu1 %v1123_v63 }
  0xe3   :  { %v932_v0 = vpop.f32.mrf.mxu0 }
  0xe4   :  { %v996_v1 = vpop.f32.mrf.mxu1 }
  0xe5   :  { %v933_v3 = vpop.f32.mrf.mxu0 }
  0xe6   :  { %v934_v4 = vadd.f32 %v933_v3, %v932_v0  ;;  %v997_v5 = vpop.f32.mrf.mxu1 }
  0xe7   :  { %v935_v6 = vpop.f32.mrf.mxu0  ;;  %v998_v8 = vadd.f32 %v997_v5, %v996_v1 }
  0xe8   :  { %v511_v7 = vadd.f32 %v934_v4, %v1349_v2  ;;  %v999_v9 = vpop.f32.mrf.mxu1 }
  0xe9   :  { %v936_v10 = vpop.f32.mrf.mxu0 }
  0xea   :  { %v608_v11 = vadd.f32 %v998_v8, %v511_v7  ;;  %v937_v12 = vadd.f32 %v936_v10, %v935_v6  ;;  %v1000_v13 = vpop.f32.mrf.mxu1 }
  0xeb   :  { %v938_v15 = vpop.f32.mrf.mxu0  ;;  %v1001_v18 = vadd.f32 %v1000_v13, %v999_v9 }
  0xec   :  { %v670_v16 = vmax.f32 %v608_v11, 0.0  ;;  %v514_v17 = vadd.f32 %v937_v12, %v1349_v2  ;;  %v1002_v19 = vpop.f32.mrf.mxu1 }
  0xed   :  { %v939_v21 = vpop.f32.mrf.mxu0 }
  0xee   :  { %v693_v22 = vmul.f32 %v1355_v14, %v670_v16  ;;  %v611_v23 = vadd.f32 %v1001_v18, %v514_v17  ;;  %v940_v24 = vadd.f32 %v939_v21, %v938_v15  ;;  %v1003_v25 = vpop.f32.mrf.mxu1 }
  0xef   :  { %v941_v26 = vpop.f32.mrf.mxu0  ;;  %v1004_v30 = vadd.f32 %v1003_v25, %v1002_v19 }
  0xf0   :  { %v716_v27 = vadd.f32 %v1361_v20, %v693_v22  ;;  %v671_v28 = vmax.f32 %v611_v23, 0.0  ;;  %v519_v29 = vadd.f32 %v940_v24, %v1349_v2  ;;  %v1005_v31 = vpop.f32.mrf.mxu1 }
  0xf1   :  { %v942_v32 = vpop.f32.mrf.mxu0 }
  0xf2   :  { %v900_v33 = vpack.c.bf16 %v716_v27, %v716_v27  ;;  %v694_v34 = vmul.f32 %v1355_v14, %v671_v28  ;;  %v616_v35 = vadd.f32 %v1004_v30, %v519_v29  ;;  %v943_v36 = vadd.f32 %v942_v32, %v941_v26  ;;  %v1006_v37 = vpop.f32.mrf.mxu1 }
  0xf3   :  { %v944_v38 = vpop.f32.mrf.mxu0  ;;  %v1007_v42 = vadd.f32 %v1006_v37, %v1005_v31 }
  0xf4   :  { %797 = vst.msk [vmem:[%s1478_s5] sm:$0xf] %vm796_vm0, %v900_v33  ;;  %v717_v39 = vadd.f32 %v1361_v20, %v694_v34  ;;  %v672_v40 = vmax.f32 %v616_v35, 0.0  ;;  %v522_v41 = vadd.f32 %v943_v36, %v1349_v2  ;;  %v1008_v43 = vpop.f32.mrf.mxu1 }
  0xf5   :  { %v945_v44 = vpop.f32.mrf.mxu0 }
  0xf6   :  { %v901_v45 = vpack.c.bf16 %v717_v39, %v717_v39  ;;  %v695_v46 = vmul.f32 %v1355_v14, %v672_v40  ;;  %v619_v47 = vadd.f32 %v1007_v42, %v522_v41  ;;  %v946_v48 = vadd.f32 %v945_v44, %v944_v38  ;;  %v1009_v49 = vpop.f32.mrf.mxu1 }
  0xf7   :  { %v947_v50 = vpop.f32.mrf.mxu0  ;;  %v1010_v54 = vadd.f32 %v1009_v49, %v1008_v43 }
  0xf8   :  { %798 = vst.msk [vmem:[%s1478_s5 + $0x4] sm:$0xf] %vm796_vm0, %v901_v45  ;;  %v718_v51 = vadd.f32 %v1361_v20, %v695_v46  ;;  %v673_v52 = vmax.f32 %v619_v47, 0.0  ;;  %v527_v53 = vadd.f32 %v946_v48, %v1349_v2  ;;  %v1011_v55 = vpop.f32.mrf.mxu1 }
  0xf9   :  { %v948_v56 = vpop.f32.mrf.mxu0 }
  0xfa   :  { %v902_v57 = vpack.c.bf16 %v718_v51, %v718_v51  ;;  %v696_v58 = vmul.f32 %v1355_v14, %v673_v52  ;;  %v624_v59 = vadd.f32 %v1010_v54, %v527_v53  ;;  %v949_v60 = vadd.f32 %v948_v56, %v947_v50  ;;  %v1012_v61 = vpop.f32.mrf.mxu1 }
  0xfb   :  { %v950_v62 = vpop.f32.mrf.mxu0  ;;  %v1013_v3 = vadd.f32 %v1012_v61, %v1011_v55 }
  0xfc   :  { %799 = vst.msk [vmem:[%s1478_s5 + $0x8] sm:$0xf] %vm796_vm0, %v902_v57  ;;  %v719_v63 = vadd.f32 %v1361_v20, %v696_v58  ;;  %v674_v0 = vmax.f32 %v624_v59, 0.0  ;;  %v530_v1 = vadd.f32 %v949_v60, %v1349_v2  ;;  %v1014_v4 = vpop.f32.mrf.mxu1 }
  0xfd   :  { %v951_v5 = vpop.f32.mrf.mxu0 }
  0xfe   :  { %v903_v6 = vpack.c.bf16 %v719_v63, %v719_v63  ;;  %v697_v7 = vmul.f32 %v1355_v14, %v674_v0  ;;  %v627_v8 = vadd.f32 %v1013_v3, %v530_v1  ;;  %v952_v9 = vadd.f32 %v951_v5, %v950_v62  ;;  %v1015_v10 = vpop.f32.mrf.mxu1 }
  0xff   :  { %v953_v11 = vpop.f32.mrf.mxu0  ;;  %v1016_v16 = vadd.f32 %v1015_v10, %v1014_v4 }
 0x100   :  { %800 = vst.msk [vmem:[%s1478_s5 + $0xc] sm:$0xf] %vm796_vm0, %v903_v6  ;;  %v720_v12 = vadd.f32 %v1361_v20, %v697_v7  ;;  %v675_v13 = vmax.f32 %v627_v8, 0.0  ;;  %v535_v15 = vadd.f32 %v952_v9, %v1349_v2  ;;  %v1017_v17 = vpop.f32.mrf.mxu1 }
 0x101   :  { %v954_v18 = vpop.f32.mrf.mxu0 }
 0x102   :  { %v904_v19 = vpack.c.bf16 %v720_v12, %v720_v12  ;;  %v698_v21 = vmul.f32 %v1355_v14, %v675_v13  ;;  %v632_v22 = vadd.f32 %v1016_v16, %v535_v15  ;;  %v955_v23 = vadd.f32 %v954_v18, %v953_v11  ;;  %v1018_v24 = vpop.f32.mrf.mxu1 }
 0x103   :  { %v956_v25 = vpop.f32.mrf.mxu0  ;;  %v1019_v29 = vadd.f32 %v1018_v24, %v1017_v17 }
 0x104   :  { %801 = vst.msk [vmem:[%s1478_s5 + $0x10] sm:$0xf] %vm796_vm0, %v904_v19  ;;  %v721_v26 = vadd.f32 %v1361_v20, %v698_v21  ;;  %v676_v27 = vmax.f32 %v632_v22, 0.0  ;;  %v538_v28 = vadd.f32 %v955_v23, %v1349_v2  ;;  %v1020_v30 = vpop.f32.mrf.mxu1 }
 0x105   :  { %v957_v31 = vpop.f32.mrf.mxu0 }
 0x106   :  { %v905_v32 = vpack.c.bf16 %v721_v26, %v721_v26  ;;  %v699_v33 = vmul.f32 %v1355_v14, %v676_v27  ;;  %v635_v34 = vadd.f32 %v1019_v29, %v538_v28  ;;  %v958_v35 = vadd.f32 %v957_v31, %v956_v25  ;;  %v1021_v36 = vpop.f32.mrf.mxu1 }
 0x107   :  { %v959_v37 = vpop.f32.mrf.mxu0  ;;  %v1022_v41 = vadd.f32 %v1021_v36, %v1020_v30 }
 0x108   :  { %802 = vst.msk [vmem:[%s1478_s5 + $0x14] sm:$0xf] %vm796_vm0, %v905_v32  ;;  %v722_v38 = vadd.f32 %v1361_v20, %v699_v33  ;;  %v677_v39 = vmax.f32 %v635_v34, 0.0  ;;  %v543_v40 = vadd.f32 %v958_v35, %v1349_v2  ;;  %v1023_v42 = vpop.f32.mrf.mxu1 }
 0x109   :  { %v960_v43 = vpop.f32.mrf.mxu0 }
 0x10a   :  { %v906_v44 = vpack.c.bf16 %v722_v38, %v722_v38  ;;  %v700_v45 = vmul.f32 %v1355_v14, %v677_v39  ;;  %v640_v46 = vadd.f32 %v1022_v41, %v543_v40  ;;  %v961_v47 = vadd.f32 %v960_v43, %v959_v37  ;;  %v1024_v48 = vpop.f32.mrf.mxu1 }
 0x10b   :  { %v962_v49 = vpop.f32.mrf.mxu0  ;;  %v1025_v53 = vadd.f32 %v1024_v48, %v1023_v42 }
 0x10c   :  { %803 = vst.msk [vmem:[%s1478_s5 + $0x18] sm:$0xf] %vm796_vm0, %v906_v44  ;;  %v723_v50 = vadd.f32 %v1361_v20, %v700_v45  ;;  %v678_v51 = vmax.f32 %v640_v46, 0.0  ;;  %v546_v52 = vadd.f32 %v961_v47, %v1349_v2  ;;  %v1026_v54 = vpop.f32.mrf.mxu1 }
 0x10d   :  { %v963_v55 = vpop.f32.mrf.mxu0 }
 0x10e   :  { %v907_v56 = vpack.c.bf16 %v723_v50, %v723_v50  ;;  %v701_v57 = vmul.f32 %v1355_v14, %v678_v51  ;;  %v643_v58 = vadd.f32 %v1025_v53, %v546_v52  ;;  %v964_v59 = vadd.f32 %v963_v55, %v962_v49  ;;  %v1027_v60 = vpop.f32.mrf.mxu1 }
 0x10f   :  { %v965_v61 = vpop.f32.mrf.mxu0  ;;  %v1028_v1 = vadd.f32 %v1027_v60, %v1026_v54 }
 0x110   :  { %804 = vst.msk [vmem:[%s1478_s5 + $0x1c] sm:$0xf] %vm796_vm0, %v907_v56  ;;  %v724_v62 = vadd.f32 %v1361_v20, %v701_v57  ;;  %v679_v63 = vmax.f32 %v643_v58, 0.0  ;;  %v551_v0 = vadd.f32 %v964_v59, %v1349_v2  ;;  %v1029_v3 = vpop.f32.mrf.mxu1 }
 0x111   :  { %v966_v4 = vpop.f32.mrf.mxu0 }
 0x112   :  { %v908_v5 = vpack.c.bf16 %v724_v62, %v724_v62  ;;  %v702_v6 = vmul.f32 %v1355_v14, %v679_v63  ;;  %v648_v7 = vadd.f32 %v1028_v1, %v551_v0  ;;  %v967_v8 = vadd.f32 %v966_v4, %v965_v61  ;;  %v1030_v9 = vpop.f32.mrf.mxu1 }
 0x113   :  { %v968_v10 = vpop.f32.mrf.mxu0  ;;  %v1031_v15 = vadd.f32 %v1030_v9, %v1029_v3 }
 0x114   :  { %805 = vst.msk [vmem:[%s1478_s5 + $0x20] sm:$0xf] %vm796_vm0, %v908_v5  ;;  %v725_v11 = vadd.f32 %v1361_v20, %v702_v6  ;;  %v680_v12 = vmax.f32 %v648_v7, 0.0  ;;  %v554_v13 = vadd.f32 %v967_v8, %v1349_v2  ;;  %v1032_v16 = vpop.f32.mrf.mxu1 }
 0x115   :  { %v969_v17 = vpop.f32.mrf.mxu0 }
 0x116   :  { %v909_v18 = vpack.c.bf16 %v725_v11, %v725_v11  ;;  %v703_v19 = vmul.f32 %v1355_v14, %v680_v12  ;;  %v651_v21 = vadd.f32 %v1031_v15, %v554_v13  ;;  %v970_v22 = vadd.f32 %v969_v17, %v968_v10  ;;  %v1033_v23 = vpop.f32.mrf.mxu1 }
 0x117   :  { %v971_v24 = vpop.f32.mrf.mxu0  ;;  %v1034_v28 = vadd.f32 %v1033_v23, %v1032_v16 }
 0x118   :  { %806 = vst.msk [vmem:[%s1478_s5 + $0x24] sm:$0xf] %vm796_vm0, %v909_v18  ;;  %v726_v25 = vadd.f32 %v1361_v20, %v703_v19  ;;  %v681_v26 = vmax.f32 %v651_v21, 0.0  ;;  %v559_v27 = vadd.f32 %v970_v22, %v1349_v2  ;;  %v1035_v29 = vpop.f32.mrf.mxu1 }
 0x119   :  { %v972_v30 = vpop.f32.mrf.mxu0 }
 0x11a   :  { %v910_v31 = vpack.c.bf16 %v726_v25, %v726_v25  ;;  %v704_v32 = vmul.f32 %v1355_v14, %v681_v26  ;;  %v656_v33 = vadd.f32 %v1034_v28, %v559_v27  ;;  %v973_v34 = vadd.f32 %v972_v30, %v971_v24  ;;  %v1036_v35 = vpop.f32.mrf.mxu1 }
 0x11b   :  { %v974_v36 = vpop.f32.mrf.mxu0  ;;  %v1037_v40 = vadd.f32 %v1036_v35, %v1035_v29 }
 0x11c   :  { %807 = vst.msk [vmem:[%s1478_s5 + $0x28] sm:$0xf] %vm796_vm0, %v910_v31  ;;  %v727_v37 = vadd.f32 %v1361_v20, %v704_v32  ;;  %v682_v38 = vmax.f32 %v656_v33, 0.0  ;;  %v562_v39 = vadd.f32 %v973_v34, %v1349_v2  ;;  %v1038_v41 = vpop.f32.mrf.mxu1 }
 0x11d   :  { %v975_v42 = vpop.f32.mrf.mxu0 }
 0x11e   :  { %v911_v43 = vpack.c.bf16 %v727_v37, %v727_v37  ;;  %v705_v44 = vmul.f32 %v1355_v14, %v682_v38  ;;  %v659_v45 = vadd.f32 %v1037_v40, %v562_v39  ;;  %v976_v46 = vadd.f32 %v975_v42, %v974_v36  ;;  %v1039_v47 = vpop.f32.mrf.mxu1 }
 0x11f   :  { %v977_v48 = vpop.f32.mrf.mxu0  ;;  %v1040_v52 = vadd.f32 %v1039_v47, %v1038_v41 }
 0x120   :  { %808 = vst.msk [vmem:[%s1478_s5 + $0x2c] sm:$0xf] %vm796_vm0, %v911_v43  ;;  %v728_v49 = vadd.f32 %v1361_v20, %v705_v44  ;;  %v683_v50 = vmax.f32 %v659_v45, 0.0  ;;  %v567_v51 = vadd.f32 %v976_v46, %v1349_v2  ;;  %v1041_v53 = vpop.f32.mrf.mxu1 }
 0x121   :  { %v978_v54 = vpop.f32.mrf.mxu0 }
 0x122   :  { %v912_v55 = vpack.c.bf16 %v728_v49, %v728_v49  ;;  %v706_v56 = vmul.f32 %v1355_v14, %v683_v50  ;;  %v664_v57 = vadd.f32 %v1040_v52, %v567_v51  ;;  %v979_v58 = vadd.f32 %v978_v54, %v977_v48  ;;  %v1042_v59 = vpop.f32.mrf.mxu1 }
 0x123   :  { %v1043_v63 = vadd.f32 %v1042_v59, %v1041_v53 }
 0x124   :  { %809 = vst.msk [vmem:[%s1478_s5 + $0x30] sm:$0xf] %vm796_vm0, %v912_v55  ;;  %v729_v60 = vadd.f32 %v1361_v20, %v706_v56  ;;  %v684_v61 = vmax.f32 %v664_v57, 0.0  ;;  %v570_v62 = vadd.f32 %v979_v58, %v1349_v2 }
 0x126   :  { %v913_v0 = vpack.c.bf16 %v729_v60, %v729_v60  ;;  %v707_v1 = vmul.f32 %v1355_v14, %v684_v61  ;;  %v667_v3 = vadd.f32 %v1043_v63, %v570_v62 }
 0x128   :  { %810 = vst.msk [vmem:[%s1478_s5 + $0x34] sm:$0xf] %vm796_vm0, %v913_v0  ;;  %v730_v4 = vadd.f32 %v1361_v20, %v707_v1  ;;  %v685_v5 = vmax.f32 %v667_v3, 0.0 }
 0x12a   :  { %v914_v6 = vpack.c.bf16 %v730_v4, %v730_v4  ;;  %v708_v7 = vmul.f32 %v1355_v14, %v685_v5 }
 0x12c   :  { %811 = vst.msk [vmem:[%s1478_s5 + $0x38] sm:$0xf] %vm796_vm0, %v914_v6  ;;  %v731_v2 = vadd.f32 %v1361_v20, %v708_v7 }
 0x12e   :  { %v915_v8 = vpack.c.bf16 %v731_v2, %v731_v2 }
 0x130   :  { %812 = vst.msk [vmem:[%s1478_s5 + $0x3c] sm:$0xf] %vm796_vm0, %v915_v8 }

// kernel: value_network_forward.7
= control target key start
LH: loop header
LB: loop body
LE: loop exit
PB: predicated region body
PF: predicated region fallthrough
CT: control target
= control target key end

     0   :  { %vm378_vm0 = vcmask 523264   ;;  %s959_s1 = inlined_call_operand.vmem [shape: bf16[576,128], index: 1, kind: input, shape index: {}]   ;;  %s960_s0 = inlined_call_operand.vmem [shape: bf16[32,576], index: 0, kind: input, shape index: {}]   ;;  %s961_s2 = inlined_call_operand.vmem [shape: f32[1,128], index: 2, kind: input, shape index: {}]   ;;  %s962_s3 = inlined_call_operand.vmem [shape: f32[1,128], index: 3, kind: input, shape index: {}]   ;;  %s963_s4 = inlined_call_operand.vmem [shape: f32[1,128], index: 4, kind: input, shape index: {}]   ;;  %s964_s5 = inlined_call_operand.vmem [shape: bf16[32,128], index: 5, kind: output, shape index: {}]  }
   0x1   :  { %v726_v0 = vld [vmem:[%s959_s1 + $0x78] sm:$0xff]   ;;  %v730_v4 = vld [vmem:[%s959_s1 + $0x70] sm:$0xff]   ;;  %v734_v8 = vld [vmem:[%s959_s1 + $0x68] sm:$0xff]  }
   0x2   :  { %v727_v1 = vld [vmem:[%s959_s1 + $0xf8] sm:$0xff]   ;;  %652 = vmatprep.subr.bf16.mxu0 %v726_v0  ;;  %v731_v5 = vld [vmem:[%s959_s1 + $0xf0] sm:$0xff]   ;;  %v735_v9 = vld [vmem:[%s959_s1 + $0xe8] sm:$0xff]  }
   0x3   :  { %v728_v2 = vld [vmem:[%s959_s1 + $0x38] sm:$0xff]   ;;  %680 = vmatprep.subr.bf16.mxu1 %v727_v1  ;;  %v732_v6 = vld [vmem:[%s959_s1 + $0x30] sm:$0xff]   ;;  %v736_v10 = vld [vmem:[%s959_s1 + $0x28] sm:$0xff]  }
   0x4   :  { %v729_v3 = vld [vmem:[%s959_s1 + $0xb8] sm:$0xff]   ;;  %653 = vmatpush3.bf16.msra.mxu0 %v728_v2  ;;  %v733_v7 = vld [vmem:[%s959_s1 + $0xb0] sm:$0xff]   ;;  %v737_v11 = vld [vmem:[%s959_s1 + $0xa8] sm:$0xff]  }
   0x5   :  { %681 = vmatpush3.bf16.msra.mxu1 %v729_v3  ;;  %654 = vmatprep.subr.bf16.mxu0 %v730_v4  ;;  %v738_v12 = vld [vmem:[%s959_s1 + $0x60] sm:$0xff]   ;;  %v742_v16 = vld [vmem:[%s959_s1 + $0x58] sm:$0xff]   ;;  %v746_v20 = vld [vmem:[%s959_s1 + $0x50] sm:$0xff]  }
   0x6   :  { %682 = vmatprep.subr.bf16.mxu1 %v731_v5  ;;  %v739_v13 = vld [vmem:[%s959_s1 + $0xe0] sm:$0xff]   ;;  %v743_v17 = vld [vmem:[%s959_s1 + $0xd8] sm:$0xff]   ;;  %v747_v21 = vld [vmem:[%s959_s1 + $0xd0] sm:$0xff]  }
   0x7   :  { %v740_v14 = vld [vmem:[%s959_s1 + $0x20] sm:$0xff]   ;;  %v744_v18 = vld [vmem:[%s959_s1 + $0x18] sm:$0xff]   ;;  %v748_v22 = vld [vmem:[%s959_s1 + $0x10] sm:$0xff]  }
   0x8   :  { %655 = vmatpush3.bf16.msra.mxu0 %v732_v6  ;;  %v741_v15 = vld [vmem:[%s959_s1 + $0xa0] sm:$0xff]   ;;  %v745_v19 = vld [vmem:[%s959_s1 + $0x98] sm:$0xff]   ;;  %v749_v23 = vld [vmem:[%s959_s1 + $0x90] sm:$0xff]  }
   0x9   :  { %683 = vmatpush3.bf16.msra.mxu1 %v733_v7  ;;  %656 = vmatprep.subr.bf16.mxu0 %v734_v8  ;;  %v750_v24 = vld [vmem:[%s959_s1 + $0x48] sm:$0xff]   ;;  %v754_v28 = vld [vmem:[%s959_s1 + $0x40] sm:$0xff]   ;;  %v764_v36 = vld [vmem:[%s959_s1 + $0x118] sm:$0xff]  }
   0xa   :  { %684 = vmatprep.subr.bf16.mxu1 %v735_v9  ;;  %v751_v25 = vld [vmem:[%s959_s1 + $0xc8] sm:$0xff]   ;;  %v755_v29 = vld [vmem:[%s959_s1 + $0xc0] sm:$0xff]   ;;  %v765_v37 = vld [vmem:[%s959_s1 + $0x110] sm:$0xff]  }
   0xb   :  { %v752_v26 = vld [vmem:[%s959_s1 + $0x8] sm:$0xff]   ;;  %v756_v30 = vld [vmem:[%s959_s1] sm:$0xff]  }
   0xc   :  { %657 = vmatpush3.bf16.msra.mxu0 %v736_v10  ;;  %v753_v27 = vld [vmem:[%s959_s1 + $0x88] sm:$0xff]   ;;  %v757_v31 = vld [vmem:[%s959_s1 + $0x80] sm:$0xff]  }
   0xd   :  { %685 = vmatpush3.bf16.msra.mxu1 %v737_v11  ;;  %658 = vmatprep.subr.bf16.mxu0 %v738_v12  ;;  %v758_v32 = vld [vmem:[%s960_s0] ss:$20 sps:$4 sm:$0xff]   ;;  %v760_v33 = vld [vmem:[%s960_s0 + $0x4] ss:$20 sps:$4 sm:$0xff]   ;;  %v761_v34 = vld [vmem:[%s960_s0 + $0x8] ss:$20 sps:$4 sm:$0xff]  }
   0xe   :  { %686 = vmatprep.subr.bf16.mxu1 %v739_v13  ;;  %v763_v35 = vld [vmem:[%s960_s0 + $0xc] ss:$20 sps:$4 sm:$0xff]   ;;  %417 = vmatprep.mubr.bf16.mxu0 %v760_v33  ;;  %v768_v39 = vld [vmem:[%s960_s0 + $0x34] ss:$20 sps:$4 sm:$0xff]   ;;  %v771_v42 = vld [vmem:[%s960_s0 + $0x30] ss:$20 sps:$4 sm:$0xff]  }
   0xf   :  { %466 = vmatprep.mubr.bf16.mxu1 %v763_v35  ;;  %v766_v38 = vld [vmem:[%s960_s0 + $0x2c] ss:$20 sps:$4 sm:$0xff]   ;;  %v770_v40 = vld [vmem:[%s960_s0 + $0x28] ss:$20 sps:$4 sm:$0xff]   ;;  %v774_v43 = vld [vmem:[%s960_s0 + $0x10] ss:$20 sps:$4 sm:$0xff]  }
  0x10   :  { %659 = vmatpush3.bf16.msra.mxu0 %v740_v14  ;;  %v772_v41 = vld [vmem:[%s959_s1 + $0x108] sm:$0xff]   ;;  %v773_v44 = vld [vmem:[%s959_s1 + $0x100] sm:$0xff]  }
  0x11   :  { %687 = vmatpush3.bf16.msra.mxu1 %v741_v15  ;;  %660 = vmatprep.subr.bf16.mxu0 %v742_v16  ;;  %v775_v45 = vld [vmem:[%s960_s0 + $0x38] ss:$20 sps:$4 sm:$0xff]   ;;  %v582_v58 = vld [vmem:[%s961_s2] ss:$0 sm:$0xff] }
  0x12   :  { %688 = vmatprep.subr.bf16.mxu1 %v743_v17 }
  0x14   :  { %661 = vmatpush3.bf16.msra.mxu0 %v744_v18 }
  0x15   :  { %689 = vmatpush3.bf16.msra.mxu1 %v745_v19  ;;  %662 = vmatprep.subr.bf16.mxu0 %v746_v20  ;;  %v631_v19 = vld [vmem:[%s962_s3] ss:$0 sm:$0xff] }
  0x16   :  { %690 = vmatprep.subr.bf16.mxu1 %v747_v21 }
  0x18   :  { %663 = vmatpush3.bf16.msra.mxu0 %v748_v22 }
  0x19   :  { %691 = vmatpush3.bf16.msra.mxu1 %v749_v23  ;;  %664 = vmatprep.subr.bf16.mxu0 %v750_v24 }
  0x1a   :  { %692 = vmatprep.subr.bf16.mxu1 %v751_v25 }
  0x1c   :  { %665 = vmatpush3.bf16.msra.mxu0 %v752_v26 }
  0x1d   :  { %693 = vmatpush3.bf16.msra.mxu1 %v753_v27  ;;  %666 = vmatprep.subr.bf16.mxu0 %v754_v28  ;;  %v632_v28 = vld [vmem:[%s963_s4] ss:$0 sm:$0xff] }
  0x1e   :  { %694 = vmatprep.subr.bf16.mxu1 %v755_v29 }
  0x20   :  { %667 = vmatpush3.bf16.msra.mxu0 %v756_v30 }
  0x21   :  { %695 = vmatpush3.bf16.msra.mxu1 %v757_v31  ;;  %714 = vmatprep.subr.bf16.mxu0 %v764_v36 }
  0x23   :  { %418 = vmatmul.mubr.bf16.vlgmr.msra.gmra.mxu0 %v758_v32 }
  0x24   :  { %467 = vmatmul.mubr.bf16.vlgmr.msra.gmra.mxu1 %v761_v34  ;;  %715 = vmatpush3.bf16.msra.mxu0 %v764_v36 }
  0x25   :  { %716 = vmatprep.subr.bf16.mxu0 %v765_v37  ;;  %425 = vmatprep.mubr.bf16.mxu0 %v766_v38 }
  0x26   :  { %474 = vmatprep.mubr.bf16.mxu1 %v768_v39 }
  0x28   :  { %717 = vmatpush3.bf16.msra.mxu0 %v765_v37 }
  0x29   :  { %718 = vmatprep.subr.bf16.mxu0 %v772_v41 }
  0x2b   :  { %426 = vmatmul.mubr.bf16.gmra.mxu0 %v770_v40 }
  0x2c   :  { %475 = vmatmul.mubr.bf16.gmra.mxu1 %v771_v42  ;;  %722 = vmatprep.mubr.msk.bf16.mxu0 %vm378_vm0, %v774_v43 }
  0x2d   :  { %719 = vmatpush3.bf16.msra.mxu0 %v772_v41 }
  0x2e   :  { %720 = vmatprep.subr.bf16.mxu0 %v773_v44 }
  0x31   :  { %721 = vmatpush3.bf16.msra.mxu0 %v773_v44 }
  0x34   :  { %723 = vmatmul.mubr.msk.bf16.vlgmr.msra.gmra.mxu0 %vm378_vm0, %v775_v45 }
  0xe3   :  { %v668_v46 = vpop.f32.mrf.mxu0 }
  0xe4   :  { %v696_v47 = vpop.f32.mrf.mxu1 }
  0xe5   :  { %v669_v48 = vpop.f32.mrf.mxu0 }
  0xe6   :  { %v697_v49 = vpop.f32.mrf.mxu1  ;;  %v670_v56 = vadd.f32 %v669_v48, %v668_v46 }
  0xe7   :  { %v671_v50 = vpop.f32.mrf.mxu0  ;;  %v698_v2 = vadd.f32 %v697_v49, %v696_v47 }
  0xe8   :  { %v699_v51 = vpop.f32.mrf.mxu1  ;;  %v420_v1 = vadd.f32 %v670_v56, %v582_v58 }
  0xe9   :  { %v672_v52 = vpop.f32.mrf.mxu0 }
  0xea   :  { %v700_v53 = vpop.f32.mrf.mxu1  ;;  %v673_v3 = vadd.f32 %v672_v52, %v671_v50  ;;  %v469_v13 = vadd.f32 %v698_v2, %v420_v1 }
  0xeb   :  { %v674_v54 = vpop.f32.mrf.mxu0  ;;  %v701_v16 = vadd.f32 %v700_v53, %v699_v51 }
  0xec   :  { %v702_v55 = vpop.f32.mrf.mxu1  ;;  %v423_v11 = vadd.f32 %v673_v3, %v582_v58 }
  0xed   :  { %v675_v57 = vpop.f32.mrf.mxu0 }
  0xee   :  { %v676_v59 = vadd.f32 %v675_v57, %v674_v54  ;;  %v703_v60 = vpop.f32.mrf.mxu1  ;;  %v472_v23 = vadd.f32 %v701_v16, %v423_v11 }
  0xef   :  { %v704_v61 = vadd.f32 %v703_v60, %v702_v55  ;;  %v677_v62 = vpop.f32.mrf.mxu0 }
  0xf0   :  { %v428_v63 = vadd.f32 %v676_v59, %v582_v58  ;;  %v705_v0 = vpop.f32.mrf.mxu1 }
  0xf1   :  { %v678_v4 = vpop.f32.mrf.mxu0 }
  0xf2   :  { %v679_v5 = vadd.f32 %v678_v4, %v677_v62  ;;  %v706_v6 = vpop.f32.mrf.mxu1  ;;  %v477_v7 = vadd.f32 %v704_v61, %v428_v63 }
  0xf3   :  { %v707_v9 = vadd.f32 %v706_v6, %v705_v0 }
  0xf4   :  { %v431_v8 = vadd.f32 %v679_v5, %v582_v58  ;;  %v724_v10 = vpop.f32.mrf.mxu0 }
  0xf5   :  { %v526_v12 = vadd.f32 %v724_v10, %v477_v7 }
  0xf6   :  { %v517_v14 = vpop.f32.mrf.mxu0  ;;  %v480_v15 = vadd.f32 %v707_v9, %v431_v8 }
  0xf7   :  { %v534_v17 = vmax.f32 %v526_v12, 0.0  ;;  %v518_v18 = vadd.f32 %v517_v14, %v469_v13 }
  0xf8   :  { %v725_v20 = vpop.f32.mrf.mxu0 }
  0xf9   :  { %v532_v21 = vmax.f32 %v518_v18, 0.0  ;;  %v529_v22 = vadd.f32 %v725_v20, %v480_v15  ;;  %v545_v25 = vmul.f32 %v631_v19, %v534_v17 }
  0xfa   :  { %v520_v24 = vpop.f32.mrf.mxu0 }
  0xfb   :  { %v535_v26 = vmax.f32 %v529_v22, 0.0  ;;  %v521_v27 = vadd.f32 %v520_v24, %v472_v23  ;;  %v543_v29 = vmul.f32 %v631_v19, %v532_v21  ;;  %v556_v32 = vadd.f32 %v632_v28, %v545_v25 }
  0xfd   :  { %v546_v30 = vmul.f32 %v631_v19, %v535_v26  ;;  %v533_v31 = vmax.f32 %v521_v27, 0.0  ;;  %v554_v35 = vadd.f32 %v632_v28, %v543_v29 }
  0xff   :  { %v557_v33 = vadd.f32 %v632_v28, %v546_v30  ;;  %v544_v34 = vmul.f32 %v631_v19, %v533_v31 }
 0x101   :  { %v649_v36 = vpack.c.bf16 %v557_v33, %v556_v32  ;;  %v555_v37 = vadd.f32 %v632_v28, %v544_v34 }
 0x103   :  { %651 = vst [vmem:[%s964_s5 + $0x8] sm:$0xff] %v649_v36   ;;  %v644_v38 = vpack.c.bf16 %v555_v37, %v554_v35 }
 0x105   :  { %645 = vst [vmem:[%s964_s5] sm:$0xff] %v644_v38  }

// kernel: value_network_forward.8
= control target key start
LH: loop header
LB: loop body
LE: loop exit
PB: predicated region body
PF: predicated region fallthrough
CT: control target
= control target key end

     0   :  { %s2065_s1 = inlined_call_operand.vmem [shape: bf16[1152,256], index: 1, kind: input, shape index: {}]   ;;  %s2066_s0 = inlined_call_operand.vmem [shape: bf16[8,1152], index: 0, kind: input, shape index: {}]   ;;  %s2067_s2 = inlined_call_operand.vmem [shape: f32[1,256], index: 2, kind: input, shape index: {}]   ;;  %s2068_s3 = inlined_call_operand.vmem [shape: f32[1,256], index: 3, kind: input, shape index: {}]   ;;  %s2069_s4 = inlined_call_operand.vmem [shape: f32[1,256], index: 4, kind: input, shape index: {}]   ;;  %s2070_s5 = inlined_call_operand.vmem [shape: bf16[8,256], index: 5, kind: output, shape index: {}]  }
   0x1   :  { %v1338_v0 = vld [vmem:[%s2065_s1 + $0x74] ss:$8 sps:$4 sm:$0xff]   ;;  %v1340_v1 = vld [vmem:[%s2065_s1 + $0x70] ss:$8 sps:$4 sm:$0xff]   ;;  %v1344_v4 = vld [vmem:[%s2065_s1 + $0x64] ss:$8 sps:$4 sm:$0xff]  }
   0x2   :  { %934 = vmatprep.subr.bf16.mxu0 %v1338_v0  ;;  %v1341_v2 = vld [vmem:[%s2065_s1 + $0x174] ss:$8 sps:$4 sm:$0xff]   ;;  %v1343_v3 = vld [vmem:[%s2065_s1 + $0x170] ss:$8 sps:$4 sm:$0xff]   ;;  %v1346_v5 = vld [vmem:[%s2065_s1 + $0x60] ss:$8 sps:$4 sm:$0xff]  }
   0x3   :  { %935 = vmatpush1.bf16.msra.mxu0 %v1340_v1  ;;  %975 = vmatprep.subr.bf16.mxu1 %v1341_v2  ;;  %v1347_v6 = vld [vmem:[%s2065_s1 + $0x164] ss:$8 sps:$4 sm:$0xff]   ;;  %v1349_v7 = vld [vmem:[%s2065_s1 + $0x160] ss:$8 sps:$4 sm:$0xff]   ;;  %v1350_v8 = vld [vmem:[%s2065_s1 + $0x54] ss:$8 sps:$4 sm:$0xff]  }
   0x4   :  { %976 = vmatpush1.bf16.msra.mxu1 %v1343_v3  ;;  %936 = vmatprep.subr.bf16.mxu0 %v1344_v4  ;;  %v1352_v9 = vld [vmem:[%s2065_s1 + $0x50] ss:$8 sps:$4 sm:$0xff]   ;;  %v1353_v10 = vld [vmem:[%s2065_s1 + $0x154] ss:$8 sps:$4 sm:$0xff]   ;;  %v1356_v11 = vld [vmem:[%s2065_s1 + $0x44] ss:$8 sps:$4 sm:$0xff]  }
   0x5   :  { %977 = vmatprep.subr.bf16.mxu1 %v1347_v6  ;;  %v1355_v12 = vld [vmem:[%s2065_s1 + $0x150] ss:$8 sps:$4 sm:$0xff]   ;;  %v1359_v13 = vld [vmem:[%s2065_s1 + $0x144] ss:$8 sps:$4 sm:$0xff]   ;;  %v1358_v14 = vld [vmem:[%s2065_s1 + $0x40] ss:$8 sps:$4 sm:$0xff]  }
   0x6   :  { %v1362_v15 = vld [vmem:[%s2065_s1 + $0x34] ss:$8 sps:$4 sm:$0xff]   ;;  %v1361_v16 = vld [vmem:[%s2065_s1 + $0x140] ss:$8 sps:$4 sm:$0xff]   ;;  %v1364_v18 = vld [vmem:[%s2065_s1 + $0x30] ss:$8 sps:$4 sm:$0xff]  }
   0x7   :  { %937 = vmatpush1.bf16.msra.mxu0 %v1346_v5  ;;  %v1365_v17 = vld [vmem:[%s2065_s1 + $0x134] ss:$8 sps:$4 sm:$0xff]   ;;  %v1368_v19 = vld [vmem:[%s2065_s1 + $0x24] ss:$8 sps:$4 sm:$0xff]   ;;  %v1367_v20 = vld [vmem:[%s2065_s1 + $0x130] ss:$8 sps:$4 sm:$0xff]  }
   0x8   :  { %938 = vmatprep.subr.bf16.mxu0 %v1350_v8  ;;  %978 = vmatpush1.bf16.msra.mxu1 %v1349_v7  ;;  %v1371_v21 = vld [vmem:[%s2065_s1 + $0x124] ss:$8 sps:$4 sm:$0xff]   ;;  %v1370_v22 = vld [vmem:[%s2065_s1 + $0x20] ss:$8 sps:$4 sm:$0xff]   ;;  %v1374_v23 = vld [vmem:[%s2065_s1 + $0x14] ss:$8 sps:$4 sm:$0xff]  }
   0x9   :  { %979 = vmatprep.subr.bf16.mxu1 %v1353_v10  ;;  %v1373_v24 = vld [vmem:[%s2065_s1 + $0x120] ss:$8 sps:$4 sm:$0xff]   ;;  %v1377_v25 = vld [vmem:[%s2065_s1 + $0x114] ss:$8 sps:$4 sm:$0xff]   ;;  %v1376_v26 = vld [vmem:[%s2065_s1 + $0x10] ss:$8 sps:$4 sm:$0xff]  }
   0xa   :  { %v1380_v27 = vld [vmem:[%s2065_s1 + $0x4] ss:$8 sps:$4 sm:$0xff]   ;;  %v1379_v28 = vld [vmem:[%s2065_s1 + $0x110] ss:$8 sps:$4 sm:$0xff]   ;;  %v1382_v30 = vld [vmem:[%s2065_s1] ss:$8 sps:$4 sm:$0xff]  }
   0xb   :  { %939 = vmatpush1.bf16.msra.mxu0 %v1352_v9  ;;  %v1383_v29 = vld [vmem:[%s2065_s1 + $0x104] ss:$8 sps:$4 sm:$0xff]   ;;  %v1386_v31 = vld [vmem:[%s2065_s1 + $0xf4] ss:$8 sps:$4 sm:$0xff]   ;;  %v1385_v32 = vld [vmem:[%s2065_s1 + $0x100] ss:$8 sps:$4 sm:$0xff]  }
   0xc   :  { %940 = vmatprep.subr.bf16.mxu0 %v1356_v11  ;;  %980 = vmatpush1.bf16.msra.mxu1 %v1355_v12  ;;  %v1389_v33 = vld [vmem:[%s2065_s1 + $0x1f4] ss:$8 sps:$4 sm:$0xff]   ;;  %v1388_v34 = vld [vmem:[%s2065_s1 + $0xf0] ss:$8 sps:$4 sm:$0xff]   ;;  %v1392_v35 = vld [vmem:[%s2065_s1 + $0xe4] ss:$8 sps:$4 sm:$0xff]  }
   0xd   :  { %981 = vmatprep.subr.bf16.mxu1 %v1359_v13  ;;  %v1391_v36 = vld [vmem:[%s2065_s1 + $0x1f0] ss:$8 sps:$4 sm:$0xff]   ;;  %v1395_v37 = vld [vmem:[%s2065_s1 + $0x1e4] ss:$8 sps:$4 sm:$0xff]   ;;  %v1394_v38 = vld [vmem:[%s2065_s1 + $0xe0] ss:$8 sps:$4 sm:$0xff]  }
   0xe   :  { %v1398_v39 = vld [vmem:[%s2065_s1 + $0xd4] ss:$8 sps:$4 sm:$0xff]   ;;  %v1397_v40 = vld [vmem:[%s2065_s1 + $0x1e0] ss:$8 sps:$4 sm:$0xff]   ;;  %v1400_v42 = vld [vmem:[%s2065_s1 + $0xd0] ss:$8 sps:$4 sm:$0xff]  }
   0xf   :  { %941 = vmatpush1.bf16.msra.mxu0 %v1358_v14  ;;  %v1401_v41 = vld [vmem:[%s2065_s1 + $0x1d4] ss:$8 sps:$4 sm:$0xff]   ;;  %v1404_v43 = vld [vmem:[%s2065_s1 + $0xc4] ss:$8 sps:$4 sm:$0xff]   ;;  %v1403_v44 = vld [vmem:[%s2065_s1 + $0x1d0] ss:$8 sps:$4 sm:$0xff]  }
  0x10   :  { %942 = vmatprep.subr.bf16.mxu0 %v1362_v15  ;;  %982 = vmatpush1.bf16.msra.mxu1 %v1361_v16  ;;  %v1407_v45 = vld [vmem:[%s2065_s1 + $0x1c4] ss:$8 sps:$4 sm:$0xff]   ;;  %v1406_v47 = vld [vmem:[%s2065_s1 + $0xc0] ss:$8 sps:$4 sm:$0xff]   ;;  %v1410_v49 = vld [vmem:[%s2065_s1 + $0xb4] ss:$8 sps:$4 sm:$0xff]  }
  0x11   :  { %983 = vmatprep.subr.bf16.mxu1 %v1365_v17  ;;  %v21_v46 = vld [vmem:[%s2066_s0] sm:$0xff]  ;;  %v22_v50 = vld [vmem:[%s2066_s0 + $0x8] sm:$0xff]  ;;  %v1413_v53 = vld [vmem:[%s2065_s1 + $0x1b4] ss:$8 sps:$4 sm:$0xff]  }
  0x12   :  { %v1183_v48 = vcombine.high %v21_v46, %v21_v46  ;;  %v1409_v51 = vld [vmem:[%s2065_s1 + $0x1c0] ss:$8 sps:$4 sm:$0xff]   ;;  %v1185_v52 = vcombine.high %v22_v50, %v22_v50  ;;  %v1412_v54 = vld [vmem:[%s2065_s1 + $0xb0] ss:$8 sps:$4 sm:$0xff]   ;;  %v1416_v55 = vld [vmem:[%s2065_s1 + $0xa4] ss:$8 sps:$4 sm:$0xff]   ;;  %v1182_v5 = vcombine.low %v21_v46, %v21_v46  ;;  %v1184_v8 = vcombine.low %v22_v50, %v22_v50 }
  0x13   :  { %943 = vmatpush1.bf16.msra.mxu0 %v1364_v18  ;;  %v1415_v56 = vld [vmem:[%s2065_s1 + $0x1b0] ss:$8 sps:$4 sm:$0xff]   ;;  %v1419_v57 = vld [vmem:[%s2065_s1 + $0x1a4] ss:$8 sps:$4 sm:$0xff]   ;;  %v1418_v58 = vld [vmem:[%s2065_s1 + $0xa0] ss:$8 sps:$4 sm:$0xff]  }
  0x14   :  { %944 = vmatprep.subr.bf16.mxu0 %v1368_v19  ;;  %984 = vmatpush1.bf16.msra.mxu1 %v1367_v20  ;;  %v1422_v59 = vld [vmem:[%s2065_s1 + $0x94] ss:$8 sps:$4 sm:$0xff]   ;;  %v1421_v60 = vld [vmem:[%s2065_s1 + $0x1a0] ss:$8 sps:$4 sm:$0xff]   ;;  %v1424_v62 = vld [vmem:[%s2065_s1 + $0x90] ss:$8 sps:$4 sm:$0xff]  }
  0x15   :  { %985 = vmatprep.subr.bf16.mxu1 %v1371_v21  ;;  %966 = vmatprep.mubr.bf16.mxu0 %v1183_v48  ;;  %v1425_v61 = vld [vmem:[%s2065_s1 + $0x194] ss:$8 sps:$4 sm:$0xff]   ;;  %v1428_v63 = vld [vmem:[%s2065_s1 + $0x84] ss:$8 sps:$4 sm:$0xff]   ;;  %v1427_v0 = vld [vmem:[%s2065_s1 + $0x190] ss:$8 sps:$4 sm:$0xff]  }
  0x16   :  { %1007 = vmatprep.mubr.bf16.mxu1 %v1185_v52  ;;  %v1431_v1 = vld [vmem:[%s2065_s1 + $0x184] ss:$8 sps:$4 sm:$0xff]   ;;  %v1430_v2 = vld [vmem:[%s2065_s1 + $0x80] ss:$8 sps:$4 sm:$0xff]   ;;  %v1438_v3 = vld [vmem:[%s2065_s1 + $0x274] ss:$8 sps:$4 sm:$0xff]  }
  0x17   :  { %945 = vmatpush1.bf16.msra.mxu0 %v1370_v22  ;;  %v1435_v4 = vld [vmem:[%s2065_s1 + $0x180] ss:$8 sps:$4 sm:$0xff]   ;;  %v1443_v6 = vld [vmem:[%s2065_s1 + $0x374] ss:$8 sps:$4 sm:$0xff]   ;;  %v1436_v7 = vld [vmem:[%s2065_s1 + $0x270] ss:$8 sps:$4 sm:$0xff]  }
  0x18   :  { %946 = vmatprep.subr.bf16.mxu0 %v1374_v23  ;;  %986 = vmatpush1.bf16.msra.mxu1 %v1373_v24  ;;  %v1446_v9 = vld [vmem:[%s2065_s1 + $0x264] ss:$8 sps:$4 sm:$0xff]   ;;  %v1441_v10 = vld [vmem:[%s2065_s1 + $0x370] ss:$8 sps:$4 sm:$0xff]   ;;  %v1444_v12 = vld [vmem:[%s2065_s1 + $0x260] ss:$8 sps:$4 sm:$0xff]  }
  0x19   :  { %987 = vmatprep.subr.bf16.mxu1 %v1377_v25  ;;  %v1449_v11 = vld [vmem:[%s2065_s1 + $0x364] ss:$8 sps:$4 sm:$0xff]   ;;  %v1452_v13 = vld [vmem:[%s2065_s1 + $0x254] ss:$8 sps:$4 sm:$0xff]   ;;  %v1447_v14 = vld [vmem:[%s2065_s1 + $0x360] ss:$8 sps:$4 sm:$0xff]  }
  0x1a   :  { %v1455_v15 = vld [vmem:[%s2065_s1 + $0x354] ss:$8 sps:$4 sm:$0xff]   ;;  %v1450_v16 = vld [vmem:[%s2065_s1 + $0x250] ss:$8 sps:$4 sm:$0xff]   ;;  %v1458_v17 = vld [vmem:[%s2065_s1 + $0x244] ss:$8 sps:$4 sm:$0xff]  }
  0x1b   :  { %947 = vmatpush1.bf16.msra.mxu0 %v1376_v26  ;;  %v1453_v18 = vld [vmem:[%s2065_s1 + $0x350] ss:$8 sps:$4 sm:$0xff]   ;;  %v1461_v19 = vld [vmem:[%s2065_s1 + $0x344] ss:$8 sps:$4 sm:$0xff]   ;;  %v1456_v20 = vld [vmem:[%s2065_s1 + $0x240] ss:$8 sps:$4 sm:$0xff]  }
  0x1c   :  { %948 = vmatprep.subr.bf16.mxu0 %v1380_v27  ;;  %988 = vmatpush1.bf16.msra.mxu1 %v1379_v28  ;;  %v1464_v21 = vld [vmem:[%s2065_s1 + $0x234] ss:$8 sps:$4 sm:$0xff]   ;;  %v1459_v22 = vld [vmem:[%s2065_s1 + $0x340] ss:$8 sps:$4 sm:$0xff]   ;;  %v1462_v24 = vld [vmem:[%s2065_s1 + $0x230] ss:$8 sps:$4 sm:$0xff]  }
  0x1d   :  { %989 = vmatprep.subr.bf16.mxu1 %v1383_v29  ;;  %v1467_v23 = vld [vmem:[%s2065_s1 + $0x334] ss:$8 sps:$4 sm:$0xff]   ;;  %v1470_v25 = vld [vmem:[%s2065_s1 + $0x224] ss:$8 sps:$4 sm:$0xff]   ;;  %v1465_v26 = vld [vmem:[%s2065_s1 + $0x330] ss:$8 sps:$4 sm:$0xff]  }
  0x1e   :  { %v1473_v27 = vld [vmem:[%s2065_s1 + $0x324] ss:$8 sps:$4 sm:$0xff]   ;;  %v1468_v28 = vld [vmem:[%s2065_s1 + $0x220] ss:$8 sps:$4 sm:$0xff]   ;;  %v1476_v29 = vld [vmem:[%s2065_s1 + $0x214] ss:$8 sps:$4 sm:$0xff]  }
  0x1f   :  { %949 = vmatpush1.bf16.msra.mxu0 %v1382_v30  ;;  %v1471_v30 = vld [vmem:[%s2065_s1 + $0x320] ss:$8 sps:$4 sm:$0xff]   ;;  %v1489_v46 = vld [vmem:[%s2065_s1 + $0x3f0] ss:$8 sps:$4 sm:$0xff]  }
  0x20   :  { %950 = vmatprep.subr.bf16.mxu0 %v1386_v31  ;;  %990 = vmatpush1.bf16.msra.mxu1 %v1385_v32  ;;  %v1479_v31 = vld [vmem:[%s2065_s1 + $0x314] ss:$8 sps:$4 sm:$0xff]   ;;  %v1492_v48 = vld [vmem:[%s2065_s1 + $0x2e0] ss:$8 sps:$4 sm:$0xff]   ;;  %v1498_v52 = vld [vmem:[%s2065_s1 + $0x2d0] ss:$8 sps:$4 sm:$0xff]  }
  0x21   :  { %991 = vmatprep.subr.bf16.mxu1 %v1389_v33  ;;  %v1873_v32 = vld [vmem:[%s2066_s0 + $0x10] sm:$0xff]  ;;  %v1495_v50 = vld [vmem:[%s2065_s1 + $0x3e0] ss:$8 sps:$4 sm:$0xff]  }
  0x22   :  { %v1474_v33 = vld [vmem:[%s2065_s1 + $0x210] ss:$8 sps:$4 sm:$0xff]  }
  0x23   :  { %951 = vmatpush2.bf16.msra.mxu0 %v1388_v34  ;;  %v1187_v34 = vcombine.high %v1873_v32, %v1873_v32 }
  0x24   :  { %952 = vmatprep.subr.bf16.mxu0 %v1392_v35  ;;  %992 = vmatpush2.bf16.msra.mxu1 %v1391_v36  ;;  %v1883_v35 = vld [vmem:[%s2066_s0 + $0x18] sm:$0xff]  ;;  %v1482_v36 = vld [vmem:[%s2065_s1 + $0x204] ss:$8 sps:$4 sm:$0xff]  }
  0x25   :  { %993 = vmatprep.subr.bf16.mxu1 %v1395_v37  ;;  %v1189_v37 = vcombine.high %v1883_v35, %v1883_v35 }
  0x27   :  { %953 = vmatpush2.bf16.msra.mxu0 %v1394_v38  ;;  %v1477_v38 = vld [vmem:[%s2065_s1 + $0x310] ss:$8 sps:$4 sm:$0xff]  }
  0x28   :  { %954 = vmatprep.subr.bf16.mxu0 %v1398_v39  ;;  %994 = vmatpush2.bf16.msra.mxu1 %v1397_v40  ;;  %v1485_v39 = vld [vmem:[%s2065_s1 + $0x304] ss:$8 sps:$4 sm:$0xff]   ;;  %v1480_v40 = vld [vmem:[%s2065_s1 + $0x200] ss:$8 sps:$4 sm:$0xff]  }
  0x29   :  { %995 = vmatprep.subr.bf16.mxu1 %v1401_v41  ;;  %v1488_v41 = vld [vmem:[%s2065_s1 + $0x2f4] ss:$8 sps:$4 sm:$0xff]  }
  0x2b   :  { %955 = vmatpush2.bf16.msra.mxu0 %v1400_v42  ;;  %v1483_v42 = vld [vmem:[%s2065_s1 + $0x300] ss:$8 sps:$4 sm:$0xff]  }
  0x2c   :  { %956 = vmatprep.subr.bf16.mxu0 %v1404_v43  ;;  %996 = vmatpush2.bf16.msra.mxu1 %v1403_v44  ;;  %v1491_v43 = vld [vmem:[%s2065_s1 + $0x3f4] ss:$8 sps:$4 sm:$0xff]   ;;  %v1486_v44 = vld [vmem:[%s2065_s1 + $0x2f0] ss:$8 sps:$4 sm:$0xff]  }
  0x2d   :  { %997 = vmatprep.subr.bf16.mxu1 %v1407_v45  ;;  %v1494_v45 = vld [vmem:[%s2065_s1 + $0x2e4] ss:$8 sps:$4 sm:$0xff]  }
  0x2f   :  { %957 = vmatpush2.bf16.msra.mxu0 %v1406_v47  ;;  %v1497_v47 = vld [vmem:[%s2065_s1 + $0x3e4] ss:$8 sps:$4 sm:$0xff]  }
  0x30   :  { %958 = vmatprep.subr.bf16.mxu0 %v1410_v49  ;;  %998 = vmatpush2.bf16.msra.mxu1 %v1409_v51  ;;  %v1500_v49 = vld [vmem:[%s2065_s1 + $0x2d4] ss:$8 sps:$4 sm:$0xff]  }
  0x31   :  { %999 = vmatprep.subr.bf16.mxu1 %v1413_v53  ;;  %v1503_v51 = vld [vmem:[%s2065_s1 + $0x3d4] ss:$8 sps:$4 sm:$0xff]   ;;  %v1506_v53 = vld [vmem:[%s2065_s1 + $0x2c4] ss:$8 sps:$4 sm:$0xff]  }
  0x33   :  { %959 = vmatpush2.bf16.msra.mxu0 %v1412_v54  ;;  %v1501_v54 = vld [vmem:[%s2065_s1 + $0x3d0] ss:$8 sps:$4 sm:$0xff]  }
  0x34   :  { %960 = vmatprep.subr.bf16.mxu0 %v1416_v55  ;;  %1000 = vmatpush2.bf16.msra.mxu1 %v1415_v56  ;;  %v1509_v55 = vld [vmem:[%s2065_s1 + $0x3c4] ss:$8 sps:$4 sm:$0xff]   ;;  %v1504_v56 = vld [vmem:[%s2065_s1 + $0x2c0] ss:$8 sps:$4 sm:$0xff]  }
  0x35   :  { %1001 = vmatprep.subr.bf16.mxu1 %v1419_v57  ;;  %v1512_v57 = vld [vmem:[%s2065_s1 + $0x2b4] ss:$8 sps:$4 sm:$0xff]  }
  0x37   :  { %961 = vmatpush2.bf16.msra.mxu0 %v1418_v58  ;;  %v1507_v58 = vld [vmem:[%s2065_s1 + $0x3c0] ss:$8 sps:$4 sm:$0xff]  }
  0x38   :  { %962 = vmatprep.subr.bf16.mxu0 %v1422_v59  ;;  %1002 = vmatpush2.bf16.msra.mxu1 %v1421_v60  ;;  %v1515_v59 = vld [vmem:[%s2065_s1 + $0x3b4] ss:$8 sps:$4 sm:$0xff]   ;;  %v1510_v60 = vld [vmem:[%s2065_s1 + $0x2b0] ss:$8 sps:$4 sm:$0xff]  }
  0x39   :  { %1003 = vmatprep.subr.bf16.mxu1 %v1425_v61  ;;  %v1518_v61 = vld [vmem:[%s2065_s1 + $0x2a4] ss:$8 sps:$4 sm:$0xff]  }
  0x3b   :  { %963 = vmatpush2.bf16.msra.mxu0 %v1424_v62  ;;  %v1513_v62 = vld [vmem:[%s2065_s1 + $0x3b0] ss:$8 sps:$4 sm:$0xff]  }
  0x3c   :  { %964 = vmatprep.subr.bf16.mxu0 %v1428_v63  ;;  %1004 = vmatpush2.bf16.msra.mxu1 %v1427_v0  ;;  %v1521_v63 = vld [vmem:[%s2065_s1 + $0x3a4] ss:$8 sps:$4 sm:$0xff]   ;;  %v1516_v0 = vld [vmem:[%s2065_s1 + $0x2a0] ss:$8 sps:$4 sm:$0xff]  }
  0x3d   :  { %1005 = vmatprep.subr.bf16.mxu1 %v1431_v1  ;;  %v1524_v1 = vld [vmem:[%s2065_s1 + $0x294] ss:$8 sps:$4 sm:$0xff]  }
  0x3f   :  { %965 = vmatpush2.bf16.msra.mxu0 %v1430_v2  ;;  %v1519_v2 = vld [vmem:[%s2065_s1 + $0x3a0] ss:$8 sps:$4 sm:$0xff]  }
  0x40   :  { %1016 = vmatprep.subr.bf16.mxu0 %v1438_v3  ;;  %1006 = vmatpush2.bf16.msra.mxu1 %v1435_v4  ;;  %v1527_v3 = vld [vmem:[%s2065_s1 + $0x394] ss:$8 sps:$4 sm:$0xff]   ;;  %v1522_v4 = vld [vmem:[%s2065_s1 + $0x290] ss:$8 sps:$4 sm:$0xff]  }
  0x41   :  { %1057 = vmatprep.subr.bf16.mxu1 %v1443_v6  ;;  %v1525_v6 = vld [vmem:[%s2065_s1 + $0x390] ss:$8 sps:$4 sm:$0xff]  }
  0x42   :  { %967 = vmatmul.mubr.bf16.vlgmr.msra.gmra.mxu0 %v1182_v5  ;;  %v1530_v5 = vld [vmem:[%s2065_s1 + $0x284] ss:$8 sps:$4 sm:$0xff]  }
  0x43   :  { %1017 = vmatpush1.bf16.msra.mxu0 %v1436_v7  ;;  %1008 = vmatmul.mubr.bf16.vlgmr.msra.gmra.mxu1 %v1184_v8  ;;  %v1533_v7 = vld [vmem:[%s2065_s1 + $0x384] ss:$8 sps:$4 sm:$0xff]   ;;  %v1528_v8 = vld [vmem:[%s2065_s1 + $0x280] ss:$8 sps:$4 sm:$0xff]  }
  0x44   :  { %1018 = vmatprep.subr.bf16.mxu0 %v1446_v9  ;;  %1058 = vmatpush1.bf16.msra.mxu1 %v1441_v10  ;;  %v1538_v9 = vld [vmem:[%s2065_s1 + $0x474] ss:$8 sps:$4 sm:$0xff]   ;;  %v1531_v10 = vld [vmem:[%s2065_s1 + $0x380] ss:$8 sps:$4 sm:$0xff]  }
  0x45   :  { %1059 = vmatprep.subr.bf16.mxu1 %v1449_v11  ;;  %1048 = vmatprep.mubr.bf16.mxu0 %v1187_v34  ;;  %v1186_v11 = vcombine.low %v1873_v32, %v1873_v32 }
  0x46   :  { %1089 = vmatprep.mubr.bf16.mxu1 %v1189_v37 }
  0x47   :  { %1019 = vmatpush1.bf16.msra.mxu0 %v1444_v12  ;;  %v1536_v12 = vld [vmem:[%s2065_s1 + $0x470] ss:$8 sps:$4 sm:$0xff]  }
  0x48   :  { %1020 = vmatprep.subr.bf16.mxu0 %v1452_v13  ;;  %1060 = vmatpush1.bf16.msra.mxu1 %v1447_v14  ;;  %v1188_v13 = vcombine.low %v1883_v35, %v1883_v35  ;;  %v1543_v14 = vld [vmem:[%s2065_s1 + $0x464] ss:$8 sps:$4 sm:$0xff]  }
  0x49   :  { %1061 = vmatprep.subr.bf16.mxu1 %v1455_v15  ;;  %v1541_v15 = vld [vmem:[%s2065_s1 + $0x460] ss:$8 sps:$4 sm:$0xff]  }
  0x4b   :  { %1021 = vmatpush1.bf16.msra.mxu0 %v1450_v16  ;;  %v1563_v16 = vmov 0  }
  0x4c   :  { %1022 = vmatprep.subr.bf16.mxu0 %v1458_v17  ;;  %1062 = vmatpush1.bf16.msra.mxu1 %v1453_v18  ;;  %v1546_v17 = vld [vmem:[%s2065_s1 + $0x454] ss:$8 sps:$4 sm:$0xff]   ;;  %v1544_v18 = vld [vmem:[%s2065_s1 + $0x450] ss:$8 sps:$4 sm:$0xff]  }
  0x4d   :  { %1063 = vmatprep.subr.bf16.mxu1 %v1461_v19  ;;  %v1549_v19 = vld [vmem:[%s2065_s1 + $0x444] ss:$8 sps:$4 sm:$0xff]  }
  0x4f   :  { %1023 = vmatpush1.bf16.msra.mxu0 %v1456_v20  ;;  %v1547_v20 = vld [vmem:[%s2065_s1 + $0x440] ss:$8 sps:$4 sm:$0xff]  }
  0x50   :  { %1024 = vmatprep.subr.bf16.mxu0 %v1464_v21  ;;  %1064 = vmatpush1.bf16.msra.mxu1 %v1459_v22  ;;  %v1552_v21 = vld [vmem:[%s2065_s1 + $0x434] ss:$8 sps:$4 sm:$0xff]   ;;  %v1550_v22 = vld [vmem:[%s2065_s1 + $0x430] ss:$8 sps:$4 sm:$0xff]  }
  0x51   :  { %1065 = vmatprep.subr.bf16.mxu1 %v1467_v23  ;;  %v1555_v23 = vld [vmem:[%s2065_s1 + $0x424] ss:$8 sps:$4 sm:$0xff]  }
  0x53   :  { %1025 = vmatpush1.bf16.msra.mxu0 %v1462_v24  ;;  %v1553_v24 = vld [vmem:[%s2065_s1 + $0x420] ss:$8 sps:$4 sm:$0xff]  }
  0x54   :  { %1026 = vmatprep.subr.bf16.mxu0 %v1470_v25  ;;  %1066 = vmatpush1.bf16.msra.mxu1 %v1465_v26  ;;  %v1558_v25 = vld [vmem:[%s2065_s1 + $0x414] ss:$8 sps:$4 sm:$0xff]   ;;  %v1556_v26 = vld [vmem:[%s2065_s1 + $0x410] ss:$8 sps:$4 sm:$0xff]  }
  0x55   :  { %1067 = vmatprep.subr.bf16.mxu1 %v1473_v27  ;;  %v1561_v27 = vld [vmem:[%s2065_s1 + $0x404] ss:$8 sps:$4 sm:$0xff]  }
  0x57   :  { %1027 = vmatpush1.bf16.msra.mxu0 %v1468_v28  ;;  %v1559_v28 = vld [vmem:[%s2065_s1 + $0x400] ss:$8 sps:$4 sm:$0xff]  }
  0x58   :  { %1028 = vmatprep.subr.bf16.mxu0 %v1476_v29  ;;  %1068 = vmatpush1.bf16.msra.mxu1 %v1471_v30  ;;  %v1562_v29 = vld [vmem:[%s2066_s0 + $0x20] ss:$0 sps:$4 sm:$0xff]   ;;  %v172_v30 = vlaneseq }
  0x59   :  { %1069 = vmatprep.subr.bf16.mxu1 %v1479_v31 }
  0x5a   :  { %v173_v31 = vshrl.u32 %v172_v30, 7 }
  0x5b   :  { %1029 = vmatpush1.bf16.msra.mxu0 %v1474_v33  ;;  %v170_v33 = vld [vmem:[%s2067_s2] sm:$0x3] }
  0x5c   :  { %1030 = vmatprep.subr.bf16.mxu0 %v1482_v36  ;;  %1070 = vmatpush1.bf16.msra.mxu1 %v1477_v38  ;;  %v174_v32 = vsub.s32 0, %v173_v31  ;;  %v178_v34 = vsub.s32 1, %v173_v31 }
  0x5d   :  { %1071 = vmatprep.subr.bf16.mxu1 %v1485_v39 }
  0x5e   :  { %v175_v35 = vrot.slane %v170_v33, %v174_v32  ;;  %v179_v36 = vrot.slane %v170_v33, %v178_v34 }
  0x5f   :  { %1031 = vmatpush1.bf16.msra.mxu0 %v1480_v40 }
  0x60   :  { %1032 = vmatprep.subr.bf16.mxu0 %v1488_v41  ;;  %1072 = vmatpush1.bf16.msra.mxu1 %v1483_v42 }
  0x61   :  { %1073 = vmatprep.subr.bf16.mxu1 %v1491_v43 }
  0x63   :  { %1033 = vmatpush2.bf16.msra.mxu0 %v1486_v44 }
  0x64   :  { %1034 = vmatprep.subr.bf16.mxu0 %v1494_v45  ;;  %1074 = vmatpush2.bf16.msra.mxu1 %v1489_v46 }
  0x65   :  { %1075 = vmatprep.subr.bf16.mxu1 %v1497_v47 }
  0x67   :  { %1035 = vmatpush2.bf16.msra.mxu0 %v1492_v48 }
  0x68   :  { %1036 = vmatprep.subr.bf16.mxu0 %v1500_v49  ;;  %1076 = vmatpush2.bf16.msra.mxu1 %v1495_v50 }
  0x69   :  { %1077 = vmatprep.subr.bf16.mxu1 %v1503_v51 }
  0x6b   :  { %1037 = vmatpush2.bf16.msra.mxu0 %v1498_v52 }
  0x6c   :  { %1038 = vmatprep.subr.bf16.mxu0 %v1506_v53  ;;  %1078 = vmatpush2.bf16.msra.mxu1 %v1501_v54 }
  0x6d   :  { %1079 = vmatprep.subr.bf16.mxu1 %v1509_v55 }
  0x6f   :  { %1039 = vmatpush2.bf16.msra.mxu0 %v1504_v56 }
  0x70   :  { %1040 = vmatprep.subr.bf16.mxu0 %v1512_v57  ;;  %1080 = vmatpush2.bf16.msra.mxu1 %v1507_v58 }
  0x71   :  { %1081 = vmatprep.subr.bf16.mxu1 %v1515_v59  ;;  %v1141_v59 = vld [vmem:[%s2068_s3] sm:$0x3] }
  0x73   :  { %1041 = vmatpush2.bf16.msra.mxu0 %v1510_v60 }
  0x74   :  { %1042 = vmatprep.subr.bf16.mxu0 %v1518_v61  ;;  %1082 = vmatpush2.bf16.msra.mxu1 %v1513_v62 }
  0x75   :  { %1083 = vmatprep.subr.bf16.mxu1 %v1521_v63 }
  0x77   :  { %1043 = vmatpush2.bf16.msra.mxu0 %v1516_v0  ;;  %v1146_v0 = vrot.slane %v1141_v59, %v174_v32 }
  0x78   :  { %1044 = vmatprep.subr.bf16.mxu0 %v1524_v1  ;;  %1084 = vmatpush2.bf16.msra.mxu1 %v1519_v2  ;;  %v1155_v1 = vld [vmem:[%s2069_s4] sm:$0x3] }
  0x79   :  { %1085 = vmatprep.subr.bf16.mxu1 %v1527_v3 }
  0x7b   :  { %1045 = vmatpush2.bf16.msra.mxu0 %v1522_v4 }
  0x7c   :  { %1046 = vmatprep.subr.bf16.mxu0 %v1530_v5  ;;  %1086 = vmatpush2.bf16.msra.mxu1 %v1525_v6  ;;  %v1150_v5 = vrot.slane %v1141_v59, %v178_v34 }
  0x7d   :  { %1087 = vmatprep.subr.bf16.mxu1 %v1533_v7 }
  0x7f   :  { %1047 = vmatpush2.bf16.msra.mxu0 %v1528_v8  ;;  %v1160_v8 = vrot.slane %v1155_v1, %v174_v32 }
  0x80   :  { %1098 = vmatprep.subr.bf16.mxu0 %v1538_v9  ;;  %1088 = vmatpush2.bf16.msra.mxu1 %v1531_v10  ;;  %v1164_v10 = vrot.slane %v1155_v1, %v178_v34 }
  0x82   :  { %1049 = vmatmul.mubr.bf16.vlgmr.msra.gmra.mxu0 %v1186_v11 }
  0x83   :  { %1099 = vmatpush1.bf16.msra.mxu0 %v1536_v12  ;;  %1130 = vmatprep.mubr.bf16.mxu0 %v1563_v16 }
  0x84   :  { %1090 = vmatmul.mubr.bf16.vlgmr.msra.gmra.mxu1 %v1188_v13  ;;  %1100 = vmatprep.subr.bf16.mxu0 %v1543_v14 }
  0x87   :  { %1101 = vmatpush1.bf16.msra.mxu0 %v1541_v15 }
  0x88   :  { %1102 = vmatprep.subr.bf16.mxu0 %v1546_v17 }
  0x8b   :  { %1103 = vmatpush1.bf16.msra.mxu0 %v1544_v18 }
  0x8c   :  { %1104 = vmatprep.subr.bf16.mxu0 %v1549_v19 }
  0x8f   :  { %1105 = vmatpush1.bf16.msra.mxu0 %v1547_v20 }
  0x90   :  { %1106 = vmatprep.subr.bf16.mxu0 %v1552_v21 }
  0x93   :  { %1107 = vmatpush1.bf16.msra.mxu0 %v1550_v22 }
  0x94   :  { %1108 = vmatprep.subr.bf16.mxu0 %v1555_v23 }
  0x97   :  { %1109 = vmatpush1.bf16.msra.mxu0 %v1553_v24 }
  0x98   :  { %1110 = vmatprep.subr.bf16.mxu0 %v1558_v25 }
  0x9b   :  { %1111 = vmatpush1.bf16.msra.mxu0 %v1556_v26 }
  0x9c   :  { %1112 = vmatprep.subr.bf16.mxu0 %v1561_v27 }
  0x9f   :  { %1113 = vmatpush1.bf16.msra.mxu0 %v1559_v28 }
  0xa2   :  { %1131 = vmatmul.mubr.bf16.vlgmr.msra.gmra.mxu0 %v1562_v29 }
 0x102   :  { %v968_v37 = vpop.f32.mrf.mxu0 }
 0x103   :  { %v969_v38 = vadd.f32 %v968_v37, %v175_v35  ;;  %v1009_v40 = vpop.f32.mrf.mxu1 }
 0x104   :  { %v970_v39 = vpop.f32.mrf.mxu0 }
 0x105   :  { %v971_v41 = vadd.f32 %v970_v39, %v179_v36  ;;  %v1010_v42 = vadd.f32 %v1009_v40, %v969_v38  ;;  %v1011_v44 = vpop.f32.mrf.mxu1 }
 0x106   :  { %v972_v43 = vpop.f32.mrf.mxu0 }
 0x107   :  { %v1012_v45 = vadd.f32 %v1011_v44, %v971_v41  ;;  %v1013_v47 = vpop.f32.mrf.mxu1 }
 0x108   :  { %v973_v46 = vpop.f32.mrf.mxu0 }
 0x109   :  { %v1014_v48 = vpop.f32.mrf.mxu1 }
 0x142   :  { %v1050_v49 = vpop.f32.mrf.mxu0 }
 0x143   :  { %v1051_v57 = vadd.f32 %v1050_v49, %v1010_v42 }
 0x144   :  { %v1052_v50 = vpop.f32.mrf.mxu0  ;;  %v1091_v51 = vpop.f32.mrf.mxu1 }
 0x145   :  { %v1053_v58 = vadd.f32 %v1052_v50, %v1012_v45  ;;  %v1092_v60 = vadd.f32 %v1091_v51, %v1051_v57 }
 0x146   :  { %v1054_v52 = vpop.f32.mrf.mxu0  ;;  %v1093_v53 = vpop.f32.mrf.mxu1 }
 0x147   :  { %v1094_v62 = vadd.f32 %v1093_v53, %v1053_v58 }
 0x148   :  { %v1055_v54 = vpop.f32.mrf.mxu0  ;;  %v1095_v55 = vpop.f32.mrf.mxu1 }
 0x14a   :  { %v1096_v56 = vpop.f32.mrf.mxu1 }
 0x162   :  { %v1132_v61 = vpop.f32.mrf.mxu0 }
 0x163   :  { %v1133_v63 = vadd.f32 %v1132_v61, %v1092_v60 }
 0x164   :  { %v1134_v2 = vpop.f32.mrf.mxu0 }
 0x165   :  { %v1139_v3 = vmax.f32 %v1133_v63, 0.0  ;;  %v1135_v4 = vadd.f32 %v1134_v2, %v1094_v62 }
 0x166   :  { %v1136_v6 = vpop.f32.mrf.mxu0 }
 0x167   :  { %v1153_v7 = vmul.f32 %v1146_v0, %v1139_v3  ;;  %v1140_v9 = vmax.f32 %v1135_v4, 0.0 }
 0x168   :  { %v1137_v11 = vpop.f32.mrf.mxu0 }
 0x169   :  { %v1154_v12 = vmul.f32 %v1150_v5, %v1140_v9  ;;  %v1167_v13 = vadd.f32 %v1160_v8, %v1153_v7 }
 0x16b   :  { %v1168_v14 = vadd.f32 %v1164_v10, %v1154_v12 }
 0x16d   :  { %v1336_v15 = vpack.c.bf16 %v1168_v14, %v1167_v13 }
 0x16f   :  { %1177 = vst [vmem:[%s2070_s5] sm:$0xff] %v1336_v15 }

// kernel: value_network_forward.9
= control target key start
LH: loop header
LB: loop body
LE: loop exit
PB: predicated region body
PF: predicated region fallthrough
CT: control target
= control target key end

     0   :  { %s14865_s0 = inlined_call_operand.vmem [shape: bf16[2,4096], index: 0, kind: input, shape index: {}]   ;;  %s14866_s1 = inlined_call_operand.vmem [shape: bf16[4096,512], index: 1, kind: input, shape index: {}]   ;;  %s14867_s2 = inlined_call_operand.vmem [shape: f32[1,512], index: 2, kind: input, shape index: {}]   ;;  %s14868_s3 = inlined_call_operand.vmem [shape: bf16[512,256], index: 3, kind: input, shape index: {}]   ;;  %s14869_s4 = inlined_call_operand.vmem [shape: f32[1,256], index: 4, kind: input, shape index: {}]   ;;  %s14870_s5 = inlined_call_operand.vmem [shape: f32[1,256], index: 5, kind: input, shape index: {}]   ;;  %s14871_s6 = inlined_call_operand.<no memory space> [shape: f32[1,1], index: 6, kind: input, shape index: {}]   ;;  %s14872_s7 = inlined_call_operand.vmem [shape: f32[2,1], index: 7, kind: output, shape index: {}]  }
   0x1   :  { %v12_v0 = vstv %s14871_s6 }
   0x2   :  { %13 = vst [vmem:[#allocation2] sm:$0x1] %v12_v0 }
   0x3   :  { %v9488_v1 = vld [vmem:[%s14866_s1 + $0xe4] ss:$16 sps:$4 sm:$0xff]   ;;  %v9492_v3 = vld [vmem:[%s14866_s1 + $0xe0] ss:$16 sps:$4 sm:$0xff]   ;;  %v1070_v39 = vlaneseq  ;;  %v11121_v40 = vmov 1966171168  }
   0x4   :  { %v9490_v2 = vld [vmem:[%s14866_s1 + $0x2e4] ss:$16 sps:$4 sm:$0xff]   ;;  %6530 = vmatprep.subr.bf16.mxu0 %v9488_v1  ;;  %v9493_v4 = vld [vmem:[%s14866_s1 + $0x2e0] ss:$16 sps:$4 sm:$0xff]   ;;  %v1111_v41 = vunpack.c.l.s4 %v11121_v40  ;;  %vm8355_vm0 = vcmask 7168  }
   0x5   :  { %6571 = vmatprep.subr.bf16.mxu1 %v9490_v2  ;;  %v9494_v5 = vld [vmem:[%s14866_s1 + $0xc4] ss:$16 sps:$4 sm:$0xff]   ;;  %6531 = vmatpush1.bf16.msra.mxu0 %v9492_v3  ;;  %v9498_v7 = vld [vmem:[%s14866_s1 + $0xc0] ss:$16 sps:$4 sm:$0xff]   ;;  %v11291_v46 = vshrl.u32 %v1070_v39, 7 }
   0x6   :  { %6572 = vmatpush1.bf16.msra.mxu1 %v9493_v4  ;;  %v9496_v6 = vld [vmem:[%s14866_s1 + $0x2c4] ss:$16 sps:$4 sm:$0xff]   ;;  %6532 = vmatprep.subr.bf16.mxu0 %v9494_v5  ;;  %v9499_v8 = vld [vmem:[%s14866_s1 + $0x2c0] ss:$16 sps:$4 sm:$0xff]   ;;  %v1112_v47 = vunpack.c.0.s8 %v1111_v41 }
   0x7   :  { %6573 = vmatprep.subr.bf16.mxu1 %v9496_v6  ;;  %v9500_v9 = vld [vmem:[%s14866_s1 + $0xa4] ss:$16 sps:$4 sm:$0xff]   ;;  %v9504_v11 = vld [vmem:[%s14866_s1 + $0xa0] ss:$16 sps:$4 sm:$0xff]  }
   0x8   :  { %v9502_v10 = vld [vmem:[%s14866_s1 + $0x2a4] ss:$16 sps:$4 sm:$0xff]   ;;  %v9505_v12 = vld [vmem:[%s14866_s1 + $0x2a0] ss:$16 sps:$4 sm:$0xff]   ;;  %v11315_v55 = vsub.s32 %v1112_v47, %v11291_v46 }
   0x9   :  { %6533 = vmatpush1.bf16.msra.mxu0 %v9498_v7  ;;  %v9506_v13 = vld [vmem:[%s14866_s1 + $0x84] ss:$16 sps:$4 sm:$0xff]   ;;  %v9510_v15 = vld [vmem:[%s14866_s1 + $0x80] ss:$16 sps:$4 sm:$0xff]  }
   0xa   :  { %6574 = vmatpush1.bf16.msra.mxu1 %v9499_v8  ;;  %6534 = vmatprep.subr.bf16.mxu0 %v9500_v9  ;;  %v9508_v14 = vld [vmem:[%s14866_s1 + $0x284] ss:$16 sps:$4 sm:$0xff]   ;;  %v9511_v16 = vld [vmem:[%s14866_s1 + $0x280] ss:$16 sps:$4 sm:$0xff]  }
   0xb   :  { %6575 = vmatprep.subr.bf16.mxu1 %v9502_v10  ;;  %v9512_v17 = vld [vmem:[%s14866_s1 + $0x64] ss:$16 sps:$4 sm:$0xff]   ;;  %v9516_v19 = vld [vmem:[%s14866_s1 + $0x60] ss:$16 sps:$4 sm:$0xff]  }
   0xc   :  { %v9514_v18 = vld [vmem:[%s14866_s1 + $0x264] ss:$16 sps:$4 sm:$0xff]   ;;  %v9517_v20 = vld [vmem:[%s14866_s1 + $0x260] ss:$16 sps:$4 sm:$0xff]  }
   0xd   :  { %6535 = vmatpush1.bf16.msra.mxu0 %v9504_v11  ;;  %v9518_v21 = vld [vmem:[%s14866_s1 + $0x44] ss:$16 sps:$4 sm:$0xff]   ;;  %v9522_v23 = vld [vmem:[%s14866_s1 + $0x40] ss:$16 sps:$4 sm:$0xff]  }
   0xe   :  { %6576 = vmatpush1.bf16.msra.mxu1 %v9505_v12  ;;  %6536 = vmatprep.subr.bf16.mxu0 %v9506_v13  ;;  %v9520_v22 = vld [vmem:[%s14866_s1 + $0x244] ss:$16 sps:$4 sm:$0xff]   ;;  %v9523_v24 = vld [vmem:[%s14866_s1 + $0x240] ss:$16 sps:$4 sm:$0xff]  }
   0xf   :  { %6577 = vmatprep.subr.bf16.mxu1 %v9508_v14  ;;  %v9524_v25 = vld [vmem:[%s14866_s1 + $0x24] ss:$16 sps:$4 sm:$0xff]   ;;  %v9528_v27 = vld [vmem:[%s14866_s1 + $0x20] ss:$16 sps:$4 sm:$0xff]  }
  0x10   :  { %v9526_v26 = vld [vmem:[%s14866_s1 + $0x224] ss:$16 sps:$4 sm:$0xff]   ;;  %v9529_v28 = vld [vmem:[%s14866_s1 + $0x220] ss:$16 sps:$4 sm:$0xff]  }
  0x11   :  { %6537 = vmatpush1.bf16.msra.mxu0 %v9510_v15  ;;  %v9530_v29 = vld [vmem:[%s14866_s1 + $0x4] ss:$16 sps:$4 sm:$0xff]   ;;  %v9534_v31 = vld [vmem:[%s14866_s1] ss:$16 sps:$4 sm:$0xff]  }
  0x12   :  { %6578 = vmatpush1.bf16.msra.mxu1 %v9511_v16  ;;  %6538 = vmatprep.subr.bf16.mxu0 %v9512_v17  ;;  %v9532_v30 = vld [vmem:[%s14866_s1 + $0x204] ss:$16 sps:$4 sm:$0xff]   ;;  %v9535_v32 = vld [vmem:[%s14866_s1 + $0x200] ss:$16 sps:$4 sm:$0xff]  }
  0x13   :  { %6579 = vmatprep.subr.bf16.mxu1 %v9514_v18  ;;  %v9536_v33 = vld [vmem:[%s14866_s1 + $0x1e4] ss:$16 sps:$4 sm:$0xff]   ;;  %v9540_v35 = vld [vmem:[%s14866_s1 + $0x1e0] ss:$16 sps:$4 sm:$0xff]  }
  0x14   :  { %v9538_v34 = vld [vmem:[%s14866_s1 + $0x3e4] ss:$16 sps:$4 sm:$0xff]   ;;  %v9541_v36 = vld [vmem:[%s14866_s1 + $0x3e0] ss:$16 sps:$4 sm:$0xff]  }
  0x15   :  { %6539 = vmatpush1.bf16.msra.mxu0 %v9516_v19  ;;  %v9542_v37 = vld [vmem:[%s14866_s1 + $0x1c4] ss:$16 sps:$4 sm:$0xff]   ;;  %v9546_v42 = vld [vmem:[%s14866_s1 + $0x1c0] ss:$16 sps:$4 sm:$0xff]  }
  0x16   :  { %6580 = vmatpush1.bf16.msra.mxu1 %v9517_v20  ;;  %6540 = vmatprep.subr.bf16.mxu0 %v9518_v21  ;;  %v9544_v38 = vld [vmem:[%s14866_s1 + $0x3c4] ss:$16 sps:$4 sm:$0xff]   ;;  %v9547_v43 = vld [vmem:[%s14866_s1 + $0x3c0] ss:$16 sps:$4 sm:$0xff]  }
  0x17   :  { %6581 = vmatprep.subr.bf16.mxu1 %v9520_v22  ;;  %v9548_v44 = vld [vmem:[%s14866_s1 + $0x1a4] ss:$16 sps:$4 sm:$0xff]   ;;  %v9552_v48 = vld [vmem:[%s14866_s1 + $0x1a0] ss:$16 sps:$4 sm:$0xff]  }
  0x18   :  { %v9550_v45 = vld [vmem:[%s14866_s1 + $0x3a4] ss:$16 sps:$4 sm:$0xff]   ;;  %v9553_v49 = vld [vmem:[%s14866_s1 + $0x3a0] ss:$16 sps:$4 sm:$0xff]  }
  0x19   :  { %6541 = vmatpush1.bf16.msra.mxu0 %v9522_v23  ;;  %v9554_v50 = vld [vmem:[%s14866_s1 + $0x184] ss:$16 sps:$4 sm:$0xff]   ;;  %v9558_v52 = vld [vmem:[%s14866_s1 + $0x180] ss:$16 sps:$4 sm:$0xff]  }
  0x1a   :  { %6582 = vmatpush1.bf16.msra.mxu1 %v9523_v24  ;;  %6542 = vmatprep.subr.bf16.mxu0 %v9524_v25  ;;  %v9556_v51 = vld [vmem:[%s14866_s1 + $0x384] ss:$16 sps:$4 sm:$0xff]   ;;  %v9559_v53 = vld [vmem:[%s14866_s1 + $0x380] ss:$16 sps:$4 sm:$0xff]  }
  0x1b   :  { %6583 = vmatprep.subr.bf16.mxu1 %v9526_v26  ;;  %v28_v54 = vld [vmem:[%s14865_s0] sm:$0xff] }
  0x1c   :  { %v32_v56 = vld [vmem:[%s14865_s0 + $0x20] sm:$0xff] }
  0x1d   :  { %6543 = vmatpush1.bf16.msra.mxu0 %v9528_v27  ;;  %v36_v57 = vld [vmem:[%s14865_s0 + $0x40] sm:$0xff]  ;;  %v1106_v60 = vcombine.low %v28_v54, %v32_v56  ;;  %v1107_v7 = vcombine.high %v28_v54, %v32_v56 }
  0x1e   :  { %6584 = vmatpush1.bf16.msra.mxu1 %v9529_v28  ;;  %6544 = vmatprep.subr.bf16.mxu0 %v9530_v29  ;;  %v40_v58 = vld [vmem:[%s14865_s0 + $0x60] sm:$0xff] }
  0x1f   :  { %6585 = vmatprep.subr.bf16.mxu1 %v9532_v30  ;;  %v9560_v59 = vld [vmem:[%s14866_s1 + $0x164] ss:$16 sps:$4 sm:$0xff]   ;;  %v1108_v61 = vcombine.low %v36_v57, %v40_v58  ;;  %v1116_v63 = vrot.slane %v1106_v60, %v11315_v55  ;;  %v9564_v1 = vld [vmem:[%s14866_s1 + $0x160] ss:$16 sps:$4 sm:$0xff]   ;;  %v1109_v8 = vcombine.high %v36_v57, %v40_v58  ;;  %v11368_v14 = vrot.slane %v1107_v7, %v11315_v55 }
  0x20   :  { %v9562_v62 = vld [vmem:[%s14866_s1 + $0x364] ss:$16 sps:$4 sm:$0xff]   ;;  %v9565_v2 = vld [vmem:[%s14866_s1 + $0x360] ss:$16 sps:$4 sm:$0xff]  }
  0x21   :  { %6545 = vmatpush1.bf16.msra.mxu0 %v9534_v31  ;;  %v1130_v0 = vrot.slane %v1108_v61, %v11315_v55  ;;  %v9566_v3 = vld [vmem:[%s14866_s1 + $0x144] ss:$16 sps:$4 sm:$0xff]   ;;  %v9570_v9 = vld [vmem:[%s14866_s1 + $0x140] ss:$16 sps:$4 sm:$0xff]   ;;  %v11371_v15 = vrot.slane %v1109_v8, %v11315_v55 }
  0x22   :  { %6586 = vmatpush1.bf16.msra.mxu1 %v9535_v32  ;;  %6546 = vmatprep.subr.bf16.mxu0 %v9536_v33  ;;  %v9568_v5 = vld [vmem:[%s14866_s1 + $0x344] ss:$16 sps:$4 sm:$0xff]   ;;  %v9571_v10 = vld [vmem:[%s14866_s1 + $0x340] ss:$16 sps:$4 sm:$0xff]  }
  0x23   :  { %6587 = vmatprep.subr.bf16.mxu1 %v9538_v34  ;;  %v1139_v4 = vcombine.high %v1116_v63, %v1130_v0  ;;  %v9572_v11 = vld [vmem:[%s14866_s1 + $0x124] ss:$16 sps:$4 sm:$0xff]   ;;  %v9576_v16 = vld [vmem:[%s14866_s1 + $0x120] ss:$16 sps:$4 sm:$0xff]   ;;  %v1138_v18 = vcombine.low %v1116_v63, %v1130_v0  ;;  %v1141_v21 = vcombine.high %v11368_v14, %v11371_v15 }
  0x24   :  { %v9574_v13 = vld [vmem:[%s14866_s1 + $0x324] ss:$16 sps:$4 sm:$0xff]   ;;  %v9577_v17 = vld [vmem:[%s14866_s1 + $0x320] ss:$16 sps:$4 sm:$0xff]  }
  0x25   :  { %6547 = vmatpush2.bf16.msra.mxu0 %v9540_v35  ;;  %v11347_v6 = vrot.slane %v1139_v4, %v11315_v55  ;;  %v9578_v19 = vld [vmem:[%s14866_s1 + $0x104] ss:$16 sps:$4 sm:$0xff]   ;;  %v9582_v22 = vld [vmem:[%s14866_s1 + $0x100] ss:$16 sps:$4 sm:$0xff]   ;;  %v11394_v24 = vrot.slane %v1138_v18, %v11315_v55  ;;  %v11403_v27 = vrot.slane %v1141_v21, %v11315_v55 }
  0x26   :  { %6588 = vmatpush2.bf16.msra.mxu1 %v9541_v36  ;;  %6548 = vmatprep.subr.bf16.mxu0 %v9542_v37  ;;  %v9580_v20 = vld [vmem:[%s14866_s1 + $0x304] ss:$16 sps:$4 sm:$0xff]   ;;  %v9583_v23 = vld [vmem:[%s14866_s1 + $0x300] ss:$16 sps:$4 sm:$0xff]  }
  0x27   :  { %6589 = vmatprep.subr.bf16.mxu1 %v9544_v38  ;;  %v11360_v12 = vcombine.high %v11347_v6, %v11347_v6  ;;  %6562 = vmatprep.mubr.bf16.mxu0 %v11347_v6  ;;  %v9586_v25 = vld [vmem:[%s14866_s1 + $0x4e4] ss:$16 sps:$4 sm:$0xff]   ;;  %v11407_v28 = vcombine.high %v11394_v24, %v11394_v24  ;;  %v9584_v29 = vld [vmem:[%s14866_s1 + $0x4e0] ss:$16 sps:$4 sm:$0xff]   ;;  %v11423_v33 = vcombine.high %v11403_v27, %v11403_v27 }
  0x28   :  { %v9589_v26 = vld [vmem:[%s14866_s1 + $0x6e4] ss:$16 sps:$4 sm:$0xff]   ;;  %v9587_v30 = vld [vmem:[%s14866_s1 + $0x6e0] ss:$16 sps:$4 sm:$0xff]  }
  0x29   :  { %6549 = vmatpush2.bf16.msra.mxu0 %v9546_v42  ;;  %6603 = vmatprep.mubr.bf16.mxu1 %v11360_v12  ;;  %v9592_v31 = vld [vmem:[%s14866_s1 + $0x4c4] ss:$16 sps:$4 sm:$0xff]   ;;  %v9590_v34 = vld [vmem:[%s14866_s1 + $0x4c0] ss:$16 sps:$4 sm:$0xff]  }
  0x2a   :  { %6590 = vmatpush2.bf16.msra.mxu1 %v9547_v43  ;;  %6550 = vmatprep.subr.bf16.mxu0 %v9548_v44  ;;  %v9595_v32 = vld [vmem:[%s14866_s1 + $0x6c4] ss:$16 sps:$4 sm:$0xff]   ;;  %v9593_v35 = vld [vmem:[%s14866_s1 + $0x6c0] ss:$16 sps:$4 sm:$0xff]  }
  0x2b   :  { %6591 = vmatprep.subr.bf16.mxu1 %v9550_v45  ;;  %v9598_v36 = vld [vmem:[%s14866_s1 + $0x4a4] ss:$16 sps:$4 sm:$0xff]   ;;  %v9596_v38 = vld [vmem:[%s14866_s1 + $0x4a0] ss:$16 sps:$4 sm:$0xff]  }
  0x2c   :  { %v9601_v37 = vld [vmem:[%s14866_s1 + $0x6a4] ss:$16 sps:$4 sm:$0xff]   ;;  %v9599_v39 = vld [vmem:[%s14866_s1 + $0x6a0] ss:$16 sps:$4 sm:$0xff]  }
  0x2d   :  { %6551 = vmatpush2.bf16.msra.mxu0 %v9552_v48  ;;  %v9604_v40 = vld [vmem:[%s14866_s1 + $0x484] ss:$16 sps:$4 sm:$0xff]   ;;  %v9602_v42 = vld [vmem:[%s14866_s1 + $0x480] ss:$16 sps:$4 sm:$0xff]  }
  0x2e   :  { %6592 = vmatpush2.bf16.msra.mxu1 %v9553_v49  ;;  %6552 = vmatprep.subr.bf16.mxu0 %v9554_v50  ;;  %v9607_v41 = vld [vmem:[%s14866_s1 + $0x684] ss:$16 sps:$4 sm:$0xff]   ;;  %v9605_v43 = vld [vmem:[%s14866_s1 + $0x680] ss:$16 sps:$4 sm:$0xff]  }
  0x2f   :  { %6593 = vmatprep.subr.bf16.mxu1 %v9556_v51  ;;  %v9610_v44 = vld [vmem:[%s14866_s1 + $0x464] ss:$16 sps:$4 sm:$0xff]   ;;  %v9608_v47 = vld [vmem:[%s14866_s1 + $0x460] ss:$16 sps:$4 sm:$0xff]  }
  0x30   :  { %v9613_v45 = vld [vmem:[%s14866_s1 + $0x664] ss:$16 sps:$4 sm:$0xff]   ;;  %v9611_v48 = vld [vmem:[%s14866_s1 + $0x660] ss:$16 sps:$4 sm:$0xff]  }
  0x31   :  { %6553 = vmatpush2.bf16.msra.mxu0 %v9558_v52  ;;  %v9616_v49 = vld [vmem:[%s14866_s1 + $0x444] ss:$16 sps:$4 sm:$0xff]   ;;  %v9614_v51 = vld [vmem:[%s14866_s1 + $0x440] ss:$16 sps:$4 sm:$0xff]  }
  0x32   :  { %6594 = vmatpush2.bf16.msra.mxu1 %v9559_v53  ;;  %6554 = vmatprep.subr.bf16.mxu0 %v9560_v59  ;;  %v9619_v50 = vld [vmem:[%s14866_s1 + $0x644] ss:$16 sps:$4 sm:$0xff]   ;;  %v9617_v52 = vld [vmem:[%s14866_s1 + $0x640] ss:$16 sps:$4 sm:$0xff]  }
  0x33   :  { %6595 = vmatprep.subr.bf16.mxu1 %v9562_v62  ;;  %v9622_v53 = vld [vmem:[%s14866_s1 + $0x424] ss:$16 sps:$4 sm:$0xff]   ;;  %v9620_v56 = vld [vmem:[%s14866_s1 + $0x420] ss:$16 sps:$4 sm:$0xff]  }
  0x34   :  { %v9625_v54 = vld [vmem:[%s14866_s1 + $0x624] ss:$16 sps:$4 sm:$0xff]   ;;  %v9623_v57 = vld [vmem:[%s14866_s1 + $0x620] ss:$16 sps:$4 sm:$0xff]  }
  0x35   :  { %6555 = vmatpush2.bf16.msra.mxu0 %v9564_v1  ;;  %v9628_v58 = vld [vmem:[%s14866_s1 + $0x404] ss:$16 sps:$4 sm:$0xff]   ;;  %v9626_v60 = vld [vmem:[%s14866_s1 + $0x400] ss:$16 sps:$4 sm:$0xff]  }
  0x36   :  { %6596 = vmatpush2.bf16.msra.mxu1 %v9565_v2  ;;  %6556 = vmatprep.subr.bf16.mxu0 %v9566_v3  ;;  %v9631_v59 = vld [vmem:[%s14866_s1 + $0x604] ss:$16 sps:$4 sm:$0xff]   ;;  %v9629_v61 = vld [vmem:[%s14866_s1 + $0x600] ss:$16 sps:$4 sm:$0xff]  }
  0x37   :  { %6597 = vmatprep.subr.bf16.mxu1 %v9568_v5  ;;  %v9634_v62 = vld [vmem:[%s14866_s1 + $0x5e4] ss:$16 sps:$4 sm:$0xff]   ;;  %v9632_v0 = vld [vmem:[%s14866_s1 + $0x5e0] ss:$16 sps:$4 sm:$0xff]  }
  0x38   :  { %v9637_v63 = vld [vmem:[%s14866_s1 + $0x7e4] ss:$16 sps:$4 sm:$0xff]   ;;  %v9635_v1 = vld [vmem:[%s14866_s1 + $0x7e0] ss:$16 sps:$4 sm:$0xff]  }
  0x39   :  { %6557 = vmatpush2.bf16.msra.mxu0 %v9570_v9  ;;  %v9640_v2 = vld [vmem:[%s14866_s1 + $0x5c4] ss:$16 sps:$4 sm:$0xff]   ;;  %v9638_v4 = vld [vmem:[%s14866_s1 + $0x5c0] ss:$16 sps:$4 sm:$0xff]  }
  0x3a   :  { %6598 = vmatpush2.bf16.msra.mxu1 %v9571_v10  ;;  %6558 = vmatprep.subr.bf16.mxu0 %v9572_v11  ;;  %v9643_v3 = vld [vmem:[%s14866_s1 + $0x7c4] ss:$16 sps:$4 sm:$0xff]   ;;  %v9641_v5 = vld [vmem:[%s14866_s1 + $0x7c0] ss:$16 sps:$4 sm:$0xff]  }
  0x3b   :  { %6599 = vmatprep.subr.bf16.mxu1 %v9574_v13  ;;  %v9646_v7 = vld [vmem:[%s14866_s1 + $0x5a4] ss:$16 sps:$4 sm:$0xff]   ;;  %v9644_v9 = vld [vmem:[%s14866_s1 + $0x5a0] ss:$16 sps:$4 sm:$0xff]  }
  0x3c   :  { %v9649_v8 = vld [vmem:[%s14866_s1 + $0x7a4] ss:$16 sps:$4 sm:$0xff]   ;;  %v9647_v10 = vld [vmem:[%s14866_s1 + $0x7a0] ss:$16 sps:$4 sm:$0xff]  }
  0x3d   :  { %6559 = vmatpush2.bf16.msra.mxu0 %v9576_v16  ;;  %v9652_v11 = vld [vmem:[%s14866_s1 + $0x584] ss:$16 sps:$4 sm:$0xff]   ;;  %v9650_v16 = vld [vmem:[%s14866_s1 + $0x580] ss:$16 sps:$4 sm:$0xff]  }
  0x3e   :  { %6600 = vmatpush2.bf16.msra.mxu1 %v9577_v17  ;;  %6560 = vmatprep.subr.bf16.mxu0 %v9578_v19  ;;  %v9655_v13 = vld [vmem:[%s14866_s1 + $0x784] ss:$16 sps:$4 sm:$0xff]   ;;  %v9653_v17 = vld [vmem:[%s14866_s1 + $0x780] ss:$16 sps:$4 sm:$0xff]  }
  0x3f   :  { %6601 = vmatprep.subr.bf16.mxu1 %v9580_v20  ;;  %v9658_v18 = vld [vmem:[%s14866_s1 + $0x564] ss:$16 sps:$4 sm:$0xff]   ;;  %v9656_v20 = vld [vmem:[%s14866_s1 + $0x560] ss:$16 sps:$4 sm:$0xff]  }
  0x40   :  { %v9661_v19 = vld [vmem:[%s14866_s1 + $0x764] ss:$16 sps:$4 sm:$0xff]   ;;  %v9659_v21 = vld [vmem:[%s14866_s1 + $0x760] ss:$16 sps:$4 sm:$0xff]  }
  0x41   :  { %6561 = vmatpush2.bf16.msra.mxu0 %v9582_v22  ;;  %v9664_v22 = vld [vmem:[%s14866_s1 + $0x544] ss:$16 sps:$4 sm:$0xff]  }
  0x42   :  { %6602 = vmatpush2.bf16.msra.mxu1 %v9583_v23  ;;  %6612 = vmatprep.subr.bf16.mxu0 %v9586_v25  ;;  %v9667_v23 = vld [vmem:[%s14866_s1 + $0x744] ss:$16 sps:$4 sm:$0xff]   ;;  %v9662_v25 = vld [vmem:[%s14866_s1 + $0x540] ss:$16 sps:$4 sm:$0xff]  }
  0x43   :  { %6653 = vmatprep.subr.bf16.mxu1 %v9589_v26  ;;  %v9665_v26 = vld [vmem:[%s14866_s1 + $0x740] ss:$16 sps:$4 sm:$0xff]  }
  0x44   :  { %6563 = vmatmul.mubr.bf16.vlgmr.msra.gmra.mxu0 %v11394_v24 }
  0x45   :  { %6604 = vmatmul.mubr.bf16.vlgmr.msra.gmra.mxu1 %v11407_v28  ;;  %6613 = vmatpush1.bf16.msra.mxu0 %v9584_v29  ;;  %v9670_v29 = vld [vmem:[%s14866_s1 + $0x524] ss:$16 sps:$4 sm:$0xff]  }
  0x46   :  { %6654 = vmatpush1.bf16.msra.mxu1 %v9587_v30  ;;  %6614 = vmatprep.subr.bf16.mxu0 %v9592_v31  ;;  %v9673_v30 = vld [vmem:[%s14866_s1 + $0x724] ss:$16 sps:$4 sm:$0xff]   ;;  %v9668_v31 = vld [vmem:[%s14866_s1 + $0x520] ss:$16 sps:$4 sm:$0xff]  }
  0x47   :  { %6655 = vmatprep.subr.bf16.mxu1 %v9595_v32  ;;  %6644 = vmatprep.mubr.bf16.mxu0 %v11403_v27  ;;  %v9671_v32 = vld [vmem:[%s14866_s1 + $0x720] ss:$16 sps:$4 sm:$0xff]  }
  0x48   :  { %6685 = vmatprep.mubr.bf16.mxu1 %v11423_v33 }
  0x49   :  { %6615 = vmatpush1.bf16.msra.mxu0 %v9590_v34  ;;  %v1140_v34 = vcombine.low %v11368_v14, %v11371_v15  ;;  %v9677_v14 = vld [vmem:[%s14866_s1 + $0x700] ss:$16 sps:$4 sm:$0xff]  }
  0x4a   :  { %6656 = vmatpush1.bf16.msra.mxu1 %v9593_v35  ;;  %6616 = vmatprep.subr.bf16.mxu0 %v9598_v36  ;;  %v9676_v35 = vld [vmem:[%s14866_s1 + $0x504] ss:$16 sps:$4 sm:$0xff]  }
  0x4b   :  { %6657 = vmatprep.subr.bf16.mxu1 %v9601_v37  ;;  %v9679_v36 = vld [vmem:[%s14866_s1 + $0x704] ss:$16 sps:$4 sm:$0xff]   ;;  %v9674_v37 = vld [vmem:[%s14866_s1 + $0x500] ss:$16 sps:$4 sm:$0xff]   ;;  %v11606_v15 = vrot.slane %v1140_v34, %v11315_v55 }
  0x4c   :  { %v9734_v34 = vld [vmem:[%s14866_s1 + $0x9c0] ss:$16 sps:$4 sm:$0xff]  }
  0x4d   :  { %6617 = vmatpush1.bf16.msra.mxu0 %v9596_v38  ;;  %v9682_v38 = vld [vmem:[%s14866_s1 + $0x8e4] ss:$16 sps:$4 sm:$0xff]  }
  0x4e   :  { %6658 = vmatpush1.bf16.msra.mxu1 %v9599_v39  ;;  %6618 = vmatprep.subr.bf16.mxu0 %v9604_v40  ;;  %v9685_v39 = vld [vmem:[%s14866_s1 + $0xae4] ss:$16 sps:$4 sm:$0xff]   ;;  %v11616_v40 = vcombine.high %v11606_v15, %v11606_v15 }
  0x4f   :  { %6659 = vmatprep.subr.bf16.mxu1 %v9607_v41  ;;  %v9680_v41 = vld [vmem:[%s14866_s1 + $0x8e0] ss:$16 sps:$4 sm:$0xff]  }
  0x51   :  { %6619 = vmatpush1.bf16.msra.mxu0 %v9602_v42  ;;  %v9683_v42 = vld [vmem:[%s14866_s1 + $0xae0] ss:$16 sps:$4 sm:$0xff]  }
  0x52   :  { %6660 = vmatpush1.bf16.msra.mxu1 %v9605_v43  ;;  %6620 = vmatprep.subr.bf16.mxu0 %v9610_v44  ;;  %v9688_v43 = vld [vmem:[%s14866_s1 + $0x8c4] ss:$16 sps:$4 sm:$0xff]  }
  0x53   :  { %6661 = vmatprep.subr.bf16.mxu1 %v9613_v45  ;;  %v9691_v44 = vld [vmem:[%s14866_s1 + $0xac4] ss:$16 sps:$4 sm:$0xff]   ;;  %v11633_v45 = vld [vmem:[%s14865_s0 + $0x8] sm:$0xff] }
  0x55   :  { %6621 = vmatpush1.bf16.msra.mxu0 %v9608_v47  ;;  %v11638_v47 = vld [vmem:[%s14865_s0 + $0x28] sm:$0xff] }
  0x56   :  { %6662 = vmatpush1.bf16.msra.mxu1 %v9611_v48  ;;  %6622 = vmatprep.subr.bf16.mxu0 %v9616_v49  ;;  %v11643_v48 = vld [vmem:[%s14865_s0 + $0x48] sm:$0xff] }
  0x57   :  { %6663 = vmatprep.subr.bf16.mxu1 %v9619_v50  ;;  %v11648_v49 = vld [vmem:[%s14865_s0 + $0x68] sm:$0xff]  ;;  %v1174_v50 = vcombine.low %v11633_v45, %v11638_v47 }
  0x59   :  { %6623 = vmatpush1.bf16.msra.mxu0 %v9614_v51  ;;  %v9686_v51 = vld [vmem:[%s14866_s1 + $0x8c0] ss:$16 sps:$4 sm:$0xff]  }
  0x5a   :  { %6664 = vmatpush1.bf16.msra.mxu1 %v9617_v52  ;;  %6624 = vmatprep.subr.bf16.mxu0 %v9622_v53  ;;  %v9689_v52 = vld [vmem:[%s14866_s1 + $0xac0] ss:$16 sps:$4 sm:$0xff]   ;;  %v1176_v53 = vcombine.low %v11643_v48, %v11648_v49 }
  0x5b   :  { %6665 = vmatprep.subr.bf16.mxu1 %v9625_v54  ;;  %v9694_v54 = vld [vmem:[%s14866_s1 + $0x8a4] ss:$16 sps:$4 sm:$0xff]  }
  0x5d   :  { %6625 = vmatpush1.bf16.msra.mxu0 %v9620_v56  ;;  %v11666_v56 = vrot.slane %v1174_v50, %v11315_v55  ;;  %v9757_v50 = vld [vmem:[%s14866_s1 + $0xb64] ss:$16 sps:$4 sm:$0xff]  }
  0x5e   :  { %6666 = vmatpush1.bf16.msra.mxu1 %v9623_v57  ;;  %6626 = vmatprep.subr.bf16.mxu0 %v9628_v58  ;;  %v9697_v57 = vld [vmem:[%s14866_s1 + $0xaa4] ss:$16 sps:$4 sm:$0xff]   ;;  %v11672_v58 = vrot.slane %v1176_v53, %v11315_v55 }
  0x5f   :  { %6667 = vmatprep.subr.bf16.mxu1 %v9631_v59  ;;  %v9692_v59 = vld [vmem:[%s14866_s1 + $0x8a0] ss:$16 sps:$4 sm:$0xff]   ;;  %v9760_v53 = vld [vmem:[%s14866_s1 + $0x944] ss:$16 sps:$4 sm:$0xff]  }
  0x61   :  { %6627 = vmatpush1.bf16.msra.mxu0 %v9626_v60  ;;  %v9695_v60 = vld [vmem:[%s14866_s1 + $0xaa0] ss:$16 sps:$4 sm:$0xff]  }
  0x62   :  { %6668 = vmatpush1.bf16.msra.mxu1 %v9629_v61  ;;  %6628 = vmatprep.subr.bf16.mxu0 %v9634_v62  ;;  %v1207_v61 = vcombine.high %v11666_v56, %v11672_v58  ;;  %v9700_v62 = vld [vmem:[%s14866_s1 + $0x884] ss:$16 sps:$4 sm:$0xff]  }
  0x63   :  { %6669 = vmatprep.subr.bf16.mxu1 %v9637_v63  ;;  %v9703_v63 = vld [vmem:[%s14866_s1 + $0xa84] ss:$16 sps:$4 sm:$0xff]  }
  0x65   :  { %6629 = vmatpush2.bf16.msra.mxu0 %v9632_v0  ;;  %v11689_v0 = vrot.slane %v1207_v61, %v11315_v55  ;;  %v9761_v61 = vld [vmem:[%s14866_s1 + $0xb40] ss:$16 sps:$4 sm:$0xff]  }
  0x66   :  { %6670 = vmatpush2.bf16.msra.mxu1 %v9635_v1  ;;  %6630 = vmatprep.subr.bf16.mxu0 %v9640_v2  ;;  %v9698_v1 = vld [vmem:[%s14866_s1 + $0x880] ss:$16 sps:$4 sm:$0xff]  }
  0x67   :  { %6671 = vmatprep.subr.bf16.mxu1 %v9643_v3  ;;  %v9701_v2 = vld [vmem:[%s14866_s1 + $0xa80] ss:$16 sps:$4 sm:$0xff]   ;;  %v11700_v3 = vcombine.high %v11689_v0, %v11689_v0 }
  0x69   :  { %6631 = vmatpush2.bf16.msra.mxu0 %v9638_v4  ;;  %v9706_v4 = vld [vmem:[%s14866_s1 + $0x864] ss:$16 sps:$4 sm:$0xff]  }
  0x6a   :  { %6672 = vmatpush2.bf16.msra.mxu1 %v9641_v5  ;;  %6632 = vmatprep.subr.bf16.mxu0 %v9646_v7  ;;  %v9709_v5 = vld [vmem:[%s14866_s1 + $0xa64] ss:$16 sps:$4 sm:$0xff]   ;;  %v9704_v7 = vld [vmem:[%s14866_s1 + $0x860] ss:$16 sps:$4 sm:$0xff]  }
  0x6b   :  { %6673 = vmatprep.subr.bf16.mxu1 %v9649_v8  ;;  %v9707_v8 = vld [vmem:[%s14866_s1 + $0xa60] ss:$16 sps:$4 sm:$0xff]  }
  0x6d   :  { %6633 = vmatpush2.bf16.msra.mxu0 %v9644_v9  ;;  %v9712_v9 = vld [vmem:[%s14866_s1 + $0x844] ss:$16 sps:$4 sm:$0xff]  }
  0x6e   :  { %6674 = vmatpush2.bf16.msra.mxu1 %v9647_v10  ;;  %6634 = vmatprep.subr.bf16.mxu0 %v9652_v11  ;;  %v9715_v10 = vld [vmem:[%s14866_s1 + $0xa44] ss:$16 sps:$4 sm:$0xff]   ;;  %v9710_v11 = vld [vmem:[%s14866_s1 + $0x840] ss:$16 sps:$4 sm:$0xff]  }
  0x6f   :  { %6675 = vmatprep.subr.bf16.mxu1 %v9655_v13  ;;  %v9713_v13 = vld [vmem:[%s14866_s1 + $0xa40] ss:$16 sps:$4 sm:$0xff]  }
  0x71   :  { %6635 = vmatpush2.bf16.msra.mxu0 %v9650_v16  ;;  %v9718_v16 = vld [vmem:[%s14866_s1 + $0x824] ss:$16 sps:$4 sm:$0xff]  }
  0x72   :  { %6676 = vmatpush2.bf16.msra.mxu1 %v9653_v17  ;;  %6636 = vmatprep.subr.bf16.mxu0 %v9658_v18  ;;  %v9721_v17 = vld [vmem:[%s14866_s1 + $0xa24] ss:$16 sps:$4 sm:$0xff]   ;;  %v9716_v18 = vld [vmem:[%s14866_s1 + $0x820] ss:$16 sps:$4 sm:$0xff]  }
  0x73   :  { %6677 = vmatprep.subr.bf16.mxu1 %v9661_v19  ;;  %v9719_v19 = vld [vmem:[%s14866_s1 + $0xa20] ss:$16 sps:$4 sm:$0xff]  }
  0x75   :  { %6637 = vmatpush2.bf16.msra.mxu0 %v9656_v20  ;;  %v9724_v20 = vld [vmem:[%s14866_s1 + $0x804] ss:$16 sps:$4 sm:$0xff]  }
  0x76   :  { %6678 = vmatpush2.bf16.msra.mxu1 %v9659_v21  ;;  %6638 = vmatprep.subr.bf16.mxu0 %v9664_v22  ;;  %v9727_v21 = vld [vmem:[%s14866_s1 + $0xa04] ss:$16 sps:$4 sm:$0xff]   ;;  %v9722_v22 = vld [vmem:[%s14866_s1 + $0x800] ss:$16 sps:$4 sm:$0xff]  }
  0x77   :  { %6679 = vmatprep.subr.bf16.mxu1 %v9667_v23  ;;  %v9725_v23 = vld [vmem:[%s14866_s1 + $0xa00] ss:$16 sps:$4 sm:$0xff]  }
  0x79   :  { %6639 = vmatpush2.bf16.msra.mxu0 %v9662_v25  ;;  %v9730_v25 = vld [vmem:[%s14866_s1 + $0x9e4] ss:$16 sps:$4 sm:$0xff]  }
  0x7a   :  { %6680 = vmatpush2.bf16.msra.mxu1 %v9665_v26  ;;  %6640 = vmatprep.subr.bf16.mxu0 %v9670_v29  ;;  %v9733_v26 = vld [vmem:[%s14866_s1 + $0xbe4] ss:$16 sps:$4 sm:$0xff]   ;;  %v9728_v29 = vld [vmem:[%s14866_s1 + $0x9e0] ss:$16 sps:$4 sm:$0xff]  }
  0x7b   :  { %6681 = vmatprep.subr.bf16.mxu1 %v9673_v30  ;;  %v9731_v30 = vld [vmem:[%s14866_s1 + $0xbe0] ss:$16 sps:$4 sm:$0xff]  }
  0x7d   :  { %6641 = vmatpush2.bf16.msra.mxu0 %v9668_v31  ;;  %v9736_v31 = vld [vmem:[%s14866_s1 + $0x9c4] ss:$16 sps:$4 sm:$0xff]  }
  0x7e   :  { %6682 = vmatpush2.bf16.msra.mxu1 %v9671_v32  ;;  %6642 = vmatprep.subr.bf16.mxu0 %v9676_v35  ;;  %v9739_v32 = vld [vmem:[%s14866_s1 + $0xbc4] ss:$16 sps:$4 sm:$0xff]   ;;  %v9737_v35 = vld [vmem:[%s14866_s1 + $0xbc0] ss:$16 sps:$4 sm:$0xff]  }
  0x7f   :  { %6683 = vmatprep.subr.bf16.mxu1 %v9679_v36  ;;  %v9742_v36 = vld [vmem:[%s14866_s1 + $0x9a4] ss:$16 sps:$4 sm:$0xff]  }
  0x81   :  { %6643 = vmatpush2.bf16.msra.mxu0 %v9674_v37  ;;  %v9745_v37 = vld [vmem:[%s14866_s1 + $0xba4] ss:$16 sps:$4 sm:$0xff]  }
  0x82   :  { %6684 = vmatpush2.bf16.msra.mxu1 %v9677_v14  ;;  %6694 = vmatprep.subr.bf16.mxu0 %v9682_v38  ;;  %v9740_v14 = vld [vmem:[%s14866_s1 + $0x9a0] ss:$16 sps:$4 sm:$0xff]  }
  0x83   :  { %6735 = vmatprep.subr.bf16.mxu1 %v9685_v39  ;;  %v9743_v38 = vld [vmem:[%s14866_s1 + $0xba0] ss:$16 sps:$4 sm:$0xff]   ;;  %v9748_v39 = vld [vmem:[%s14866_s1 + $0x984] ss:$16 sps:$4 sm:$0xff]  }
  0x84   :  { %6645 = vmatmul.mubr.bf16.vlgmr.msra.gmra.mxu0 %v11606_v15 }
  0x85   :  { %6686 = vmatmul.mubr.bf16.vlgmr.msra.gmra.mxu1 %v11616_v40  ;;  %6695 = vmatpush1.bf16.msra.mxu0 %v9680_v41  ;;  %v9751_v41 = vld [vmem:[%s14866_s1 + $0xb84] ss:$16 sps:$4 sm:$0xff]  }
  0x86   :  { %6736 = vmatpush1.bf16.msra.mxu1 %v9683_v42  ;;  %6696 = vmatprep.subr.bf16.mxu0 %v9688_v43  ;;  %v9746_v42 = vld [vmem:[%s14866_s1 + $0x980] ss:$16 sps:$4 sm:$0xff]  }
  0x87   :  { %6737 = vmatprep.subr.bf16.mxu1 %v9691_v44  ;;  %6726 = vmatprep.mubr.bf16.mxu0 %v11689_v0  ;;  %v9749_v43 = vld [vmem:[%s14866_s1 + $0xb80] ss:$16 sps:$4 sm:$0xff]   ;;  %v9754_v44 = vld [vmem:[%s14866_s1 + $0x964] ss:$16 sps:$4 sm:$0xff]  }
  0x88   :  { %6767 = vmatprep.mubr.bf16.mxu1 %v11700_v3 }
  0x89   :  { %6697 = vmatpush1.bf16.msra.mxu0 %v9686_v51  ;;  %v9752_v51 = vld [vmem:[%s14866_s1 + $0x960] ss:$16 sps:$4 sm:$0xff]  }
  0x8a   :  { %6738 = vmatpush1.bf16.msra.mxu1 %v9689_v52  ;;  %6698 = vmatprep.subr.bf16.mxu0 %v9694_v54  ;;  %v9755_v52 = vld [vmem:[%s14866_s1 + $0xb60] ss:$16 sps:$4 sm:$0xff]   ;;  %v9763_v54 = vld [vmem:[%s14866_s1 + $0xb44] ss:$16 sps:$4 sm:$0xff]  }
  0x8b   :  { %6739 = vmatprep.subr.bf16.mxu1 %v9697_v57  ;;  %v1175_v57 = vcombine.high %v11633_v45, %v11638_v47  ;;  %v9769_v45 = vld [vmem:[%s14866_s1 + $0xb24] ss:$16 sps:$4 sm:$0xff]  }
  0x8d   :  { %6699 = vmatpush1.bf16.msra.mxu0 %v9692_v59  ;;  %v1177_v59 = vcombine.high %v11643_v48, %v11648_v49  ;;  %v11834_v47 = vrot.slane %v1175_v57, %v11315_v55  ;;  %v9764_v49 = vld [vmem:[%s14866_s1 + $0x920] ss:$16 sps:$4 sm:$0xff]   ;;  %v9826_v57 = vld [vmem:[%s14866_s1 + $0xde4] ss:$16 sps:$4 sm:$0xff]  }
  0x8e   :  { %6740 = vmatpush1.bf16.msra.mxu1 %v9695_v60  ;;  %6700 = vmatprep.subr.bf16.mxu0 %v9700_v62  ;;  %v9758_v60 = vld [vmem:[%s14866_s1 + $0x940] ss:$16 sps:$4 sm:$0xff]   ;;  %v9766_v62 = vld [vmem:[%s14866_s1 + $0x924] ss:$16 sps:$4 sm:$0xff]  }
  0x8f   :  { %6741 = vmatprep.subr.bf16.mxu1 %v9703_v63  ;;  %v11837_v48 = vrot.slane %v1177_v59, %v11315_v55  ;;  %v1206_v63 = vcombine.low %v11666_v56, %v11672_v58  ;;  %v9770_v56 = vld [vmem:[%s14866_s1 + $0x900] ss:$16 sps:$4 sm:$0xff]   ;;  %v9829_v59 = vld [vmem:[%s14866_s1 + $0xfe4] ss:$16 sps:$4 sm:$0xff]  }
  0x91   :  { %6701 = vmatpush1.bf16.msra.mxu0 %v9698_v1  ;;  %v9767_v1 = vld [vmem:[%s14866_s1 + $0xb20] ss:$16 sps:$4 sm:$0xff]   ;;  %v11859_v58 = vrot.slane %v1206_v63, %v11315_v55 }
  0x92   :  { %6742 = vmatpush1.bf16.msra.mxu1 %v9701_v2  ;;  %6702 = vmatprep.subr.bf16.mxu0 %v9706_v4  ;;  %v9772_v2 = vld [vmem:[%s14866_s1 + $0x904] ss:$16 sps:$4 sm:$0xff]   ;;  %v9833_v63 = vld [vmem:[%s14866_s1 + $0xfc0] ss:$16 sps:$4 sm:$0xff]  }
  0x93   :  { %6743 = vmatprep.subr.bf16.mxu1 %v9709_v5  ;;  %v9775_v4 = vld [vmem:[%s14866_s1 + $0xb04] ss:$16 sps:$4 sm:$0xff]   ;;  %v1209_v5 = vcombine.high %v11834_v47, %v11837_v48 }
  0x95   :  { %6703 = vmatpush1.bf16.msra.mxu0 %v9704_v7  ;;  %v9773_v7 = vld [vmem:[%s14866_s1 + $0xb00] ss:$16 sps:$4 sm:$0xff]  }
  0x96   :  { %6744 = vmatpush1.bf16.msra.mxu1 %v9707_v8  ;;  %6704 = vmatprep.subr.bf16.mxu0 %v9712_v9  ;;  %v9778_v8 = vld [vmem:[%s14866_s1 + $0xce4] ss:$16 sps:$4 sm:$0xff]  }
  0x97   :  { %6745 = vmatprep.subr.bf16.mxu1 %v9715_v10  ;;  %v9781_v9 = vld [vmem:[%s14866_s1 + $0xee4] ss:$16 sps:$4 sm:$0xff]   ;;  %v11871_v10 = vrot.slane %v1209_v5, %v11315_v55  ;;  %v9839_v5 = vld [vmem:[%s14866_s1 + $0xfa0] ss:$16 sps:$4 sm:$0xff]  }
  0x99   :  { %6705 = vmatpush1.bf16.msra.mxu0 %v9710_v11  ;;  %v11875_v11 = vcombine.high %v11859_v58, %v11859_v58 }
  0x9a   :  { %6746 = vmatpush1.bf16.msra.mxu1 %v9713_v13  ;;  %6706 = vmatprep.subr.bf16.mxu0 %v9718_v16  ;;  %v9776_v13 = vld [vmem:[%s14866_s1 + $0xce0] ss:$16 sps:$4 sm:$0xff]  }
  0x9b   :  { %6747 = vmatprep.subr.bf16.mxu1 %v9721_v17  ;;  %v9779_v16 = vld [vmem:[%s14866_s1 + $0xee0] ss:$16 sps:$4 sm:$0xff]   ;;  %v9784_v17 = vld [vmem:[%s14866_s1 + $0xcc4] ss:$16 sps:$4 sm:$0xff]  }
  0x9d   :  { %6707 = vmatpush1.bf16.msra.mxu0 %v9716_v18  ;;  %v9787_v18 = vld [vmem:[%s14866_s1 + $0xec4] ss:$16 sps:$4 sm:$0xff]  }
  0x9e   :  { %6748 = vmatpush1.bf16.msra.mxu1 %v9719_v19  ;;  %6708 = vmatprep.subr.bf16.mxu0 %v9724_v20  ;;  %v11891_v19 = vcombine.high %v11871_v10, %v11871_v10  ;;  %v9782_v20 = vld [vmem:[%s14866_s1 + $0xcc0] ss:$16 sps:$4 sm:$0xff]  }
  0x9f   :  { %6749 = vmatprep.subr.bf16.mxu1 %v9727_v21  ;;  %v9785_v21 = vld [vmem:[%s14866_s1 + $0xec0] ss:$16 sps:$4 sm:$0xff]  }
  0xa1   :  { %6709 = vmatpush1.bf16.msra.mxu0 %v9722_v22  ;;  %v9790_v22 = vld [vmem:[%s14866_s1 + $0xca4] ss:$16 sps:$4 sm:$0xff]  }
  0xa2   :  { %6750 = vmatpush1.bf16.msra.mxu1 %v9725_v23  ;;  %6710 = vmatprep.subr.bf16.mxu0 %v9730_v25  ;;  %v9793_v23 = vld [vmem:[%s14866_s1 + $0xea4] ss:$16 sps:$4 sm:$0xff]   ;;  %v9788_v25 = vld [vmem:[%s14866_s1 + $0xca0] ss:$16 sps:$4 sm:$0xff]  }
  0xa3   :  { %6751 = vmatprep.subr.bf16.mxu1 %v9733_v26  ;;  %v9791_v26 = vld [vmem:[%s14866_s1 + $0xea0] ss:$16 sps:$4 sm:$0xff]  }
  0xa5   :  { %6711 = vmatpush2.bf16.msra.mxu0 %v9728_v29  ;;  %v9796_v29 = vld [vmem:[%s14866_s1 + $0xc84] ss:$16 sps:$4 sm:$0xff]  }
  0xa6   :  { %6752 = vmatpush2.bf16.msra.mxu1 %v9731_v30  ;;  %6712 = vmatprep.subr.bf16.mxu0 %v9736_v31  ;;  %v9799_v30 = vld [vmem:[%s14866_s1 + $0xe84] ss:$16 sps:$4 sm:$0xff]   ;;  %v9794_v31 = vld [vmem:[%s14866_s1 + $0xc80] ss:$16 sps:$4 sm:$0xff]  }
  0xa7   :  { %6753 = vmatprep.subr.bf16.mxu1 %v9739_v32  ;;  %v9797_v32 = vld [vmem:[%s14866_s1 + $0xe80] ss:$16 sps:$4 sm:$0xff]  }
  0xa9   :  { %6713 = vmatpush2.bf16.msra.mxu0 %v9734_v34  ;;  %v9802_v34 = vld [vmem:[%s14866_s1 + $0xc64] ss:$16 sps:$4 sm:$0xff]  }
  0xaa   :  { %6754 = vmatpush2.bf16.msra.mxu1 %v9737_v35  ;;  %6714 = vmatprep.subr.bf16.mxu0 %v9742_v36  ;;  %v9805_v35 = vld [vmem:[%s14866_s1 + $0xe64] ss:$16 sps:$4 sm:$0xff]   ;;  %v9800_v36 = vld [vmem:[%s14866_s1 + $0xc60] ss:$16 sps:$4 sm:$0xff]  }
  0xab   :  { %6755 = vmatprep.subr.bf16.mxu1 %v9745_v37  ;;  %v9803_v37 = vld [vmem:[%s14866_s1 + $0xe60] ss:$16 sps:$4 sm:$0xff]  }
  0xad   :  { %6715 = vmatpush2.bf16.msra.mxu0 %v9740_v14  ;;  %v9808_v14 = vld [vmem:[%s14866_s1 + $0xc44] ss:$16 sps:$4 sm:$0xff]  }
  0xae   :  { %6756 = vmatpush2.bf16.msra.mxu1 %v9743_v38  ;;  %6716 = vmatprep.subr.bf16.mxu0 %v9748_v39  ;;  %v9811_v38 = vld [vmem:[%s14866_s1 + $0xe44] ss:$16 sps:$4 sm:$0xff]   ;;  %v9806_v39 = vld [vmem:[%s14866_s1 + $0xc40] ss:$16 sps:$4 sm:$0xff]  }
  0xaf   :  { %6757 = vmatprep.subr.bf16.mxu1 %v9751_v41  ;;  %v9809_v41 = vld [vmem:[%s14866_s1 + $0xe40] ss:$16 sps:$4 sm:$0xff]  }
  0xb1   :  { %6717 = vmatpush2.bf16.msra.mxu0 %v9746_v42  ;;  %v9814_v42 = vld [vmem:[%s14866_s1 + $0xc24] ss:$16 sps:$4 sm:$0xff]  }
  0xb2   :  { %6758 = vmatpush2.bf16.msra.mxu1 %v9749_v43  ;;  %6718 = vmatprep.subr.bf16.mxu0 %v9754_v44  ;;  %v9817_v43 = vld [vmem:[%s14866_s1 + $0xe24] ss:$16 sps:$4 sm:$0xff]   ;;  %v9812_v44 = vld [vmem:[%s14866_s1 + $0xc20] ss:$16 sps:$4 sm:$0xff]  }
  0xb3   :  { %6759 = vmatprep.subr.bf16.mxu1 %v9757_v50  ;;  %v9815_v50 = vld [vmem:[%s14866_s1 + $0xe20] ss:$16 sps:$4 sm:$0xff]  }
  0xb5   :  { %6719 = vmatpush2.bf16.msra.mxu0 %v9752_v51  ;;  %v9820_v51 = vld [vmem:[%s14866_s1 + $0xc04] ss:$16 sps:$4 sm:$0xff]  }
  0xb6   :  { %6760 = vmatpush2.bf16.msra.mxu1 %v9755_v52  ;;  %6720 = vmatprep.subr.bf16.mxu0 %v9760_v53  ;;  %v9823_v52 = vld [vmem:[%s14866_s1 + $0xe04] ss:$16 sps:$4 sm:$0xff]   ;;  %v9818_v53 = vld [vmem:[%s14866_s1 + $0xc00] ss:$16 sps:$4 sm:$0xff]  }
  0xb7   :  { %6761 = vmatprep.subr.bf16.mxu1 %v9763_v54  ;;  %v9821_v54 = vld [vmem:[%s14866_s1 + $0xe00] ss:$16 sps:$4 sm:$0xff]  }
  0xb9   :  { %6721 = vmatpush2.bf16.msra.mxu0 %v9758_v60  ;;  %v9824_v60 = vld [vmem:[%s14866_s1 + $0xde0] ss:$16 sps:$4 sm:$0xff]  }
  0xba   :  { %6762 = vmatpush2.bf16.msra.mxu1 %v9761_v61  ;;  %6722 = vmatprep.subr.bf16.mxu0 %v9766_v62  ;;  %v9827_v61 = vld [vmem:[%s14866_s1 + $0xfe0] ss:$16 sps:$4 sm:$0xff]   ;;  %v9832_v62 = vld [vmem:[%s14866_s1 + $0xdc4] ss:$16 sps:$4 sm:$0xff]  }
  0xbb   :  { %6763 = vmatprep.subr.bf16.mxu1 %v9769_v45  ;;  %v9835_v45 = vld [vmem:[%s14866_s1 + $0xfc4] ss:$16 sps:$4 sm:$0xff]  }
  0xbd   :  { %6723 = vmatpush2.bf16.msra.mxu0 %v9764_v49  ;;  %v9830_v49 = vld [vmem:[%s14866_s1 + $0xdc0] ss:$16 sps:$4 sm:$0xff]  }
  0xbe   :  { %6764 = vmatpush2.bf16.msra.mxu1 %v9767_v1  ;;  %6724 = vmatprep.subr.bf16.mxu0 %v9772_v2  ;;  %v9838_v1 = vld [vmem:[%s14866_s1 + $0xda4] ss:$16 sps:$4 sm:$0xff]  }
  0xbf   :  { %6765 = vmatprep.subr.bf16.mxu1 %v9775_v4  ;;  %v9841_v2 = vld [vmem:[%s14866_s1 + $0xfa4] ss:$16 sps:$4 sm:$0xff]   ;;  %v9836_v4 = vld [vmem:[%s14866_s1 + $0xda0] ss:$16 sps:$4 sm:$0xff]  }
  0xc1   :  { %6725 = vmatpush2.bf16.msra.mxu0 %v9770_v56  ;;  %v9844_v56 = vld [vmem:[%s14866_s1 + $0xd84] ss:$16 sps:$4 sm:$0xff]  }
  0xc2   :  { %6766 = vmatpush2.bf16.msra.mxu1 %v9773_v7  ;;  %6776 = vmatprep.subr.bf16.mxu0 %v9778_v8  ;;  %v9847_v7 = vld [vmem:[%s14866_s1 + $0xf84] ss:$16 sps:$4 sm:$0xff]   ;;  %v9842_v8 = vld [vmem:[%s14866_s1 + $0xd80] ss:$16 sps:$4 sm:$0xff]  }
  0xc3   :  { %6817 = vmatprep.subr.bf16.mxu1 %v9781_v9  ;;  %v9845_v9 = vld [vmem:[%s14866_s1 + $0xf80] ss:$16 sps:$4 sm:$0xff]  }
  0xc4   :  { %6727 = vmatmul.mubr.bf16.vlgmr.msra.gmra.mxu0 %v11859_v58 }
  0xc5   :  { %6768 = vmatmul.mubr.bf16.vlgmr.msra.gmra.mxu1 %v11875_v11  ;;  %6777 = vmatpush1.bf16.msra.mxu0 %v9776_v13  ;;  %v9850_v13 = vld [vmem:[%s14866_s1 + $0xd64] ss:$16 sps:$4 sm:$0xff]  }
  0xc6   :  { %6818 = vmatpush1.bf16.msra.mxu1 %v9779_v16  ;;  %6778 = vmatprep.subr.bf16.mxu0 %v9784_v17  ;;  %v9853_v16 = vld [vmem:[%s14866_s1 + $0xf64] ss:$16 sps:$4 sm:$0xff]  }
  0xc7   :  { %6819 = vmatprep.subr.bf16.mxu1 %v9787_v18  ;;  %6808 = vmatprep.mubr.bf16.mxu0 %v11871_v10  ;;  %v30_v17 = vld [vmem:[%s14865_s0 + $0x10] sm:$0xff] }
  0xc8   :  { %6849 = vmatprep.mubr.bf16.mxu1 %v11891_v19  ;;  %v9848_v18 = vld [vmem:[%s14866_s1 + $0xd60] ss:$16 sps:$4 sm:$0xff]  }
  0xc9   :  { %6779 = vmatpush1.bf16.msra.mxu0 %v9782_v20  ;;  %v34_v20 = vld [vmem:[%s14865_s0 + $0x30] sm:$0xff] }
  0xca   :  { %6820 = vmatpush1.bf16.msra.mxu1 %v9785_v21  ;;  %6780 = vmatprep.subr.bf16.mxu0 %v9790_v22  ;;  %v38_v21 = vld [vmem:[%s14865_s0 + $0x50] sm:$0xff] }
  0xcb   :  { %6821 = vmatprep.subr.bf16.mxu1 %v9793_v23  ;;  %v42_v22 = vld [vmem:[%s14865_s0 + $0x70] sm:$0xff] }
  0xcc   :  { %v9851_v23 = vld [vmem:[%s14866_s1 + $0xf60] ss:$16 sps:$4 sm:$0xff]  }
  0xcd   :  { %6781 = vmatpush1.bf16.msra.mxu0 %v9788_v25  ;;  %v9856_v25 = vld [vmem:[%s14866_s1 + $0xd44] ss:$16 sps:$4 sm:$0xff]  }
  0xce   :  { %6822 = vmatpush1.bf16.msra.mxu1 %v9791_v26  ;;  %6782 = vmatprep.subr.bf16.mxu0 %v9796_v29  ;;  %v9859_v26 = vld [vmem:[%s14866_s1 + $0xf44] ss:$16 sps:$4 sm:$0xff]   ;;  %v1242_v29 = vcombine.low %v30_v17, %v34_v20 }
  0xcf   :  { %6823 = vmatprep.subr.bf16.mxu1 %v9799_v30  ;;  %v1244_v30 = vcombine.low %v38_v21, %v42_v22 }
  0xd1   :  { %6783 = vmatpush1.bf16.msra.mxu0 %v9794_v31  ;;  %v9854_v31 = vld [vmem:[%s14866_s1 + $0xd40] ss:$16 sps:$4 sm:$0xff]  }
  0xd2   :  { %6824 = vmatpush1.bf16.msra.mxu1 %v9797_v32  ;;  %6784 = vmatprep.subr.bf16.mxu0 %v9802_v34  ;;  %v9857_v32 = vld [vmem:[%s14866_s1 + $0xf40] ss:$16 sps:$4 sm:$0xff]   ;;  %v9862_v34 = vld [vmem:[%s14866_s1 + $0xd24] ss:$16 sps:$4 sm:$0xff]  }
  0xd3   :  { %6825 = vmatprep.subr.bf16.mxu1 %v9805_v35  ;;  %v9865_v35 = vld [vmem:[%s14866_s1 + $0xf24] ss:$16 sps:$4 sm:$0xff]  }
  0xd5   :  { %6785 = vmatpush1.bf16.msra.mxu0 %v9800_v36  ;;  %v12066_v36 = vrot.slane %v1242_v29, %v11315_v55 }
  0xd6   :  { %6826 = vmatpush1.bf16.msra.mxu1 %v9803_v37  ;;  %6786 = vmatprep.subr.bf16.mxu0 %v9808_v14  ;;  %v12069_v37 = vrot.slane %v1244_v30, %v11315_v55  ;;  %v9860_v14 = vld [vmem:[%s14866_s1 + $0xd20] ss:$16 sps:$4 sm:$0xff]  }
  0xd7   :  { %6827 = vmatprep.subr.bf16.mxu1 %v9811_v38  ;;  %v1208_v38 = vcombine.low %v11834_v47, %v11837_v48  ;;  %v9866_v47 = vld [vmem:[%s14866_s1 + $0xd00] ss:$16 sps:$4 sm:$0xff]  }
  0xd8   :  { %v1275_v48 = vcombine.high %v12066_v36, %v12069_v37 }
  0xd9   :  { %6787 = vmatpush1.bf16.msra.mxu0 %v9806_v39  ;;  %v9863_v39 = vld [vmem:[%s14866_s1 + $0xf20] ss:$16 sps:$4 sm:$0xff]  }
  0xda   :  { %6828 = vmatpush1.bf16.msra.mxu1 %v9809_v41  ;;  %6788 = vmatprep.subr.bf16.mxu0 %v9814_v42  ;;  %v1243_v41 = vcombine.high %v30_v17, %v34_v20  ;;  %v1245_v42 = vcombine.high %v38_v21, %v42_v22  ;;  %v9886_v22 = vld [vmem:[%s14866_s1 + $0x10a4] ss:$16 sps:$4 sm:$0xff]  }
  0xdb   :  { %6829 = vmatprep.subr.bf16.mxu1 %v9817_v43  ;;  %v9868_v43 = vld [vmem:[%s14866_s1 + $0xd04] ss:$16 sps:$4 sm:$0xff]  }
  0xdd   :  { %6789 = vmatpush1.bf16.msra.mxu0 %v9812_v44  ;;  %v9871_v44 = vld [vmem:[%s14866_s1 + $0xf04] ss:$16 sps:$4 sm:$0xff]  }
  0xde   :  { %6830 = vmatpush1.bf16.msra.mxu1 %v9815_v50  ;;  %6790 = vmatprep.subr.bf16.mxu0 %v9820_v51  ;;  %v12091_v50 = vrot.slane %v1243_v41, %v11315_v55  ;;  %v12094_v51 = vrot.slane %v1245_v42, %v11315_v55  ;;  %v9890_v41 = vld [vmem:[%s14866_s1 + $0x1080] ss:$16 sps:$4 sm:$0xff]  }
  0xdf   :  { %6831 = vmatprep.subr.bf16.mxu1 %v9823_v52  ;;  %v9869_v52 = vld [vmem:[%s14866_s1 + $0xf00] ss:$16 sps:$4 sm:$0xff]  }
  0xe0   :  { %v9893_v42 = vld [vmem:[%s14866_s1 + $0x1280] ss:$16 sps:$4 sm:$0xff]  }
  0xe1   :  { %6791 = vmatpush1.bf16.msra.mxu0 %v9818_v53  ;;  %v12100_v53 = vrot.slane %v1208_v38, %v11315_v55  ;;  %v9892_v38 = vld [vmem:[%s14866_s1 + $0x1084] ss:$16 sps:$4 sm:$0xff]  }
  0xe2   :  { %6832 = vmatpush1.bf16.msra.mxu1 %v9821_v54  ;;  %6792 = vmatprep.subr.bf16.mxu0 %v9826_v57  ;;  %v1068_v54 = vld [vmem:[%s14867_s2] sm:$0xf]  ;;  %v12106_v57 = vsub.s32 0, %v11291_v46 }
  0xe3   :  { %6833 = vmatprep.subr.bf16.mxu1 %v9829_v59  ;;  %v1277_v59 = vcombine.high %v12091_v50, %v12094_v51 }
  0xe5   :  { %6793 = vmatpush2.bf16.msra.mxu0 %v9824_v60  ;;  %v9874_v60 = vld [vmem:[%s14866_s1 + $0x10e4] ss:$16 sps:$4 sm:$0xff]  }
  0xe6   :  { %6834 = vmatpush2.bf16.msra.mxu1 %v9827_v61  ;;  %6794 = vmatprep.subr.bf16.mxu0 %v9832_v62  ;;  %v9877_v61 = vld [vmem:[%s14866_s1 + $0x12e4] ss:$16 sps:$4 sm:$0xff]   ;;  %v1276_v62 = vcombine.low %v12091_v50, %v12094_v51 }
  0xe7   :  { %6835 = vmatprep.subr.bf16.mxu1 %v9835_v45  ;;  %v12119_v45 = vsub.s32 1, %v11291_v46  ;;  %v10066_v50 = vld [vmem:[%s14866_s1 + $0x18e4] ss:$16 sps:$4 sm:$0xff]  }
  0xe8   :  { %v10069_v51 = vld [vmem:[%s14866_s1 + $0x1ae4] ss:$16 sps:$4 sm:$0xff]  }
  0xe9   :  { %6795 = vmatpush2.bf16.msra.mxu0 %v9830_v49  ;;  %v12122_v49 = vrot.slane %v1275_v48, %v11315_v55  ;;  %v9899_v48 = vld [vmem:[%s14866_s1 + $0x1260] ss:$16 sps:$4 sm:$0xff]  }
  0xea   :  { %6836 = vmatpush2.bf16.msra.mxu1 %v9833_v63  ;;  %6796 = vmatprep.subr.bf16.mxu0 %v9838_v1  ;;  %v12126_v63 = vcombine.high %v12100_v53, %v12100_v53  ;;  %v9872_v1 = vld [vmem:[%s14866_s1 + $0x10e0] ss:$16 sps:$4 sm:$0xff]  }
  0xeb   :  { %6837 = vmatprep.subr.bf16.mxu1 %v9841_v2  ;;  %v1073_v2 = vrot.slane %v1068_v54, %v12106_v57 }
  0xed   :  { %6797 = vmatpush2.bf16.msra.mxu0 %v9836_v4  ;;  %v9875_v4 = vld [vmem:[%s14866_s1 + $0x12e0] ss:$16 sps:$4 sm:$0xff]  }
  0xee   :  { %6838 = vmatpush2.bf16.msra.mxu1 %v9839_v5  ;;  %6798 = vmatprep.subr.bf16.mxu0 %v9844_v56  ;;  %v9880_v5 = vld [vmem:[%s14866_s1 + $0x10c4] ss:$16 sps:$4 sm:$0xff]  }
  0xef   :  { %6839 = vmatprep.subr.bf16.mxu1 %v9847_v7  ;;  %v9883_v56 = vld [vmem:[%s14866_s1 + $0x12c4] ss:$16 sps:$4 sm:$0xff]   ;;  %v1077_v7 = vrot.slane %v1068_v54, %v12119_v45 }
  0xf0   :  { %v9907_v54 = vld [vmem:[%s14866_s1 + $0x1244] ss:$16 sps:$4 sm:$0xff]  }
  0xf1   :  { %6799 = vmatpush2.bf16.msra.mxu0 %v9842_v8  ;;  %v12144_v8 = vcombine.high %v12122_v49, %v12122_v49 }
  0xf2   :  { %6840 = vmatpush2.bf16.msra.mxu1 %v9845_v9  ;;  %6800 = vmatprep.subr.bf16.mxu0 %v9850_v13 }
  0xf3   :  { %6841 = vmatprep.subr.bf16.mxu1 %v9853_v16  ;;  %v9878_v16 = vld [vmem:[%s14866_s1 + $0x10c0] ss:$16 sps:$4 sm:$0xff]  }
  0xf5   :  { %6801 = vmatpush2.bf16.msra.mxu0 %v9848_v18  ;;  %v9881_v18 = vld [vmem:[%s14866_s1 + $0x12c0] ss:$16 sps:$4 sm:$0xff]  }
  0xf6   :  { %6842 = vmatpush2.bf16.msra.mxu1 %v9851_v23  ;;  %6802 = vmatprep.subr.bf16.mxu0 %v9856_v25  ;;  %v9889_v23 = vld [vmem:[%s14866_s1 + $0x12a4] ss:$16 sps:$4 sm:$0xff]  }
  0xf7   :  { %6843 = vmatprep.subr.bf16.mxu1 %v9859_v26 }
  0xf9   :  { %6803 = vmatpush2.bf16.msra.mxu0 %v9854_v31  ;;  %v9884_v31 = vld [vmem:[%s14866_s1 + $0x10a0] ss:$16 sps:$4 sm:$0xff]  }
  0xfa   :  { %6844 = vmatpush2.bf16.msra.mxu1 %v9857_v32  ;;  %6804 = vmatprep.subr.bf16.mxu0 %v9862_v34  ;;  %v9887_v34 = vld [vmem:[%s14866_s1 + $0x12a0] ss:$16 sps:$4 sm:$0xff]  }
  0xfb   :  { %6845 = vmatprep.subr.bf16.mxu1 %v9865_v35 }
  0xfd   :  { %6805 = vmatpush2.bf16.msra.mxu0 %v9860_v14 }
  0xfe   :  { %6846 = vmatpush2.bf16.msra.mxu1 %v9863_v39  ;;  %6806 = vmatprep.subr.bf16.mxu0 %v9868_v43  ;;  %v9895_v39 = vld [vmem:[%s14866_s1 + $0x1284] ss:$16 sps:$4 sm:$0xff]  }
  0xff   :  { %6847 = vmatprep.subr.bf16.mxu1 %v9871_v44  ;;  %v9898_v43 = vld [vmem:[%s14866_s1 + $0x1064] ss:$16 sps:$4 sm:$0xff]  }
 0x100   :  { %v9901_v44 = vld [vmem:[%s14866_s1 + $0x1264] ss:$16 sps:$4 sm:$0xff]  }
 0x101   :  { %6807 = vmatpush2.bf16.msra.mxu0 %v9866_v47  ;;  %v9896_v47 = vld [vmem:[%s14866_s1 + $0x1060] ss:$16 sps:$4 sm:$0xff]  }
 0x102   :  { %6848 = vmatpush2.bf16.msra.mxu1 %v9869_v52  ;;  %6858 = vmatprep.subr.bf16.mxu0 %v9874_v60  ;;  %v9904_v52 = vld [vmem:[%s14866_s1 + $0x1044] ss:$16 sps:$4 sm:$0xff]   ;;  %v9902_v60 = vld [vmem:[%s14866_s1 + $0x1040] ss:$16 sps:$4 sm:$0xff]  }
 0x103   :  { %6899 = vmatprep.subr.bf16.mxu1 %v9877_v61  ;;  %v9905_v61 = vld [vmem:[%s14866_s1 + $0x1240] ss:$16 sps:$4 sm:$0xff]  }
 0x104   :  { %v6564_v9 = vpop.f32.mrf.mxu0  ;;  %6809 = vmatmul.mubr.bf16.vlgmr.msra.gmra.mxu0 %v12100_v53 }
 0x105   :  { %v6605_v13 = vpop.f32.mrf.mxu1  ;;  %6850 = vmatmul.mubr.bf16.vlgmr.msra.gmra.mxu1 %v12126_v63  ;;  %v6565_v17 = vadd.f32 %v6564_v9, %v1073_v2  ;;  %6859 = vmatpush1.bf16.msra.mxu0 %v9872_v1  ;;  %v9910_v1 = vld [vmem:[%s14866_s1 + $0x1024] ss:$16 sps:$4 sm:$0xff]   ;;  %v9914_v9 = vld [vmem:[%s14866_s1 + $0x1000] ss:$16 sps:$4 sm:$0xff]  }
 0x106   :  { %6900 = vmatpush1.bf16.msra.mxu1 %v9875_v4  ;;  %v6566_v20 = vpop.f32.mrf.mxu0  ;;  %6860 = vmatprep.subr.bf16.mxu0 %v9880_v5  ;;  %v9913_v2 = vld [vmem:[%s14866_s1 + $0x1224] ss:$16 sps:$4 sm:$0xff]   ;;  %v9908_v4 = vld [vmem:[%s14866_s1 + $0x1020] ss:$16 sps:$4 sm:$0xff]  }
 0x107   :  { %v6607_v21 = vpop.f32.mrf.mxu1  ;;  %6901 = vmatprep.subr.bf16.mxu1 %v9883_v56  ;;  %v12160_v25 = vadd.f32 %v6605_v13, %v6565_v17  ;;  %v6567_v26 = vadd.f32 %v6566_v20, %v1077_v7  ;;  %6890 = vmatprep.mubr.bf16.mxu0 %v12122_v49  ;;  %v9911_v5 = vld [vmem:[%s14866_s1 + $0x1220] ss:$16 sps:$4 sm:$0xff]   ;;  %v9916_v56 = vld [vmem:[%s14866_s1 + $0x1004] ss:$16 sps:$4 sm:$0xff]  }
 0x108   :  { %6931 = vmatprep.mubr.bf16.mxu1 %v12144_v8  ;;  %v6568_v29 = vpop.f32.mrf.mxu0  ;;  %v9919_v7 = vld [vmem:[%s14866_s1 + $0x1204] ss:$16 sps:$4 sm:$0xff]   ;;  %v9917_v13 = vld [vmem:[%s14866_s1 + $0x1200] ss:$16 sps:$4 sm:$0xff]  }
 0x109   :  { %v6609_v30 = vpop.f32.mrf.mxu1  ;;  %v12167_v32 = vadd.f32 %v6607_v21, %v6567_v26  ;;  %6861 = vmatpush1.bf16.msra.mxu0 %v9878_v16  ;;  %v9922_v16 = vld [vmem:[%s14866_s1 + $0x11e4] ss:$16 sps:$4 sm:$0xff]   ;;  %v9923_v20 = vld [vmem:[%s14866_s1 + $0x13e0] ss:$16 sps:$4 sm:$0xff]  }
 0x10a   :  { %6902 = vmatpush1.bf16.msra.mxu1 %v9881_v18  ;;  %v6569_v35 = vpop.f32.mrf.mxu0  ;;  %6862 = vmatprep.subr.bf16.mxu0 %v9886_v22  ;;  %v9925_v17 = vld [vmem:[%s14866_s1 + $0x13e4] ss:$16 sps:$4 sm:$0xff]   ;;  %v9920_v18 = vld [vmem:[%s14866_s1 + $0x11e0] ss:$16 sps:$4 sm:$0xff]  }
 0x10b   :  { %v6610_v14 = vpop.f32.mrf.mxu1  ;;  %6903 = vmatprep.subr.bf16.mxu1 %v9889_v23  ;;  %v9928_v21 = vld [vmem:[%s14866_s1 + $0x11c4] ss:$16 sps:$4 sm:$0xff]   ;;  %v9926_v23 = vld [vmem:[%s14866_s1 + $0x11c0] ss:$16 sps:$4 sm:$0xff]  }
 0x10c   :  { %v9931_v22 = vld [vmem:[%s14866_s1 + $0x13c4] ss:$16 sps:$4 sm:$0xff]   ;;  %v9929_v26 = vld [vmem:[%s14866_s1 + $0x13c0] ss:$16 sps:$4 sm:$0xff]  }
 0x10d   :  { %6863 = vmatpush1.bf16.msra.mxu0 %v9884_v31  ;;  %v9934_v29 = vld [vmem:[%s14866_s1 + $0x11a4] ss:$16 sps:$4 sm:$0xff]   ;;  %v9932_v31 = vld [vmem:[%s14866_s1 + $0x11a0] ss:$16 sps:$4 sm:$0xff]  }
 0x10e   :  { %6904 = vmatpush1.bf16.msra.mxu1 %v9887_v34  ;;  %6864 = vmatprep.subr.bf16.mxu0 %v9892_v38  ;;  %v9937_v30 = vld [vmem:[%s14866_s1 + $0x13a4] ss:$16 sps:$4 sm:$0xff]   ;;  %v9935_v34 = vld [vmem:[%s14866_s1 + $0x13a0] ss:$16 sps:$4 sm:$0xff]  }
 0x10f   :  { %6905 = vmatprep.subr.bf16.mxu1 %v9895_v39  ;;  %v9940_v35 = vld [vmem:[%s14866_s1 + $0x1184] ss:$16 sps:$4 sm:$0xff]   ;;  %v9938_v38 = vld [vmem:[%s14866_s1 + $0x1180] ss:$16 sps:$4 sm:$0xff]  }
 0x110   :  { %v9943_v14 = vld [vmem:[%s14866_s1 + $0x1384] ss:$16 sps:$4 sm:$0xff]   ;;  %v9941_v39 = vld [vmem:[%s14866_s1 + $0x1380] ss:$16 sps:$4 sm:$0xff]  }
 0x111   :  { %6865 = vmatpush1.bf16.msra.mxu0 %v9890_v41  ;;  %v9946_v41 = vld [vmem:[%s14866_s1 + $0x1164] ss:$16 sps:$4 sm:$0xff]  }
 0x112   :  { %6906 = vmatpush1.bf16.msra.mxu1 %v9893_v42  ;;  %6866 = vmatprep.subr.bf16.mxu0 %v9898_v43  ;;  %v9949_v42 = vld [vmem:[%s14866_s1 + $0x1364] ss:$16 sps:$4 sm:$0xff]   ;;  %v9944_v43 = vld [vmem:[%s14866_s1 + $0x1160] ss:$16 sps:$4 sm:$0xff]  }
 0x113   :  { %6907 = vmatprep.subr.bf16.mxu1 %v9901_v44  ;;  %v9947_v44 = vld [vmem:[%s14866_s1 + $0x1360] ss:$16 sps:$4 sm:$0xff]  }
 0x115   :  { %6867 = vmatpush1.bf16.msra.mxu0 %v9896_v47  ;;  %v9952_v47 = vld [vmem:[%s14866_s1 + $0x1144] ss:$16 sps:$4 sm:$0xff]  }
 0x116   :  { %6908 = vmatpush1.bf16.msra.mxu1 %v9899_v48  ;;  %6868 = vmatprep.subr.bf16.mxu0 %v9904_v52  ;;  %v9955_v48 = vld [vmem:[%s14866_s1 + $0x1344] ss:$16 sps:$4 sm:$0xff]   ;;  %v9950_v52 = vld [vmem:[%s14866_s1 + $0x1140] ss:$16 sps:$4 sm:$0xff]  }
 0x117   :  { %6909 = vmatprep.subr.bf16.mxu1 %v9907_v54  ;;  %v9953_v54 = vld [vmem:[%s14866_s1 + $0x1340] ss:$16 sps:$4 sm:$0xff]  }
 0x119   :  { %6869 = vmatpush1.bf16.msra.mxu0 %v9902_v60  ;;  %v9958_v60 = vld [vmem:[%s14866_s1 + $0x1124] ss:$16 sps:$4 sm:$0xff]  }
 0x11a   :  { %6910 = vmatpush1.bf16.msra.mxu1 %v9905_v61  ;;  %6870 = vmatprep.subr.bf16.mxu0 %v9910_v1  ;;  %v9961_v61 = vld [vmem:[%s14866_s1 + $0x1324] ss:$16 sps:$4 sm:$0xff]   ;;  %v1274_v1 = vcombine.low %v12066_v36, %v12069_v37 }
 0x11b   :  { %6911 = vmatprep.subr.bf16.mxu1 %v9913_v2  ;;  %v9956_v2 = vld [vmem:[%s14866_s1 + $0x1120] ss:$16 sps:$4 sm:$0xff]   ;;  %v9967_v36 = vld [vmem:[%s14866_s1 + $0x1304] ss:$16 sps:$4 sm:$0xff]  }
 0x11c   :  { %v12325_v37 = vrot.slane %v1274_v1, %v11315_v55  ;;  %v9994_v1 = vld [vmem:[%s14866_s1 + $0x1464] ss:$16 sps:$4 sm:$0xff]  }
 0x11d   :  { %6871 = vmatpush1.bf16.msra.mxu0 %v9908_v4  ;;  %v9959_v4 = vld [vmem:[%s14866_s1 + $0x1320] ss:$16 sps:$4 sm:$0xff]  }
 0x11e   :  { %6912 = vmatpush1.bf16.msra.mxu1 %v9911_v5  ;;  %6872 = vmatprep.subr.bf16.mxu0 %v9916_v56  ;;  %v9964_v5 = vld [vmem:[%s14866_s1 + $0x1104] ss:$16 sps:$4 sm:$0xff]   ;;  %v9962_v56 = vld [vmem:[%s14866_s1 + $0x1100] ss:$16 sps:$4 sm:$0xff]  }
 0x11f   :  { %6913 = vmatprep.subr.bf16.mxu1 %v9919_v7  ;;  %v9965_v7 = vld [vmem:[%s14866_s1 + $0x1300] ss:$16 sps:$4 sm:$0xff]  }
 0x121   :  { %6873 = vmatpush1.bf16.msra.mxu0 %v9914_v9  ;;  %v9970_v9 = vld [vmem:[%s14866_s1 + $0x14e4] ss:$16 sps:$4 sm:$0xff]  }
 0x122   :  { %6914 = vmatpush1.bf16.msra.mxu1 %v9917_v13  ;;  %6874 = vmatprep.subr.bf16.mxu0 %v9922_v16  ;;  %v9973_v13 = vld [vmem:[%s14866_s1 + $0x16e4] ss:$16 sps:$4 sm:$0xff]   ;;  %v9968_v16 = vld [vmem:[%s14866_s1 + $0x14e0] ss:$16 sps:$4 sm:$0xff]  }
 0x123   :  { %6915 = vmatprep.subr.bf16.mxu1 %v9925_v17  ;;  %v9971_v17 = vld [vmem:[%s14866_s1 + $0x16e0] ss:$16 sps:$4 sm:$0xff]  }
 0x125   :  { %6875 = vmatpush2.bf16.msra.mxu0 %v9920_v18  ;;  %v12349_v18 = vrot.slane %v1277_v59, %v11315_v55  ;;  %v9974_v59 = vld [vmem:[%s14866_s1 + $0x14c0] ss:$16 sps:$4 sm:$0xff]  }
 0x126   :  { %6916 = vmatpush2.bf16.msra.mxu1 %v9923_v20  ;;  %6876 = vmatprep.subr.bf16.mxu0 %v9928_v21  ;;  %v12353_v20 = vcombine.high %v12325_v37, %v12325_v37  ;;  %v9976_v21 = vld [vmem:[%s14866_s1 + $0x14c4] ss:$16 sps:$4 sm:$0xff]  }
 0x127   :  { %6917 = vmatprep.subr.bf16.mxu1 %v9931_v22  ;;  %v9979_v22 = vld [vmem:[%s14866_s1 + $0x16c4] ss:$16 sps:$4 sm:$0xff]  }
 0x129   :  { %6877 = vmatpush2.bf16.msra.mxu0 %v9926_v23  ;;  %v9977_v23 = vld [vmem:[%s14866_s1 + $0x16c0] ss:$16 sps:$4 sm:$0xff]  }
 0x12a   :  { %6918 = vmatpush2.bf16.msra.mxu1 %v9929_v26  ;;  %6878 = vmatprep.subr.bf16.mxu0 %v9934_v29  ;;  %v12369_v26 = vcombine.high %v12349_v18, %v12349_v18 }
 0x12b   :  { %6919 = vmatprep.subr.bf16.mxu1 %v9937_v30 }
 0x12d   :  { %6879 = vmatpush2.bf16.msra.mxu0 %v9932_v31 }
 0x12e   :  { %6920 = vmatpush2.bf16.msra.mxu1 %v9935_v34  ;;  %6880 = vmatprep.subr.bf16.mxu0 %v9940_v35 }
 0x12f   :  { %6921 = vmatprep.subr.bf16.mxu1 %v9943_v14  ;;  %v9982_v14 = vld [vmem:[%s14866_s1 + $0x14a4] ss:$16 sps:$4 sm:$0xff]  }
 0x131   :  { %6881 = vmatpush2.bf16.msra.mxu0 %v9938_v38  ;;  %v9985_v38 = vld [vmem:[%s14866_s1 + $0x16a4] ss:$16 sps:$4 sm:$0xff]  }
 0x132   :  { %6922 = vmatpush2.bf16.msra.mxu1 %v9941_v39  ;;  %6882 = vmatprep.subr.bf16.mxu0 %v9946_v41 }
 0x133   :  { %6923 = vmatprep.subr.bf16.mxu1 %v9949_v42  ;;  %v9983_v42 = vld [vmem:[%s14866_s1 + $0x16a0] ss:$16 sps:$4 sm:$0xff]  }
 0x135   :  { %6883 = vmatpush2.bf16.msra.mxu0 %v9944_v43 }
 0x136   :  { %6924 = vmatpush2.bf16.msra.mxu1 %v9947_v44  ;;  %6884 = vmatprep.subr.bf16.mxu0 %v9952_v47 }
 0x137   :  { %6925 = vmatprep.subr.bf16.mxu1 %v9955_v48 }
 0x139   :  { %6885 = vmatpush2.bf16.msra.mxu0 %v9950_v52  ;;  %v9988_v52 = vld [vmem:[%s14866_s1 + $0x1484] ss:$16 sps:$4 sm:$0xff]  }
 0x13a   :  { %6926 = vmatpush2.bf16.msra.mxu1 %v9953_v54  ;;  %6886 = vmatprep.subr.bf16.mxu0 %v9958_v60  ;;  %v9991_v54 = vld [vmem:[%s14866_s1 + $0x1684] ss:$16 sps:$4 sm:$0xff]   ;;  %v9986_v60 = vld [vmem:[%s14866_s1 + $0x1480] ss:$16 sps:$4 sm:$0xff]  }
 0x13b   :  { %6927 = vmatprep.subr.bf16.mxu1 %v9961_v61  ;;  %v9989_v61 = vld [vmem:[%s14866_s1 + $0x1680] ss:$16 sps:$4 sm:$0xff]  }
 0x13d   :  { %6887 = vmatpush2.bf16.msra.mxu0 %v9956_v2  ;;  %v9997_v2 = vld [vmem:[%s14866_s1 + $0x1664] ss:$16 sps:$4 sm:$0xff]  }
 0x13e   :  { %6928 = vmatpush2.bf16.msra.mxu1 %v9959_v4  ;;  %6888 = vmatprep.subr.bf16.mxu0 %v9964_v5  ;;  %v9992_v4 = vld [vmem:[%s14866_s1 + $0x1460] ss:$16 sps:$4 sm:$0xff]  }
 0x13f   :  { %6929 = vmatprep.subr.bf16.mxu1 %v9967_v36  ;;  %v9995_v5 = vld [vmem:[%s14866_s1 + $0x1660] ss:$16 sps:$4 sm:$0xff]   ;;  %v10000_v36 = vld [vmem:[%s14866_s1 + $0x1444] ss:$16 sps:$4 sm:$0xff]  }
 0x141   :  { %6889 = vmatpush2.bf16.msra.mxu0 %v9962_v56  ;;  %v10003_v56 = vld [vmem:[%s14866_s1 + $0x1644] ss:$16 sps:$4 sm:$0xff]  }
 0x142   :  { %6930 = vmatpush2.bf16.msra.mxu1 %v9965_v7  ;;  %6940 = vmatprep.subr.bf16.mxu0 %v9970_v9  ;;  %v9998_v7 = vld [vmem:[%s14866_s1 + $0x1440] ss:$16 sps:$4 sm:$0xff]  }
 0x143   :  { %6981 = vmatprep.subr.bf16.mxu1 %v9973_v13  ;;  %v10001_v9 = vld [vmem:[%s14866_s1 + $0x1640] ss:$16 sps:$4 sm:$0xff]   ;;  %v10006_v13 = vld [vmem:[%s14866_s1 + $0x1424] ss:$16 sps:$4 sm:$0xff]  }
 0x144   :  { %v6646_v29 = vpop.f32.mrf.mxu0  ;;  %6891 = vmatmul.mubr.bf16.vlgmr.msra.gmra.mxu0 %v12325_v37 }
 0x145   :  { %v6687_v30 = vpop.f32.mrf.mxu1  ;;  %6932 = vmatmul.mubr.bf16.vlgmr.msra.gmra.mxu1 %v12353_v20  ;;  %v6647_v31 = vadd.f32 %v6646_v29, %v12160_v25  ;;  %6941 = vmatpush1.bf16.msra.mxu0 %v9968_v16  ;;  %v9980_v25 = vld [vmem:[%s14866_s1 + $0x14a0] ss:$16 sps:$4 sm:$0xff]   ;;  %v10009_v16 = vld [vmem:[%s14866_s1 + $0x1624] ss:$16 sps:$4 sm:$0xff]  }
 0x146   :  { %6982 = vmatpush1.bf16.msra.mxu1 %v9971_v17  ;;  %v6648_v34 = vpop.f32.mrf.mxu0  ;;  %6942 = vmatprep.subr.bf16.mxu0 %v9976_v21  ;;  %v10004_v17 = vld [vmem:[%s14866_s1 + $0x1420] ss:$16 sps:$4 sm:$0xff]  }
 0x147   :  { %v6689_v35 = vpop.f32.mrf.mxu1  ;;  %6983 = vmatprep.subr.bf16.mxu1 %v9979_v22  ;;  %v12380_v39 = vadd.f32 %v6687_v30, %v6647_v31  ;;  %v6649_v41 = vadd.f32 %v6648_v34, %v12167_v32  ;;  %6972 = vmatprep.mubr.bf16.mxu0 %v12349_v18  ;;  %v10007_v21 = vld [vmem:[%s14866_s1 + $0x1620] ss:$16 sps:$4 sm:$0xff]   ;;  %v10012_v22 = vld [vmem:[%s14866_s1 + $0x1404] ss:$16 sps:$4 sm:$0xff]  }
 0x148   :  { %7013 = vmatprep.mubr.bf16.mxu1 %v12369_v26  ;;  %v6650_v43 = vpop.f32.mrf.mxu0  ;;  %v10013_v29 = vld [vmem:[%s14866_s1 + $0x1600] ss:$16 sps:$4 sm:$0xff]   ;;  %v10018_v30 = vld [vmem:[%s14866_s1 + $0x15e4] ss:$16 sps:$4 sm:$0xff]  }
 0x149   :  { %v6691_v44 = vpop.f32.mrf.mxu1  ;;  %v12391_v47 = vadd.f32 %v6689_v35, %v6649_v41  ;;  %6943 = vmatpush1.bf16.msra.mxu0 %v9974_v59  ;;  %v10015_v59 = vld [vmem:[%s14866_s1 + $0x1604] ss:$16 sps:$4 sm:$0xff]   ;;  %v10016_v34 = vld [vmem:[%s14866_s1 + $0x15e0] ss:$16 sps:$4 sm:$0xff]  }
 0x14a   :  { %6984 = vmatpush1.bf16.msra.mxu1 %v9977_v23  ;;  %v6651_v48 = vpop.f32.mrf.mxu0  ;;  %6944 = vmatprep.subr.bf16.mxu0 %v9982_v14  ;;  %v10010_v23 = vld [vmem:[%s14866_s1 + $0x1400] ss:$16 sps:$4 sm:$0xff]   ;;  %v10021_v31 = vld [vmem:[%s14866_s1 + $0x17e4] ss:$16 sps:$4 sm:$0xff]  }
 0x14b   :  { %v6692_v32 = vpop.f32.mrf.mxu1  ;;  %6985 = vmatprep.subr.bf16.mxu1 %v9985_v38  ;;  %v10019_v35 = vld [vmem:[%s14866_s1 + $0x17e0] ss:$16 sps:$4 sm:$0xff]   ;;  %v10024_v14 = vld [vmem:[%s14866_s1 + $0x15c4] ss:$16 sps:$4 sm:$0xff]  }
 0x14c   :  { %v10027_v38 = vld [vmem:[%s14866_s1 + $0x17c4] ss:$16 sps:$4 sm:$0xff]   ;;  %v10022_v41 = vld [vmem:[%s14866_s1 + $0x15c0] ss:$16 sps:$4 sm:$0xff]  }
 0x14d   :  { %6945 = vmatpush1.bf16.msra.mxu0 %v9980_v25  ;;  %v10025_v25 = vld [vmem:[%s14866_s1 + $0x17c0] ss:$16 sps:$4 sm:$0xff]   ;;  %v10033_v43 = vld [vmem:[%s14866_s1 + $0x17a4] ss:$16 sps:$4 sm:$0xff]  }
 0x14e   :  { %6986 = vmatpush1.bf16.msra.mxu1 %v9983_v42  ;;  %6946 = vmatprep.subr.bf16.mxu0 %v9988_v52  ;;  %v10030_v42 = vld [vmem:[%s14866_s1 + $0x15a4] ss:$16 sps:$4 sm:$0xff]   ;;  %v10028_v44 = vld [vmem:[%s14866_s1 + $0x15a0] ss:$16 sps:$4 sm:$0xff]  }
 0x14f   :  { %6987 = vmatprep.subr.bf16.mxu1 %v9991_v54  ;;  %v10031_v48 = vld [vmem:[%s14866_s1 + $0x17a0] ss:$16 sps:$4 sm:$0xff]   ;;  %v10036_v32 = vld [vmem:[%s14866_s1 + $0x1584] ss:$16 sps:$4 sm:$0xff]  }
 0x150   :  { %v10039_v52 = vld [vmem:[%s14866_s1 + $0x1784] ss:$16 sps:$4 sm:$0xff]   ;;  %v10034_v54 = vld [vmem:[%s14866_s1 + $0x1580] ss:$16 sps:$4 sm:$0xff]  }
 0x151   :  { %6947 = vmatpush1.bf16.msra.mxu0 %v9986_v60  ;;  %v10037_v60 = vld [vmem:[%s14866_s1 + $0x1780] ss:$16 sps:$4 sm:$0xff]  }
 0x152   :  { %6988 = vmatpush1.bf16.msra.mxu1 %v9989_v61  ;;  %6948 = vmatprep.subr.bf16.mxu0 %v9994_v1  ;;  %v10042_v61 = vld [vmem:[%s14866_s1 + $0x1564] ss:$16 sps:$4 sm:$0xff]  }
 0x153   :  { %6989 = vmatprep.subr.bf16.mxu1 %v9997_v2  ;;  %v10045_v1 = vld [vmem:[%s14866_s1 + $0x1764] ss:$16 sps:$4 sm:$0xff]   ;;  %v31_v2 = vld [vmem:[%s14865_s0 + $0x18] sm:$0xff] }
 0x155   :  { %6949 = vmatpush1.bf16.msra.mxu0 %v9992_v4  ;;  %v35_v4 = vld [vmem:[%s14865_s0 + $0x38] sm:$0xff] }
 0x156   :  { %6990 = vmatpush1.bf16.msra.mxu1 %v9995_v5  ;;  %6950 = vmatprep.subr.bf16.mxu0 %v10000_v36  ;;  %v39_v5 = vld [vmem:[%s14865_s0 + $0x58] sm:$0xff] }
 0x157   :  { %6991 = vmatprep.subr.bf16.mxu1 %v10003_v56  ;;  %v43_v36 = vld [vmem:[%s14865_s0 + $0x78] sm:$0xff]  ;;  %v10040_v56 = vld [vmem:[%s14866_s1 + $0x1560] ss:$16 sps:$4 sm:$0xff]  }
 0x159   :  { %6951 = vmatpush1.bf16.msra.mxu0 %v9998_v7  ;;  %v10043_v7 = vld [vmem:[%s14866_s1 + $0x1760] ss:$16 sps:$4 sm:$0xff]  }
 0x15a   :  { %6992 = vmatpush1.bf16.msra.mxu1 %v10001_v9  ;;  %6952 = vmatprep.subr.bf16.mxu0 %v10006_v13  ;;  %v10048_v9 = vld [vmem:[%s14866_s1 + $0x1544] ss:$16 sps:$4 sm:$0xff]  }
 0x15b   :  { %6993 = vmatprep.subr.bf16.mxu1 %v10009_v16  ;;  %v10051_v13 = vld [vmem:[%s14866_s1 + $0x1744] ss:$16 sps:$4 sm:$0xff]   ;;  %v1310_v16 = vcombine.low %v31_v2, %v35_v4 }
 0x15d   :  { %6953 = vmatpush1.bf16.msra.mxu0 %v10004_v17  ;;  %v1312_v17 = vcombine.low %v39_v5, %v43_v36 }
 0x15e   :  { %6994 = vmatpush1.bf16.msra.mxu1 %v10007_v21  ;;  %6954 = vmatprep.subr.bf16.mxu0 %v10012_v22  ;;  %v10046_v21 = vld [vmem:[%s14866_s1 + $0x1540] ss:$16 sps:$4 sm:$0xff]  }
 0x15f   :  { %6995 = vmatprep.subr.bf16.mxu1 %v10015_v59  ;;  %v10049_v22 = vld [vmem:[%s14866_s1 + $0x1740] ss:$16 sps:$4 sm:$0xff]   ;;  %v10054_v59 = vld [vmem:[%s14866_s1 + $0x1524] ss:$16 sps:$4 sm:$0xff]  }
 0x161   :  { %6955 = vmatpush1.bf16.msra.mxu0 %v10010_v23  ;;  %v10057_v23 = vld [vmem:[%s14866_s1 + $0x1724] ss:$16 sps:$4 sm:$0xff]  }
 0x162   :  { %6996 = vmatpush1.bf16.msra.mxu1 %v10013_v29  ;;  %6956 = vmatprep.subr.bf16.mxu0 %v10018_v30  ;;  %v12544_v29 = vrot.slane %v1310_v16, %v11315_v55  ;;  %v12547_v30 = vrot.slane %v1312_v17, %v11315_v55 }
 0x163   :  { %6997 = vmatprep.subr.bf16.mxu1 %v10021_v31  ;;  %v10052_v31 = vld [vmem:[%s14866_s1 + $0x1520] ss:$16 sps:$4 sm:$0xff]  }
 0x165   :  { %6957 = vmatpush2.bf16.msra.mxu0 %v10016_v34  ;;  %v10055_v34 = vld [vmem:[%s14866_s1 + $0x1720] ss:$16 sps:$4 sm:$0xff]  }
 0x166   :  { %6998 = vmatpush2.bf16.msra.mxu1 %v10019_v35  ;;  %6958 = vmatprep.subr.bf16.mxu0 %v10024_v14  ;;  %v1311_v35 = vcombine.high %v31_v2, %v35_v4  ;;  %v1313_v14 = vcombine.high %v39_v5, %v43_v36  ;;  %v10072_v2 = vld [vmem:[%s14866_s1 + $0x18c4] ss:$16 sps:$4 sm:$0xff]   ;;  %v10070_v5 = vld [vmem:[%s14866_s1 + $0x18c0] ss:$16 sps:$4 sm:$0xff]  }
 0x167   :  { %6999 = vmatprep.subr.bf16.mxu1 %v10027_v38  ;;  %v10060_v38 = vld [vmem:[%s14866_s1 + $0x1504] ss:$16 sps:$4 sm:$0xff]   ;;  %v10073_v36 = vld [vmem:[%s14866_s1 + $0x1ac0] ss:$16 sps:$4 sm:$0xff]  }
 0x168   :  { %v10075_v4 = vld [vmem:[%s14866_s1 + $0x1ac4] ss:$16 sps:$4 sm:$0xff]  }
 0x169   :  { %6959 = vmatpush2.bf16.msra.mxu0 %v10022_v41  ;;  %v10063_v41 = vld [vmem:[%s14866_s1 + $0x1704] ss:$16 sps:$4 sm:$0xff]  }
 0x16a   :  { %7000 = vmatpush2.bf16.msra.mxu1 %v10025_v25  ;;  %6960 = vmatprep.subr.bf16.mxu0 %v10030_v42  ;;  %v1343_v25 = vcombine.high %v12544_v29, %v12547_v30  ;;  %v12564_v42 = vrot.slane %v1311_v35, %v11315_v55 }
 0x16b   :  { %7001 = vmatprep.subr.bf16.mxu1 %v10033_v43  ;;  %v12567_v43 = vrot.slane %v1313_v14, %v11315_v55 }
 0x16d   :  { %6961 = vmatpush2.bf16.msra.mxu0 %v10028_v44  ;;  %v12573_v44 = vrot.slane %v1276_v62, %v11315_v55  ;;  %v1344_v62 = vcombine.low %v12564_v42, %v12567_v43 }
 0x16e   :  { %7002 = vmatpush2.bf16.msra.mxu1 %v10031_v48  ;;  %6962 = vmatprep.subr.bf16.mxu0 %v10036_v32  ;;  %v10058_v48 = vld [vmem:[%s14866_s1 + $0x1500] ss:$16 sps:$4 sm:$0xff]  }
 0x16f   :  { %7003 = vmatprep.subr.bf16.mxu1 %v10039_v52  ;;  %v10061_v32 = vld [vmem:[%s14866_s1 + $0x1700] ss:$16 sps:$4 sm:$0xff]   ;;  %v1345_v52 = vcombine.high %v12564_v42, %v12567_v43  ;;  %v10256_v42 = vld [vmem:[%s14866_s1 + $0xe8] ss:$16 sps:$4 sm:$0xff]  }
 0x170   :  { %v10259_v43 = vld [vmem:[%s14866_s1 + $0x2e8] ss:$16 sps:$4 sm:$0xff]  }
 0x171   :  { %6963 = vmatpush2.bf16.msra.mxu0 %v10034_v54  ;;  %v10064_v54 = vld [vmem:[%s14866_s1 + $0x18e0] ss:$16 sps:$4 sm:$0xff]  }
 0x172   :  { %7004 = vmatpush2.bf16.msra.mxu1 %v10037_v60  ;;  %6964 = vmatprep.subr.bf16.mxu0 %v10042_v61  ;;  %v10067_v60 = vld [vmem:[%s14866_s1 + $0x1ae0] ss:$16 sps:$4 sm:$0xff]   ;;  %v12598_v61 = vrot.slane %v1343_v25, %v11315_v55  ;;  %v10087_v25 = vld [vmem:[%s14866_s1 + $0x1a84] ss:$16 sps:$4 sm:$0xff]  }
 0x173   :  { %7005 = vmatprep.subr.bf16.mxu1 %v10045_v1  ;;  %v12602_v1 = vcombine.high %v12573_v44, %v12573_v44 }
 0x175   :  { %6965 = vmatpush2.bf16.msra.mxu0 %v10040_v56  ;;  %v12618_v56 = vcombine.high %v12598_v61, %v12598_v61 }
 0x176   :  { %7006 = vmatpush2.bf16.msra.mxu1 %v10043_v7  ;;  %6966 = vmatprep.subr.bf16.mxu0 %v10048_v9 }
 0x177   :  { %7007 = vmatprep.subr.bf16.mxu1 %v10051_v13 }
 0x179   :  { %6967 = vmatpush2.bf16.msra.mxu0 %v10046_v21  ;;  %v10078_v21 = vld [vmem:[%s14866_s1 + $0x18a4] ss:$16 sps:$4 sm:$0xff]  }
 0x17a   :  { %7008 = vmatpush2.bf16.msra.mxu1 %v10049_v22  ;;  %6968 = vmatprep.subr.bf16.mxu0 %v10054_v59  ;;  %v10081_v22 = vld [vmem:[%s14866_s1 + $0x1aa4] ss:$16 sps:$4 sm:$0xff]  }
 0x17b   :  { %7009 = vmatprep.subr.bf16.mxu1 %v10057_v23 }
 0x17d   :  { %6969 = vmatpush2.bf16.msra.mxu0 %v10052_v31  ;;  %v10079_v31 = vld [vmem:[%s14866_s1 + $0x1aa0] ss:$16 sps:$4 sm:$0xff]  }
 0x17e   :  { %7010 = vmatpush2.bf16.msra.mxu1 %v10055_v34  ;;  %6970 = vmatprep.subr.bf16.mxu0 %v10060_v38 }
 0x17f   :  { %7011 = vmatprep.subr.bf16.mxu1 %v10063_v41  ;;  %v10084_v41 = vld [vmem:[%s14866_s1 + $0x1884] ss:$16 sps:$4 sm:$0xff]  }
 0x181   :  { %6971 = vmatpush2.bf16.msra.mxu0 %v10058_v48  ;;  %v10082_v48 = vld [vmem:[%s14866_s1 + $0x1880] ss:$16 sps:$4 sm:$0xff]  }
 0x182   :  { %7012 = vmatpush2.bf16.msra.mxu1 %v10061_v32  ;;  %7022 = vmatprep.subr.bf16.mxu0 %v10066_v50  ;;  %v10085_v32 = vld [vmem:[%s14866_s1 + $0x1a80] ss:$16 sps:$4 sm:$0xff]   ;;  %v10090_v50 = vld [vmem:[%s14866_s1 + $0x1864] ss:$16 sps:$4 sm:$0xff]  }
 0x183   :  { %7063 = vmatprep.subr.bf16.mxu1 %v10069_v51  ;;  %v10093_v51 = vld [vmem:[%s14866_s1 + $0x1a64] ss:$16 sps:$4 sm:$0xff]  }
 0x184   :  { %v6728_v7 = vpop.f32.mrf.mxu0  ;;  %6973 = vmatmul.mubr.bf16.vlgmr.msra.gmra.mxu0 %v12573_v44 }
 0x185   :  { %v6769_v9 = vpop.f32.mrf.mxu1  ;;  %7014 = vmatmul.mubr.bf16.vlgmr.msra.gmra.mxu1 %v12602_v1  ;;  %v6729_v13 = vadd.f32 %v6728_v7, %v12380_v39  ;;  %7023 = vmatpush1.bf16.msra.mxu0 %v10064_v54  ;;  %v10076_v39 = vld [vmem:[%s14866_s1 + $0x18a0] ss:$16 sps:$4 sm:$0xff]   ;;  %v10102_v7 = vld [vmem:[%s14866_s1 + $0x1824] ss:$16 sps:$4 sm:$0xff]  }
 0x186   :  { %7064 = vmatpush1.bf16.msra.mxu1 %v10067_v60  ;;  %v6730_v16 = vpop.f32.mrf.mxu0  ;;  %7024 = vmatprep.subr.bf16.mxu0 %v10072_v2  ;;  %v10088_v54 = vld [vmem:[%s14866_s1 + $0x1860] ss:$16 sps:$4 sm:$0xff]   ;;  %v10096_v2 = vld [vmem:[%s14866_s1 + $0x1844] ss:$16 sps:$4 sm:$0xff]  }
 0x187   :  { %v6771_v17 = vpop.f32.mrf.mxu1  ;;  %7065 = vmatprep.subr.bf16.mxu1 %v10075_v4  ;;  %v12629_v59 = vadd.f32 %v6769_v9, %v6729_v13  ;;  %v6731_v23 = vadd.f32 %v6730_v16, %v12391_v47  ;;  %7054 = vmatprep.mubr.bf16.mxu0 %v12598_v61  ;;  %v10091_v60 = vld [vmem:[%s14866_s1 + $0x1a60] ss:$16 sps:$4 sm:$0xff]   ;;  %v10099_v4 = vld [vmem:[%s14866_s1 + $0x1a44] ss:$16 sps:$4 sm:$0xff]  }
 0x188   :  { %7095 = vmatprep.mubr.bf16.mxu1 %v12618_v56  ;;  %v6732_v34 = vpop.f32.mrf.mxu0  ;;  %v10105_v9 = vld [vmem:[%s14866_s1 + $0x1a24] ss:$16 sps:$4 sm:$0xff]   ;;  %v10100_v13 = vld [vmem:[%s14866_s1 + $0x1820] ss:$16 sps:$4 sm:$0xff]  }
 0x189   :  { %v6773_v35 = vpop.f32.mrf.mxu1  ;;  %v12640_v14 = vadd.f32 %v6771_v17, %v6731_v23  ;;  %7025 = vmatpush1.bf16.msra.mxu0 %v10070_v5  ;;  %v10094_v5 = vld [vmem:[%s14866_s1 + $0x1840] ss:$16 sps:$4 sm:$0xff]   ;;  %v10108_v17 = vld [vmem:[%s14866_s1 + $0x1804] ss:$16 sps:$4 sm:$0xff]  }
 0x18a   :  { %7066 = vmatpush1.bf16.msra.mxu1 %v10073_v36  ;;  %v6733_v38 = vpop.f32.mrf.mxu0  ;;  %7026 = vmatprep.subr.bf16.mxu0 %v10078_v21  ;;  %v10097_v36 = vld [vmem:[%s14866_s1 + $0x1a40] ss:$16 sps:$4 sm:$0xff]   ;;  %v10111_v21 = vld [vmem:[%s14866_s1 + $0x1a04] ss:$16 sps:$4 sm:$0xff]  }
 0x18b   :  { %v6774_v47 = vpop.f32.mrf.mxu1  ;;  %7067 = vmatprep.subr.bf16.mxu1 %v10081_v22  ;;  %v10103_v16 = vld [vmem:[%s14866_s1 + $0x1a20] ss:$16 sps:$4 sm:$0xff]   ;;  %v10120_v38 = vld [vmem:[%s14866_s1 + $0x19c4] ss:$16 sps:$4 sm:$0xff]  }
 0x18c   :  { %v10106_v22 = vld [vmem:[%s14866_s1 + $0x1800] ss:$16 sps:$4 sm:$0xff]   ;;  %v10123_v47 = vld [vmem:[%s14866_s1 + $0x1bc4] ss:$16 sps:$4 sm:$0xff]  }
 0x18d   :  { %7027 = vmatpush1.bf16.msra.mxu0 %v10076_v39  ;;  %v10109_v23 = vld [vmem:[%s14866_s1 + $0x1a00] ss:$16 sps:$4 sm:$0xff]   ;;  %v10114_v39 = vld [vmem:[%s14866_s1 + $0x19e4] ss:$16 sps:$4 sm:$0xff]  }
 0x18e   :  { %7068 = vmatpush1.bf16.msra.mxu1 %v10079_v31  ;;  %7028 = vmatprep.subr.bf16.mxu0 %v10084_v41  ;;  %v10117_v31 = vld [vmem:[%s14866_s1 + $0x1be4] ss:$16 sps:$4 sm:$0xff]   ;;  %v10112_v34 = vld [vmem:[%s14866_s1 + $0x19e0] ss:$16 sps:$4 sm:$0xff]  }
 0x18f   :  { %7069 = vmatprep.subr.bf16.mxu1 %v10087_v25  ;;  %v10115_v35 = vld [vmem:[%s14866_s1 + $0x1be0] ss:$16 sps:$4 sm:$0xff]  }
 0x190   :  { %v10118_v41 = vld [vmem:[%s14866_s1 + $0x19c0] ss:$16 sps:$4 sm:$0xff]  }
 0x191   :  { %7029 = vmatpush1.bf16.msra.mxu0 %v10082_v48  ;;  %v10121_v25 = vld [vmem:[%s14866_s1 + $0x1bc0] ss:$16 sps:$4 sm:$0xff]   ;;  %v10126_v48 = vld [vmem:[%s14866_s1 + $0x19a4] ss:$16 sps:$4 sm:$0xff]  }
 0x192   :  { %7070 = vmatpush1.bf16.msra.mxu1 %v10085_v32  ;;  %7030 = vmatprep.subr.bf16.mxu0 %v10090_v50  ;;  %v10129_v32 = vld [vmem:[%s14866_s1 + $0x1ba4] ss:$16 sps:$4 sm:$0xff]   ;;  %v10124_v50 = vld [vmem:[%s14866_s1 + $0x19a0] ss:$16 sps:$4 sm:$0xff]  }
 0x193   :  { %7071 = vmatprep.subr.bf16.mxu1 %v10093_v51  ;;  %v10127_v51 = vld [vmem:[%s14866_s1 + $0x1ba0] ss:$16 sps:$4 sm:$0xff]  }
 0x195   :  { %7031 = vmatpush1.bf16.msra.mxu0 %v10088_v54  ;;  %v10132_v54 = vld [vmem:[%s14866_s1 + $0x1984] ss:$16 sps:$4 sm:$0xff]  }
 0x196   :  { %7072 = vmatpush1.bf16.msra.mxu1 %v10091_v60  ;;  %7032 = vmatprep.subr.bf16.mxu0 %v10096_v2  ;;  %v10135_v60 = vld [vmem:[%s14866_s1 + $0x1b84] ss:$16 sps:$4 sm:$0xff]   ;;  %v10130_v2 = vld [vmem:[%s14866_s1 + $0x1980] ss:$16 sps:$4 sm:$0xff]  }
 0x197   :  { %7073 = vmatprep.subr.bf16.mxu1 %v10099_v4  ;;  %v10133_v4 = vld [vmem:[%s14866_s1 + $0x1b80] ss:$16 sps:$4 sm:$0xff]  }
 0x199   :  { %7033 = vmatpush1.bf16.msra.mxu0 %v10094_v5  ;;  %v10138_v5 = vld [vmem:[%s14866_s1 + $0x1964] ss:$16 sps:$4 sm:$0xff]  }
 0x19a   :  { %7074 = vmatpush1.bf16.msra.mxu1 %v10097_v36  ;;  %7034 = vmatprep.subr.bf16.mxu0 %v10102_v7  ;;  %v10141_v36 = vld [vmem:[%s14866_s1 + $0x1b64] ss:$16 sps:$4 sm:$0xff]   ;;  %v10136_v7 = vld [vmem:[%s14866_s1 + $0x1960] ss:$16 sps:$4 sm:$0xff]  }
 0x19b   :  { %7075 = vmatprep.subr.bf16.mxu1 %v10105_v9  ;;  %v10139_v9 = vld [vmem:[%s14866_s1 + $0x1b60] ss:$16 sps:$4 sm:$0xff]  }
 0x19d   :  { %7035 = vmatpush1.bf16.msra.mxu0 %v10100_v13  ;;  %v10144_v13 = vld [vmem:[%s14866_s1 + $0x1944] ss:$16 sps:$4 sm:$0xff]  }
 0x19e   :  { %7076 = vmatpush1.bf16.msra.mxu1 %v10103_v16  ;;  %7036 = vmatprep.subr.bf16.mxu0 %v10108_v17  ;;  %v10147_v16 = vld [vmem:[%s14866_s1 + $0x1b44] ss:$16 sps:$4 sm:$0xff]   ;;  %v10142_v17 = vld [vmem:[%s14866_s1 + $0x1940] ss:$16 sps:$4 sm:$0xff]  }
 0x19f   :  { %7077 = vmatprep.subr.bf16.mxu1 %v10111_v21  ;;  %v10145_v21 = vld [vmem:[%s14866_s1 + $0x1b40] ss:$16 sps:$4 sm:$0xff]  }
 0x1a1   :  { %7037 = vmatpush1.bf16.msra.mxu0 %v10106_v22  ;;  %v10150_v22 = vld [vmem:[%s14866_s1 + $0x1924] ss:$16 sps:$4 sm:$0xff]  }
 0x1a2   :  { %7078 = vmatpush1.bf16.msra.mxu1 %v10109_v23  ;;  %7038 = vmatprep.subr.bf16.mxu0 %v10114_v39  ;;  %v10153_v23 = vld [vmem:[%s14866_s1 + $0x1b24] ss:$16 sps:$4 sm:$0xff]   ;;  %v1342_v39 = vcombine.low %v12544_v29, %v12547_v30 }
 0x1a3   :  { %7079 = vmatprep.subr.bf16.mxu1 %v10117_v31  ;;  %v10148_v31 = vld [vmem:[%s14866_s1 + $0x1920] ss:$16 sps:$4 sm:$0xff]   ;;  %v10159_v29 = vld [vmem:[%s14866_s1 + $0x1b04] ss:$16 sps:$4 sm:$0xff]  }
 0x1a4   :  { %v12795_v30 = vrot.slane %v1342_v39, %v11315_v55 }
 0x1a5   :  { %7039 = vmatpush2.bf16.msra.mxu0 %v10112_v34  ;;  %v10151_v34 = vld [vmem:[%s14866_s1 + $0x1b20] ss:$16 sps:$4 sm:$0xff]  }
 0x1a6   :  { %7080 = vmatpush2.bf16.msra.mxu1 %v10115_v35  ;;  %7040 = vmatprep.subr.bf16.mxu0 %v10120_v38  ;;  %v10156_v35 = vld [vmem:[%s14866_s1 + $0x1904] ss:$16 sps:$4 sm:$0xff]   ;;  %v10154_v38 = vld [vmem:[%s14866_s1 + $0x1900] ss:$16 sps:$4 sm:$0xff]  }
 0x1a7   :  { %7081 = vmatprep.subr.bf16.mxu1 %v10123_v47  ;;  %v10157_v47 = vld [vmem:[%s14866_s1 + $0x1b00] ss:$16 sps:$4 sm:$0xff]  }
 0x1a9   :  { %7041 = vmatpush2.bf16.msra.mxu0 %v10118_v41  ;;  %v10162_v41 = vld [vmem:[%s14866_s1 + $0x1ce4] ss:$16 sps:$4 sm:$0xff]  }
 0x1aa   :  { %7082 = vmatpush2.bf16.msra.mxu1 %v10121_v25  ;;  %7042 = vmatprep.subr.bf16.mxu0 %v10126_v48  ;;  %v10165_v25 = vld [vmem:[%s14866_s1 + $0x1ee4] ss:$16 sps:$4 sm:$0xff]   ;;  %v10160_v48 = vld [vmem:[%s14866_s1 + $0x1ce0] ss:$16 sps:$4 sm:$0xff]  }
 0x1ab   :  { %7083 = vmatprep.subr.bf16.mxu1 %v10129_v32  ;;  %v10163_v32 = vld [vmem:[%s14866_s1 + $0x1ee0] ss:$16 sps:$4 sm:$0xff]  }
 0x1ad   :  { %7043 = vmatpush2.bf16.msra.mxu0 %v10124_v50  ;;  %v12819_v50 = vrot.slane %v1345_v52, %v11315_v55  ;;  %v10166_v52 = vld [vmem:[%s14866_s1 + $0x1cc0] ss:$16 sps:$4 sm:$0xff]  }
 0x1ae   :  { %7084 = vmatpush2.bf16.msra.mxu1 %v10127_v51  ;;  %7044 = vmatprep.subr.bf16.mxu0 %v10132_v54  ;;  %v12823_v51 = vcombine.high %v12795_v30, %v12795_v30  ;;  %v10168_v54 = vld [vmem:[%s14866_s1 + $0x1cc4] ss:$16 sps:$4 sm:$0xff]  }
 0x1af   :  { %7085 = vmatprep.subr.bf16.mxu1 %v10135_v60  ;;  %v10171_v60 = vld [vmem:[%s14866_s1 + $0x1ec4] ss:$16 sps:$4 sm:$0xff]  }
 0x1b1   :  { %7045 = vmatpush2.bf16.msra.mxu0 %v10130_v2  ;;  %v10169_v2 = vld [vmem:[%s14866_s1 + $0x1ec0] ss:$16 sps:$4 sm:$0xff]  }
 0x1b2   :  { %7086 = vmatpush2.bf16.msra.mxu1 %v10133_v4  ;;  %7046 = vmatprep.subr.bf16.mxu0 %v10138_v5  ;;  %v12839_v4 = vcombine.high %v12819_v50, %v12819_v50 }
 0x1b3   :  { %7087 = vmatprep.subr.bf16.mxu1 %v10141_v36 }
 0x1b5   :  { %7047 = vmatpush2.bf16.msra.mxu0 %v10136_v7 }
 0x1b6   :  { %7088 = vmatpush2.bf16.msra.mxu1 %v10139_v9  ;;  %7048 = vmatprep.subr.bf16.mxu0 %v10144_v13 }
 0x1b7   :  { %7089 = vmatprep.subr.bf16.mxu1 %v10147_v16  ;;  %v10174_v16 = vld [vmem:[%s14866_s1 + $0x1ca4] ss:$16 sps:$4 sm:$0xff]  }
 0x1b9   :  { %7049 = vmatpush2.bf16.msra.mxu0 %v10142_v17  ;;  %v10177_v17 = vld [vmem:[%s14866_s1 + $0x1ea4] ss:$16 sps:$4 sm:$0xff]  }
 0x1ba   :  { %7090 = vmatpush2.bf16.msra.mxu1 %v10145_v21  ;;  %7050 = vmatprep.subr.bf16.mxu0 %v10150_v22 }
 0x1bb   :  { %7091 = vmatprep.subr.bf16.mxu1 %v10153_v23  ;;  %v10175_v23 = vld [vmem:[%s14866_s1 + $0x1ea0] ss:$16 sps:$4 sm:$0xff]  }
 0x1bd   :  { %7051 = vmatpush2.bf16.msra.mxu0 %v10148_v31 }
 0x1be   :  { %7092 = vmatpush2.bf16.msra.mxu1 %v10151_v34  ;;  %7052 = vmatprep.subr.bf16.mxu0 %v10156_v35 }
 0x1bf   :  { %7093 = vmatprep.subr.bf16.mxu1 %v10159_v29  ;;  %v10180_v29 = vld [vmem:[%s14866_s1 + $0x1c84] ss:$16 sps:$4 sm:$0xff]  }
 0x1c1   :  { %7053 = vmatpush2.bf16.msra.mxu0 %v10154_v38  ;;  %v10183_v38 = vld [vmem:[%s14866_s1 + $0x1e84] ss:$16 sps:$4 sm:$0xff]  }
 0x1c2   :  { %7094 = vmatpush2.bf16.msra.mxu1 %v10157_v47  ;;  %7104 = vmatprep.subr.bf16.mxu0 %v10162_v41  ;;  %v10178_v47 = vld [vmem:[%s14866_s1 + $0x1c80] ss:$16 sps:$4 sm:$0xff]  }
 0x1c3   :  { %7145 = vmatprep.subr.bf16.mxu1 %v10165_v25  ;;  %v10181_v41 = vld [vmem:[%s14866_s1 + $0x1e80] ss:$16 sps:$4 sm:$0xff]   ;;  %v10186_v25 = vld [vmem:[%s14866_s1 + $0x1c64] ss:$16 sps:$4 sm:$0xff]  }
 0x1c4   :  { %v6810_v5 = vpop.f32.mrf.mxu0  ;;  %7055 = vmatmul.mubr.bf16.vlgmr.msra.gmra.mxu0 %v12795_v30 }
 0x1c5   :  { %v6851_v36 = vpop.f32.mrf.mxu1  ;;  %7096 = vmatmul.mubr.bf16.vlgmr.msra.gmra.mxu1 %v12823_v51  ;;  %v6811_v7 = vadd.f32 %v6810_v5, %v12629_v59  ;;  %7105 = vmatpush1.bf16.msra.mxu0 %v10160_v48  ;;  %v10172_v59 = vld [vmem:[%s14866_s1 + $0x1ca0] ss:$16 sps:$4 sm:$0xff]   ;;  %v10189_v48 = vld [vmem:[%s14866_s1 + $0x1e64] ss:$16 sps:$4 sm:$0xff]  }
 0x1c6   :  { %7146 = vmatpush1.bf16.msra.mxu1 %v10163_v32  ;;  %v6812_v9 = vpop.f32.mrf.mxu0  ;;  %7106 = vmatprep.subr.bf16.mxu0 %v10168_v54  ;;  %v10184_v32 = vld [vmem:[%s14866_s1 + $0x1c60] ss:$16 sps:$4 sm:$0xff]  }
 0x1c7   :  { %v6853_v13 = vpop.f32.mrf.mxu1  ;;  %7147 = vmatprep.subr.bf16.mxu1 %v10171_v60  ;;  %v12850_v21 = vadd.f32 %v6851_v36, %v6811_v7  ;;  %v6813_v22 = vadd.f32 %v6812_v9, %v12640_v14  ;;  %7136 = vmatprep.mubr.bf16.mxu0 %v12819_v50  ;;  %v10187_v54 = vld [vmem:[%s14866_s1 + $0x1e60] ss:$16 sps:$4 sm:$0xff]   ;;  %v10192_v60 = vld [vmem:[%s14866_s1 + $0x1c44] ss:$16 sps:$4 sm:$0xff]  }
 0x1c8   :  { %7177 = vmatprep.mubr.bf16.mxu1 %v12839_v4  ;;  %v6814_v39 = vpop.f32.mrf.mxu0  ;;  %v10193_v5 = vld [vmem:[%s14866_s1 + $0x1e40] ss:$16 sps:$4 sm:$0xff]   ;;  %v10198_v36 = vld [vmem:[%s14866_s1 + $0x1c24] ss:$16 sps:$4 sm:$0xff]  }
 0x1c9   :  { %v6855_v31 = vpop.f32.mrf.mxu1  ;;  %v12861_v34 = vadd.f32 %v6853_v13, %v6813_v22  ;;  %7107 = vmatpush1.bf16.msra.mxu0 %v10166_v52  ;;  %v10195_v52 = vld [vmem:[%s14866_s1 + $0x1e44] ss:$16 sps:$4 sm:$0xff]   ;;  %v10196_v9 = vld [vmem:[%s14866_s1 + $0x1c20] ss:$16 sps:$4 sm:$0xff]  }
 0x1ca   :  { %7148 = vmatpush1.bf16.msra.mxu1 %v10169_v2  ;;  %v6815_v35 = vpop.f32.mrf.mxu0  ;;  %7108 = vmatprep.subr.bf16.mxu0 %v10174_v16  ;;  %v10190_v2 = vld [vmem:[%s14866_s1 + $0x1c40] ss:$16 sps:$4 sm:$0xff]   ;;  %v10201_v7 = vld [vmem:[%s14866_s1 + $0x1e24] ss:$16 sps:$4 sm:$0xff]  }
 0x1cb   :  { %v6856_v14 = vpop.f32.mrf.mxu1  ;;  %7149 = vmatprep.subr.bf16.mxu1 %v10177_v17  ;;  %v10199_v13 = vld [vmem:[%s14866_s1 + $0x1e20] ss:$16 sps:$4 sm:$0xff]   ;;  %v10204_v16 = vld [vmem:[%s14866_s1 + $0x1c04] ss:$16 sps:$4 sm:$0xff]  }
 0x1cc   :  { %v10207_v17 = vld [vmem:[%s14866_s1 + $0x1e04] ss:$16 sps:$4 sm:$0xff]   ;;  %v10202_v22 = vld [vmem:[%s14866_s1 + $0x1c00] ss:$16 sps:$4 sm:$0xff]  }
 0x1cd   :  { %7109 = vmatpush1.bf16.msra.mxu0 %v10172_v59  ;;  %v10205_v59 = vld [vmem:[%s14866_s1 + $0x1e00] ss:$16 sps:$4 sm:$0xff]   ;;  %v10213_v39 = vld [vmem:[%s14866_s1 + $0x1fe4] ss:$16 sps:$4 sm:$0xff]  }
 0x1ce   :  { %7150 = vmatpush1.bf16.msra.mxu1 %v10175_v23  ;;  %7110 = vmatprep.subr.bf16.mxu0 %v10180_v29  ;;  %v10210_v23 = vld [vmem:[%s14866_s1 + $0x1de4] ss:$16 sps:$4 sm:$0xff]   ;;  %v10208_v31 = vld [vmem:[%s14866_s1 + $0x1de0] ss:$16 sps:$4 sm:$0xff]  }
 0x1cf   :  { %7151 = vmatprep.subr.bf16.mxu1 %v10183_v38  ;;  %v10211_v35 = vld [vmem:[%s14866_s1 + $0x1fe0] ss:$16 sps:$4 sm:$0xff]   ;;  %v10216_v14 = vld [vmem:[%s14866_s1 + $0x1dc4] ss:$16 sps:$4 sm:$0xff]  }
 0x1d0   :  { %v10219_v29 = vld [vmem:[%s14866_s1 + $0x1fc4] ss:$16 sps:$4 sm:$0xff]   ;;  %v10214_v38 = vld [vmem:[%s14866_s1 + $0x1dc0] ss:$16 sps:$4 sm:$0xff]  }
 0x1d1   :  { %7111 = vmatpush1.bf16.msra.mxu0 %v10178_v47  ;;  %v10217_v47 = vld [vmem:[%s14866_s1 + $0x1fc0] ss:$16 sps:$4 sm:$0xff]  }
 0x1d2   :  { %7152 = vmatpush1.bf16.msra.mxu1 %v10181_v41  ;;  %7112 = vmatprep.subr.bf16.mxu0 %v10186_v25  ;;  %v10222_v41 = vld [vmem:[%s14866_s1 + $0x1da4] ss:$16 sps:$4 sm:$0xff]  }
 0x1d3   :  { %7153 = vmatprep.subr.bf16.mxu1 %v10189_v48  ;;  %v10225_v25 = vld [vmem:[%s14866_s1 + $0x1fa4] ss:$16 sps:$4 sm:$0xff]   ;;  %v10220_v48 = vld [vmem:[%s14866_s1 + $0x1da0] ss:$16 sps:$4 sm:$0xff]  }
 0x1d5   :  { %7113 = vmatpush1.bf16.msra.mxu0 %v10184_v32  ;;  %v10223_v32 = vld [vmem:[%s14866_s1 + $0x1fa0] ss:$16 sps:$4 sm:$0xff]  }
 0x1d6   :  { %7154 = vmatpush1.bf16.msra.mxu1 %v10187_v54  ;;  %7114 = vmatprep.subr.bf16.mxu0 %v10192_v60  ;;  %v10228_v54 = vld [vmem:[%s14866_s1 + $0x1d84] ss:$16 sps:$4 sm:$0xff]  }
 0x1d7   :  { %7155 = vmatprep.subr.bf16.mxu1 %v10195_v52  ;;  %v10231_v60 = vld [vmem:[%s14866_s1 + $0x1f84] ss:$16 sps:$4 sm:$0xff]   ;;  %v10226_v52 = vld [vmem:[%s14866_s1 + $0x1d80] ss:$16 sps:$4 sm:$0xff]  }
 0x1d9   :  { %7115 = vmatpush1.bf16.msra.mxu0 %v10190_v2  ;;  %v10229_v2 = vld [vmem:[%s14866_s1 + $0x1f80] ss:$16 sps:$4 sm:$0xff]  }
 0x1da   :  { %7156 = vmatpush1.bf16.msra.mxu1 %v10193_v5  ;;  %7116 = vmatprep.subr.bf16.mxu0 %v10198_v36  ;;  %v10234_v5 = vld [vmem:[%s14866_s1 + $0x1d64] ss:$16 sps:$4 sm:$0xff]  }
 0x1db   :  { %7157 = vmatprep.subr.bf16.mxu1 %v10201_v7  ;;  %v10237_v36 = vld [vmem:[%s14866_s1 + $0x1f64] ss:$16 sps:$4 sm:$0xff]   ;;  %v10232_v7 = vld [vmem:[%s14866_s1 + $0x1d60] ss:$16 sps:$4 sm:$0xff]  }
 0x1dd   :  { %7117 = vmatpush1.bf16.msra.mxu0 %v10196_v9  ;;  %v10235_v9 = vld [vmem:[%s14866_s1 + $0x1f60] ss:$16 sps:$4 sm:$0xff]  }
 0x1de   :  { %7158 = vmatpush1.bf16.msra.mxu1 %v10199_v13  ;;  %7118 = vmatprep.subr.bf16.mxu0 %v10204_v16  ;;  %v10240_v13 = vld [vmem:[%s14866_s1 + $0x1d44] ss:$16 sps:$4 sm:$0xff]  }
 0x1df   :  { %7159 = vmatprep.subr.bf16.mxu1 %v10207_v17  ;;  %v10243_v16 = vld [vmem:[%s14866_s1 + $0x1f44] ss:$16 sps:$4 sm:$0xff]   ;;  %v10238_v17 = vld [vmem:[%s14866_s1 + $0x1d40] ss:$16 sps:$4 sm:$0xff]  }
 0x1e1   :  { %7119 = vmatpush1.bf16.msra.mxu0 %v10202_v22  ;;  %v10241_v22 = vld [vmem:[%s14866_s1 + $0x1f40] ss:$16 sps:$4 sm:$0xff]  }
 0x1e2   :  { %7160 = vmatpush1.bf16.msra.mxu1 %v10205_v59  ;;  %7120 = vmatprep.subr.bf16.mxu0 %v10210_v23  ;;  %v10246_v59 = vld [vmem:[%s14866_s1 + $0x1d24] ss:$16 sps:$4 sm:$0xff]  }
 0x1e3   :  { %7161 = vmatprep.subr.bf16.mxu1 %v10213_v39  ;;  %v10249_v23 = vld [vmem:[%s14866_s1 + $0x1f24] ss:$16 sps:$4 sm:$0xff]   ;;  %v10244_v39 = vld [vmem:[%s14866_s1 + $0x1d20] ss:$16 sps:$4 sm:$0xff]  }
 0x1e5   :  { %7121 = vmatpush2.bf16.msra.mxu0 %v10208_v31  ;;  %v10247_v31 = vld [vmem:[%s14866_s1 + $0x1f20] ss:$16 sps:$4 sm:$0xff]  }
 0x1e6   :  { %7162 = vmatpush2.bf16.msra.mxu1 %v10211_v35  ;;  %7122 = vmatprep.subr.bf16.mxu0 %v10216_v14  ;;  %v10252_v35 = vld [vmem:[%s14866_s1 + $0x1d04] ss:$16 sps:$4 sm:$0xff]  }
 0x1e7   :  { %7163 = vmatprep.subr.bf16.mxu1 %v10219_v29  ;;  %v10255_v14 = vld [vmem:[%s14866_s1 + $0x1f04] ss:$16 sps:$4 sm:$0xff]   ;;  %v13017_v29 = vrot.slane %v1344_v62, %v11315_v55  ;;  %v10261_v55 = vld [vmem:[%s14866_s1 + $0x2ec] ss:$16 sps:$4 sm:$0xff]  }
 0x1e9   :  { %7123 = vmatpush2.bf16.msra.mxu0 %v10214_v38  ;;  %v10250_v38 = vld [vmem:[%s14866_s1 + $0x1d00] ss:$16 sps:$4 sm:$0xff]   ;;  %v13039_v62 = vcombine.high %v13017_v29, %v13017_v29 }
 0x1ea   :  { %7164 = vmatpush2.bf16.msra.mxu1 %v10217_v47  ;;  %7124 = vmatprep.subr.bf16.mxu0 %v10222_v41  ;;  %v10253_v47 = vld [vmem:[%s14866_s1 + $0x1f00] ss:$16 sps:$4 sm:$0xff]   ;;  %v10258_v41 = vld [vmem:[%s14866_s1 + $0xec] ss:$16 sps:$4 sm:$0xff]  }
 0x1eb   :  { %7165 = vmatprep.subr.bf16.mxu1 %v10225_v25  ;;  %v10264_v25 = vld [vmem:[%s14866_s1 + $0xcc] ss:$16 sps:$4 sm:$0xff]  }
 0x1ed   :  { %7125 = vmatpush2.bf16.msra.mxu0 %v10220_v48  ;;  %v10267_v48 = vld [vmem:[%s14866_s1 + $0x2cc] ss:$16 sps:$4 sm:$0xff]  }
 0x1ee   :  { %7166 = vmatpush2.bf16.msra.mxu1 %v10223_v32  ;;  %7126 = vmatprep.subr.bf16.mxu0 %v10228_v54  ;;  %v10262_v32 = vld [vmem:[%s14866_s1 + $0xc8] ss:$16 sps:$4 sm:$0xff]  }
 0x1ef   :  { %7167 = vmatprep.subr.bf16.mxu1 %v10231_v60  ;;  %v10265_v54 = vld [vmem:[%s14866_s1 + $0x2c8] ss:$16 sps:$4 sm:$0xff]  }
 0x1f1   :  { %7127 = vmatpush2.bf16.msra.mxu0 %v10226_v52 }
 0x1f2   :  { %7168 = vmatpush2.bf16.msra.mxu1 %v10229_v2  ;;  %7128 = vmatprep.subr.bf16.mxu0 %v10234_v5 }
 0x1f3   :  { %7169 = vmatprep.subr.bf16.mxu1 %v10237_v36 }
 0x1f5   :  { %7129 = vmatpush2.bf16.msra.mxu0 %v10232_v7  ;;  %v10270_v7 = vld [vmem:[%s14866_s1 + $0xac] ss:$16 sps:$4 sm:$0xff]  }
 0x1f6   :  { %7170 = vmatpush2.bf16.msra.mxu1 %v10235_v9  ;;  %7130 = vmatprep.subr.bf16.mxu0 %v10240_v13  ;;  %v10273_v9 = vld [vmem:[%s14866_s1 + $0x2ac] ss:$16 sps:$4 sm:$0xff]  }
 0x1f7   :  { %7171 = vmatprep.subr.bf16.mxu1 %v10243_v16 }
 0x1f9   :  { %7131 = vmatpush2.bf16.msra.mxu0 %v10238_v17  ;;  %v10271_v17 = vld [vmem:[%s14866_s1 + $0x2a8] ss:$16 sps:$4 sm:$0xff]  }
 0x1fa   :  { %7172 = vmatpush2.bf16.msra.mxu1 %v10241_v22  ;;  %7132 = vmatprep.subr.bf16.mxu0 %v10246_v59 }
 0x1fb   :  { %7173 = vmatprep.subr.bf16.mxu1 %v10249_v23 }
 0x1fd   :  { %7133 = vmatpush2.bf16.msra.mxu0 %v10244_v39 }
 0x1fe   :  { %7174 = vmatpush2.bf16.msra.mxu1 %v10247_v31  ;;  %7134 = vmatprep.subr.bf16.mxu0 %v10252_v35  ;;  %v10276_v31 = vld [vmem:[%s14866_s1 + $0x8c] ss:$16 sps:$4 sm:$0xff]   ;;  %v10277_v35 = vld [vmem:[%s14866_s1 + $0x288] ss:$16 sps:$4 sm:$0xff]  }
 0x1ff   :  { %7175 = vmatprep.subr.bf16.mxu1 %v10255_v14  ;;  %v10282_v14 = vld [vmem:[%s14866_s1 + $0x6c] ss:$16 sps:$4 sm:$0xff]  }
 0x201   :  { %7135 = vmatpush2.bf16.msra.mxu0 %v10250_v38  ;;  %v10285_v38 = vld [vmem:[%s14866_s1 + $0x26c] ss:$16 sps:$4 sm:$0xff]  }
 0x202   :  { %7176 = vmatpush2.bf16.msra.mxu1 %v10253_v47  ;;  %7186 = vmatprep.subr.bf16.mxu0 %v10258_v41  ;;  %v10280_v47 = vld [vmem:[%s14866_s1 + $0x68] ss:$16 sps:$4 sm:$0xff]  }
 0x203   :  { %7227 = vmatprep.subr.bf16.mxu1 %v10261_v55  ;;  %v10283_v41 = vld [vmem:[%s14866_s1 + $0x268] ss:$16 sps:$4 sm:$0xff]   ;;  %v10288_v55 = vld [vmem:[%s14866_s1 + $0x4c] ss:$16 sps:$4 sm:$0xff]  }
 0x204   :  { %v6892_v60 = vpop.f32.mrf.mxu0  ;;  %7137 = vmatmul.mubr.bf16.vlgmr.msra.gmra.mxu0 %v13017_v29 }
 0x205   :  { %v6933_v52 = vpop.f32.mrf.mxu1  ;;  %7178 = vmatmul.mubr.bf16.vlgmr.msra.gmra.mxu1 %v13039_v62  ;;  %v6893_v2 = vadd.f32 %v6892_v60, %v12850_v21  ;;  %7187 = vmatpush1.bf16.msra.mxu0 %v10256_v42  ;;  %v10268_v21 = vld [vmem:[%s14866_s1 + $0xa8] ss:$16 sps:$4 sm:$0xff]   ;;  %v10291_v42 = vld [vmem:[%s14866_s1 + $0x24c] ss:$16 sps:$4 sm:$0xff]  }
 0x206   :  { %7228 = vmatpush1.bf16.msra.mxu1 %v10259_v43  ;;  %v6894_v5 = vpop.f32.mrf.mxu0  ;;  %7188 = vmatprep.subr.bf16.mxu0 %v10264_v25  ;;  %v10286_v43 = vld [vmem:[%s14866_s1 + $0x48] ss:$16 sps:$4 sm:$0xff]  }
 0x207   :  { %v6935_v36 = vpop.f32.mrf.mxu1  ;;  %7229 = vmatprep.subr.bf16.mxu1 %v10267_v48  ;;  %v13062_v13 = vadd.f32 %v6933_v52, %v6893_v2  ;;  %v6895_v16 = vadd.f32 %v6894_v5, %v12861_v34  ;;  %7218 = vmatprep.mubr.bf16.mxu0 %v11347_v6  ;;  %v10279_v6 = vld [vmem:[%s14866_s1 + $0x28c] ss:$16 sps:$4 sm:$0xff]   ;;  %v10289_v25 = vld [vmem:[%s14866_s1 + $0x248] ss:$16 sps:$4 sm:$0xff]  }
 0x208   :  { %7259 = vmatprep.mubr.bf16.mxu1 %v11360_v12  ;;  %v6896_v22 = vpop.f32.mrf.mxu0  ;;  %v10274_v12 = vld [vmem:[%s14866_s1 + $0x88] ss:$16 sps:$4 sm:$0xff]   ;;  %v10294_v48 = vld [vmem:[%s14866_s1 + $0x2c] ss:$16 sps:$4 sm:$0xff]  }
 0x209   :  { %v6937_v59 = vpop.f32.mrf.mxu1  ;;  %v13073_v23 = vadd.f32 %v6935_v36, %v6895_v16  ;;  %7189 = vmatpush1.bf16.msra.mxu0 %v10262_v32  ;;  %v10297_v32 = vld [vmem:[%s14866_s1 + $0x22c] ss:$16 sps:$4 sm:$0xff]   ;;  %v10295_v60 = vld [vmem:[%s14866_s1 + $0x228] ss:$16 sps:$4 sm:$0xff]  }
 0x20a   :  { %7230 = vmatpush1.bf16.msra.mxu1 %v10265_v54  ;;  %v6897_v39 = vpop.f32.mrf.mxu0  ;;  %7190 = vmatprep.subr.bf16.mxu0 %v10270_v7  ;;  %v10292_v54 = vld [vmem:[%s14866_s1 + $0x28] ss:$16 sps:$4 sm:$0xff]   ;;  %v10300_v52 = vld [vmem:[%s14866_s1 + $0xc] ss:$16 sps:$4 sm:$0xff]  }
 0x20b   :  { %v6938_v34 = vpop.f32.mrf.mxu1  ;;  %7231 = vmatprep.subr.bf16.mxu1 %v10273_v9  ;;  %v10303_v2 = vld [vmem:[%s14866_s1 + $0x20c] ss:$16 sps:$4 sm:$0xff]   ;;  %v10298_v5 = vld [vmem:[%s14866_s1 + $0x8] ss:$16 sps:$4 sm:$0xff]  }
 0x20c   :  { %v10301_v36 = vld [vmem:[%s14866_s1 + $0x208] ss:$16 sps:$4 sm:$0xff]   ;;  %v10306_v7 = vld [vmem:[%s14866_s1 + $0x1ec] ss:$16 sps:$4 sm:$0xff]  }
 0x20d   :  { %7191 = vmatpush1.bf16.msra.mxu0 %v10268_v21  ;;  %v10309_v9 = vld [vmem:[%s14866_s1 + $0x3ec] ss:$16 sps:$4 sm:$0xff]   ;;  %v10304_v16 = vld [vmem:[%s14866_s1 + $0x1e8] ss:$16 sps:$4 sm:$0xff]  }
 0x20e   :  { %7232 = vmatpush1.bf16.msra.mxu1 %v10271_v17  ;;  %7192 = vmatprep.subr.bf16.mxu0 %v10276_v31  ;;  %v10307_v21 = vld [vmem:[%s14866_s1 + $0x3e8] ss:$16 sps:$4 sm:$0xff]   ;;  %v10312_v17 = vld [vmem:[%s14866_s1 + $0x1cc] ss:$16 sps:$4 sm:$0xff]  }
 0x20f   :  { %7233 = vmatprep.subr.bf16.mxu1 %v10279_v6  ;;  %v10315_v22 = vld [vmem:[%s14866_s1 + $0x3cc] ss:$16 sps:$4 sm:$0xff]   ;;  %v10310_v59 = vld [vmem:[%s14866_s1 + $0x1c8] ss:$16 sps:$4 sm:$0xff]  }
 0x210   :  { %v10313_v39 = vld [vmem:[%s14866_s1 + $0x3c8] ss:$16 sps:$4 sm:$0xff]   ;;  %v10318_v34 = vld [vmem:[%s14866_s1 + $0x1ac] ss:$16 sps:$4 sm:$0xff]  }
 0x211   :  { %7193 = vmatpush1.bf16.msra.mxu0 %v10274_v12  ;;  %v10321_v31 = vld [vmem:[%s14866_s1 + $0x3ac] ss:$16 sps:$4 sm:$0xff]   ;;  %v10316_v6 = vld [vmem:[%s14866_s1 + $0x1a8] ss:$16 sps:$4 sm:$0xff]  }
 0x212   :  { %7234 = vmatpush1.bf16.msra.mxu1 %v10277_v35  ;;  %7194 = vmatprep.subr.bf16.mxu0 %v10282_v14  ;;  %v10319_v12 = vld [vmem:[%s14866_s1 + $0x3a8] ss:$16 sps:$4 sm:$0xff]   ;;  %v10324_v35 = vld [vmem:[%s14866_s1 + $0x18c] ss:$16 sps:$4 sm:$0xff]  }
 0x213   :  { %7235 = vmatprep.subr.bf16.mxu1 %v10285_v38  ;;  %v10327_v14 = vld [vmem:[%s14866_s1 + $0x38c] ss:$16 sps:$4 sm:$0xff]   ;;  %v10322_v38 = vld [vmem:[%s14866_s1 + $0x188] ss:$16 sps:$4 sm:$0xff]  }
 0x215   :  { %7195 = vmatpush1.bf16.msra.mxu0 %v10280_v47  ;;  %v10325_v47 = vld [vmem:[%s14866_s1 + $0x388] ss:$16 sps:$4 sm:$0xff]  }
 0x216   :  { %7236 = vmatpush1.bf16.msra.mxu1 %v10283_v41  ;;  %7196 = vmatprep.subr.bf16.mxu0 %v10288_v55  ;;  %v10330_v41 = vld [vmem:[%s14866_s1 + $0x16c] ss:$16 sps:$4 sm:$0xff]  }
 0x217   :  { %7237 = vmatprep.subr.bf16.mxu1 %v10291_v42  ;;  %v10333_v55 = vld [vmem:[%s14866_s1 + $0x36c] ss:$16 sps:$4 sm:$0xff]   ;;  %v10328_v42 = vld [vmem:[%s14866_s1 + $0x168] ss:$16 sps:$4 sm:$0xff]  }
 0x219   :  { %7197 = vmatpush1.bf16.msra.mxu0 %v10286_v43  ;;  %v10331_v43 = vld [vmem:[%s14866_s1 + $0x368] ss:$16 sps:$4 sm:$0xff]  }
 0x21a   :  { %7238 = vmatpush1.bf16.msra.mxu1 %v10289_v25  ;;  %7198 = vmatprep.subr.bf16.mxu0 %v10294_v48  ;;  %v10336_v25 = vld [vmem:[%s14866_s1 + $0x14c] ss:$16 sps:$4 sm:$0xff]  }
 0x21b   :  { %7239 = vmatprep.subr.bf16.mxu1 %v10297_v32  ;;  %v10339_v48 = vld [vmem:[%s14866_s1 + $0x34c] ss:$16 sps:$4 sm:$0xff]   ;;  %v10334_v32 = vld [vmem:[%s14866_s1 + $0x148] ss:$16 sps:$4 sm:$0xff]  }
 0x21d   :  { %7199 = vmatpush1.bf16.msra.mxu0 %v10292_v54  ;;  %v10337_v54 = vld [vmem:[%s14866_s1 + $0x348] ss:$16 sps:$4 sm:$0xff]  }
 0x21e   :  { %7240 = vmatpush1.bf16.msra.mxu1 %v10295_v60  ;;  %7200 = vmatprep.subr.bf16.mxu0 %v10300_v52  ;;  %v10342_v60 = vld [vmem:[%s14866_s1 + $0x12c] ss:$16 sps:$4 sm:$0xff]  }
 0x21f   :  { %7241 = vmatprep.subr.bf16.mxu1 %v10303_v2  ;;  %v10345_v52 = vld [vmem:[%s14866_s1 + $0x32c] ss:$16 sps:$4 sm:$0xff]   ;;  %v10340_v2 = vld [vmem:[%s14866_s1 + $0x128] ss:$16 sps:$4 sm:$0xff]  }
 0x221   :  { %7201 = vmatpush1.bf16.msra.mxu0 %v10298_v5  ;;  %v10343_v5 = vld [vmem:[%s14866_s1 + $0x328] ss:$16 sps:$4 sm:$0xff]  }
 0x222   :  { %7242 = vmatpush1.bf16.msra.mxu1 %v10301_v36  ;;  %7202 = vmatprep.subr.bf16.mxu0 %v10306_v7  ;;  %v10348_v36 = vld [vmem:[%s14866_s1 + $0x10c] ss:$16 sps:$4 sm:$0xff]  }
 0x223   :  { %7243 = vmatprep.subr.bf16.mxu1 %v10309_v9  ;;  %v10351_v7 = vld [vmem:[%s14866_s1 + $0x30c] ss:$16 sps:$4 sm:$0xff]   ;;  %v10346_v9 = vld [vmem:[%s14866_s1 + $0x108] ss:$16 sps:$4 sm:$0xff]  }
 0x225   :  { %7203 = vmatpush2.bf16.msra.mxu0 %v10304_v16  ;;  %v10349_v16 = vld [vmem:[%s14866_s1 + $0x308] ss:$16 sps:$4 sm:$0xff]  }
 0x226   :  { %7244 = vmatpush2.bf16.msra.mxu1 %v10307_v21  ;;  %7204 = vmatprep.subr.bf16.mxu0 %v10312_v17  ;;  %v10354_v21 = vld [vmem:[%s14866_s1 + $0x4ec] ss:$16 sps:$4 sm:$0xff]  }
 0x227   :  { %7245 = vmatprep.subr.bf16.mxu1 %v10315_v22  ;;  %v10357_v17 = vld [vmem:[%s14866_s1 + $0x6ec] ss:$16 sps:$4 sm:$0xff]   ;;  %v10352_v22 = vld [vmem:[%s14866_s1 + $0x4e8] ss:$16 sps:$4 sm:$0xff]  }
 0x229   :  { %7205 = vmatpush2.bf16.msra.mxu0 %v10310_v59  ;;  %v10355_v59 = vld [vmem:[%s14866_s1 + $0x6e8] ss:$16 sps:$4 sm:$0xff]  }
 0x22a   :  { %7246 = vmatpush2.bf16.msra.mxu1 %v10313_v39  ;;  %7206 = vmatprep.subr.bf16.mxu0 %v10318_v34  ;;  %v10360_v39 = vld [vmem:[%s14866_s1 + $0x4cc] ss:$16 sps:$4 sm:$0xff]  }
 0x22b   :  { %7247 = vmatprep.subr.bf16.mxu1 %v10321_v31  ;;  %v10363_v34 = vld [vmem:[%s14866_s1 + $0x6cc] ss:$16 sps:$4 sm:$0xff]   ;;  %v10358_v31 = vld [vmem:[%s14866_s1 + $0x4c8] ss:$16 sps:$4 sm:$0xff]  }
 0x22d   :  { %7207 = vmatpush2.bf16.msra.mxu0 %v10316_v6  ;;  %v10361_v6 = vld [vmem:[%s14866_s1 + $0x6c8] ss:$16 sps:$4 sm:$0xff]  }
 0x22e   :  { %7248 = vmatpush2.bf16.msra.mxu1 %v10319_v12  ;;  %7208 = vmatprep.subr.bf16.mxu0 %v10324_v35 }
 0x22f   :  { %7249 = vmatprep.subr.bf16.mxu1 %v10327_v14 }
 0x231   :  { %7209 = vmatpush2.bf16.msra.mxu0 %v10322_v38 }
 0x232   :  { %7250 = vmatpush2.bf16.msra.mxu1 %v10325_v47  ;;  %7210 = vmatprep.subr.bf16.mxu0 %v10330_v41  ;;  %v10366_v41 = vld [vmem:[%s14866_s1 + $0x4ac] ss:$16 sps:$4 sm:$0xff]  }
 0x233   :  { %7251 = vmatprep.subr.bf16.mxu1 %v10333_v55  ;;  %v10369_v55 = vld [vmem:[%s14866_s1 + $0x6ac] ss:$16 sps:$4 sm:$0xff]  }
 0x235   :  { %7211 = vmatpush2.bf16.msra.mxu0 %v10328_v42 }
 0x236   :  { %7252 = vmatpush2.bf16.msra.mxu1 %v10331_v43  ;;  %7212 = vmatprep.subr.bf16.mxu0 %v10336_v25 }
 0x237   :  { %7253 = vmatprep.subr.bf16.mxu1 %v10339_v48 }
 0x239   :  { %7213 = vmatpush2.bf16.msra.mxu0 %v10334_v32 }
 0x23a   :  { %7254 = vmatpush2.bf16.msra.mxu1 %v10337_v54  ;;  %7214 = vmatprep.subr.bf16.mxu0 %v10342_v60  ;;  %v10372_v54 = vld [vmem:[%s14866_s1 + $0x48c] ss:$16 sps:$4 sm:$0xff]   ;;  %v10373_v60 = vld [vmem:[%s14866_s1 + $0x688] ss:$16 sps:$4 sm:$0xff]  }
 0x23b   :  { %7255 = vmatprep.subr.bf16.mxu1 %v10345_v52  ;;  %v10378_v52 = vld [vmem:[%s14866_s1 + $0x46c] ss:$16 sps:$4 sm:$0xff]  }
 0x23d   :  { %7215 = vmatpush2.bf16.msra.mxu0 %v10340_v2  ;;  %v10381_v2 = vld [vmem:[%s14866_s1 + $0x66c] ss:$16 sps:$4 sm:$0xff]  }
 0x23e   :  { %7256 = vmatpush2.bf16.msra.mxu1 %v10343_v5  ;;  %7216 = vmatprep.subr.bf16.mxu0 %v10348_v36  ;;  %v10376_v5 = vld [vmem:[%s14866_s1 + $0x468] ss:$16 sps:$4 sm:$0xff]  }
 0x23f   :  { %7257 = vmatprep.subr.bf16.mxu1 %v10351_v7  ;;  %v10379_v36 = vld [vmem:[%s14866_s1 + $0x668] ss:$16 sps:$4 sm:$0xff]   ;;  %v10384_v7 = vld [vmem:[%s14866_s1 + $0x44c] ss:$16 sps:$4 sm:$0xff]  }
 0x241   :  { %7217 = vmatpush2.bf16.msra.mxu0 %v10346_v9  ;;  %v10387_v9 = vld [vmem:[%s14866_s1 + $0x64c] ss:$16 sps:$4 sm:$0xff]  }
 0x242   :  { %7258 = vmatpush2.bf16.msra.mxu1 %v10349_v16  ;;  %7268 = vmatprep.subr.bf16.mxu0 %v10354_v21  ;;  %v10382_v16 = vld [vmem:[%s14866_s1 + $0x448] ss:$16 sps:$4 sm:$0xff]  }
 0x243   :  { %7309 = vmatprep.subr.bf16.mxu1 %v10357_v17  ;;  %v10385_v21 = vld [vmem:[%s14866_s1 + $0x648] ss:$16 sps:$4 sm:$0xff]   ;;  %v10390_v17 = vld [vmem:[%s14866_s1 + $0x42c] ss:$16 sps:$4 sm:$0xff]  }
 0x244   :  { %v6974_v12 = vpop.f32.mrf.mxu0  ;;  %7219 = vmatmul.mubr.bf16.vlgmr.msra.gmra.mxu0 %v11394_v24 }
 0x245   :  { %v7015_v35 = vpop.f32.mrf.mxu1  ;;  %7260 = vmatmul.mubr.bf16.vlgmr.msra.gmra.mxu1 %v11407_v28  ;;  %v6975_v14 = vadd.f32 %v6974_v12, %v13062_v13  ;;  %7269 = vmatpush1.bf16.msra.mxu0 %v10352_v22  ;;  %v10364_v28 = vld [vmem:[%s14866_s1 + $0x4a8] ss:$16 sps:$4 sm:$0xff]   ;;  %v10393_v22 = vld [vmem:[%s14866_s1 + $0x62c] ss:$16 sps:$4 sm:$0xff]  }
 0x246   :  { %7310 = vmatpush1.bf16.msra.mxu1 %v10355_v59  ;;  %v6976_v38 = vpop.f32.mrf.mxu0  ;;  %7270 = vmatprep.subr.bf16.mxu0 %v10360_v39  ;;  %v10367_v13 = vld [vmem:[%s14866_s1 + $0x6a8] ss:$16 sps:$4 sm:$0xff]  }
 0x247   :  { %v7017_v47 = vpop.f32.mrf.mxu1  ;;  %7311 = vmatprep.subr.bf16.mxu1 %v10363_v34  ;;  %v13264_v42 = vadd.f32 %v7015_v35, %v6975_v14  ;;  %v6977_v24 = vadd.f32 %v6976_v38, %v13073_v23  ;;  %7300 = vmatprep.mubr.bf16.mxu0 %v11403_v27  ;;  %v10375_v27 = vld [vmem:[%s14866_s1 + $0x68c] ss:$16 sps:$4 sm:$0xff]   ;;  %v10388_v59 = vld [vmem:[%s14866_s1 + $0x428] ss:$16 sps:$4 sm:$0xff]  }
 0x248   :  { %7341 = vmatprep.mubr.bf16.mxu1 %v11423_v33  ;;  %v6978_v43 = vpop.f32.mrf.mxu0  ;;  %v10370_v33 = vld [vmem:[%s14866_s1 + $0x488] ss:$16 sps:$4 sm:$0xff]   ;;  %v10396_v34 = vld [vmem:[%s14866_s1 + $0x40c] ss:$16 sps:$4 sm:$0xff]  }
 0x249   :  { %v7019_v25 = vpop.f32.mrf.mxu1  ;;  %v13275_v48 = vadd.f32 %v7017_v47, %v6977_v24  ;;  %7271 = vmatpush1.bf16.msra.mxu0 %v10358_v31  ;;  %v10391_v39 = vld [vmem:[%s14866_s1 + $0x628] ss:$16 sps:$4 sm:$0xff]   ;;  %v10399_v31 = vld [vmem:[%s14866_s1 + $0x60c] ss:$16 sps:$4 sm:$0xff]  }
 0x24a   :  { %7312 = vmatpush1.bf16.msra.mxu1 %v10361_v6  ;;  %v6979_v32 = vpop.f32.mrf.mxu0  ;;  %7272 = vmatprep.subr.bf16.mxu0 %v10366_v41  ;;  %v10394_v6 = vld [vmem:[%s14866_s1 + $0x408] ss:$16 sps:$4 sm:$0xff]   ;;  %v10402_v35 = vld [vmem:[%s14866_s1 + $0x5ec] ss:$16 sps:$4 sm:$0xff]  }
 0x24b   :  { %v7020_v23 = vpop.f32.mrf.mxu1  ;;  %7313 = vmatprep.subr.bf16.mxu1 %v10369_v55  ;;  %v10397_v12 = vld [vmem:[%s14866_s1 + $0x608] ss:$16 sps:$4 sm:$0xff]   ;;  %v10405_v14 = vld [vmem:[%s14866_s1 + $0x7ec] ss:$16 sps:$4 sm:$0xff]  }
 0x24c   :  { %v10400_v38 = vld [vmem:[%s14866_s1 + $0x5e8] ss:$16 sps:$4 sm:$0xff]   ;;  %v10408_v41 = vld [vmem:[%s14866_s1 + $0x5cc] ss:$16 sps:$4 sm:$0xff]  }
 0x24d   :  { %7273 = vmatpush1.bf16.msra.mxu0 %v10364_v28  ;;  %v10403_v47 = vld [vmem:[%s14866_s1 + $0x7e8] ss:$16 sps:$4 sm:$0xff]   ;;  %v10411_v55 = vld [vmem:[%s14866_s1 + $0x7cc] ss:$16 sps:$4 sm:$0xff]  }
 0x24e   :  { %7314 = vmatpush1.bf16.msra.mxu1 %v10367_v13  ;;  %7274 = vmatprep.subr.bf16.mxu0 %v10372_v54  ;;  %v10406_v24 = vld [vmem:[%s14866_s1 + $0x5c8] ss:$16 sps:$4 sm:$0xff]   ;;  %v10414_v13 = vld [vmem:[%s14866_s1 + $0x5ac] ss:$16 sps:$4 sm:$0xff]  }
 0x24f   :  { %7315 = vmatprep.subr.bf16.mxu1 %v10375_v27  ;;  %v10409_v28 = vld [vmem:[%s14866_s1 + $0x7c8] ss:$16 sps:$4 sm:$0xff]   ;;  %v10417_v43 = vld [vmem:[%s14866_s1 + $0x7ac] ss:$16 sps:$4 sm:$0xff]  }
 0x250   :  { %v10412_v25 = vld [vmem:[%s14866_s1 + $0x5a8] ss:$16 sps:$4 sm:$0xff]   ;;  %v10420_v23 = vld [vmem:[%s14866_s1 + $0x58c] ss:$16 sps:$4 sm:$0xff]  }
 0x251   :  { %7275 = vmatpush1.bf16.msra.mxu0 %v10370_v33  ;;  %v10415_v32 = vld [vmem:[%s14866_s1 + $0x7a8] ss:$16 sps:$4 sm:$0xff]   ;;  %v10423_v54 = vld [vmem:[%s14866_s1 + $0x78c] ss:$16 sps:$4 sm:$0xff]  }
 0x252   :  { %7316 = vmatpush1.bf16.msra.mxu1 %v10373_v60  ;;  %7276 = vmatprep.subr.bf16.mxu0 %v10378_v52  ;;  %v10418_v27 = vld [vmem:[%s14866_s1 + $0x588] ss:$16 sps:$4 sm:$0xff]   ;;  %v10426_v60 = vld [vmem:[%s14866_s1 + $0x56c] ss:$16 sps:$4 sm:$0xff]  }
 0x253   :  { %7317 = vmatprep.subr.bf16.mxu1 %v10381_v2  ;;  %v10421_v33 = vld [vmem:[%s14866_s1 + $0x788] ss:$16 sps:$4 sm:$0xff]   ;;  %v10429_v52 = vld [vmem:[%s14866_s1 + $0x76c] ss:$16 sps:$4 sm:$0xff]  }
 0x254   :  { %v10424_v2 = vld [vmem:[%s14866_s1 + $0x568] ss:$16 sps:$4 sm:$0xff]  }
 0x255   :  { %7277 = vmatpush1.bf16.msra.mxu0 %v10376_v5  ;;  %v10427_v5 = vld [vmem:[%s14866_s1 + $0x768] ss:$16 sps:$4 sm:$0xff]  }
 0x256   :  { %7318 = vmatpush1.bf16.msra.mxu1 %v10379_v36  ;;  %7278 = vmatprep.subr.bf16.mxu0 %v10384_v7  ;;  %v10432_v36 = vld [vmem:[%s14866_s1 + $0x54c] ss:$16 sps:$4 sm:$0xff]  }
 0x257   :  { %7319 = vmatprep.subr.bf16.mxu1 %v10387_v9  ;;  %v10435_v7 = vld [vmem:[%s14866_s1 + $0x74c] ss:$16 sps:$4 sm:$0xff]   ;;  %v10430_v9 = vld [vmem:[%s14866_s1 + $0x548] ss:$16 sps:$4 sm:$0xff]  }
 0x259   :  { %7279 = vmatpush1.bf16.msra.mxu0 %v10382_v16  ;;  %v10433_v16 = vld [vmem:[%s14866_s1 + $0x748] ss:$16 sps:$4 sm:$0xff]  }
 0x25a   :  { %7320 = vmatpush1.bf16.msra.mxu1 %v10385_v21  ;;  %7280 = vmatprep.subr.bf16.mxu0 %v10390_v17  ;;  %v10438_v21 = vld [vmem:[%s14866_s1 + $0x52c] ss:$16 sps:$4 sm:$0xff]  }
 0x25b   :  { %7321 = vmatprep.subr.bf16.mxu1 %v10393_v22  ;;  %v10441_v17 = vld [vmem:[%s14866_s1 + $0x72c] ss:$16 sps:$4 sm:$0xff]   ;;  %v10436_v22 = vld [vmem:[%s14866_s1 + $0x528] ss:$16 sps:$4 sm:$0xff]  }
 0x25d   :  { %7281 = vmatpush1.bf16.msra.mxu0 %v10388_v59  ;;  %v10439_v59 = vld [vmem:[%s14866_s1 + $0x728] ss:$16 sps:$4 sm:$0xff]  }
 0x25e   :  { %7322 = vmatpush1.bf16.msra.mxu1 %v10391_v39  ;;  %7282 = vmatprep.subr.bf16.mxu0 %v10396_v34  ;;  %v10444_v39 = vld [vmem:[%s14866_s1 + $0x50c] ss:$16 sps:$4 sm:$0xff]  }
 0x25f   :  { %7323 = vmatprep.subr.bf16.mxu1 %v10399_v31  ;;  %v10447_v34 = vld [vmem:[%s14866_s1 + $0x70c] ss:$16 sps:$4 sm:$0xff]   ;;  %v10442_v31 = vld [vmem:[%s14866_s1 + $0x508] ss:$16 sps:$4 sm:$0xff]  }
 0x261   :  { %7283 = vmatpush1.bf16.msra.mxu0 %v10394_v6  ;;  %v10445_v6 = vld [vmem:[%s14866_s1 + $0x708] ss:$16 sps:$4 sm:$0xff]  }
 0x262   :  { %7324 = vmatpush1.bf16.msra.mxu1 %v10397_v12  ;;  %7284 = vmatprep.subr.bf16.mxu0 %v10402_v35  ;;  %v10450_v12 = vld [vmem:[%s14866_s1 + $0x8ec] ss:$16 sps:$4 sm:$0xff]  }
 0x263   :  { %7325 = vmatprep.subr.bf16.mxu1 %v10405_v14  ;;  %v10453_v35 = vld [vmem:[%s14866_s1 + $0xaec] ss:$16 sps:$4 sm:$0xff]   ;;  %v10448_v14 = vld [vmem:[%s14866_s1 + $0x8e8] ss:$16 sps:$4 sm:$0xff]  }
 0x265   :  { %7285 = vmatpush2.bf16.msra.mxu0 %v10400_v38  ;;  %v10451_v38 = vld [vmem:[%s14866_s1 + $0xae8] ss:$16 sps:$4 sm:$0xff]  }
 0x266   :  { %7326 = vmatpush2.bf16.msra.mxu1 %v10403_v47  ;;  %7286 = vmatprep.subr.bf16.mxu0 %v10408_v41  ;;  %v10456_v47 = vld [vmem:[%s14866_s1 + $0x8cc] ss:$16 sps:$4 sm:$0xff]  }
 0x267   :  { %7327 = vmatprep.subr.bf16.mxu1 %v10411_v55  ;;  %v10459_v41 = vld [vmem:[%s14866_s1 + $0xacc] ss:$16 sps:$4 sm:$0xff]  }
 0x269   :  { %7287 = vmatpush2.bf16.msra.mxu0 %v10406_v24 }
 0x26a   :  { %7328 = vmatpush2.bf16.msra.mxu1 %v10409_v28  ;;  %7288 = vmatprep.subr.bf16.mxu0 %v10414_v13  ;;  %v10454_v13 = vld [vmem:[%s14866_s1 + $0x8c8] ss:$16 sps:$4 sm:$0xff]  }
 0x26b   :  { %7329 = vmatprep.subr.bf16.mxu1 %v10417_v43  ;;  %v10457_v43 = vld [vmem:[%s14866_s1 + $0xac8] ss:$16 sps:$4 sm:$0xff]  }
 0x26d   :  { %7289 = vmatpush2.bf16.msra.mxu0 %v10412_v25 }
 0x26e   :  { %7330 = vmatpush2.bf16.msra.mxu1 %v10415_v32  ;;  %7290 = vmatprep.subr.bf16.mxu0 %v10420_v23 }
 0x26f   :  { %7331 = vmatprep.subr.bf16.mxu1 %v10423_v54 }
 0x271   :  { %7291 = vmatpush2.bf16.msra.mxu0 %v10418_v27 }
 0x272   :  { %7332 = vmatpush2.bf16.msra.mxu1 %v10421_v33  ;;  %7292 = vmatprep.subr.bf16.mxu0 %v10426_v60  ;;  %v10460_v60 = vld [vmem:[%s14866_s1 + $0x8a8] ss:$16 sps:$4 sm:$0xff]  }
 0x273   :  { %7333 = vmatprep.subr.bf16.mxu1 %v10429_v52  ;;  %v10463_v52 = vld [vmem:[%s14866_s1 + $0xaa8] ss:$16 sps:$4 sm:$0xff]  }
 0x275   :  { %7293 = vmatpush2.bf16.msra.mxu0 %v10424_v2 }
 0x276   :  { %7334 = vmatpush2.bf16.msra.mxu1 %v10427_v5  ;;  %7294 = vmatprep.subr.bf16.mxu0 %v10432_v36  ;;  %v10466_v5 = vld [vmem:[%s14866_s1 + $0x888] ss:$16 sps:$4 sm:$0xff]  }
 0x277   :  { %7335 = vmatprep.subr.bf16.mxu1 %v10435_v7  ;;  %v10469_v36 = vld [vmem:[%s14866_s1 + $0xa88] ss:$16 sps:$4 sm:$0xff]   ;;  %v10474_v7 = vld [vmem:[%s14866_s1 + $0x86c] ss:$16 sps:$4 sm:$0xff]  }
 0x279   :  { %7295 = vmatpush2.bf16.msra.mxu0 %v10430_v9  ;;  %v10477_v9 = vld [vmem:[%s14866_s1 + $0xa6c] ss:$16 sps:$4 sm:$0xff]  }
 0x27a   :  { %7336 = vmatpush2.bf16.msra.mxu1 %v10433_v16  ;;  %7296 = vmatprep.subr.bf16.mxu0 %v10438_v21  ;;  %v10472_v16 = vld [vmem:[%s14866_s1 + $0x868] ss:$16 sps:$4 sm:$0xff]  }
 0x27b   :  { %7337 = vmatprep.subr.bf16.mxu1 %v10441_v17  ;;  %v10475_v21 = vld [vmem:[%s14866_s1 + $0xa68] ss:$16 sps:$4 sm:$0xff]   ;;  %v10480_v17 = vld [vmem:[%s14866_s1 + $0x84c] ss:$16 sps:$4 sm:$0xff]  }
 0x27d   :  { %7297 = vmatpush2.bf16.msra.mxu0 %v10436_v22  ;;  %v10483_v22 = vld [vmem:[%s14866_s1 + $0xa4c] ss:$16 sps:$4 sm:$0xff]  }
 0x27e   :  { %7338 = vmatpush2.bf16.msra.mxu1 %v10439_v59  ;;  %7298 = vmatprep.subr.bf16.mxu0 %v10444_v39  ;;  %v10478_v59 = vld [vmem:[%s14866_s1 + $0x848] ss:$16 sps:$4 sm:$0xff]  }
 0x27f   :  { %7339 = vmatprep.subr.bf16.mxu1 %v10447_v34  ;;  %v10481_v39 = vld [vmem:[%s14866_s1 + $0xa48] ss:$16 sps:$4 sm:$0xff]   ;;  %v10486_v34 = vld [vmem:[%s14866_s1 + $0x82c] ss:$16 sps:$4 sm:$0xff]  }
 0x281   :  { %7299 = vmatpush2.bf16.msra.mxu0 %v10442_v31  ;;  %v10489_v31 = vld [vmem:[%s14866_s1 + $0xa2c] ss:$16 sps:$4 sm:$0xff]  }
 0x282   :  { %7340 = vmatpush2.bf16.msra.mxu1 %v10445_v6  ;;  %7350 = vmatprep.subr.bf16.mxu0 %v10450_v12  ;;  %v10484_v6 = vld [vmem:[%s14866_s1 + $0x828] ss:$16 sps:$4 sm:$0xff]  }
 0x283   :  { %7391 = vmatprep.subr.bf16.mxu1 %v10453_v35  ;;  %v10487_v12 = vld [vmem:[%s14866_s1 + $0xa28] ss:$16 sps:$4 sm:$0xff]   ;;  %v10492_v35 = vld [vmem:[%s14866_s1 + $0x80c] ss:$16 sps:$4 sm:$0xff]  }
 0x284   :  { %v7056_v55 = vpop.f32.mrf.mxu0  ;;  %7301 = vmatmul.mubr.bf16.vlgmr.msra.gmra.mxu0 %v11606_v15  ;;  %v10462_v15 = vld [vmem:[%s14866_s1 + $0x8ac] ss:$16 sps:$4 sm:$0xff]  }
 0x285   :  { %v7097_v24 = vpop.f32.mrf.mxu1  ;;  %7342 = vmatmul.mubr.bf16.vlgmr.msra.gmra.mxu1 %v11616_v40  ;;  %v7057_v28 = vadd.f32 %v7056_v55, %v13264_v42  ;;  %7351 = vmatpush1.bf16.msra.mxu0 %v10448_v14  ;;  %v10465_v40 = vld [vmem:[%s14866_s1 + $0xaac] ss:$16 sps:$4 sm:$0xff]  }
 0x286   :  { %7392 = vmatpush1.bf16.msra.mxu1 %v10451_v38  ;;  %v7058_v25 = vpop.f32.mrf.mxu0  ;;  %7352 = vmatprep.subr.bf16.mxu0 %v10456_v47  ;;  %v10495_v14 = vld [vmem:[%s14866_s1 + $0xa0c] ss:$16 sps:$4 sm:$0xff]   ;;  %v10490_v38 = vld [vmem:[%s14866_s1 + $0x808] ss:$16 sps:$4 sm:$0xff]  }
 0x287   :  { %v7099_v32 = vpop.f32.mrf.mxu1  ;;  %7393 = vmatprep.subr.bf16.mxu1 %v10459_v41  ;;  %v13466_v42 = vadd.f32 %v7097_v24, %v7057_v28  ;;  %v7059_v23 = vadd.f32 %v7058_v25, %v13275_v48  ;;  %7382 = vmatprep.mubr.bf16.mxu0 %v11689_v0  ;;  %v10468_v0 = vld [vmem:[%s14866_s1 + $0x88c] ss:$16 sps:$4 sm:$0xff]   ;;  %v10493_v47 = vld [vmem:[%s14866_s1 + $0xa08] ss:$16 sps:$4 sm:$0xff]  }
 0x288   :  { %7423 = vmatprep.mubr.bf16.mxu1 %v11700_v3  ;;  %v7060_v54 = vpop.f32.mrf.mxu0  ;;  %v10471_v3 = vld [vmem:[%s14866_s1 + $0xa8c] ss:$16 sps:$4 sm:$0xff]   ;;  %v10496_v24 = vld [vmem:[%s14866_s1 + $0x9e8] ss:$16 sps:$4 sm:$0xff]  }
 0x289   :  { %v7101_v27 = vpop.f32.mrf.mxu1  ;;  %v13471_v33 = vadd.f32 %v7099_v32, %v7059_v23  ;;  %7353 = vmatpush1.bf16.msra.mxu0 %v10454_v13  ;;  %v10498_v41 = vld [vmem:[%s14866_s1 + $0x9ec] ss:$16 sps:$4 sm:$0xff]   ;;  %v10499_v28 = vld [vmem:[%s14866_s1 + $0xbe8] ss:$16 sps:$4 sm:$0xff]  }
 0x28a   :  { %7394 = vmatpush1.bf16.msra.mxu1 %v10457_v43  ;;  %v7061_v2 = vpop.f32.mrf.mxu0  ;;  %7354 = vmatprep.subr.bf16.mxu0 %v10462_v15  ;;  %v10501_v55 = vld [vmem:[%s14866_s1 + $0xbec] ss:$16 sps:$4 sm:$0xff]   ;;  %v10502_v25 = vld [vmem:[%s14866_s1 + $0x9c8] ss:$16 sps:$4 sm:$0xff]  }
 0x28b   :  { %v7102_v48 = vpop.f32.mrf.mxu1  ;;  %7395 = vmatprep.subr.bf16.mxu1 %v10465_v40  ;;  %v10504_v13 = vld [vmem:[%s14866_s1 + $0x9cc] ss:$16 sps:$4 sm:$0xff]   ;;  %v10505_v32 = vld [vmem:[%s14866_s1 + $0xbc8] ss:$16 sps:$4 sm:$0xff]  }
 0x28c   :  { %v10507_v43 = vld [vmem:[%s14866_s1 + $0xbcc] ss:$16 sps:$4 sm:$0xff]   ;;  %v10508_v23 = vld [vmem:[%s14866_s1 + $0x9a8] ss:$16 sps:$4 sm:$0xff]  }
 0x28d   :  { %7355 = vmatpush1.bf16.msra.mxu0 %v10460_v60  ;;  %v10510_v15 = vld [vmem:[%s14866_s1 + $0x9ac] ss:$16 sps:$4 sm:$0xff]   ;;  %v10511_v54 = vld [vmem:[%s14866_s1 + $0xba8] ss:$16 sps:$4 sm:$0xff]  }
 0x28e   :  { %7396 = vmatpush1.bf16.msra.mxu1 %v10463_v52  ;;  %7356 = vmatprep.subr.bf16.mxu0 %v10468_v0  ;;  %v10513_v40 = vld [vmem:[%s14866_s1 + $0xbac] ss:$16 sps:$4 sm:$0xff]   ;;  %v10514_v52 = vld [vmem:[%s14866_s1 + $0x988] ss:$16 sps:$4 sm:$0xff]  }
 0x28f   :  { %7397 = vmatprep.subr.bf16.mxu1 %v10471_v3  ;;  %v10516_v27 = vld [vmem:[%s14866_s1 + $0x98c] ss:$16 sps:$4 sm:$0xff]   ;;  %v10517_v2 = vld [vmem:[%s14866_s1 + $0xb88] ss:$16 sps:$4 sm:$0xff]  }
 0x290   :  { %v10519_v60 = vld [vmem:[%s14866_s1 + $0xb8c] ss:$16 sps:$4 sm:$0xff]   ;;  %v10520_v3 = vld [vmem:[%s14866_s1 + $0x968] ss:$16 sps:$4 sm:$0xff]  }
 0x291   :  { %7357 = vmatpush1.bf16.msra.mxu0 %v10466_v5  ;;  %v10522_v48 = vld [vmem:[%s14866_s1 + $0x96c] ss:$16 sps:$4 sm:$0xff]   ;;  %v10523_v5 = vld [vmem:[%s14866_s1 + $0xb68] ss:$16 sps:$4 sm:$0xff]  }
 0x292   :  { %7398 = vmatpush1.bf16.msra.mxu1 %v10469_v36  ;;  %7358 = vmatprep.subr.bf16.mxu0 %v10474_v7  ;;  %v10525_v0 = vld [vmem:[%s14866_s1 + $0xb6c] ss:$16 sps:$4 sm:$0xff]  }
 0x293   :  { %7399 = vmatprep.subr.bf16.mxu1 %v10477_v9  ;;  %v10528_v36 = vld [vmem:[%s14866_s1 + $0x94c] ss:$16 sps:$4 sm:$0xff]   ;;  %v10526_v9 = vld [vmem:[%s14866_s1 + $0x948] ss:$16 sps:$4 sm:$0xff]  }
 0x294   :  { %v10531_v7 = vld [vmem:[%s14866_s1 + $0xb4c] ss:$16 sps:$4 sm:$0xff]  }
 0x295   :  { %7359 = vmatpush1.bf16.msra.mxu0 %v10472_v16  ;;  %v10529_v16 = vld [vmem:[%s14866_s1 + $0xb48] ss:$16 sps:$4 sm:$0xff]  }
 0x296   :  { %7400 = vmatpush1.bf16.msra.mxu1 %v10475_v21  ;;  %7360 = vmatprep.subr.bf16.mxu0 %v10480_v17  ;;  %v10534_v21 = vld [vmem:[%s14866_s1 + $0x92c] ss:$16 sps:$4 sm:$0xff]  }
 0x297   :  { %7401 = vmatprep.subr.bf16.mxu1 %v10483_v22  ;;  %v10537_v17 = vld [vmem:[%s14866_s1 + $0xb2c] ss:$16 sps:$4 sm:$0xff]   ;;  %v10532_v22 = vld [vmem:[%s14866_s1 + $0x928] ss:$16 sps:$4 sm:$0xff]  }
 0x299   :  { %7361 = vmatpush1.bf16.msra.mxu0 %v10478_v59  ;;  %v10535_v59 = vld [vmem:[%s14866_s1 + $0xb28] ss:$16 sps:$4 sm:$0xff]  }
 0x29a   :  { %7402 = vmatpush1.bf16.msra.mxu1 %v10481_v39  ;;  %7362 = vmatprep.subr.bf16.mxu0 %v10486_v34  ;;  %v10540_v39 = vld [vmem:[%s14866_s1 + $0x90c] ss:$16 sps:$4 sm:$0xff]  }
 0x29b   :  { %7403 = vmatprep.subr.bf16.mxu1 %v10489_v31  ;;  %v10543_v34 = vld [vmem:[%s14866_s1 + $0xb0c] ss:$16 sps:$4 sm:$0xff]   ;;  %v10538_v31 = vld [vmem:[%s14866_s1 + $0x908] ss:$16 sps:$4 sm:$0xff]  }
 0x29d   :  { %7363 = vmatpush1.bf16.msra.mxu0 %v10484_v6  ;;  %v10541_v6 = vld [vmem:[%s14866_s1 + $0xb08] ss:$16 sps:$4 sm:$0xff]  }
 0x29e   :  { %7404 = vmatpush1.bf16.msra.mxu1 %v10487_v12  ;;  %7364 = vmatprep.subr.bf16.mxu0 %v10492_v35  ;;  %v10546_v12 = vld [vmem:[%s14866_s1 + $0xcec] ss:$16 sps:$4 sm:$0xff]  }
 0x29f   :  { %7405 = vmatprep.subr.bf16.mxu1 %v10495_v14  ;;  %v10549_v35 = vld [vmem:[%s14866_s1 + $0xeec] ss:$16 sps:$4 sm:$0xff]   ;;  %v10544_v14 = vld [vmem:[%s14866_s1 + $0xce8] ss:$16 sps:$4 sm:$0xff]  }
 0x2a1   :  { %7365 = vmatpush1.bf16.msra.mxu0 %v10490_v38  ;;  %v10547_v38 = vld [vmem:[%s14866_s1 + $0xee8] ss:$16 sps:$4 sm:$0xff]  }
 0x2a2   :  { %7406 = vmatpush1.bf16.msra.mxu1 %v10493_v47  ;;  %7366 = vmatprep.subr.bf16.mxu0 %v10498_v41  ;;  %v10552_v47 = vld [vmem:[%s14866_s1 + $0xccc] ss:$16 sps:$4 sm:$0xff]  }
 0x2a3   :  { %7407 = vmatprep.subr.bf16.mxu1 %v10501_v55  ;;  %v10555_v41 = vld [vmem:[%s14866_s1 + $0xecc] ss:$16 sps:$4 sm:$0xff]  }
 0x2a5   :  { %7367 = vmatpush2.bf16.msra.mxu0 %v10496_v24 }
 0x2a6   :  { %7408 = vmatpush2.bf16.msra.mxu1 %v10499_v28  ;;  %7368 = vmatprep.subr.bf16.mxu0 %v10504_v13  ;;  %v10550_v13 = vld [vmem:[%s14866_s1 + $0xcc8] ss:$16 sps:$4 sm:$0xff]  }
 0x2a7   :  { %7409 = vmatprep.subr.bf16.mxu1 %v10507_v43  ;;  %v10553_v43 = vld [vmem:[%s14866_s1 + $0xec8] ss:$16 sps:$4 sm:$0xff]  }
 0x2a9   :  { %7369 = vmatpush2.bf16.msra.mxu0 %v10502_v25 }
 0x2aa   :  { %7410 = vmatpush2.bf16.msra.mxu1 %v10505_v32  ;;  %7370 = vmatprep.subr.bf16.mxu0 %v10510_v15 }
 0x2ab   :  { %7411 = vmatprep.subr.bf16.mxu1 %v10513_v40 }
 0x2ad   :  { %7371 = vmatpush2.bf16.msra.mxu0 %v10508_v23 }
 0x2ae   :  { %7412 = vmatpush2.bf16.msra.mxu1 %v10511_v54  ;;  %7372 = vmatprep.subr.bf16.mxu0 %v10516_v27  ;;  %v10556_v27 = vld [vmem:[%s14866_s1 + $0xca8] ss:$16 sps:$4 sm:$0xff]  }
 0x2af   :  { %7413 = vmatprep.subr.bf16.mxu1 %v10519_v60  ;;  %v10559_v60 = vld [vmem:[%s14866_s1 + $0xea8] ss:$16 sps:$4 sm:$0xff]  }
 0x2b1   :  { %7373 = vmatpush2.bf16.msra.mxu0 %v10514_v52 }
 0x2b2   :  { %7414 = vmatpush2.bf16.msra.mxu1 %v10517_v2  ;;  %7374 = vmatprep.subr.bf16.mxu0 %v10522_v48  ;;  %v10562_v2 = vld [vmem:[%s14866_s1 + $0xc88] ss:$16 sps:$4 sm:$0xff]  }
 0x2b3   :  { %7415 = vmatprep.subr.bf16.mxu1 %v10525_v0  ;;  %v10565_v48 = vld [vmem:[%s14866_s1 + $0xe88] ss:$16 sps:$4 sm:$0xff]   ;;  %v10570_v0 = vld [vmem:[%s14866_s1 + $0xc6c] ss:$16 sps:$4 sm:$0xff]  }
 0x2b5   :  { %7375 = vmatpush2.bf16.msra.mxu0 %v10520_v3  ;;  %v10573_v3 = vld [vmem:[%s14866_s1 + $0xe6c] ss:$16 sps:$4 sm:$0xff]  }
 0x2b6   :  { %7416 = vmatpush2.bf16.msra.mxu1 %v10523_v5  ;;  %7376 = vmatprep.subr.bf16.mxu0 %v10528_v36  ;;  %v10568_v5 = vld [vmem:[%s14866_s1 + $0xc68] ss:$16 sps:$4 sm:$0xff]  }
 0x2b7   :  { %7417 = vmatprep.subr.bf16.mxu1 %v10531_v7  ;;  %v10571_v36 = vld [vmem:[%s14866_s1 + $0xe68] ss:$16 sps:$4 sm:$0xff]   ;;  %v10576_v7 = vld [vmem:[%s14866_s1 + $0xc4c] ss:$16 sps:$4 sm:$0xff]  }
 0x2b9   :  { %7377 = vmatpush2.bf16.msra.mxu0 %v10526_v9  ;;  %v10579_v9 = vld [vmem:[%s14866_s1 + $0xe4c] ss:$16 sps:$4 sm:$0xff]  }
 0x2ba   :  { %7418 = vmatpush2.bf16.msra.mxu1 %v10529_v16  ;;  %7378 = vmatprep.subr.bf16.mxu0 %v10534_v21  ;;  %v10574_v16 = vld [vmem:[%s14866_s1 + $0xc48] ss:$16 sps:$4 sm:$0xff]  }
 0x2bb   :  { %7419 = vmatprep.subr.bf16.mxu1 %v10537_v17  ;;  %v10577_v21 = vld [vmem:[%s14866_s1 + $0xe48] ss:$16 sps:$4 sm:$0xff]   ;;  %v10582_v17 = vld [vmem:[%s14866_s1 + $0xc2c] ss:$16 sps:$4 sm:$0xff]  }
 0x2bd   :  { %7379 = vmatpush2.bf16.msra.mxu0 %v10532_v22  ;;  %v10585_v22 = vld [vmem:[%s14866_s1 + $0xe2c] ss:$16 sps:$4 sm:$0xff]  }
 0x2be   :  { %7420 = vmatpush2.bf16.msra.mxu1 %v10535_v59  ;;  %7380 = vmatprep.subr.bf16.mxu0 %v10540_v39  ;;  %v10580_v59 = vld [vmem:[%s14866_s1 + $0xc28] ss:$16 sps:$4 sm:$0xff]  }
 0x2bf   :  { %7421 = vmatprep.subr.bf16.mxu1 %v10543_v34  ;;  %v10583_v39 = vld [vmem:[%s14866_s1 + $0xe28] ss:$16 sps:$4 sm:$0xff]   ;;  %v10588_v34 = vld [vmem:[%s14866_s1 + $0xc0c] ss:$16 sps:$4 sm:$0xff]  }
 0x2c1   :  { %7381 = vmatpush2.bf16.msra.mxu0 %v10538_v31  ;;  %v10591_v31 = vld [vmem:[%s14866_s1 + $0xe0c] ss:$16 sps:$4 sm:$0xff]  }
 0x2c2   :  { %7422 = vmatpush2.bf16.msra.mxu1 %v10541_v6  ;;  %7432 = vmatprep.subr.bf16.mxu0 %v10546_v12  ;;  %v10586_v6 = vld [vmem:[%s14866_s1 + $0xc08] ss:$16 sps:$4 sm:$0xff]  }
 0x2c3   :  { %7473 = vmatprep.subr.bf16.mxu1 %v10549_v35  ;;  %v10589_v12 = vld [vmem:[%s14866_s1 + $0xe08] ss:$16 sps:$4 sm:$0xff]   ;;  %v10594_v35 = vld [vmem:[%s14866_s1 + $0xdec] ss:$16 sps:$4 sm:$0xff]  }
 0x2c4   :  { %v7138_v55 = vpop.f32.mrf.mxu0  ;;  %7383 = vmatmul.mubr.bf16.vlgmr.msra.gmra.mxu0 %v11859_v58  ;;  %v10558_v58 = vld [vmem:[%s14866_s1 + $0xcac] ss:$16 sps:$4 sm:$0xff]  }
 0x2c5   :  { %v7179_v24 = vpop.f32.mrf.mxu1  ;;  %7424 = vmatmul.mubr.bf16.vlgmr.msra.gmra.mxu1 %v11875_v11  ;;  %v7139_v28 = vadd.f32 %v7138_v55, %v13466_v42  ;;  %7433 = vmatpush1.bf16.msra.mxu0 %v10544_v14  ;;  %v10561_v11 = vld [vmem:[%s14866_s1 + $0xeac] ss:$16 sps:$4 sm:$0xff]  }
 0x2c6   :  { %7474 = vmatpush1.bf16.msra.mxu1 %v10547_v38  ;;  %v7140_v25 = vpop.f32.mrf.mxu0  ;;  %7434 = vmatprep.subr.bf16.mxu0 %v10552_v47  ;;  %v10597_v14 = vld [vmem:[%s14866_s1 + $0xfec] ss:$16 sps:$4 sm:$0xff]   ;;  %v10592_v38 = vld [vmem:[%s14866_s1 + $0xde8] ss:$16 sps:$4 sm:$0xff]  }
 0x2c7   :  { %v7181_v32 = vpop.f32.mrf.mxu1  ;;  %7475 = vmatprep.subr.bf16.mxu1 %v10555_v41  ;;  %v13668_v42 = vadd.f32 %v7179_v24, %v7139_v28  ;;  %v7141_v15 = vadd.f32 %v7140_v25, %v13471_v33  ;;  %7464 = vmatprep.mubr.bf16.mxu0 %v11871_v10  ;;  %v10564_v10 = vld [vmem:[%s14866_s1 + $0xc8c] ss:$16 sps:$4 sm:$0xff]   ;;  %v10595_v47 = vld [vmem:[%s14866_s1 + $0xfe8] ss:$16 sps:$4 sm:$0xff]  }
 0x2c8   :  { %7505 = vmatprep.mubr.bf16.mxu1 %v11891_v19  ;;  %v7142_v40 = vpop.f32.mrf.mxu0  ;;  %v10567_v19 = vld [vmem:[%s14866_s1 + $0xe8c] ss:$16 sps:$4 sm:$0xff]   ;;  %v10598_v24 = vld [vmem:[%s14866_s1 + $0xdc8] ss:$16 sps:$4 sm:$0xff]  }
 0x2c9   :  { %v7183_v23 = vpop.f32.mrf.mxu1  ;;  %v13673_v54 = vadd.f32 %v7181_v32, %v7141_v15  ;;  %7435 = vmatpush1.bf16.msra.mxu0 %v10550_v13  ;;  %v10600_v41 = vld [vmem:[%s14866_s1 + $0xdcc] ss:$16 sps:$4 sm:$0xff]   ;;  %v10601_v28 = vld [vmem:[%s14866_s1 + $0xfc8] ss:$16 sps:$4 sm:$0xff]  }
 0x2ca   :  { %7476 = vmatpush1.bf16.msra.mxu1 %v10553_v43  ;;  %v7143_v52 = vpop.f32.mrf.mxu0  ;;  %7436 = vmatprep.subr.bf16.mxu0 %v10558_v58  ;;  %v10603_v55 = vld [vmem:[%s14866_s1 + $0xfcc] ss:$16 sps:$4 sm:$0xff]   ;;  %v10604_v25 = vld [vmem:[%s14866_s1 + $0xda8] ss:$16 sps:$4 sm:$0xff]  }
 0x2cb   :  { %v7184_v33 = vpop.f32.mrf.mxu1  ;;  %7477 = vmatprep.subr.bf16.mxu1 %v10561_v11  ;;  %v10606_v13 = vld [vmem:[%s14866_s1 + $0xdac] ss:$16 sps:$4 sm:$0xff]   ;;  %v10607_v32 = vld [vmem:[%s14866_s1 + $0xfa8] ss:$16 sps:$4 sm:$0xff]  }
 0x2cc   :  { %v10609_v43 = vld [vmem:[%s14866_s1 + $0xfac] ss:$16 sps:$4 sm:$0xff]   ;;  %v10610_v15 = vld [vmem:[%s14866_s1 + $0xd88] ss:$16 sps:$4 sm:$0xff]  }
 0x2cd   :  { %7437 = vmatpush1.bf16.msra.mxu0 %v10556_v27  ;;  %v10612_v58 = vld [vmem:[%s14866_s1 + $0xd8c] ss:$16 sps:$4 sm:$0xff]   ;;  %v10613_v40 = vld [vmem:[%s14866_s1 + $0xf88] ss:$16 sps:$4 sm:$0xff]  }
 0x2ce   :  { %7478 = vmatpush1.bf16.msra.mxu1 %v10559_v60  ;;  %7438 = vmatprep.subr.bf16.mxu0 %v10564_v10  ;;  %v10615_v11 = vld [vmem:[%s14866_s1 + $0xf8c] ss:$16 sps:$4 sm:$0xff]   ;;  %v10616_v60 = vld [vmem:[%s14866_s1 + $0xd68] ss:$16 sps:$4 sm:$0xff]  }
 0x2cf   :  { %7479 = vmatprep.subr.bf16.mxu1 %v10567_v19  ;;  %v10618_v23 = vld [vmem:[%s14866_s1 + $0xd6c] ss:$16 sps:$4 sm:$0xff]   ;;  %v10619_v52 = vld [vmem:[%s14866_s1 + $0xf68] ss:$16 sps:$4 sm:$0xff]  }
 0x2d0   :  { %v10621_v27 = vld [vmem:[%s14866_s1 + $0xf6c] ss:$16 sps:$4 sm:$0xff]   ;;  %v10622_v19 = vld [vmem:[%s14866_s1 + $0xd48] ss:$16 sps:$4 sm:$0xff]  }
 0x2d1   :  { %7439 = vmatpush1.bf16.msra.mxu0 %v10562_v2  ;;  %v10624_v33 = vld [vmem:[%s14866_s1 + $0xd4c] ss:$16 sps:$4 sm:$0xff]   ;;  %v10625_v2 = vld [vmem:[%s14866_s1 + $0xf48] ss:$16 sps:$4 sm:$0xff]  }
 0x2d2   :  { %7480 = vmatpush1.bf16.msra.mxu1 %v10565_v48  ;;  %7440 = vmatprep.subr.bf16.mxu0 %v10570_v0  ;;  %v10627_v10 = vld [vmem:[%s14866_s1 + $0xf4c] ss:$16 sps:$4 sm:$0xff]  }
 0x2d3   :  { %7481 = vmatprep.subr.bf16.mxu1 %v10573_v3  ;;  %v10630_v48 = vld [vmem:[%s14866_s1 + $0xd2c] ss:$16 sps:$4 sm:$0xff]   ;;  %v10628_v3 = vld [vmem:[%s14866_s1 + $0xd28] ss:$16 sps:$4 sm:$0xff]  }
 0x2d4   :  { %v10633_v0 = vld [vmem:[%s14866_s1 + $0xf2c] ss:$16 sps:$4 sm:$0xff]  }
 0x2d5   :  { %7441 = vmatpush1.bf16.msra.mxu0 %v10568_v5  ;;  %v10631_v5 = vld [vmem:[%s14866_s1 + $0xf28] ss:$16 sps:$4 sm:$0xff]  }
 0x2d6   :  { %7482 = vmatpush1.bf16.msra.mxu1 %v10571_v36  ;;  %7442 = vmatprep.subr.bf16.mxu0 %v10576_v7  ;;  %v10636_v36 = vld [vmem:[%s14866_s1 + $0xd0c] ss:$16 sps:$4 sm:$0xff]  }
 0x2d7   :  { %7483 = vmatprep.subr.bf16.mxu1 %v10579_v9  ;;  %v10639_v7 = vld [vmem:[%s14866_s1 + $0xf0c] ss:$16 sps:$4 sm:$0xff]   ;;  %v10634_v9 = vld [vmem:[%s14866_s1 + $0xd08] ss:$16 sps:$4 sm:$0xff]  }
 0x2d9   :  { %7443 = vmatpush1.bf16.msra.mxu0 %v10574_v16  ;;  %v10637_v16 = vld [vmem:[%s14866_s1 + $0xf08] ss:$16 sps:$4 sm:$0xff]  }
 0x2da   :  { %7484 = vmatpush1.bf16.msra.mxu1 %v10577_v21  ;;  %7444 = vmatprep.subr.bf16.mxu0 %v10582_v17  ;;  %v1080_v21 = vsub.s32 2, %v11291_v46  ;;  %v10642_v17 = vld [vmem:[%s14866_s1 + $0x10ec] ss:$16 sps:$4 sm:$0xff]  }
 0x2db   :  { %7485 = vmatprep.subr.bf16.mxu1 %v10585_v22  ;;  %v10645_v22 = vld [vmem:[%s14866_s1 + $0x12ec] ss:$16 sps:$4 sm:$0xff]  }
 0x2dd   :  { %7445 = vmatpush1.bf16.msra.mxu0 %v10580_v59  ;;  %v1084_v59 = vsub.s32 3, %v11291_v46  ;;  %v10648_v46 = vld [vmem:[%s14866_s1 + $0x10cc] ss:$16 sps:$4 sm:$0xff]  }
 0x2de   :  { %7486 = vmatpush1.bf16.msra.mxu1 %v10583_v39  ;;  %7446 = vmatprep.subr.bf16.mxu0 %v10588_v34  ;;  %v11120_v39 = vld [vmem:[%s14867_s2] sm:$0xf] }
 0x2df   :  { %7487 = vmatprep.subr.bf16.mxu1 %v10591_v31  ;;  %v1081_v34 = vrot.slane %v11120_v39, %v1080_v21  ;;  %v10640_v31 = vld [vmem:[%s14866_s1 + $0x10e8] ss:$16 sps:$4 sm:$0xff]   ;;  %v10687_v21 = vld [vmem:[%s14866_s1 + $0x120c] ss:$16 sps:$4 sm:$0xff]  }
 0x2e1   :  { %7447 = vmatpush1.bf16.msra.mxu0 %v10586_v6  ;;  %v10643_v6 = vld [vmem:[%s14866_s1 + $0x12e8] ss:$16 sps:$4 sm:$0xff]  }
 0x2e2   :  { %7488 = vmatpush1.bf16.msra.mxu1 %v10589_v12  ;;  %7448 = vmatprep.subr.bf16.mxu0 %v10594_v35  ;;  %v10651_v12 = vld [vmem:[%s14866_s1 + $0x12cc] ss:$16 sps:$4 sm:$0xff]   ;;  %v1085_v35 = vrot.slane %v11120_v39, %v1084_v59 }
 0x2e3   :  { %7489 = vmatprep.subr.bf16.mxu1 %v10597_v14  ;;  %v10690_v59 = vld [vmem:[%s14866_s1 + $0x11ec] ss:$16 sps:$4 sm:$0xff]  }
 0x2e4   :  { %v10693_v39 = vld [vmem:[%s14866_s1 + $0x13ec] ss:$16 sps:$4 sm:$0xff]  }
 0x2e5   :  { %7449 = vmatpush2.bf16.msra.mxu0 %v10592_v38 }
 0x2e6   :  { %7490 = vmatpush2.bf16.msra.mxu1 %v10595_v47  ;;  %7450 = vmatprep.subr.bf16.mxu0 %v10600_v41  ;;  %v10646_v41 = vld [vmem:[%s14866_s1 + $0x10c8] ss:$16 sps:$4 sm:$0xff]  }
 0x2e7   :  { %7491 = vmatprep.subr.bf16.mxu1 %v10603_v55  ;;  %v10649_v55 = vld [vmem:[%s14866_s1 + $0x12c8] ss:$16 sps:$4 sm:$0xff]  }
 0x2e9   :  { %7451 = vmatpush2.bf16.msra.mxu0 %v10598_v24 }
 0x2ea   :  { %7492 = vmatpush2.bf16.msra.mxu1 %v10601_v28  ;;  %7452 = vmatprep.subr.bf16.mxu0 %v10606_v13 }
 0x2eb   :  { %7493 = vmatprep.subr.bf16.mxu1 %v10609_v43 }
 0x2ed   :  { %7453 = vmatpush2.bf16.msra.mxu0 %v10604_v25 }
 0x2ee   :  { %7494 = vmatpush2.bf16.msra.mxu1 %v10607_v32  ;;  %7454 = vmatprep.subr.bf16.mxu0 %v10612_v58 }
 0x2ef   :  { %7495 = vmatprep.subr.bf16.mxu1 %v10615_v11  ;;  %v10652_v11 = vld [vmem:[%s14866_s1 + $0x10a8] ss:$16 sps:$4 sm:$0xff]  }
 0x2f1   :  { %7455 = vmatpush2.bf16.msra.mxu0 %v10610_v15  ;;  %v10655_v15 = vld [vmem:[%s14866_s1 + $0x12a8] ss:$16 sps:$4 sm:$0xff]  }
 0x2f2   :  { %7496 = vmatpush2.bf16.msra.mxu1 %v10613_v40  ;;  %7456 = vmatprep.subr.bf16.mxu0 %v10618_v23 }
 0x2f3   :  { %7497 = vmatprep.subr.bf16.mxu1 %v10621_v27  ;;  %v10658_v27 = vld [vmem:[%s14866_s1 + $0x1088] ss:$16 sps:$4 sm:$0xff]  }
 0x2f5   :  { %7457 = vmatpush2.bf16.msra.mxu0 %v10616_v60  ;;  %v10661_v60 = vld [vmem:[%s14866_s1 + $0x1288] ss:$16 sps:$4 sm:$0xff]  }
 0x2f6   :  { %7498 = vmatpush2.bf16.msra.mxu1 %v10619_v52  ;;  %7458 = vmatprep.subr.bf16.mxu0 %v10624_v33  ;;  %v10666_v52 = vld [vmem:[%s14866_s1 + $0x106c] ss:$16 sps:$4 sm:$0xff]  }
 0x2f7   :  { %7499 = vmatprep.subr.bf16.mxu1 %v10627_v10  ;;  %v10669_v33 = vld [vmem:[%s14866_s1 + $0x126c] ss:$16 sps:$4 sm:$0xff]   ;;  %v10664_v10 = vld [vmem:[%s14866_s1 + $0x1068] ss:$16 sps:$4 sm:$0xff]  }
 0x2f9   :  { %7459 = vmatpush2.bf16.msra.mxu0 %v10622_v19  ;;  %v10667_v19 = vld [vmem:[%s14866_s1 + $0x1268] ss:$16 sps:$4 sm:$0xff]  }
 0x2fa   :  { %7500 = vmatpush2.bf16.msra.mxu1 %v10625_v2  ;;  %7460 = vmatprep.subr.bf16.mxu0 %v10630_v48  ;;  %v10672_v2 = vld [vmem:[%s14866_s1 + $0x104c] ss:$16 sps:$4 sm:$0xff]  }
 0x2fb   :  { %7501 = vmatprep.subr.bf16.mxu1 %v10633_v0  ;;  %v10675_v48 = vld [vmem:[%s14866_s1 + $0x124c] ss:$16 sps:$4 sm:$0xff]   ;;  %v10670_v0 = vld [vmem:[%s14866_s1 + $0x1048] ss:$16 sps:$4 sm:$0xff]  }
 0x2fd   :  { %7461 = vmatpush2.bf16.msra.mxu0 %v10628_v3  ;;  %v10673_v3 = vld [vmem:[%s14866_s1 + $0x1248] ss:$16 sps:$4 sm:$0xff]  }
 0x2fe   :  { %7502 = vmatpush2.bf16.msra.mxu1 %v10631_v5  ;;  %7462 = vmatprep.subr.bf16.mxu0 %v10636_v36  ;;  %v10678_v5 = vld [vmem:[%s14866_s1 + $0x102c] ss:$16 sps:$4 sm:$0xff]  }
 0x2ff   :  { %7503 = vmatprep.subr.bf16.mxu1 %v10639_v7  ;;  %v10681_v36 = vld [vmem:[%s14866_s1 + $0x122c] ss:$16 sps:$4 sm:$0xff]   ;;  %v10676_v7 = vld [vmem:[%s14866_s1 + $0x1028] ss:$16 sps:$4 sm:$0xff]  }
 0x301   :  { %7463 = vmatpush2.bf16.msra.mxu0 %v10634_v9  ;;  %v10679_v9 = vld [vmem:[%s14866_s1 + $0x1228] ss:$16 sps:$4 sm:$0xff]  }
 0x302   :  { %7504 = vmatpush2.bf16.msra.mxu1 %v10637_v16  ;;  %7514 = vmatprep.subr.bf16.mxu0 %v10642_v17  ;;  %v10684_v16 = vld [vmem:[%s14866_s1 + $0x100c] ss:$16 sps:$4 sm:$0xff]   ;;  %v10682_v17 = vld [vmem:[%s14866_s1 + $0x1008] ss:$16 sps:$4 sm:$0xff]  }
 0x303   :  { %7555 = vmatprep.subr.bf16.mxu1 %v10645_v22  ;;  %v10685_v22 = vld [vmem:[%s14866_s1 + $0x1208] ss:$16 sps:$4 sm:$0xff]  }
 0x304   :  { %v7220_v14 = vpop.f32.mrf.mxu0  ;;  %7465 = vmatmul.mubr.bf16.vlgmr.msra.gmra.mxu0 %v12100_v53  ;;  %v10654_v53 = vld [vmem:[%s14866_s1 + $0x10ac] ss:$16 sps:$4 sm:$0xff]  }
 0x305   :  { %v7261_v38 = vpop.f32.mrf.mxu1  ;;  %7506 = vmatmul.mubr.bf16.vlgmr.msra.gmra.mxu1 %v12126_v63  ;;  %v7221_v47 = vadd.f32 %v7220_v14, %v1081_v34  ;;  %7515 = vmatpush1.bf16.msra.mxu0 %v10640_v31  ;;  %v10657_v63 = vld [vmem:[%s14866_s1 + $0x12ac] ss:$16 sps:$4 sm:$0xff]   ;;  %v10688_v34 = vld [vmem:[%s14866_s1 + $0x11e8] ss:$16 sps:$4 sm:$0xff]  }
 0x306   :  { %7556 = vmatpush1.bf16.msra.mxu1 %v10643_v6  ;;  %v7222_v24 = vpop.f32.mrf.mxu0  ;;  %7516 = vmatprep.subr.bf16.mxu0 %v10648_v46  ;;  %v10691_v31 = vld [vmem:[%s14866_s1 + $0x13e8] ss:$16 sps:$4 sm:$0xff]   ;;  %v10696_v6 = vld [vmem:[%s14866_s1 + $0x11cc] ss:$16 sps:$4 sm:$0xff]  }
 0x307   :  { %v7263_v28 = vpop.f32.mrf.mxu1  ;;  %7557 = vmatprep.subr.bf16.mxu1 %v10651_v12  ;;  %v13874_v13 = vadd.f32 %v7261_v38, %v7221_v47  ;;  %v7223_v43 = vadd.f32 %v7222_v24, %v1085_v35  ;;  %7546 = vmatprep.mubr.bf16.mxu0 %v12122_v49  ;;  %v10660_v49 = vld [vmem:[%s14866_s1 + $0x108c] ss:$16 sps:$4 sm:$0xff]   ;;  %v10694_v12 = vld [vmem:[%s14866_s1 + $0x11c8] ss:$16 sps:$4 sm:$0xff]  }
 0x308   :  { %7587 = vmatprep.mubr.bf16.mxu1 %v12144_v8  ;;  %v7224_v25 = vpop.f32.mrf.mxu0  ;;  %v10663_v8 = vld [vmem:[%s14866_s1 + $0x128c] ss:$16 sps:$4 sm:$0xff]   ;;  %v10697_v35 = vld [vmem:[%s14866_s1 + $0x13c8] ss:$16 sps:$4 sm:$0xff]  }
 0x309   :  { %v7265_v32 = vpop.f32.mrf.mxu1  ;;  %v13878_v58 = vadd.f32 %v7263_v28, %v7223_v43  ;;  %7517 = vmatpush1.bf16.msra.mxu0 %v10646_v41  ;;  %v10699_v46 = vld [vmem:[%s14866_s1 + $0x13cc] ss:$16 sps:$4 sm:$0xff]   ;;  %v10700_v47 = vld [vmem:[%s14866_s1 + $0x11a8] ss:$16 sps:$4 sm:$0xff]  }
 0x30a   :  { %7558 = vmatpush1.bf16.msra.mxu1 %v10649_v55  ;;  %v7225_v40 = vpop.f32.mrf.mxu0  ;;  %7518 = vmatprep.subr.bf16.mxu0 %v10654_v53  ;;  %v10702_v14 = vld [vmem:[%s14866_s1 + $0x11ac] ss:$16 sps:$4 sm:$0xff]   ;;  %v10703_v41 = vld [vmem:[%s14866_s1 + $0x13a8] ss:$16 sps:$4 sm:$0xff]  }
 0x30b   :  { %v7266_v23 = vpop.f32.mrf.mxu1  ;;  %7559 = vmatprep.subr.bf16.mxu1 %v10657_v63  ;;  %v10705_v38 = vld [vmem:[%s14866_s1 + $0x13ac] ss:$16 sps:$4 sm:$0xff]   ;;  %v10706_v28 = vld [vmem:[%s14866_s1 + $0x1188] ss:$16 sps:$4 sm:$0xff]  }
 0x30c   :  { %v10708_v55 = vld [vmem:[%s14866_s1 + $0x118c] ss:$16 sps:$4 sm:$0xff]   ;;  %v10709_v53 = vld [vmem:[%s14866_s1 + $0x1388] ss:$16 sps:$4 sm:$0xff]  }
 0x30d   :  { %7519 = vmatpush1.bf16.msra.mxu0 %v10652_v11  ;;  %v10711_v24 = vld [vmem:[%s14866_s1 + $0x138c] ss:$16 sps:$4 sm:$0xff]   ;;  %v10712_v25 = vld [vmem:[%s14866_s1 + $0x1168] ss:$16 sps:$4 sm:$0xff]  }
 0x30e   :  { %7560 = vmatpush1.bf16.msra.mxu1 %v10655_v15  ;;  %7520 = vmatprep.subr.bf16.mxu0 %v10660_v49  ;;  %v10714_v63 = vld [vmem:[%s14866_s1 + $0x116c] ss:$16 sps:$4 sm:$0xff]   ;;  %v10715_v32 = vld [vmem:[%s14866_s1 + $0x1368] ss:$16 sps:$4 sm:$0xff]  }
 0x30f   :  { %7561 = vmatprep.subr.bf16.mxu1 %v10663_v8  ;;  %v10717_v43 = vld [vmem:[%s14866_s1 + $0x136c] ss:$16 sps:$4 sm:$0xff]   ;;  %v10718_v40 = vld [vmem:[%s14866_s1 + $0x1148] ss:$16 sps:$4 sm:$0xff]  }
 0x310   :  { %v10720_v11 = vld [vmem:[%s14866_s1 + $0x114c] ss:$16 sps:$4 sm:$0xff]   ;;  %v10721_v23 = vld [vmem:[%s14866_s1 + $0x1348] ss:$16 sps:$4 sm:$0xff]  }
 0x311   :  { %7521 = vmatpush1.bf16.msra.mxu0 %v10658_v27  ;;  %v10723_v15 = vld [vmem:[%s14866_s1 + $0x134c] ss:$16 sps:$4 sm:$0xff]   ;;  %v10724_v27 = vld [vmem:[%s14866_s1 + $0x1128] ss:$16 sps:$4 sm:$0xff]  }
 0x312   :  { %7562 = vmatpush1.bf16.msra.mxu1 %v10661_v60  ;;  %7522 = vmatprep.subr.bf16.mxu0 %v10666_v52  ;;  %v10726_v49 = vld [vmem:[%s14866_s1 + $0x112c] ss:$16 sps:$4 sm:$0xff]   ;;  %v10727_v60 = vld [vmem:[%s14866_s1 + $0x1328] ss:$16 sps:$4 sm:$0xff]  }
 0x313   :  { %7563 = vmatprep.subr.bf16.mxu1 %v10669_v33  ;;  %v10729_v8 = vld [vmem:[%s14866_s1 + $0x132c] ss:$16 sps:$4 sm:$0xff]  }
 0x314   :  { %v10732_v52 = vld [vmem:[%s14866_s1 + $0x110c] ss:$16 sps:$4 sm:$0xff]  }
 0x315   :  { %7523 = vmatpush1.bf16.msra.mxu0 %v10664_v10  ;;  %v10735_v33 = vld [vmem:[%s14866_s1 + $0x130c] ss:$16 sps:$4 sm:$0xff]   ;;  %v10730_v10 = vld [vmem:[%s14866_s1 + $0x1108] ss:$16 sps:$4 sm:$0xff]  }
 0x316   :  { %7564 = vmatpush1.bf16.msra.mxu1 %v10667_v19  ;;  %7524 = vmatprep.subr.bf16.mxu0 %v10672_v2  ;;  %v10733_v19 = vld [vmem:[%s14866_s1 + $0x1308] ss:$16 sps:$4 sm:$0xff]   ;;  %v10738_v2 = vld [vmem:[%s14866_s1 + $0x14ec] ss:$16 sps:$4 sm:$0xff]  }
 0x317   :  { %7565 = vmatprep.subr.bf16.mxu1 %v10675_v48  ;;  %v10741_v48 = vld [vmem:[%s14866_s1 + $0x16ec] ss:$16 sps:$4 sm:$0xff]  }
 0x319   :  { %7525 = vmatpush1.bf16.msra.mxu0 %v10670_v0  ;;  %v10736_v0 = vld [vmem:[%s14866_s1 + $0x14e8] ss:$16 sps:$4 sm:$0xff]  }
 0x31a   :  { %7566 = vmatpush1.bf16.msra.mxu1 %v10673_v3  ;;  %7526 = vmatprep.subr.bf16.mxu0 %v10678_v5  ;;  %v10739_v3 = vld [vmem:[%s14866_s1 + $0x16e8] ss:$16 sps:$4 sm:$0xff]   ;;  %v10744_v5 = vld [vmem:[%s14866_s1 + $0x14cc] ss:$16 sps:$4 sm:$0xff]  }
 0x31b   :  { %7567 = vmatprep.subr.bf16.mxu1 %v10681_v36  ;;  %v10747_v36 = vld [vmem:[%s14866_s1 + $0x16cc] ss:$16 sps:$4 sm:$0xff]  }
 0x31d   :  { %7527 = vmatpush1.bf16.msra.mxu0 %v10676_v7 }
 0x31e   :  { %7568 = vmatpush1.bf16.msra.mxu1 %v10679_v9  ;;  %7528 = vmatprep.subr.bf16.mxu0 %v10684_v16 }
 0x31f   :  { %7569 = vmatprep.subr.bf16.mxu1 %v10687_v21  ;;  %v10742_v21 = vld [vmem:[%s14866_s1 + $0x14c8] ss:$16 sps:$4 sm:$0xff]  }
 0x321   :  { %7529 = vmatpush1.bf16.msra.mxu0 %v10682_v17  ;;  %v10745_v17 = vld [vmem:[%s14866_s1 + $0x16c8] ss:$16 sps:$4 sm:$0xff]  }
 0x322   :  { %7570 = vmatpush1.bf16.msra.mxu1 %v10685_v22  ;;  %7530 = vmatprep.subr.bf16.mxu0 %v10690_v59 }
 0x323   :  { %7571 = vmatprep.subr.bf16.mxu1 %v10693_v39 }
 0x325   :  { %7531 = vmatpush2.bf16.msra.mxu0 %v10688_v34 }
 0x326   :  { %7572 = vmatpush2.bf16.msra.mxu1 %v10691_v31  ;;  %7532 = vmatprep.subr.bf16.mxu0 %v10696_v6 }
 0x327   :  { %7573 = vmatprep.subr.bf16.mxu1 %v10699_v46  ;;  %v10748_v46 = vld [vmem:[%s14866_s1 + $0x14a8] ss:$16 sps:$4 sm:$0xff]  }
 0x329   :  { %7533 = vmatpush2.bf16.msra.mxu0 %v10694_v12  ;;  %v10751_v12 = vld [vmem:[%s14866_s1 + $0x16a8] ss:$16 sps:$4 sm:$0xff]  }
 0x32a   :  { %7574 = vmatpush2.bf16.msra.mxu1 %v10697_v35  ;;  %7534 = vmatprep.subr.bf16.mxu0 %v10702_v14  ;;  %v10754_v14 = vld [vmem:[%s14866_s1 + $0x1488] ss:$16 sps:$4 sm:$0xff]  }
 0x32b   :  { %7575 = vmatprep.subr.bf16.mxu1 %v10705_v38  ;;  %v10757_v38 = vld [vmem:[%s14866_s1 + $0x1688] ss:$16 sps:$4 sm:$0xff]  }
 0x32d   :  { %7535 = vmatpush2.bf16.msra.mxu0 %v10700_v47  ;;  %v10762_v47 = vld [vmem:[%s14866_s1 + $0x146c] ss:$16 sps:$4 sm:$0xff]  }
 0x32e   :  { %7576 = vmatpush2.bf16.msra.mxu1 %v10703_v41  ;;  %7536 = vmatprep.subr.bf16.mxu0 %v10708_v55  ;;  %v10765_v41 = vld [vmem:[%s14866_s1 + $0x166c] ss:$16 sps:$4 sm:$0xff]   ;;  %v10760_v55 = vld [vmem:[%s14866_s1 + $0x1468] ss:$16 sps:$4 sm:$0xff]  }
 0x32f   :  { %7577 = vmatprep.subr.bf16.mxu1 %v10711_v24  ;;  %v10763_v24 = vld [vmem:[%s14866_s1 + $0x1668] ss:$16 sps:$4 sm:$0xff]  }
 0x331   :  { %7537 = vmatpush2.bf16.msra.mxu0 %v10706_v28  ;;  %v10768_v28 = vld [vmem:[%s14866_s1 + $0x144c] ss:$16 sps:$4 sm:$0xff]  }
 0x332   :  { %7578 = vmatpush2.bf16.msra.mxu1 %v10709_v53  ;;  %7538 = vmatprep.subr.bf16.mxu0 %v10714_v63  ;;  %v10771_v53 = vld [vmem:[%s14866_s1 + $0x164c] ss:$16 sps:$4 sm:$0xff]   ;;  %v10766_v63 = vld [vmem:[%s14866_s1 + $0x1448] ss:$16 sps:$4 sm:$0xff]  }
 0x333   :  { %7579 = vmatprep.subr.bf16.mxu1 %v10717_v43  ;;  %v10769_v43 = vld [vmem:[%s14866_s1 + $0x1648] ss:$16 sps:$4 sm:$0xff]  }
 0x335   :  { %7539 = vmatpush2.bf16.msra.mxu0 %v10712_v25  ;;  %v10774_v25 = vld [vmem:[%s14866_s1 + $0x142c] ss:$16 sps:$4 sm:$0xff]  }
 0x336   :  { %7580 = vmatpush2.bf16.msra.mxu1 %v10715_v32  ;;  %7540 = vmatprep.subr.bf16.mxu0 %v10720_v11  ;;  %v10777_v32 = vld [vmem:[%s14866_s1 + $0x162c] ss:$16 sps:$4 sm:$0xff]   ;;  %v10772_v11 = vld [vmem:[%s14866_s1 + $0x1428] ss:$16 sps:$4 sm:$0xff]  }
 0x337   :  { %7581 = vmatprep.subr.bf16.mxu1 %v10723_v15  ;;  %v10775_v15 = vld [vmem:[%s14866_s1 + $0x1628] ss:$16 sps:$4 sm:$0xff]  }
 0x339   :  { %7541 = vmatpush2.bf16.msra.mxu0 %v10718_v40  ;;  %v10780_v40 = vld [vmem:[%s14866_s1 + $0x140c] ss:$16 sps:$4 sm:$0xff]  }
 0x33a   :  { %7582 = vmatpush2.bf16.msra.mxu1 %v10721_v23  ;;  %7542 = vmatprep.subr.bf16.mxu0 %v10726_v49  ;;  %v10783_v23 = vld [vmem:[%s14866_s1 + $0x160c] ss:$16 sps:$4 sm:$0xff]   ;;  %v10778_v49 = vld [vmem:[%s14866_s1 + $0x1408] ss:$16 sps:$4 sm:$0xff]  }
 0x33b   :  { %7583 = vmatprep.subr.bf16.mxu1 %v10729_v8  ;;  %v10781_v8 = vld [vmem:[%s14866_s1 + $0x1608] ss:$16 sps:$4 sm:$0xff]  }
 0x33d   :  { %7543 = vmatpush2.bf16.msra.mxu0 %v10724_v27  ;;  %v10786_v27 = vld [vmem:[%s14866_s1 + $0x15ec] ss:$16 sps:$4 sm:$0xff]  }
 0x33e   :  { %7584 = vmatpush2.bf16.msra.mxu1 %v10727_v60  ;;  %7544 = vmatprep.subr.bf16.mxu0 %v10732_v52  ;;  %v10789_v60 = vld [vmem:[%s14866_s1 + $0x17ec] ss:$16 sps:$4 sm:$0xff]   ;;  %v10784_v52 = vld [vmem:[%s14866_s1 + $0x15e8] ss:$16 sps:$4 sm:$0xff]  }
 0x33f   :  { %7585 = vmatprep.subr.bf16.mxu1 %v10735_v33  ;;  %v10787_v33 = vld [vmem:[%s14866_s1 + $0x17e8] ss:$16 sps:$4 sm:$0xff]  }
 0x341   :  { %7545 = vmatpush2.bf16.msra.mxu0 %v10730_v10  ;;  %v10792_v10 = vld [vmem:[%s14866_s1 + $0x15cc] ss:$16 sps:$4 sm:$0xff]  }
 0x342   :  { %7586 = vmatpush2.bf16.msra.mxu1 %v10733_v19  ;;  %7596 = vmatprep.subr.bf16.mxu0 %v10738_v2  ;;  %v10795_v19 = vld [vmem:[%s14866_s1 + $0x17cc] ss:$16 sps:$4 sm:$0xff]   ;;  %v10790_v2 = vld [vmem:[%s14866_s1 + $0x15c8] ss:$16 sps:$4 sm:$0xff]  }
 0x343   :  { %7637 = vmatprep.subr.bf16.mxu1 %v10741_v48  ;;  %v10793_v48 = vld [vmem:[%s14866_s1 + $0x17c8] ss:$16 sps:$4 sm:$0xff]  }
 0x344   :  { %v7302_v7 = vpop.f32.mrf.mxu0  ;;  %7547 = vmatmul.mubr.bf16.vlgmr.msra.gmra.mxu0 %v12325_v37  ;;  %v10750_v37 = vld [vmem:[%s14866_s1 + $0x14ac] ss:$16 sps:$4 sm:$0xff]  }
 0x345   :  { %v7343_v9 = vpop.f32.mrf.mxu1  ;;  %7588 = vmatmul.mubr.bf16.vlgmr.msra.gmra.mxu1 %v12353_v20  ;;  %v7303_v16 = vadd.f32 %v7302_v7, %v13874_v13  ;;  %7597 = vmatpush1.bf16.msra.mxu0 %v10736_v0  ;;  %v10753_v20 = vld [vmem:[%s14866_s1 + $0x16ac] ss:$16 sps:$4 sm:$0xff]  }
 0x346   :  { %7638 = vmatpush1.bf16.msra.mxu1 %v10739_v3  ;;  %v7304_v22 = vpop.f32.mrf.mxu0  ;;  %7598 = vmatprep.subr.bf16.mxu0 %v10744_v5  ;;  %v10798_v0 = vld [vmem:[%s14866_s1 + $0x15ac] ss:$16 sps:$4 sm:$0xff]   ;;  %v10796_v5 = vld [vmem:[%s14866_s1 + $0x15a8] ss:$16 sps:$4 sm:$0xff]  }
 0x347   :  { %v7345_v59 = vpop.f32.mrf.mxu1  ;;  %7639 = vmatprep.subr.bf16.mxu1 %v10747_v36  ;;  %v14075_v13 = vadd.f32 %v7343_v9, %v7303_v16  ;;  %v7305_v39 = vadd.f32 %v7304_v22, %v13878_v58  ;;  %7628 = vmatprep.mubr.bf16.mxu0 %v12349_v18  ;;  %v10756_v18 = vld [vmem:[%s14866_s1 + $0x148c] ss:$16 sps:$4 sm:$0xff]   ;;  %v10799_v36 = vld [vmem:[%s14866_s1 + $0x17a8] ss:$16 sps:$4 sm:$0xff]  }
 0x348   :  { %7669 = vmatprep.mubr.bf16.mxu1 %v12369_v26  ;;  %v7306_v34 = vpop.f32.mrf.mxu0  ;;  %v10759_v26 = vld [vmem:[%s14866_s1 + $0x168c] ss:$16 sps:$4 sm:$0xff]   ;;  %v10802_v16 = vld [vmem:[%s14866_s1 + $0x1588] ss:$16 sps:$4 sm:$0xff]  }
 0x349   :  { %v7347_v31 = vpop.f32.mrf.mxu1  ;;  %v14080_v6 = vadd.f32 %v7345_v59, %v7305_v39  ;;  %7599 = vmatpush1.bf16.msra.mxu0 %v10742_v21  ;;  %v10801_v3 = vld [vmem:[%s14866_s1 + $0x17ac] ss:$16 sps:$4 sm:$0xff]   ;;  %v10805_v21 = vld [vmem:[%s14866_s1 + $0x1788] ss:$16 sps:$4 sm:$0xff]  }
 0x34a   :  { %7640 = vmatpush1.bf16.msra.mxu1 %v10745_v17  ;;  %v7307_v35 = vpop.f32.mrf.mxu0  ;;  %7600 = vmatprep.subr.bf16.mxu0 %v10750_v37  ;;  %v10804_v7 = vld [vmem:[%s14866_s1 + $0x158c] ss:$16 sps:$4 sm:$0xff]   ;;  %v10808_v59 = vld [vmem:[%s14866_s1 + $0x1568] ss:$16 sps:$4 sm:$0xff]  }
 0x34b   :  { %v7348_v58 = vpop.f32.mrf.mxu1  ;;  %7641 = vmatprep.subr.bf16.mxu1 %v10753_v20  ;;  %v10807_v9 = vld [vmem:[%s14866_s1 + $0x178c] ss:$16 sps:$4 sm:$0xff]   ;;  %v10811_v37 = vld [vmem:[%s14866_s1 + $0x1768] ss:$16 sps:$4 sm:$0xff]  }
 0x34c   :  { %v10810_v17 = vld [vmem:[%s14866_s1 + $0x156c] ss:$16 sps:$4 sm:$0xff]   ;;  %v10814_v34 = vld [vmem:[%s14866_s1 + $0x1548] ss:$16 sps:$4 sm:$0xff]  }
 0x34d   :  { %7601 = vmatpush1.bf16.msra.mxu0 %v10748_v46  ;;  %v10813_v22 = vld [vmem:[%s14866_s1 + $0x176c] ss:$16 sps:$4 sm:$0xff]   ;;  %v10817_v31 = vld [vmem:[%s14866_s1 + $0x1748] ss:$16 sps:$4 sm:$0xff]  }
 0x34e   :  { %7642 = vmatpush1.bf16.msra.mxu1 %v10751_v12  ;;  %7602 = vmatprep.subr.bf16.mxu0 %v10756_v18  ;;  %v10816_v20 = vld [vmem:[%s14866_s1 + $0x154c] ss:$16 sps:$4 sm:$0xff]   ;;  %v10820_v35 = vld [vmem:[%s14866_s1 + $0x1528] ss:$16 sps:$4 sm:$0xff]  }
 0x34f   :  { %7643 = vmatprep.subr.bf16.mxu1 %v10759_v26  ;;  %v10819_v39 = vld [vmem:[%s14866_s1 + $0x174c] ss:$16 sps:$4 sm:$0xff]   ;;  %v10823_v58 = vld [vmem:[%s14866_s1 + $0x1728] ss:$16 sps:$4 sm:$0xff]  }
 0x350   :  { %v10822_v46 = vld [vmem:[%s14866_s1 + $0x152c] ss:$16 sps:$4 sm:$0xff]  }
 0x351   :  { %7603 = vmatpush1.bf16.msra.mxu0 %v10754_v14  ;;  %v10825_v12 = vld [vmem:[%s14866_s1 + $0x172c] ss:$16 sps:$4 sm:$0xff]   ;;  %v10826_v14 = vld [vmem:[%s14866_s1 + $0x1508] ss:$16 sps:$4 sm:$0xff]  }
 0x352   :  { %7644 = vmatpush1.bf16.msra.mxu1 %v10757_v38  ;;  %7604 = vmatprep.subr.bf16.mxu0 %v10762_v47  ;;  %v10828_v18 = vld [vmem:[%s14866_s1 + $0x150c] ss:$16 sps:$4 sm:$0xff]   ;;  %v10829_v38 = vld [vmem:[%s14866_s1 + $0x1708] ss:$16 sps:$4 sm:$0xff]  }
 0x353   :  { %7645 = vmatprep.subr.bf16.mxu1 %v10765_v41  ;;  %v10831_v26 = vld [vmem:[%s14866_s1 + $0x170c] ss:$16 sps:$4 sm:$0xff]  }
 0x354   :  { %v10834_v47 = vld [vmem:[%s14866_s1 + $0x18ec] ss:$16 sps:$4 sm:$0xff]  }
 0x355   :  { %7605 = vmatpush1.bf16.msra.mxu0 %v10760_v55  ;;  %v10837_v41 = vld [vmem:[%s14866_s1 + $0x1aec] ss:$16 sps:$4 sm:$0xff]   ;;  %v10832_v55 = vld [vmem:[%s14866_s1 + $0x18e8] ss:$16 sps:$4 sm:$0xff]  }
 0x356   :  { %7646 = vmatpush1.bf16.msra.mxu1 %v10763_v24  ;;  %7606 = vmatprep.subr.bf16.mxu0 %v10768_v28  ;;  %v10835_v24 = vld [vmem:[%s14866_s1 + $0x1ae8] ss:$16 sps:$4 sm:$0xff]   ;;  %v10840_v28 = vld [vmem:[%s14866_s1 + $0x18cc] ss:$16 sps:$4 sm:$0xff]  }
 0x357   :  { %7647 = vmatprep.subr.bf16.mxu1 %v10771_v53  ;;  %v10843_v53 = vld [vmem:[%s14866_s1 + $0x1acc] ss:$16 sps:$4 sm:$0xff]  }
 0x359   :  { %7607 = vmatpush1.bf16.msra.mxu0 %v10766_v63 }
 0x35a   :  { %7648 = vmatpush1.bf16.msra.mxu1 %v10769_v43  ;;  %7608 = vmatprep.subr.bf16.mxu0 %v10774_v25 }
 0x35b   :  { %7649 = vmatprep.subr.bf16.mxu1 %v10777_v32  ;;  %v10838_v32 = vld [vmem:[%s14866_s1 + $0x18c8] ss:$16 sps:$4 sm:$0xff]  }
 0x35d   :  { %7609 = vmatpush1.bf16.msra.mxu0 %v10772_v11  ;;  %v10841_v11 = vld [vmem:[%s14866_s1 + $0x1ac8] ss:$16 sps:$4 sm:$0xff]  }
 0x35e   :  { %7650 = vmatpush1.bf16.msra.mxu1 %v10775_v15  ;;  %7610 = vmatprep.subr.bf16.mxu0 %v10780_v40 }
 0x35f   :  { %7651 = vmatprep.subr.bf16.mxu1 %v10783_v23 }
 0x361   :  { %7611 = vmatpush1.bf16.msra.mxu0 %v10778_v49 }
 0x362   :  { %7652 = vmatpush1.bf16.msra.mxu1 %v10781_v8  ;;  %7612 = vmatprep.subr.bf16.mxu0 %v10786_v27 }
 0x363   :  { %7653 = vmatprep.subr.bf16.mxu1 %v10789_v60  ;;  %v10844_v60 = vld [vmem:[%s14866_s1 + $0x18a8] ss:$16 sps:$4 sm:$0xff]  }
 0x365   :  { %7613 = vmatpush2.bf16.msra.mxu0 %v10784_v52  ;;  %v10847_v52 = vld [vmem:[%s14866_s1 + $0x1aa8] ss:$16 sps:$4 sm:$0xff]  }
 0x366   :  { %7654 = vmatpush2.bf16.msra.mxu1 %v10787_v33  ;;  %7614 = vmatprep.subr.bf16.mxu0 %v10792_v10  ;;  %v10850_v10 = vld [vmem:[%s14866_s1 + $0x1888] ss:$16 sps:$4 sm:$0xff]  }
 0x367   :  { %7655 = vmatprep.subr.bf16.mxu1 %v10795_v19  ;;  %v10853_v19 = vld [vmem:[%s14866_s1 + $0x1a88] ss:$16 sps:$4 sm:$0xff]  }
 0x369   :  { %7615 = vmatpush2.bf16.msra.mxu0 %v10790_v2  ;;  %v10858_v2 = vld [vmem:[%s14866_s1 + $0x186c] ss:$16 sps:$4 sm:$0xff]  }
 0x36a   :  { %7656 = vmatpush2.bf16.msra.mxu1 %v10793_v48  ;;  %7616 = vmatprep.subr.bf16.mxu0 %v10798_v0  ;;  %v10861_v48 = vld [vmem:[%s14866_s1 + $0x1a6c] ss:$16 sps:$4 sm:$0xff]   ;;  %v10856_v0 = vld [vmem:[%s14866_s1 + $0x1868] ss:$16 sps:$4 sm:$0xff]  }
 0x36b   :  { %7657 = vmatprep.subr.bf16.mxu1 %v10801_v3  ;;  %v10859_v3 = vld [vmem:[%s14866_s1 + $0x1a68] ss:$16 sps:$4 sm:$0xff]  }
 0x36d   :  { %7617 = vmatpush2.bf16.msra.mxu0 %v10796_v5  ;;  %v10864_v5 = vld [vmem:[%s14866_s1 + $0x184c] ss:$16 sps:$4 sm:$0xff]  }
 0x36e   :  { %7658 = vmatpush2.bf16.msra.mxu1 %v10799_v36  ;;  %7618 = vmatprep.subr.bf16.mxu0 %v10804_v7  ;;  %v10867_v36 = vld [vmem:[%s14866_s1 + $0x1a4c] ss:$16 sps:$4 sm:$0xff]   ;;  %v10862_v7 = vld [vmem:[%s14866_s1 + $0x1848] ss:$16 sps:$4 sm:$0xff]  }
 0x36f   :  { %7659 = vmatprep.subr.bf16.mxu1 %v10807_v9  ;;  %v10865_v9 = vld [vmem:[%s14866_s1 + $0x1a48] ss:$16 sps:$4 sm:$0xff]  }
 0x371   :  { %7619 = vmatpush2.bf16.msra.mxu0 %v10802_v16  ;;  %v10870_v16 = vld [vmem:[%s14866_s1 + $0x182c] ss:$16 sps:$4 sm:$0xff]  }
 0x372   :  { %7660 = vmatpush2.bf16.msra.mxu1 %v10805_v21  ;;  %7620 = vmatprep.subr.bf16.mxu0 %v10810_v17  ;;  %v10873_v21 = vld [vmem:[%s14866_s1 + $0x1a2c] ss:$16 sps:$4 sm:$0xff]   ;;  %v10868_v17 = vld [vmem:[%s14866_s1 + $0x1828] ss:$16 sps:$4 sm:$0xff]  }
 0x373   :  { %7661 = vmatprep.subr.bf16.mxu1 %v10813_v22  ;;  %v10871_v22 = vld [vmem:[%s14866_s1 + $0x1a28] ss:$16 sps:$4 sm:$0xff]  }
 0x375   :  { %7621 = vmatpush2.bf16.msra.mxu0 %v10808_v59  ;;  %v10876_v59 = vld [vmem:[%s14866_s1 + $0x180c] ss:$16 sps:$4 sm:$0xff]  }
 0x376   :  { %7662 = vmatpush2.bf16.msra.mxu1 %v10811_v37  ;;  %7622 = vmatprep.subr.bf16.mxu0 %v10816_v20  ;;  %v10879_v37 = vld [vmem:[%s14866_s1 + $0x1a0c] ss:$16 sps:$4 sm:$0xff]   ;;  %v10874_v20 = vld [vmem:[%s14866_s1 + $0x1808] ss:$16 sps:$4 sm:$0xff]  }
 0x377   :  { %7663 = vmatprep.subr.bf16.mxu1 %v10819_v39  ;;  %v10877_v39 = vld [vmem:[%s14866_s1 + $0x1a08] ss:$16 sps:$4 sm:$0xff]  }
 0x379   :  { %7623 = vmatpush2.bf16.msra.mxu0 %v10814_v34  ;;  %v10882_v34 = vld [vmem:[%s14866_s1 + $0x19ec] ss:$16 sps:$4 sm:$0xff]  }
 0x37a   :  { %7664 = vmatpush2.bf16.msra.mxu1 %v10817_v31  ;;  %7624 = vmatprep.subr.bf16.mxu0 %v10822_v46  ;;  %v10885_v31 = vld [vmem:[%s14866_s1 + $0x1bec] ss:$16 sps:$4 sm:$0xff]   ;;  %v10880_v46 = vld [vmem:[%s14866_s1 + $0x19e8] ss:$16 sps:$4 sm:$0xff]  }
 0x37b   :  { %7665 = vmatprep.subr.bf16.mxu1 %v10825_v12  ;;  %v10883_v12 = vld [vmem:[%s14866_s1 + $0x1be8] ss:$16 sps:$4 sm:$0xff]  }
 0x37d   :  { %7625 = vmatpush2.bf16.msra.mxu0 %v10820_v35  ;;  %v10888_v35 = vld [vmem:[%s14866_s1 + $0x19cc] ss:$16 sps:$4 sm:$0xff]  }
 0x37e   :  { %7666 = vmatpush2.bf16.msra.mxu1 %v10823_v58  ;;  %7626 = vmatprep.subr.bf16.mxu0 %v10828_v18  ;;  %v10891_v58 = vld [vmem:[%s14866_s1 + $0x1bcc] ss:$16 sps:$4 sm:$0xff]   ;;  %v10886_v18 = vld [vmem:[%s14866_s1 + $0x19c8] ss:$16 sps:$4 sm:$0xff]  }
 0x37f   :  { %7667 = vmatprep.subr.bf16.mxu1 %v10831_v26  ;;  %v10889_v26 = vld [vmem:[%s14866_s1 + $0x1bc8] ss:$16 sps:$4 sm:$0xff]  }
 0x381   :  { %7627 = vmatpush2.bf16.msra.mxu0 %v10826_v14  ;;  %v10894_v14 = vld [vmem:[%s14866_s1 + $0x19ac] ss:$16 sps:$4 sm:$0xff]  }
 0x382   :  { %7668 = vmatpush2.bf16.msra.mxu1 %v10829_v38  ;;  %7678 = vmatprep.subr.bf16.mxu0 %v10834_v47  ;;  %v10897_v38 = vld [vmem:[%s14866_s1 + $0x1bac] ss:$16 sps:$4 sm:$0xff]   ;;  %v10892_v47 = vld [vmem:[%s14866_s1 + $0x19a8] ss:$16 sps:$4 sm:$0xff]  }
 0x383   :  { %7719 = vmatprep.subr.bf16.mxu1 %v10837_v41  ;;  %v10895_v41 = vld [vmem:[%s14866_s1 + $0x1ba8] ss:$16 sps:$4 sm:$0xff]  }
 0x384   :  { %v7384_v63 = vpop.f32.mrf.mxu0  ;;  %7629 = vmatmul.mubr.bf16.vlgmr.msra.gmra.mxu0 %v12573_v44  ;;  %v10846_v44 = vld [vmem:[%s14866_s1 + $0x18ac] ss:$16 sps:$4 sm:$0xff]  }
 0x385   :  { %v7425_v43 = vpop.f32.mrf.mxu1  ;;  %7670 = vmatmul.mubr.bf16.vlgmr.msra.gmra.mxu1 %v12602_v1  ;;  %v7385_v25 = vadd.f32 %v7384_v63, %v14075_v13  ;;  %7679 = vmatpush1.bf16.msra.mxu0 %v10832_v55  ;;  %v10849_v1 = vld [vmem:[%s14866_s1 + $0x1aac] ss:$16 sps:$4 sm:$0xff]  }
 0x386   :  { %7720 = vmatpush1.bf16.msra.mxu1 %v10835_v24  ;;  %v7386_v15 = vpop.f32.mrf.mxu0  ;;  %7680 = vmatprep.subr.bf16.mxu0 %v10840_v28  ;;  %v10900_v55 = vld [vmem:[%s14866_s1 + $0x198c] ss:$16 sps:$4 sm:$0xff]   ;;  %v10898_v28 = vld [vmem:[%s14866_s1 + $0x1988] ss:$16 sps:$4 sm:$0xff]  }
 0x387   :  { %v7427_v40 = vpop.f32.mrf.mxu1  ;;  %7721 = vmatprep.subr.bf16.mxu1 %v10843_v53  ;;  %v14277_v13 = vadd.f32 %v7425_v43, %v7385_v25  ;;  %v7387_v23 = vadd.f32 %v7386_v15, %v14080_v6  ;;  %7710 = vmatprep.mubr.bf16.mxu0 %v12598_v61  ;;  %v10852_v61 = vld [vmem:[%s14866_s1 + $0x188c] ss:$16 sps:$4 sm:$0xff]   ;;  %v10901_v53 = vld [vmem:[%s14866_s1 + $0x1b88] ss:$16 sps:$4 sm:$0xff]  }
 0x388   :  { %7751 = vmatprep.mubr.bf16.mxu1 %v12618_v56  ;;  %v7388_v49 = vpop.f32.mrf.mxu0  ;;  %v10855_v56 = vld [vmem:[%s14866_s1 + $0x1a8c] ss:$16 sps:$4 sm:$0xff]   ;;  %v10904_v25 = vld [vmem:[%s14866_s1 + $0x1968] ss:$16 sps:$4 sm:$0xff]  }
 0x389   :  { %v7429_v8 = vpop.f32.mrf.mxu1  ;;  %v14282_v27 = vadd.f32 %v7427_v40, %v7387_v23  ;;  %7681 = vmatpush1.bf16.msra.mxu0 %v10838_v32  ;;  %v10903_v24 = vld [vmem:[%s14866_s1 + $0x1b8c] ss:$16 sps:$4 sm:$0xff]   ;;  %v10907_v32 = vld [vmem:[%s14866_s1 + $0x1b68] ss:$16 sps:$4 sm:$0xff]  }
 0x38a   :  { %7722 = vmatpush1.bf16.msra.mxu1 %v10841_v11  ;;  %v7389_v33 = vpop.f32.mrf.mxu0  ;;  %7682 = vmatprep.subr.bf16.mxu0 %v10846_v44  ;;  %v10906_v63 = vld [vmem:[%s14866_s1 + $0x196c] ss:$16 sps:$4 sm:$0xff]   ;;  %v10910_v40 = vld [vmem:[%s14866_s1 + $0x1948] ss:$16 sps:$4 sm:$0xff]  }
 0x38b   :  { %v7430_v6 = vpop.f32.mrf.mxu1  ;;  %7723 = vmatprep.subr.bf16.mxu1 %v10849_v1  ;;  %v10909_v43 = vld [vmem:[%s14866_s1 + $0x1b6c] ss:$16 sps:$4 sm:$0xff]   ;;  %v10913_v44 = vld [vmem:[%s14866_s1 + $0x1b48] ss:$16 sps:$4 sm:$0xff]  }
 0x38c   :  { %v10912_v11 = vld [vmem:[%s14866_s1 + $0x194c] ss:$16 sps:$4 sm:$0xff]   ;;  %v10916_v49 = vld [vmem:[%s14866_s1 + $0x1928] ss:$16 sps:$4 sm:$0xff]  }
 0x38d   :  { %7683 = vmatpush1.bf16.msra.mxu0 %v10844_v60  ;;  %v10915_v15 = vld [vmem:[%s14866_s1 + $0x1b4c] ss:$16 sps:$4 sm:$0xff]   ;;  %v10919_v8 = vld [vmem:[%s14866_s1 + $0x1b28] ss:$16 sps:$4 sm:$0xff]  }
 0x38e   :  { %7724 = vmatpush1.bf16.msra.mxu1 %v10847_v52  ;;  %7684 = vmatprep.subr.bf16.mxu0 %v10852_v61  ;;  %v10918_v1 = vld [vmem:[%s14866_s1 + $0x192c] ss:$16 sps:$4 sm:$0xff]   ;;  %v10922_v33 = vld [vmem:[%s14866_s1 + $0x1908] ss:$16 sps:$4 sm:$0xff]  }
 0x38f   :  { %7725 = vmatprep.subr.bf16.mxu1 %v10855_v56  ;;  %v10921_v23 = vld [vmem:[%s14866_s1 + $0x1b2c] ss:$16 sps:$4 sm:$0xff]   ;;  %v10925_v6 = vld [vmem:[%s14866_s1 + $0x1b08] ss:$16 sps:$4 sm:$0xff]  }
 0x390   :  { %v10924_v60 = vld [vmem:[%s14866_s1 + $0x190c] ss:$16 sps:$4 sm:$0xff]  }
 0x391   :  { %7685 = vmatpush1.bf16.msra.mxu0 %v10850_v10  ;;  %v10927_v52 = vld [vmem:[%s14866_s1 + $0x1b0c] ss:$16 sps:$4 sm:$0xff]   ;;  %v10928_v10 = vld [vmem:[%s14866_s1 + $0x1ce8] ss:$16 sps:$4 sm:$0xff]  }
 0x392   :  { %7726 = vmatpush1.bf16.msra.mxu1 %v10853_v19  ;;  %7686 = vmatprep.subr.bf16.mxu0 %v10858_v2  ;;  %v10930_v61 = vld [vmem:[%s14866_s1 + $0x1cec] ss:$16 sps:$4 sm:$0xff]   ;;  %v10931_v19 = vld [vmem:[%s14866_s1 + $0x1ee8] ss:$16 sps:$4 sm:$0xff]  }
 0x393   :  { %7727 = vmatprep.subr.bf16.mxu1 %v10861_v48  ;;  %v10933_v56 = vld [vmem:[%s14866_s1 + $0x1eec] ss:$16 sps:$4 sm:$0xff]  }
 0x394   :  { %v10936_v2 = vld [vmem:[%s14866_s1 + $0x1ccc] ss:$16 sps:$4 sm:$0xff]  }
 0x395   :  { %7687 = vmatpush1.bf16.msra.mxu0 %v10856_v0  ;;  %v10939_v48 = vld [vmem:[%s14866_s1 + $0x1ecc] ss:$16 sps:$4 sm:$0xff]  }
 0x396   :  { %7728 = vmatpush1.bf16.msra.mxu1 %v10859_v3  ;;  %7688 = vmatprep.subr.bf16.mxu0 %v10864_v5 }
 0x397   :  { %7729 = vmatprep.subr.bf16.mxu1 %v10867_v36  ;;  %v10934_v36 = vld [vmem:[%s14866_s1 + $0x1cc8] ss:$16 sps:$4 sm:$0xff]  }
 0x399   :  { %7689 = vmatpush1.bf16.msra.mxu0 %v10862_v7  ;;  %v10937_v7 = vld [vmem:[%s14866_s1 + $0x1ec8] ss:$16 sps:$4 sm:$0xff]  }
 0x39a   :  { %7730 = vmatpush1.bf16.msra.mxu1 %v10865_v9  ;;  %7690 = vmatprep.subr.bf16.mxu0 %v10870_v16 }
 0x39b   :  { %7731 = vmatprep.subr.bf16.mxu1 %v10873_v21 }
 0x39d   :  { %7691 = vmatpush1.bf16.msra.mxu0 %v10868_v17 }
 0x39e   :  { %7732 = vmatpush1.bf16.msra.mxu1 %v10871_v22  ;;  %7692 = vmatprep.subr.bf16.mxu0 %v10876_v59 }
 0x39f   :  { %7733 = vmatprep.subr.bf16.mxu1 %v10879_v37  ;;  %v10940_v37 = vld [vmem:[%s14866_s1 + $0x1ca8] ss:$16 sps:$4 sm:$0xff]  }
 0x3a1   :  { %7693 = vmatpush1.bf16.msra.mxu0 %v10874_v20  ;;  %v10943_v20 = vld [vmem:[%s14866_s1 + $0x1ea8] ss:$16 sps:$4 sm:$0xff]  }
 0x3a2   :  { %7734 = vmatpush1.bf16.msra.mxu1 %v10877_v39  ;;  %7694 = vmatprep.subr.bf16.mxu0 %v10882_v34  ;;  %v10946_v34 = vld [vmem:[%s14866_s1 + $0x1c88] ss:$16 sps:$4 sm:$0xff]  }
 0x3a3   :  { %7735 = vmatprep.subr.bf16.mxu1 %v10885_v31  ;;  %v10949_v31 = vld [vmem:[%s14866_s1 + $0x1e88] ss:$16 sps:$4 sm:$0xff]  }
 0x3a5   :  { %7695 = vmatpush2.bf16.msra.mxu0 %v10880_v46  ;;  %v10954_v46 = vld [vmem:[%s14866_s1 + $0x1c6c] ss:$16 sps:$4 sm:$0xff]  }
 0x3a6   :  { %7736 = vmatpush2.bf16.msra.mxu1 %v10883_v12  ;;  %7696 = vmatprep.subr.bf16.mxu0 %v10888_v35  ;;  %v10957_v12 = vld [vmem:[%s14866_s1 + $0x1e6c] ss:$16 sps:$4 sm:$0xff]   ;;  %v10952_v35 = vld [vmem:[%s14866_s1 + $0x1c68] ss:$16 sps:$4 sm:$0xff]  }
 0x3a7   :  { %7737 = vmatprep.subr.bf16.mxu1 %v10891_v58  ;;  %v10955_v58 = vld [vmem:[%s14866_s1 + $0x1e68] ss:$16 sps:$4 sm:$0xff]  }
 0x3a9   :  { %7697 = vmatpush2.bf16.msra.mxu0 %v10886_v18  ;;  %v10960_v18 = vld [vmem:[%s14866_s1 + $0x1c4c] ss:$16 sps:$4 sm:$0xff]  }
 0x3aa   :  { %7738 = vmatpush2.bf16.msra.mxu1 %v10889_v26  ;;  %7698 = vmatprep.subr.bf16.mxu0 %v10894_v14  ;;  %v10963_v26 = vld [vmem:[%s14866_s1 + $0x1e4c] ss:$16 sps:$4 sm:$0xff]   ;;  %v10958_v14 = vld [vmem:[%s14866_s1 + $0x1c48] ss:$16 sps:$4 sm:$0xff]  }
 0x3ab   :  { %7739 = vmatprep.subr.bf16.mxu1 %v10897_v38  ;;  %v10961_v38 = vld [vmem:[%s14866_s1 + $0x1e48] ss:$16 sps:$4 sm:$0xff]  }
 0x3ad   :  { %7699 = vmatpush2.bf16.msra.mxu0 %v10892_v47  ;;  %v10966_v47 = vld [vmem:[%s14866_s1 + $0x1c2c] ss:$16 sps:$4 sm:$0xff]  }
 0x3ae   :  { %7740 = vmatpush2.bf16.msra.mxu1 %v10895_v41  ;;  %7700 = vmatprep.subr.bf16.mxu0 %v10900_v55  ;;  %v10969_v41 = vld [vmem:[%s14866_s1 + $0x1e2c] ss:$16 sps:$4 sm:$0xff]   ;;  %v10964_v55 = vld [vmem:[%s14866_s1 + $0x1c28] ss:$16 sps:$4 sm:$0xff]  }
 0x3af   :  { %7741 = vmatprep.subr.bf16.mxu1 %v10903_v24  ;;  %v10967_v24 = vld [vmem:[%s14866_s1 + $0x1e28] ss:$16 sps:$4 sm:$0xff]  }
 0x3b1   :  { %7701 = vmatpush2.bf16.msra.mxu0 %v10898_v28  ;;  %v10972_v28 = vld [vmem:[%s14866_s1 + $0x1c0c] ss:$16 sps:$4 sm:$0xff]  }
 0x3b2   :  { %7742 = vmatpush2.bf16.msra.mxu1 %v10901_v53  ;;  %7702 = vmatprep.subr.bf16.mxu0 %v10906_v63  ;;  %v10975_v53 = vld [vmem:[%s14866_s1 + $0x1e0c] ss:$16 sps:$4 sm:$0xff]   ;;  %v10970_v63 = vld [vmem:[%s14866_s1 + $0x1c08] ss:$16 sps:$4 sm:$0xff]  }
 0x3b3   :  { %7743 = vmatprep.subr.bf16.mxu1 %v10909_v43  ;;  %v10973_v43 = vld [vmem:[%s14866_s1 + $0x1e08] ss:$16 sps:$4 sm:$0xff]  }
 0x3b5   :  { %7703 = vmatpush2.bf16.msra.mxu0 %v10904_v25  ;;  %v10978_v25 = vld [vmem:[%s14866_s1 + $0x1dec] ss:$16 sps:$4 sm:$0xff]  }
 0x3b6   :  { %7744 = vmatpush2.bf16.msra.mxu1 %v10907_v32  ;;  %7704 = vmatprep.subr.bf16.mxu0 %v10912_v11  ;;  %v10981_v32 = vld [vmem:[%s14866_s1 + $0x1fec] ss:$16 sps:$4 sm:$0xff]   ;;  %v10976_v11 = vld [vmem:[%s14866_s1 + $0x1de8] ss:$16 sps:$4 sm:$0xff]  }
 0x3b7   :  { %7745 = vmatprep.subr.bf16.mxu1 %v10915_v15  ;;  %v10979_v15 = vld [vmem:[%s14866_s1 + $0x1fe8] ss:$16 sps:$4 sm:$0xff]  }
 0x3b9   :  { %7705 = vmatpush2.bf16.msra.mxu0 %v10910_v40  ;;  %v10984_v40 = vld [vmem:[%s14866_s1 + $0x1dcc] ss:$16 sps:$4 sm:$0xff]  }
 0x3ba   :  { %7746 = vmatpush2.bf16.msra.mxu1 %v10913_v44  ;;  %7706 = vmatprep.subr.bf16.mxu0 %v10918_v1  ;;  %v10987_v44 = vld [vmem:[%s14866_s1 + $0x1fcc] ss:$16 sps:$4 sm:$0xff]   ;;  %v10982_v1 = vld [vmem:[%s14866_s1 + $0x1dc8] ss:$16 sps:$4 sm:$0xff]  }
 0x3bb   :  { %7747 = vmatprep.subr.bf16.mxu1 %v10921_v23  ;;  %v10985_v23 = vld [vmem:[%s14866_s1 + $0x1fc8] ss:$16 sps:$4 sm:$0xff]  }
 0x3bd   :  { %7707 = vmatpush2.bf16.msra.mxu0 %v10916_v49  ;;  %v10990_v49 = vld [vmem:[%s14866_s1 + $0x1dac] ss:$16 sps:$4 sm:$0xff]  }
 0x3be   :  { %7748 = vmatpush2.bf16.msra.mxu1 %v10919_v8  ;;  %7708 = vmatprep.subr.bf16.mxu0 %v10924_v60  ;;  %v10993_v8 = vld [vmem:[%s14866_s1 + $0x1fac] ss:$16 sps:$4 sm:$0xff]   ;;  %v10988_v60 = vld [vmem:[%s14866_s1 + $0x1da8] ss:$16 sps:$4 sm:$0xff]  }
 0x3bf   :  { %7749 = vmatprep.subr.bf16.mxu1 %v10927_v52  ;;  %v10991_v52 = vld [vmem:[%s14866_s1 + $0x1fa8] ss:$16 sps:$4 sm:$0xff]  }
 0x3c1   :  { %7709 = vmatpush2.bf16.msra.mxu0 %v10922_v33  ;;  %v10996_v33 = vld [vmem:[%s14866_s1 + $0x1d8c] ss:$16 sps:$4 sm:$0xff]  }
 0x3c2   :  { %7750 = vmatpush2.bf16.msra.mxu1 %v10925_v6  ;;  %7760 = vmatprep.subr.bf16.mxu0 %v10930_v61  ;;  %v10999_v6 = vld [vmem:[%s14866_s1 + $0x1f8c] ss:$16 sps:$4 sm:$0xff]   ;;  %v10994_v61 = vld [vmem:[%s14866_s1 + $0x1d88] ss:$16 sps:$4 sm:$0xff]  }
 0x3c3   :  { %7801 = vmatprep.subr.bf16.mxu1 %v10933_v56  ;;  %v10997_v56 = vld [vmem:[%s14866_s1 + $0x1f88] ss:$16 sps:$4 sm:$0xff]  }
 0x3c4   :  { %v7466_v0 = vpop.f32.mrf.mxu0  ;;  %7711 = vmatmul.mubr.bf16.vlgmr.msra.gmra.mxu0 %v12795_v30  ;;  %v10942_v30 = vld [vmem:[%s14866_s1 + $0x1cac] ss:$16 sps:$4 sm:$0xff]  }
 0x3c5   :  { %v7507_v3 = vpop.f32.mrf.mxu1  ;;  %7752 = vmatmul.mubr.bf16.vlgmr.msra.gmra.mxu1 %v12823_v51  ;;  %v7467_v5 = vadd.f32 %v7466_v0, %v14277_v13  ;;  %7761 = vmatpush1.bf16.msra.mxu0 %v10928_v10  ;;  %v10945_v51 = vld [vmem:[%s14866_s1 + $0x1eac] ss:$16 sps:$4 sm:$0xff]  }
 0x3c6   :  { %7802 = vmatpush1.bf16.msra.mxu1 %v10931_v19  ;;  %v7468_v9 = vpop.f32.mrf.mxu0  ;;  %7762 = vmatprep.subr.bf16.mxu0 %v10936_v2  ;;  %v11002_v10 = vld [vmem:[%s14866_s1 + $0x1d6c] ss:$16 sps:$4 sm:$0xff]   ;;  %v11000_v2 = vld [vmem:[%s14866_s1 + $0x1d68] ss:$16 sps:$4 sm:$0xff]  }
 0x3c7   :  { %v7509_v16 = vpop.f32.mrf.mxu1  ;;  %7803 = vmatprep.subr.bf16.mxu1 %v10939_v48  ;;  %v14479_v13 = vadd.f32 %v7507_v3, %v7467_v5  ;;  %v7469_v21 = vadd.f32 %v7468_v9, %v14282_v27  ;;  %7792 = vmatprep.mubr.bf16.mxu0 %v12819_v50  ;;  %v10948_v50 = vld [vmem:[%s14866_s1 + $0x1c8c] ss:$16 sps:$4 sm:$0xff]   ;;  %v11003_v48 = vld [vmem:[%s14866_s1 + $0x1f68] ss:$16 sps:$4 sm:$0xff]  }
 0x3c8   :  { %7833 = vmatprep.mubr.bf16.mxu1 %v12839_v4  ;;  %v7470_v17 = vpop.f32.mrf.mxu0  ;;  %v10951_v4 = vld [vmem:[%s14866_s1 + $0x1e8c] ss:$16 sps:$4 sm:$0xff]   ;;  %v11006_v5 = vld [vmem:[%s14866_s1 + $0x1d48] ss:$16 sps:$4 sm:$0xff]  }
 0x3c9   :  { %v7511_v22 = vpop.f32.mrf.mxu1  ;;  %v14484_v59 = vadd.f32 %v7509_v16, %v7469_v21  ;;  %7763 = vmatpush1.bf16.msra.mxu0 %v10934_v36  ;;  %v11005_v19 = vld [vmem:[%s14866_s1 + $0x1f6c] ss:$16 sps:$4 sm:$0xff]   ;;  %v11009_v36 = vld [vmem:[%s14866_s1 + $0x1f48] ss:$16 sps:$4 sm:$0xff]  }
 0x3ca   :  { %7804 = vmatpush1.bf16.msra.mxu1 %v10937_v7  ;;  %v7471_v39 = vpop.f32.mrf.mxu0  ;;  %7764 = vmatprep.subr.bf16.mxu0 %v10942_v30  ;;  %v11008_v0 = vld [vmem:[%s14866_s1 + $0x1d4c] ss:$16 sps:$4 sm:$0xff]   ;;  %v11012_v16 = vld [vmem:[%s14866_s1 + $0x1d28] ss:$16 sps:$4 sm:$0xff]  }
 0x3cb   :  { %v7512_v27 = vpop.f32.mrf.mxu1  ;;  %7805 = vmatprep.subr.bf16.mxu1 %v10945_v51  ;;  %v11011_v3 = vld [vmem:[%s14866_s1 + $0x1f4c] ss:$16 sps:$4 sm:$0xff]   ;;  %v11015_v30 = vld [vmem:[%s14866_s1 + $0x1f28] ss:$16 sps:$4 sm:$0xff]  }
 0x3cc   :  { %v11014_v7 = vld [vmem:[%s14866_s1 + $0x1d2c] ss:$16 sps:$4 sm:$0xff]   ;;  %v11018_v17 = vld [vmem:[%s14866_s1 + $0x1d08] ss:$16 sps:$4 sm:$0xff]  }
 0x3cd   :  { %7765 = vmatpush1.bf16.msra.mxu0 %v10940_v37  ;;  %v11017_v9 = vld [vmem:[%s14866_s1 + $0x1f2c] ss:$16 sps:$4 sm:$0xff]   ;;  %v11021_v22 = vld [vmem:[%s14866_s1 + $0x1f08] ss:$16 sps:$4 sm:$0xff]  }
 0x3ce   :  { %7806 = vmatpush1.bf16.msra.mxu1 %v10943_v20  ;;  %7766 = vmatprep.subr.bf16.mxu0 %v10948_v50  ;;  %v11020_v51 = vld [vmem:[%s14866_s1 + $0x1d0c] ss:$16 sps:$4 sm:$0xff]   ;;  %v7843_v20 = vmax.f32 %v13673_v54, 0.0  ;;  %v11024_v39 = vld [vmem:[%s14868_s3 + $0x70] ss:$8 sps:$4 sm:$0xff]  }
 0x3cf   :  { %7807 = vmatprep.subr.bf16.mxu1 %v10951_v4  ;;  %v11023_v21 = vld [vmem:[%s14866_s1 + $0x1f0c] ss:$16 sps:$4 sm:$0xff]  }
 0x3d0   :  { %v11026_v37 = vld [vmem:[%s14868_s3 + $0x74] ss:$8 sps:$4 sm:$0xff]   ;;  %v11029_v27 = vld [vmem:[%s14868_s3 + $0x64] ss:$8 sps:$4 sm:$0xff]   ;;  %v7847_v50 = vpack.c.bf16 %v7843_v20, %v7843_v20 }
 0x3d1   :  { %7767 = vmatpush1.bf16.msra.mxu0 %v10946_v34  ;;  %v11065_v20 = vld [vmem:[%s14868_s3 + $0xa4] ss:$8 sps:$4 sm:$0xff]  }
 0x3d2   :  { %7808 = vmatpush1.bf16.msra.mxu1 %v10949_v31  ;;  %7768 = vmatprep.subr.bf16.mxu0 %v10954_v46  ;;  %v11027_v31 = vld [vmem:[%s14868_s3 + $0x60] ss:$8 sps:$4 sm:$0xff]  }
 0x3d3   :  { %7809 = vmatprep.subr.bf16.mxu1 %v10957_v12 }
 0x3d5   :  { %7769 = vmatpush1.bf16.msra.mxu0 %v10952_v35  ;;  %v11032_v35 = vld [vmem:[%s14868_s3 + $0x54] ss:$8 sps:$4 sm:$0xff]  }
 0x3d6   :  { %7810 = vmatpush1.bf16.msra.mxu1 %v10955_v58  ;;  %7770 = vmatprep.subr.bf16.mxu0 %v10960_v18 }
 0x3d7   :  { %7811 = vmatprep.subr.bf16.mxu1 %v10963_v26  ;;  %v11030_v26 = vld [vmem:[%s14868_s3 + $0x50] ss:$8 sps:$4 sm:$0xff]  }
 0x3d9   :  { %7771 = vmatpush1.bf16.msra.mxu0 %v10958_v14 }
 0x3da   :  { %7812 = vmatpush1.bf16.msra.mxu1 %v10961_v38  ;;  %7772 = vmatprep.subr.bf16.mxu0 %v10966_v47  ;;  %v11035_v47 = vld [vmem:[%s14868_s3 + $0x44] ss:$8 sps:$4 sm:$0xff]  }
 0x3db   :  { %7813 = vmatprep.subr.bf16.mxu1 %v10969_v41  ;;  %v11074_v41 = vld [vmem:[%s14868_s3 + $0x174] ss:$8 sps:$4 sm:$0xff]  }
 0x3dd   :  { %7773 = vmatpush1.bf16.msra.mxu0 %v10964_v55  ;;  %v11077_v55 = vld [vmem:[%s14868_s3 + $0x164] ss:$8 sps:$4 sm:$0xff]  }
 0x3de   :  { %7814 = vmatpush1.bf16.msra.mxu1 %v10967_v24  ;;  %7774 = vmatprep.subr.bf16.mxu0 %v10972_v28  ;;  %v11033_v24 = vld [vmem:[%s14868_s3 + $0x40] ss:$8 sps:$4 sm:$0xff]  }
 0x3df   :  { %7815 = vmatprep.subr.bf16.mxu1 %v10975_v53  ;;  %v11075_v28 = vld [vmem:[%s14868_s3 + $0x160] ss:$8 sps:$4 sm:$0xff]   ;;  %v11038_v53 = vld [vmem:[%s14868_s3 + $0x34] ss:$8 sps:$4 sm:$0xff]  }
 0x3e1   :  { %7775 = vmatpush1.bf16.msra.mxu0 %v10970_v63  ;;  %v11080_v63 = vld [vmem:[%s14868_s3 + $0x154] ss:$8 sps:$4 sm:$0xff]  }
 0x3e2   :  { %7816 = vmatpush1.bf16.msra.mxu1 %v10973_v43  ;;  %7776 = vmatprep.subr.bf16.mxu0 %v10978_v25  ;;  %v11036_v43 = vld [vmem:[%s14868_s3 + $0x30] ss:$8 sps:$4 sm:$0xff]  }
 0x3e3   :  { %7817 = vmatprep.subr.bf16.mxu1 %v10981_v32  ;;  %v11078_v25 = vld [vmem:[%s14868_s3 + $0x150] ss:$8 sps:$4 sm:$0xff]   ;;  %v11041_v32 = vld [vmem:[%s14868_s3 + $0x24] ss:$8 sps:$4 sm:$0xff]  }
 0x3e5   :  { %7777 = vmatpush2.bf16.msra.mxu0 %v10976_v11  ;;  %v11083_v11 = vld [vmem:[%s14868_s3 + $0x144] ss:$8 sps:$4 sm:$0xff]  }
 0x3e6   :  { %7818 = vmatpush2.bf16.msra.mxu1 %v10979_v15  ;;  %7778 = vmatprep.subr.bf16.mxu0 %v10984_v40  ;;  %v11039_v15 = vld [vmem:[%s14868_s3 + $0x20] ss:$8 sps:$4 sm:$0xff]  }
 0x3e7   :  { %7819 = vmatprep.subr.bf16.mxu1 %v10987_v44  ;;  %v11081_v40 = vld [vmem:[%s14868_s3 + $0x140] ss:$8 sps:$4 sm:$0xff]   ;;  %v11044_v44 = vld [vmem:[%s14868_s3 + $0x14] ss:$8 sps:$4 sm:$0xff]  }
 0x3e9   :  { %7779 = vmatpush2.bf16.msra.mxu0 %v10982_v1  ;;  %v11086_v1 = vld [vmem:[%s14868_s3 + $0x134] ss:$8 sps:$4 sm:$0xff]  }
 0x3ea   :  { %7820 = vmatpush2.bf16.msra.mxu1 %v10985_v23  ;;  %7780 = vmatprep.subr.bf16.mxu0 %v10990_v49  ;;  %v11042_v23 = vld [vmem:[%s14868_s3 + $0x10] ss:$8 sps:$4 sm:$0xff]  }
 0x3eb   :  { %7821 = vmatprep.subr.bf16.mxu1 %v10993_v8  ;;  %v11084_v49 = vld [vmem:[%s14868_s3 + $0x130] ss:$8 sps:$4 sm:$0xff]   ;;  %v11047_v8 = vld [vmem:[%s14868_s3 + $0x4] ss:$8 sps:$4 sm:$0xff]  }
 0x3ed   :  { %7781 = vmatpush2.bf16.msra.mxu0 %v10988_v60  ;;  %v11089_v60 = vld [vmem:[%s14868_s3 + $0x124] ss:$8 sps:$4 sm:$0xff]  }
 0x3ee   :  { %7822 = vmatpush2.bf16.msra.mxu1 %v10991_v52  ;;  %7782 = vmatprep.subr.bf16.mxu0 %v10996_v33  ;;  %v11045_v52 = vld [vmem:[%s14868_s3] ss:$8 sps:$4 sm:$0xff]  }
 0x3ef   :  { %7823 = vmatprep.subr.bf16.mxu1 %v10999_v6  ;;  %v11087_v33 = vld [vmem:[%s14868_s3 + $0x120] ss:$8 sps:$4 sm:$0xff]   ;;  %v11050_v6 = vld [vmem:[%s14868_s3 + $0xf4] ss:$8 sps:$4 sm:$0xff]  }
 0x3f1   :  { %7783 = vmatpush2.bf16.msra.mxu0 %v10994_v61  ;;  %v11092_v61 = vld [vmem:[%s14868_s3 + $0x114] ss:$8 sps:$4 sm:$0xff]  }
 0x3f2   :  { %7824 = vmatpush2.bf16.msra.mxu1 %v10997_v56  ;;  %7784 = vmatprep.subr.bf16.mxu0 %v11002_v10  ;;  %v11048_v56 = vld [vmem:[%s14868_s3 + $0xf0] ss:$8 sps:$4 sm:$0xff]  }
 0x3f3   :  { %7825 = vmatprep.subr.bf16.mxu1 %v11005_v19  ;;  %v11090_v10 = vld [vmem:[%s14868_s3 + $0x110] ss:$8 sps:$4 sm:$0xff]   ;;  %v11053_v19 = vld [vmem:[%s14868_s3 + $0xe4] ss:$8 sps:$4 sm:$0xff]  }
 0x3f5   :  { %7785 = vmatpush2.bf16.msra.mxu0 %v11000_v2  ;;  %v11095_v2 = vld [vmem:[%s14868_s3 + $0x104] ss:$8 sps:$4 sm:$0xff]  }
 0x3f6   :  { %7826 = vmatpush2.bf16.msra.mxu1 %v11003_v48  ;;  %7786 = vmatprep.subr.bf16.mxu0 %v11008_v0  ;;  %v11051_v48 = vld [vmem:[%s14868_s3 + $0xe0] ss:$8 sps:$4 sm:$0xff]  }
 0x3f7   :  { %7827 = vmatprep.subr.bf16.mxu1 %v11011_v3  ;;  %v11093_v0 = vld [vmem:[%s14868_s3 + $0x100] ss:$8 sps:$4 sm:$0xff]   ;;  %v11056_v3 = vld [vmem:[%s14868_s3 + $0xd4] ss:$8 sps:$4 sm:$0xff]  }
 0x3f9   :  { %7787 = vmatpush2.bf16.msra.mxu0 %v11006_v5  ;;  %v11098_v5 = vld [vmem:[%s14868_s3 + $0x1f4] ss:$8 sps:$4 sm:$0xff]  }
 0x3fa   :  { %7828 = vmatpush2.bf16.msra.mxu1 %v11009_v36  ;;  %7788 = vmatprep.subr.bf16.mxu0 %v11014_v7  ;;  %v11054_v36 = vld [vmem:[%s14868_s3 + $0xd0] ss:$8 sps:$4 sm:$0xff]  }
 0x3fb   :  { %7829 = vmatprep.subr.bf16.mxu1 %v11017_v9  ;;  %v11096_v7 = vld [vmem:[%s14868_s3 + $0x1f0] ss:$8 sps:$4 sm:$0xff]   ;;  %v11059_v9 = vld [vmem:[%s14868_s3 + $0xc4] ss:$8 sps:$4 sm:$0xff]  }
 0x3fd   :  { %7789 = vmatpush2.bf16.msra.mxu0 %v11012_v16  ;;  %v11101_v16 = vld [vmem:[%s14868_s3 + $0x1e4] ss:$8 sps:$4 sm:$0xff]  }
 0x3fe   :  { %7830 = vmatpush2.bf16.msra.mxu1 %v11015_v30  ;;  %7790 = vmatprep.subr.bf16.mxu0 %v11020_v51  ;;  %v11057_v30 = vld [vmem:[%s14868_s3 + $0xc0] ss:$8 sps:$4 sm:$0xff]  }
 0x3ff   :  { %7831 = vmatprep.subr.bf16.mxu1 %v11023_v21  ;;  %v11099_v51 = vld [vmem:[%s14868_s3 + $0x1e0] ss:$8 sps:$4 sm:$0xff]   ;;  %v11062_v21 = vld [vmem:[%s14868_s3 + $0xb4] ss:$8 sps:$4 sm:$0xff]  }
 0x401   :  { %7791 = vmatpush2.bf16.msra.mxu0 %v11018_v17  ;;  %v11104_v17 = vld [vmem:[%s14868_s3 + $0x1d4] ss:$8 sps:$4 sm:$0xff]  }
 0x402   :  { %7832 = vmatpush2.bf16.msra.mxu1 %v11021_v22  ;;  %8246 = vmatprep.subr.bf16.mxu0 %v11026_v37  ;;  %v11060_v22 = vld [vmem:[%s14868_s3 + $0xb0] ss:$8 sps:$4 sm:$0xff]  }
 0x403   :  { %8287 = vmatprep.subr.bf16.mxu1 %v11074_v41  ;;  %v11102_v37 = vld [vmem:[%s14868_s3 + $0x1d0] ss:$8 sps:$4 sm:$0xff]  }
 0x404   :  { %v7548_v4 = vpop.f32.mrf.mxu0  ;;  %7793 = vmatmul.mubr.bf16.vlgmr.msra.gmra.mxu0 %v13017_v29 }
 0x405   :  { %v7589_v34 = vpop.f32.mrf.mxu1  ;;  %7834 = vmatmul.mubr.bf16.vlgmr.msra.gmra.mxu1 %v13039_v62  ;;  %v7549_v54 = vadd.f32 %v7548_v4, %v14479_v13  ;;  %8247 = vmatpush1.bf16.msra.mxu0 %v11024_v39  ;;  %v11107_v39 = vld [vmem:[%s14868_s3 + $0x1c4] ss:$8 sps:$4 sm:$0xff]   ;;  %v11068_v4 = vld [vmem:[%s14868_s3 + $0x94] ss:$8 sps:$4 sm:$0xff]  }
 0x406   :  { %8278 = vmatprep.mubr.bf16.mxu0 %v7847_v50  ;;  %v7550_v46 = vpop.f32.mrf.mxu0  ;;  %8248 = vmatprep.subr.bf16.mxu0 %v11029_v27  ;;  %v11063_v27 = vld [vmem:[%s14868_s3 + $0xa0] ss:$8 sps:$4 sm:$0xff]  }
 0x407   :  { %v7591_v12 = vpop.f32.mrf.mxu1  ;;  %v14667_v58 = vadd.f32 %v7589_v34, %v7549_v54  ;;  %v7551_v29 = vadd.f32 %v7550_v46, %v14484_v59  ;;  %v11072_v59 = vld [vmem:[%s14868_s3 + $0x170] ss:$8 sps:$4 sm:$0xff]   ;;  %v11105_v50 = vld [vmem:[%s14868_s3 + $0x1c0] ss:$8 sps:$4 sm:$0xff]   ;;  %v11110_v34 = vld [vmem:[%s14868_s3 + $0x1b4] ss:$8 sps:$4 sm:$0xff]  }
 0x408   :  { %v7552_v62 = vpop.f32.mrf.mxu0  ;;  %8288 = vmatpush1.bf16.msra.mxu1 %v11072_v59  ;;  %v11066_v54 = vld [vmem:[%s14868_s3 + $0x90] ss:$8 sps:$4 sm:$0xff]   ;;  %v11071_v46 = vld [vmem:[%s14868_s3 + $0x84] ss:$8 sps:$4 sm:$0xff]   ;;  %v11116_v59 = vld [vmem:[%s14868_s3 + $0x194] ss:$8 sps:$4 sm:$0xff]  }
 0x409   :  { %v7593_v18 = vpop.f32.mrf.mxu1  ;;  %v14670_v13 = vadd.f32 %v7591_v12, %v7551_v29  ;;  %8249 = vmatpush1.bf16.msra.mxu0 %v11027_v31  ;;  %8289 = vmatprep.subr.bf16.mxu1 %v11077_v55  ;;  %v11108_v31 = vld [vmem:[%s14868_s3 + $0x1b0] ss:$8 sps:$4 sm:$0xff]   ;;  %v11069_v12 = vld [vmem:[%s14868_s3 + $0x80] ss:$8 sps:$4 sm:$0xff]   ;;  %v11113_v62 = vld [vmem:[%s14868_s3 + $0x1a4] ss:$8 sps:$4 sm:$0xff]  }
 0x40a   :  { %v7553_v14 = vpop.f32.mrf.mxu0  ;;  %8250 = vmatprep.subr.bf16.mxu0 %v11032_v35  ;;  %v7842_v35 = vmax.f32 %v13668_v42, 0.0  ;;  %v11111_v18 = vld [vmem:[%s14868_s3 + $0x1a0] ss:$8 sps:$4 sm:$0xff]  }
 0x40b   :  { %v7594_v38 = vpop.f32.mrf.mxu1 }
 0x40c   :  { %8290 = vmatpush1.bf16.msra.mxu1 %v11075_v28  ;;  %v7846_v29 = vpack.c.bf16 %v7842_v35, %v7842_v35 }
 0x40d   :  { %8251 = vmatpush1.bf16.msra.mxu0 %v11030_v26  ;;  %8291 = vmatprep.subr.bf16.mxu1 %v11080_v63 }
 0x40e   :  { %8252 = vmatprep.subr.bf16.mxu0 %v11035_v47 }
 0x410   :  { %8292 = vmatpush1.bf16.msra.mxu1 %v11078_v25  ;;  %v11119_v25 = vld [vmem:[%s14868_s3 + $0x184] ss:$8 sps:$4 sm:$0xff]  }
 0x411   :  { %8253 = vmatpush1.bf16.msra.mxu0 %v11033_v24  ;;  %8293 = vmatprep.subr.bf16.mxu1 %v11083_v11  ;;  %v11114_v24 = vld [vmem:[%s14868_s3 + $0x190] ss:$8 sps:$4 sm:$0xff]  }
 0x412   :  { %8254 = vmatprep.subr.bf16.mxu0 %v11038_v53 }
 0x414   :  { %8294 = vmatpush1.bf16.msra.mxu1 %v11081_v40 }
 0x415   :  { %8255 = vmatpush1.bf16.msra.mxu0 %v11036_v43  ;;  %8295 = vmatprep.subr.bf16.mxu1 %v11086_v1 }
 0x416   :  { %8256 = vmatprep.subr.bf16.mxu0 %v11041_v32  ;;  %v11117_v32 = vld [vmem:[%s14868_s3 + $0x180] ss:$8 sps:$4 sm:$0xff]  }
 0x418   :  { %8296 = vmatpush1.bf16.msra.mxu1 %v11084_v49 }
 0x419   :  { %8257 = vmatpush1.bf16.msra.mxu0 %v11039_v15  ;;  %8297 = vmatprep.subr.bf16.mxu1 %v11089_v60 }
 0x41a   :  { %8258 = vmatprep.subr.bf16.mxu0 %v11044_v44 }
 0x41c   :  { %8298 = vmatpush1.bf16.msra.mxu1 %v11087_v33 }
 0x41d   :  { %8259 = vmatpush1.bf16.msra.mxu0 %v11042_v23  ;;  %8299 = vmatprep.subr.bf16.mxu1 %v11092_v61 }
 0x41e   :  { %8260 = vmatprep.subr.bf16.mxu0 %v11047_v8 }
 0x420   :  { %8300 = vmatpush1.bf16.msra.mxu1 %v11090_v10 }
 0x421   :  { %8261 = vmatpush1.bf16.msra.mxu0 %v11045_v52  ;;  %8301 = vmatprep.subr.bf16.mxu1 %v11095_v2 }
 0x422   :  { %8262 = vmatprep.subr.bf16.mxu0 %v11050_v6 }
 0x424   :  { %8302 = vmatpush1.bf16.msra.mxu1 %v11093_v0 }
 0x425   :  { %8263 = vmatpush2.bf16.msra.mxu0 %v11048_v56  ;;  %8303 = vmatprep.subr.bf16.mxu1 %v11098_v5 }
 0x426   :  { %8264 = vmatprep.subr.bf16.mxu0 %v11053_v19 }
 0x428   :  { %8304 = vmatpush2.bf16.msra.mxu1 %v11096_v7 }
 0x429   :  { %8265 = vmatpush2.bf16.msra.mxu0 %v11051_v48  ;;  %8305 = vmatprep.subr.bf16.mxu1 %v11101_v16 }
 0x42a   :  { %8266 = vmatprep.subr.bf16.mxu0 %v11056_v3 }
 0x42c   :  { %8306 = vmatpush2.bf16.msra.mxu1 %v11099_v51 }
 0x42d   :  { %8267 = vmatpush2.bf16.msra.mxu0 %v11054_v36  ;;  %8307 = vmatprep.subr.bf16.mxu1 %v11104_v17 }
 0x42e   :  { %8268 = vmatprep.subr.bf16.mxu0 %v11059_v9 }
 0x430   :  { %8308 = vmatpush2.bf16.msra.mxu1 %v11102_v37 }
 0x431   :  { %8269 = vmatpush2.bf16.msra.mxu0 %v11057_v30  ;;  %8309 = vmatprep.subr.bf16.mxu1 %v11107_v39 }
 0x432   :  { %8270 = vmatprep.subr.bf16.mxu0 %v11062_v21 }
 0x434   :  { %8310 = vmatpush2.bf16.msra.mxu1 %v11105_v50 }
 0x435   :  { %8271 = vmatpush2.bf16.msra.mxu0 %v11060_v22  ;;  %8311 = vmatprep.subr.bf16.mxu1 %v11110_v34  ;;  %v8330_v34 = vld [vmem:[%s14870_s5] sm:$0x3] }
 0x436   :  { %8272 = vmatprep.subr.bf16.mxu0 %v11065_v20  ;;  %v7914_v20 = vld [vmem:[%s14869_s4] sm:$0x3] }
 0x437   :  { %v7919_v39 = vrot.slane %v7914_v20, %v12106_v57 }
 0x438   :  { %8312 = vmatpush2.bf16.msra.mxu1 %v11108_v31 }
 0x439   :  { %8273 = vmatpush2.bf16.msra.mxu0 %v11063_v27  ;;  %8313 = vmatprep.subr.bf16.mxu1 %v11113_v62  ;;  %v7923_v27 = vrot.slane %v7914_v20, %v12119_v45  ;;  %v8339_v62 = vrot.slane %v8330_v34, %v12119_v45 }
 0x43a   :  { %8274 = vmatprep.subr.bf16.mxu0 %v11068_v4 }
 0x43c   :  { %8314 = vmatpush2.bf16.msra.mxu1 %v11111_v18 }
 0x43d   :  { %8275 = vmatpush2.bf16.msra.mxu0 %v11066_v54  ;;  %8315 = vmatprep.subr.bf16.mxu1 %v11116_v59  ;;  %v9486_v59 = vld [vmem:[#allocation2] ss:$0 sm:$0xff] }
 0x43e   :  { %8276 = vmatprep.subr.bf16.mxu0 %v11071_v46 }
 0x440   :  { %8316 = vmatpush2.bf16.msra.mxu1 %v11114_v24 }
 0x441   :  { %8277 = vmatpush2.bf16.msra.mxu0 %v11069_v12  ;;  %8317 = vmatprep.subr.bf16.mxu1 %v11119_v25 }
 0x444   :  { %v7630_v26 = vpop.f32.mrf.mxu0  ;;  %8279 = vmatmul.mubr.bf16.vlgmr.msra.gmra.mxu0 %v7846_v29  ;;  %8318 = vmatpush2.bf16.msra.mxu1 %v11117_v32  ;;  %v8335_v29 = vrot.slane %v8330_v34, %v12106_v57 }
 0x445   :  { %v7671_v14 = vpop.f32.mrf.mxu1  ;;  %v7631_v38 = vadd.f32 %v7630_v26, %v14667_v58 }
 0x446   :  { %v7632_v47 = vpop.f32.mrf.mxu0 }
 0x447   :  { %v7673_v42 = vpop.f32.mrf.mxu1  ;;  %v7672_v41 = vadd.f32 %v7671_v14, %v7631_v38  ;;  %v7633_v55 = vadd.f32 %v7632_v47, %v14670_v13 }
 0x448   :  { %v7634_v28 = vpop.f32.mrf.mxu0 }
 0x449   :  { %v7675_v53 = vpop.f32.mrf.mxu1  ;;  %v7674_v63 = vadd.f32 %v7673_v42, %v7633_v55 }
 0x44a   :  { %v7635_v58 = vpop.f32.mrf.mxu0 }
 0x44b   :  { %v7676_v43 = vpop.f32.mrf.mxu1 }
 0x484   :  { %v7712_v13 = vpop.f32.mrf.mxu0 }
 0x485   :  { %v7753_v11 = vpop.f32.mrf.mxu1  ;;  %v7713_v15 = vadd.f32 %v7712_v13, %v7672_v41 }
 0x486   :  { %v7714_v40 = vpop.f32.mrf.mxu0 }
 0x487   :  { %v7755_v44 = vpop.f32.mrf.mxu1  ;;  %v7754_v1 = vadd.f32 %v7753_v11, %v7713_v15  ;;  %v7715_v52 = vadd.f32 %v7714_v40, %v7674_v63 }
 0x488   :  { %v7716_v23 = vpop.f32.mrf.mxu0 }
 0x489   :  { %v7757_v49 = vpop.f32.mrf.mxu1  ;;  %v7756_v61 = vadd.f32 %v7755_v44, %v7715_v52 }
 0x48a   :  { %v7717_v8 = vpop.f32.mrf.mxu0 }
 0x48b   :  { %v7758_v60 = vpop.f32.mrf.mxu1 }
 0x4c4   :  { %v7794_v33 = vpop.f32.mrf.mxu0 }
 0x4c5   :  { %v7835_v6 = vpop.f32.mrf.mxu1  ;;  %v7795_v56 = vadd.f32 %v7794_v33, %v7754_v1 }
 0x4c6   :  { %v7796_v10 = vpop.f32.mrf.mxu0 }
 0x4c7   :  { %v7837_v19 = vpop.f32.mrf.mxu1  ;;  %v7836_v2 = vadd.f32 %v7835_v6, %v7795_v56  ;;  %v7797_v48 = vadd.f32 %v7796_v10, %v7756_v61 }
 0x4c8   :  { %v7798_v0 = vpop.f32.mrf.mxu0 }
 0x4c9   :  { %v7839_v3 = vpop.f32.mrf.mxu1  ;;  %v7838_v5 = vadd.f32 %v7837_v19, %v7797_v48  ;;  %v7844_v36 = vmax.f32 %v7836_v2, 0.0 }
 0x4ca   :  { %v7799_v7 = vpop.f32.mrf.mxu0 }
 0x4cb   :  { %v7840_v9 = vpop.f32.mrf.mxu1  ;;  %v7845_v16 = vmax.f32 %v7838_v5, 0.0  ;;  %v7848_v51 = vpack.c.bf16 %v7844_v36, %v7844_v36 }
 0x4cd   :  { %v7849_v30 = vpack.c.bf16 %v7845_v16, %v7845_v16 }
 0x4cf   :  { %8319 = vmatprep.mubr.bf16.mxu1 %v7849_v30 }
 0x4d0   :  { %8320 = vmatmul.mubr.bf16.vlgmr.msra.gmra.mxu1 %v7848_v51 }
 0x504   :  { %v8280_v21 = vpop.f32.mrf.mxu0 }
 0x505   :  { %v8281_v50 = vadd.f32 %v8280_v21, %v7919_v39 }
 0x506   :  { %v8282_v17 = vpop.f32.mrf.mxu0 }
 0x507   :  { %v8283_v54 = vadd.f32 %v8282_v17, %v7923_v27 }
 0x508   :  { %v8284_v22 = vpop.f32.mrf.mxu0 }
 0x50a   :  { %v8285_v37 = vpop.f32.mrf.mxu0 }
 0x590   :  { %v8321_v4 = vpop.f32.mrf.mxu1 }
 0x591   :  { %v8322_v31 = vadd.f32 %v8321_v4, %v8281_v50 }
 0x592   :  { %v8323_v46 = vpop.f32.mrf.mxu1 }
 0x593   :  { %v8328_v12 = vmax.f32 %v8322_v31, 0.0  ;;  %v8324_v35 = vadd.f32 %v8323_v46, %v8283_v54 }
 0x594   :  { %v8325_v18 = vpop.f32.mrf.mxu1 }
 0x595   :  { %v8329_v26 = vmax.f32 %v8324_v35, 0.0  ;;  %v8342_v38 = vmul.f32 %v8335_v29, %v8328_v12 }
 0x596   :  { %v8326_v14 = vpop.f32.mrf.mxu1 }
 0x597   :  { %v8343_v47 = vmul.f32 %v8339_v62, %v8329_v26 }
 0x599   :  { %v8344_v42 = vadd.f32 %v8343_v47, %v8342_v38 }
 0x59b   :  { %8345 = vadd.xlane.f32.xlu0 %v8344_v42 }
 0x624   :  { %v8346_v41 = vpop.xlane.xlu0 %8345 }
 0x625   :  { %v8354_v55 = vadd.f32 %v9486_v59, %v8346_v41 }
 0x627   :  { %8356 = vst.msk [vmem:[#allocation3] sm:$0xff] %vm8355_vm0, %v8354_v55 }
 0x62e   :  { %v8375_v24 = vld [vmem:[#allocation3] sm:$0x3] }
 0x62f   :  { %8376 = vst [vmem:[%s14872_s7] sm:$0x3] %v8375_v24 }

</bundles_post_ra>
